<compile_context>
chip_gen: v6e
topology: v6e:2x2x1
jax: 0.10.0
libtpu: 0.0.40
codegen_flags: <defaults>
</compile_context>

<pallas_src>
import functools

import jax
import jax.numpy as jnp
from jax.experimental import pallas as pl
from jax.experimental.pallas import tpu as pltpu

LANE = 128
EPS = 1e-5
VMEM_LIMIT = 32 * 1024 * 1024  # conservative: fits v7x's scoped VMEM as well


def _round_up(x, m):
    return (x + m - 1) // m * m


# ----------------------------------------------------------------------------
# Pallas kernels
# ----------------------------------------------------------------------------
def _conv3x3_relu_stats_kernel(x_ref, w_ref, b_ref, scale_ref, shift_ref,
                               o_ref, stats_ref, pad_ref, col_ref, *, H, W):
    """One batch element: out = relu(conv3x3(x*scale + shift) + b).
    Also emits per-channel sum / sum-of-squares of the output (BatchNorm stats)."""
    ci = x_ref.shape[-1]
    co = o_ref.shape[-1]

    # Structural zero halo: written once; the scratch persists across the batch grid
    # and the interior is fully overwritten every step.
    @pl.when(pl.program_id(0) == 0)
    def _():
        pad_ref[...] = jnp.zeros(pad_ref.shape, pad_ref.dtype)

    # Folded input affine (previous BN normalize + broadcast time embedding),
    # applied exactly once per element, in f32.
    pad_ref[1:H + 1, 1:W + 1, :] = (
        x_ref[0].astype(jnp.float32) * scale_ref[...] + shift_ref[...])

    # im2col: copy the 9 shifted windows once into a bf16 scratch.  Stores are
    # full-sublane-extent (aligned) per-tap lane blocks; shifted reads stay on the
    # f32 padded scratch.
    # TODO(synk): a bf16 padded scratch would also drop these per-tap casts but needs
    # packed-dtype sublane-unaligned stores.
    for t in range(9):
        dy, dx = t // 3, t % 3
        col_ref[:, :, t * ci:(t + 1) * ci] = (
            pad_ref[dy:dy + H, dx:dx + W, :].astype(jnp.bfloat16))

    # One deep MXU matmul (K = 9*Ci) instead of 9 shallow per-tap matmuls.
    acc = jnp.dot(col_ref[...].reshape(H * W, 9 * ci), w_ref[...],
                  preferred_element_type=jnp.float32)
    h = jnp.maximum(acc + b_ref[...], 0.0)                      # bias + ReLU epilogue
    o_ref[0] = h.reshape(H, W, co).astype(o_ref.dtype)

    # Per-batch partial BatchNorm statistics as one (2, Co) store
    # (row 0 = sum, row 1 = sum of squares).
    stats_ref[0] = jnp.concatenate(
        [jnp.sum(h, axis=0, keepdims=True),
         jnp.sum(h * h, axis=0, keepdims=True)], axis=0)


def _conv2x2_kernel(q_ref, w_ref, b_ref, o_ref, *, Ho, Wo):
    """2x2 stride-1 conv over a space-to-depth input == 4x4 stride-2 conv."""
    c4 = q_ref.shape[-1]
    co = o_ref.shape[-1]
    acc = None
    for t in range(4):
        a, b = t // 2, t % 2
        win = q_ref[0, a:a + Ho, b:b + Wo, :].reshape(Ho * Wo, c4).astype(jnp.bfloat16)
        d = jnp.dot(win, w_ref[t], preferred_element_type=jnp.float32)
        acc = d if acc is None else acc + d
    o_ref[0] = (acc + b_ref[...]).reshape(Ho, Wo, co).astype(o_ref.dtype)


# ----------------------------------------------------------------------------
# Pallas wrappers
# ----------------------------------------------------------------------------
def conv3x3_relu_stats(x, w_flat, bias, scale, shift):
    """x:(N,H,W,Ci) bf16, w_flat:(9*Ci,Co) bf16, bias:(1,Co) f32,
    scale:(1,1,Ci) f32, shift:(N,1,Ci) f32 -> (out:(N,H,W,Co) bf16, stats:(N,2,Co) f32)."""
    N, H, W, Ci = x.shape
    Co = w_flat.shape[-1]
    kernel = functools.partial(_conv3x3_relu_stats_kernel, H=H, W=W)
    flops = 2 * N * H * W * 9 * Ci * Co
    bytes_accessed = 2 * (x.size + w_flat.size + N * H * W * Co) + 4 * N * 2 * Co
    return pl.pallas_call(
        kernel,
        out_shape=(
            jax.ShapeDtypeStruct((N, H, W, Co), jnp.bfloat16),
            jax.ShapeDtypeStruct((N, 2, Co), jnp.float32),
        ),
        grid=(N,),
        in_specs=[
            pl.BlockSpec((1, H, W, Ci), lambda n: (n, 0, 0, 0)),
            pl.BlockSpec((9 * Ci, Co), lambda n: (0, 0)),      # weights stay resident
            pl.BlockSpec((1, Co), lambda n: (0, 0)),
            pl.BlockSpec((1, 1, Ci), lambda n: (0, 0, 0)),
            pl.BlockSpec((1, 1, Ci), lambda n: (n, 0, 0)),     # per-batch shift (+temb)
        ],
        out_specs=(
            pl.BlockSpec((1, H, W, Co), lambda n: (n, 0, 0, 0)),
            pl.BlockSpec((1, 2, Co), lambda n: (n, 0, 0)),
        ),
        scratch_shapes=[
            pltpu.VMEM((H + 2, W + 2, Ci), jnp.float32),       # zero-padded activation
            pltpu.VMEM((H, W, 9 * Ci), jnp.bfloat16),          # im2col matmul operand
        ],
        compiler_params=pltpu.CompilerParams(
            # TODO(synk): pltpu.CORE_PARALLEL here on v7x to split the batch across TCs.
            dimension_semantics=("parallel",),
            vmem_limit_bytes=VMEM_LIMIT,
        ),
        cost_estimate=pl.CostEstimate(flops=flops, transcendentals=0,
                                      bytes_accessed=bytes_accessed),
    )(x, w_flat, bias, scale, shift)


def conv4x4_s2_via_s2d(q, w_taps, bias):
    """q:(N,Ho+1,Wo+1,4*C) f32 space-to-depth of the padded normalized input,
    w_taps:(4,4*C,Co) bf16, bias:(1,Co) f32 -> (N,Ho,Wo,Co) bf16."""
    N, Hq, Wq, C4 = q.shape
    Co = w_taps.shape[-1]
    Ho, Wo = Hq - 1, Wq - 1
    kernel = functools.partial(_conv2x2_kernel, Ho=Ho, Wo=Wo)
    flops = 2 * N * Ho * Wo * 4 * C4 * Co
    bytes_accessed = 4 * q.size + 2 * (w_taps.size + N * Ho * Wo * Co)
    return pl.pallas_call(
        kernel,
        out_shape=jax.ShapeDtypeStruct((N, Ho, Wo, Co), jnp.bfloat16),
        grid=(N,),
        in_specs=[
            pl.BlockSpec((1, Hq, Wq, C4), lambda n: (n, 0, 0, 0)),
            pl.BlockSpec((4, C4, Co), lambda n: (0, 0, 0)),
            pl.BlockSpec((1, Co), lambda n: (0, 0)),
        ],
        out_specs=pl.BlockSpec((1, Ho, Wo, Co), lambda n: (n, 0, 0, 0)),
        compiler_params=pltpu.CompilerParams(
            dimension_semantics=("parallel",),
            vmem_limit_bytes=VMEM_LIMIT,
        ),
        cost_estimate=pl.CostEstimate(flops=flops, transcendentals=0,
                                      bytes_accessed=bytes_accessed),
    )(q, w_taps, bias)


# ----------------------------------------------------------------------------
# One-time weight repacking (hoisted out of the jitted hot path)
# ----------------------------------------------------------------------------
def _pad_to(a, shape, value=0.0):
    pads = [(0, s - d) for d, s in zip(a.shape, shape)]
    return jnp.pad(a, pads, constant_values=value)


def prepare_params(params):
    out_ch, in_ch = params["conv1_w"].shape[:2]
    tdim = params["lin_w"].shape[1]
    cp = _round_up(out_ch, LANE)     # lane-dense output channels
    cin_p = _round_up(in_ch, 8)      # sublane-friendly conv1 input channels

    def conv3_flat(w, ci_p, co_p):
        # im2col row order: (3*dy + dx) * ci_p + ci  -> matches the kernel scratch.
        co, ci, kh, kw = w.shape
        w = _pad_to(w, (co_p, ci_p, kh, kw))
        return (jnp.transpose(w, (2, 3, 1, 0))
                .reshape(kh * kw * ci_p, co_p).astype(jnp.bfloat16))

    # 4x4 stride-2 conv -> 4 taps over the space-to-depth input:
    #   wq[a*2+b][(p*2+q)*C + ci, co] = W[co, ci, 2a+p, 2b+q]
    tw = jnp.transpose(_pad_to(params["tr_w"], (cp, cp, 4, 4)), (2, 3, 1, 0))  # (ky,kx,ci,co)
    taps = []
    for a in (0, 1):
        for b in (0, 1):
            taps.append(jnp.concatenate(
                [tw[2 * a + p, 2 * b + q] for p in (0, 1) for q in (0, 1)], axis=0))
    wq = jnp.stack(taps, axis=0).astype(jnp.bfloat16)                          # (4, 4*cp, cp)

    vec = lambda v, fill=0.0: _pad_to(v, (cp,), fill).astype(jnp.float32)
    return {
        "w1": conv3_flat(params["conv1_w"], cin_p, cp),
        "b1": vec(params["conv1_b"]).reshape(1, cp),
        "w2": conv3_flat(params["conv2_w"], cp, cp),
        "b2": vec(params["conv2_b"]).reshape(1, cp),
        "wq": wq,
        "bq": vec(params["tr_b"]).reshape(1, cp),
        "lin_w": _pad_to(params["lin_w"].T, (tdim, cp)).astype(jnp.float32),
        "lin_b": vec(params["lin_b"]).reshape(1, cp),
        "g1": vec(params["bn1_gamma"], 1.0),
        "bt1": vec(params["bn1_beta"]),
        "g2": vec(params["bn2_gamma"], 1.0),
        "bt2": vec(params["bn2_beta"]),
    }


# ----------------------------------------------------------------------------
# Block forward (up=False path)
# ----------------------------------------------------------------------------
def block_forward(prep, x_nchw, t, *, out_ch, eps=EPS):
    w1 = prep["w1"]
    cin_p, cp = w1.shape[0] // 9, w1.shape[1]
    N, c_in, H, W = x_nchw.shape
    assert H % 2 == 0 and W % 2 == 0

    # NCHW -> NHWC, channel-pad, bf16 matmul operands.
    x = jnp.transpose(x_nchw, (0, 2, 3, 1))
    x = jnp.pad(x, ((0, 0), (0, 0), (0, 0), (0, cin_p - c_in))).astype(jnp.bfloat16)

    # ---- h1 = relu(conv1(x)); BN1 statistics ride along with the conv ----
    one_sc = jnp.ones((1, 1, cin_p), jnp.float32)
    zero_sh = jnp.zeros((N, 1, cin_p), jnp.float32)
    h1, st1 = conv3x3_relu_stats(x, w1, prep["b1"], one_sc, zero_sh)

    cnt = float(N * H * W)
    s1 = jnp.sum(st1, axis=0)                                   # (2, cp)
    mean1 = s1[0] / cnt
    # NOTE: E[x^2]-E[x]^2 in f32, clamped at 0 (training-mode biased variance).
    var1 = jnp.maximum(s1[1] / cnt - mean1 * mean1, 0.0)
    scale1 = prep["g1"] * jax.lax.rsqrt(var1 + eps)             # (cp,)

    # ---- time MLP (tiny: fused XLA) folded into conv2's per-batch input shift ----
    temb = jnp.maximum(t @ prep["lin_w"] + prep["lin_b"], 0.0)  # (N, cp)
    shift1 = (prep["bt1"] - mean1 * scale1)[None, :] + temb     # (N, cp)

    # ---- h2 = relu(conv2(bn1(h1) + temb)) with the affine folded in-kernel ----
    h2, st2 = conv3x3_relu_stats(h1, prep["w2"], prep["b2"],
                                 scale1.reshape(1, 1, cp), shift1.reshape(N, 1, cp))

    s2 = jnp.sum(st2, axis=0)
    mean2 = s2[0] / cnt
    var2 = jnp.maximum(s2[1] / cnt - mean2 * mean2, 0.0)
    scale2 = prep["g2"] * jax.lax.rsqrt(var2 + eps)
    shift2 = prep["bt2"] - mean2 * scale2

    # ---- transform: 4x4 stride-2 conv as a 2x2 conv over space-to-depth input ----
    # BN2 normalize + zero-pad + space-to-depth fuse into one XLA layout pass.
    # TODO(synk): folding BN2 + space-to-depth fully into the transform kernel (bf16 q)
    # needs stride-2 / packed-unaligned in-kernel loads.
    h2n = h2.astype(jnp.float32) * scale2 + shift2
    p = jnp.pad(h2n, ((0, 0), (1, 1), (1, 1), (0, 0)))
    hq, wqd = (H + 2) // 2, (W + 2) // 2
    q = p.reshape(N, hq, 2, wqd, 2, cp).transpose(0, 1, 3, 2, 4, 5).reshape(N, hq, wqd, 4 * cp)

    out = conv4x4_s2_via_s2d(q, prep["wq"], prep["bq"])         # (N, H//2, W//2, cp) bf16
    out = out[..., :out_ch].astype(jnp.float32)                 # de-pad channels
    return jnp.transpose(out, (0, 3, 1, 2))                     # NCHW


# ----------------------------------------------------------------------------
# Deterministic parameter construction
# ----------------------------------------------------------------------------
def init_params(key, in_ch, out_ch, time_emb_dim):
    ks = jax.random.split(key, 8)
    return {
        "conv1_w": 0.1 * jax.random.normal(ks[0], (out_ch, in_ch, 3, 3), jnp.float32),
        "conv1_b": 0.1 * jax.random.normal(ks[1], (out_ch,), jnp.float32),
        "conv2_w": 0.1 * jax.random.normal(ks[2], (out_ch, out_ch, 3, 3), jnp.float32),
        "conv2_b": 0.1 * jax.random.normal(ks[3], (out_ch,), jnp.float32),
        "tr_w":    0.1 * jax.random.normal(ks[4], (out_ch, out_ch, 4, 4), jnp.float32),
        "tr_b":    0.1 * jax.random.normal(ks[5], (out_ch,), jnp.float32),
        "lin_w":   0.1 * jax.random.normal(ks[6], (out_ch, time_emb_dim), jnp.float32),
        "lin_b":   0.1 * jax.random.normal(ks[7], (out_ch,), jnp.float32),
        "bn1_gamma": jnp.ones((out_ch,), jnp.float32),
        "bn1_beta":  jnp.zeros((out_ch,), jnp.float32),
        "bn2_gamma": jnp.ones((out_ch,), jnp.float32),
        "bn2_beta":  jnp.zeros((out_ch,), jnp.float32),
    }


if __name__ == "__main__":
    N, IN_CH, OUT_CH, T_DIM, HW = 2, 4, 8, 32, 16

    key = jax.random.PRNGKey(0)
    kx, kt, kp = jax.random.split(key, 3)
    x = jax.random.normal(kx, (N, IN_CH, HW, HW), jnp.float32)   # NCHW input
    t = jax.random.normal(kt, (N, T_DIM), jnp.float32)
    params = init_params(kp, IN_CH, OUT_CH, T_DIM)

    prep = prepare_params(params)                 # weight repack hoisted out of jit
    fwd = jax.jit(functools.partial(block_forward, out_ch=OUT_CH))
    out = jax.block_until_ready(fwd(prep, x, t))

    assert out.shape == (N, OUT_CH, HW // 2, HW // 2), out.shape
    assert bool(jnp.all(jnp.isfinite(out)))
    print("KERNEL_OK")
</pallas_src>

<mosaic_0001>
module attributes {stable_mosaic.version = 11 : i64} {
  func.func @_conv3x3_relu_stats_kernel(%arg0: i32, %arg1: memref<1x16x16x8xbf16, #tpu.memory_space<vmem>>, %arg2: memref<72x128xbf16, #tpu.memory_space<vmem>>, %arg3: memref<1x128xf32, #tpu.memory_space<vmem>>, %arg4: memref<1x1x8xf32, #tpu.memory_space<vmem>>, %arg5: memref<1x1x8xf32, #tpu.memory_space<vmem>>, %arg6: memref<1x16x16x128xbf16, #tpu.memory_space<vmem>>, %arg7: memref<1x2x128xf32, #tpu.memory_space<vmem>>, %arg8: memref<18x18x8xf32, #tpu.memory_space<vmem>>, %arg9: memref<16x16x72xbf16, #tpu.memory_space<vmem>>) attributes {dimension_semantics = [#tpu.dimension_semantics<parallel>], iteration_bounds = array<i64: 2>, scalar_prefetch = 0 : i64, scratch_operands = 2 : i64, tpu.core_type = #tpu.core_type<tc>, window_params = [{transform_indices = @transform_0, window_bounds = array<i64: 1, 16, 16, 8>}, {pipeline_mode = #tpu.pipeline_mode<synchronous>, transform_indices = @transform_1, window_bounds = array<i64: 72, 128>}, {pipeline_mode = #tpu.pipeline_mode<synchronous>, transform_indices = @transform_2, window_bounds = array<i64: 1, 128>}, {pipeline_mode = #tpu.pipeline_mode<synchronous>, transform_indices = @transform_3, window_bounds = array<i64: 1, 1, 8>}, {transform_indices = @transform_4, window_bounds = array<i64: 1, 1, 8>}, {transform_indices = @transform_5, window_bounds = array<i64: 1, 16, 16, 128>}, {transform_indices = @transform_6, window_bounds = array<i64: 1, 2, 128>}]} {
    %c0_i32 = arith.constant 0 : i32
    %0 = arith.cmpi eq, %arg0, %c0_i32 : i32
    %1 = arith.extui %0 : i1 to i32
    %c0_i32_0 = arith.constant 0 : i32
    %2 = arith.cmpi ne, %1, %c0_i32_0 : i32
    scf.if %2 {
      %cst_74 = arith.constant 0.000000e+00 : f32
      %63 = vector.broadcast %cst_74 : f32 to vector<18x18x8xf32>
      %c0_75 = arith.constant 0 : index
      %c0_76 = arith.constant 0 : index
      %c0_77 = arith.constant 0 : index
      %64 = vector.load %arg8[%c0_75, %c0_76, %c0_77] : memref<18x18x8xf32, #tpu.memory_space<vmem>>, vector<18x18x8xf32>
      tpu.vector_store %arg8[%c0_75, %c0_76, %c0_77], %63 {strides = array<i32>} : memref<18x18x8xf32, #tpu.memory_space<vmem>>, vector<18x18x8xf32>,
    } else {
    }
    %c0 = arith.constant 0 : index
    %c0_1 = arith.constant 0 : index
    %c0_2 = arith.constant 0 : index
    %c0_3 = arith.constant 0 : index
    %3 = vector.load %arg1[%c0, %c0_1, %c0_2, %c0_3] : memref<1x16x16x8xbf16, #tpu.memory_space<vmem>>, vector<1x16x16x8xbf16>
    %4 = vector.shape_cast %3 : vector<1x16x16x8xbf16> to vector<16x16x8xbf16>
    %5 = arith.extf %4 : vector<16x16x8xbf16> to vector<16x16x8xf32>
    %c0_4 = arith.constant 0 : index
    %c0_5 = arith.constant 0 : index
    %c0_6 = arith.constant 0 : index
    %6 = vector.load %arg4[%c0_4, %c0_5, %c0_6] : memref<1x1x8xf32, #tpu.memory_space<vmem>>, vector<1x1x8xf32>
    %7 = vector.broadcast %6 : vector<1x1x8xf32> to vector<16x16x8xf32>
    %8 = arith.mulf %5, %7 : vector<16x16x8xf32>
    %c0_7 = arith.constant 0 : index
    %c0_8 = arith.constant 0 : index
    %c0_9 = arith.constant 0 : index
    %9 = vector.load %arg5[%c0_7, %c0_8, %c0_9] : memref<1x1x8xf32, #tpu.memory_space<vmem>>, vector<1x1x8xf32>
    %10 = vector.broadcast %9 : vector<1x1x8xf32> to vector<16x16x8xf32>
    %11 = arith.addf %8, %10 : vector<16x16x8xf32>
    %c1 = arith.constant 1 : index
    %c1_10 = arith.constant 1 : index
    %c0_11 = arith.constant 0 : index
    %12 = vector.load %arg8[%c1, %c1_10, %c0_11] : memref<18x18x8xf32, #tpu.memory_space<vmem>>, vector<16x16x8xf32>
    tpu.vector_store %arg8[%c1, %c1_10, %c0_11], %11 {strides = array<i32>} : memref<18x18x8xf32, #tpu.memory_space<vmem>>, vector<16x16x8xf32>,
    %c0_12 = arith.constant 0 : index
    %c0_13 = arith.constant 0 : index
    %c0_14 = arith.constant 0 : index
    %13 = vector.load %arg8[%c0_12, %c0_13, %c0_14] : memref<18x18x8xf32, #tpu.memory_space<vmem>>, vector<16x16x8xf32>
    %14 = arith.truncf %13 : vector<16x16x8xf32> to vector<16x16x8xbf16>
    %c0_15 = arith.constant 0 : index
    %c0_16 = arith.constant 0 : index
    %c0_17 = arith.constant 0 : index
    %15 = vector.load %arg9[%c0_15, %c0_16, %c0_17] : memref<16x16x72xbf16, #tpu.memory_space<vmem>>, vector<16x16x8xbf16>
    tpu.vector_store %arg9[%c0_15, %c0_16, %c0_17], %14 {strides = array<i32>} : memref<16x16x72xbf16, #tpu.memory_space<vmem>>, vector<16x16x8xbf16>,
    %c0_18 = arith.constant 0 : index
    %c1_19 = arith.constant 1 : index
    %c0_20 = arith.constant 0 : index
    %16 = vector.load %arg8[%c0_18, %c1_19, %c0_20] : memref<18x18x8xf32, #tpu.memory_space<vmem>>, vector<16x16x8xf32>
    %17 = arith.truncf %16 : vector<16x16x8xf32> to vector<16x16x8xbf16>
    %c0_21 = arith.constant 0 : index
    %c0_22 = arith.constant 0 : index
    %c8 = arith.constant 8 : index
    %18 = vector.load %arg9[%c0_21, %c0_22, %c8] : memref<16x16x72xbf16, #tpu.memory_space<vmem>>, vector<16x16x8xbf16>
    tpu.vector_store %arg9[%c0_21, %c0_22, %c8], %17 {strides = array<i32>} : memref<16x16x72xbf16, #tpu.memory_space<vmem>>, vector<16x16x8xbf16>,
    %c0_23 = arith.constant 0 : index
    %c2 = arith.constant 2 : index
    %c0_24 = arith.constant 0 : index
    %19 = vector.load %arg8[%c0_23, %c2, %c0_24] : memref<18x18x8xf32, #tpu.memory_space<vmem>>, vector<16x16x8xf32>
    %20 = arith.truncf %19 : vector<16x16x8xf32> to vector<16x16x8xbf16>
    %c0_25 = arith.constant 0 : index
    %c0_26 = arith.constant 0 : index
    %c16 = arith.constant 16 : index
    %21 = vector.load %arg9[%c0_25, %c0_26, %c16] : memref<16x16x72xbf16, #tpu.memory_space<vmem>>, vector<16x16x8xbf16>
    tpu.vector_store %arg9[%c0_25, %c0_26, %c16], %20 {strides = array<i32>} : memref<16x16x72xbf16, #tpu.memory_space<vmem>>, vector<16x16x8xbf16>,
    %c1_27 = arith.constant 1 : index
    %c0_28 = arith.constant 0 : index
    %c0_29 = arith.constant 0 : index
    %22 = vector.load %arg8[%c1_27, %c0_28, %c0_29] : memref<18x18x8xf32, #tpu.memory_space<vmem>>, vector<16x16x8xf32>
    %23 = arith.truncf %22 : vector<16x16x8xf32> to vector<16x16x8xbf16>
    %c0_30 = arith.constant 0 : index
    %c0_31 = arith.constant 0 : index
    %c24 = arith.constant 24 : index
    %24 = vector.load %arg9[%c0_30, %c0_31, %c24] : memref<16x16x72xbf16, #tpu.memory_space<vmem>>, vector<16x16x8xbf16>
    tpu.vector_store %arg9[%c0_30, %c0_31, %c24], %23 {strides = array<i32>} : memref<16x16x72xbf16, #tpu.memory_space<vmem>>, vector<16x16x8xbf16>,
    %c1_32 = arith.constant 1 : index
    %c1_33 = arith.constant 1 : index
    %c0_34 = arith.constant 0 : index
    %25 = vector.load %arg8[%c1_32, %c1_33, %c0_34] : memref<18x18x8xf32, #tpu.memory_space<vmem>>, vector<16x16x8xf32>
    %26 = arith.truncf %25 : vector<16x16x8xf32> to vector<16x16x8xbf16>
    %c0_35 = arith.constant 0 : index
    %c0_36 = arith.constant 0 : index
    %c32 = arith.constant 32 : index
    %27 = vector.load %arg9[%c0_35, %c0_36, %c32] : memref<16x16x72xbf16, #tpu.memory_space<vmem>>, vector<16x16x8xbf16>
    tpu.vector_store %arg9[%c0_35, %c0_36, %c32], %26 {strides = array<i32>} : memref<16x16x72xbf16, #tpu.memory_space<vmem>>, vector<16x16x8xbf16>,
    %c1_37 = arith.constant 1 : index
    %c2_38 = arith.constant 2 : index
    %c0_39 = arith.constant 0 : index
    %28 = vector.load %arg8[%c1_37, %c2_38, %c0_39] : memref<18x18x8xf32, #tpu.memory_space<vmem>>, vector<16x16x8xf32>
    %29 = arith.truncf %28 : vector<16x16x8xf32> to vector<16x16x8xbf16>
    %c0_40 = arith.constant 0 : index
    %c0_41 = arith.constant 0 : index
    %c40 = arith.constant 40 : index
    %30 = vector.load %arg9[%c0_40, %c0_41, %c40] : memref<16x16x72xbf16, #tpu.memory_space<vmem>>, vector<16x16x8xbf16>
    tpu.vector_store %arg9[%c0_40, %c0_41, %c40], %29 {strides = array<i32>} : memref<16x16x72xbf16, #tpu.memory_space<vmem>>, vector<16x16x8xbf16>,
    %c2_42 = arith.constant 2 : index
    %c0_43 = arith.constant 0 : index
    %c0_44 = arith.constant 0 : index
    %31 = vector.load %arg8[%c2_42, %c0_43, %c0_44] : memref<18x18x8xf32, #tpu.memory_space<vmem>>, vector<16x16x8xf32>
    %32 = arith.truncf %31 : vector<16x16x8xf32> to vector<16x16x8xbf16>
    %c0_45 = arith.constant 0 : index
    %c0_46 = arith.constant 0 : index
    %c48 = arith.constant 48 : index
    %33 = vector.load %arg9[%c0_45, %c0_46, %c48] : memref<16x16x72xbf16, #tpu.memory_space<vmem>>, vector<16x16x8xbf16>
    tpu.vector_store %arg9[%c0_45, %c0_46, %c48], %32 {strides = array<i32>} : memref<16x16x72xbf16, #tpu.memory_space<vmem>>, vector<16x16x8xbf16>,
    %c2_47 = arith.constant 2 : index
    %c1_48 = arith.constant 1 : index
    %c0_49 = arith.constant 0 : index
    %34 = vector.load %arg8[%c2_47, %c1_48, %c0_49] : memref<18x18x8xf32, #tpu.memory_space<vmem>>, vector<16x16x8xf32>
    %35 = arith.truncf %34 : vector<16x16x8xf32> to vector<16x16x8xbf16>
    %c0_50 = arith.constant 0 : index
    %c0_51 = arith.constant 0 : index
    %c56 = arith.constant 56 : index
    %36 = vector.load %arg9[%c0_50, %c0_51, %c56] : memref<16x16x72xbf16, #tpu.memory_space<vmem>>, vector<16x16x8xbf16>
    tpu.vector_store %arg9[%c0_50, %c0_51, %c56], %35 {strides = array<i32>} : memref<16x16x72xbf16, #tpu.memory_space<vmem>>, vector<16x16x8xbf16>,
    %c2_52 = arith.constant 2 : index
    %c2_53 = arith.constant 2 : index
    %c0_54 = arith.constant 0 : index
    %37 = vector.load %arg8[%c2_52, %c2_53, %c0_54] : memref<18x18x8xf32, #tpu.memory_space<vmem>>, vector<16x16x8xf32>
    %38 = arith.truncf %37 : vector<16x16x8xf32> to vector<16x16x8xbf16>
    %c0_55 = arith.constant 0 : index
    %c0_56 = arith.constant 0 : index
    %c64 = arith.constant 64 : index
    %39 = vector.load %arg9[%c0_55, %c0_56, %c64] : memref<16x16x72xbf16, #tpu.memory_space<vmem>>, vector<16x16x8xbf16>
    tpu.vector_store %arg9[%c0_55, %c0_56, %c64], %38 {strides = array<i32>} : memref<16x16x72xbf16, #tpu.memory_space<vmem>>, vector<16x16x8xbf16>,
    %c0_57 = arith.constant 0 : index
    %c0_58 = arith.constant 0 : index
    %c0_59 = arith.constant 0 : index
    %40 = vector.load %arg9[%c0_57, %c0_58, %c0_59] : memref<16x16x72xbf16, #tpu.memory_space<vmem>>, vector<16x16x72xbf16>
    %41 = vector.shape_cast %40 : vector<16x16x72xbf16> to vector<256x72xbf16>
    %c0_60 = arith.constant 0 : index
    %c0_61 = arith.constant 0 : index
    %42 = vector.load %arg2[%c0_60, %c0_61] : memref<72x128xbf16, #tpu.memory_space<vmem>>, vector<72x128xbf16>
    %cst = arith.constant dense<0.000000e+00> : vector<256x128xf32>
    %43 = tpu.matmul %41, %42, %cst {dimension_numbers = #tpu.dot_dimension_numbers<[1], [0], [0], [1], [0, 0, 1, 1], [], []>} : vector<256x72xbf16>, vector<72x128xbf16>, vector<256x128xf32> -> vector<256x128xf32>
    %c0_62 = arith.constant 0 : index
    %c0_63 = arith.constant 0 : index
    %44 = vector.load %arg3[%c0_62, %c0_63] : memref<1x128xf32, #tpu.memory_space<vmem>>, vector<1x128xf32>
    %45 = vector.broadcast %44 : vector<1x128xf32> to vector<256x128xf32>
    %46 = arith.addf %43, %45 : vector<256x128xf32>
    %cst_64 = arith.constant 0.000000e+00 : f32
    %47 = vector.broadcast %cst_64 : f32 to vector<256x128xf32>
    %48 = arith.maximumf %46, %47 : vector<256x128xf32>
    %49 = vector.shape_cast %48 : vector<256x128xf32> to vector<16x16x128xf32>
    %50 = arith.truncf %49 : vector<16x16x128xf32> to vector<16x16x128xbf16>
    %c0_65 = arith.constant 0 : index
    %c0_66 = arith.constant 0 : index
    %c0_67 = arith.constant 0 : index
    %c0_68 = arith.constant 0 : index
    %51 = vector.load %arg6[%c0_65, %c0_66, %c0_67, %c0_68] : memref<1x16x16x128xbf16, #tpu.memory_space<vmem>>, vector<1x16x16x128xbf16>
    %52 = vector.shape_cast %51 : vector<1x16x16x128xbf16> to vector<16x16x128xbf16>
    %53 = vector.shape_cast %50 : vector<16x16x128xbf16> to vector<1x16x16x128xbf16>
    tpu.vector_store %arg6[%c0_65, %c0_66, %c0_67, %c0_68], %53 {strides = array<i32>} : memref<1x16x16x128xbf16, #tpu.memory_space<vmem>>, vector<1x16x16x128xbf16>,
    %cst_69 = arith.constant dense<0.000000e+00> : vector<128xf32>
    %54 = vector.multi_reduction <add>, %48, %cst_69 [0] : vector<256x128xf32> to vector<128xf32>
    %55 = vector.shape_cast %54 : vector<128xf32> to vector<1x128xf32>
    %56 = arith.mulf %48, %48 : vector<256x128xf32>
    %cst_70 = arith.constant dense<0.000000e+00> : vector<128xf32>
    %57 = vector.multi_reduction <add>, %56, %cst_70 [0] : vector<256x128xf32> to vector<128xf32>
    %58 = vector.shape_cast %57 : vector<128xf32> to vector<1x128xf32>
    %59 = tpu.concatenate %55, %58 in 0 : vector<1x128xf32>, vector<1x128xf32> -> vector<2x128xf32>
    %c0_71 = arith.constant 0 : index
    %c0_72 = arith.constant 0 : index
    %c0_73 = arith.constant 0 : index
    %60 = vector.load %arg7[%c0_71, %c0_72, %c0_73] : memref<1x2x128xf32, #tpu.memory_space<vmem>>, vector<1x2x128xf32>
    %61 = vector.shape_cast %60 : vector<1x2x128xf32> to vector<2x128xf32>
    %62 = vector.shape_cast %59 : vector<2x128xf32> to vector<1x2x128xf32>
    tpu.vector_store %arg7[%c0_71, %c0_72, %c0_73], %62 {strides = array<i32>} : memref<1x2x128xf32, #tpu.memory_space<vmem>>, vector<1x2x128xf32>,
    return
  }
  func.func @transform_0(%arg0: i32) -> (i32, i32, i32, i32) {
    %c0_i32 = arith.constant 0 : i32
    %c0_i32_0 = arith.constant 0 : i32
    %c0_i32_1 = arith.constant 0 : i32
    %c0_i32_2 = arith.constant 0 : i32
    return %arg0, %c0_i32, %c0_i32_0, %c0_i32_1 : i32, i32, i32, i32
  }
  func.func @transform_1(%arg0: i32) -> (i32, i32) {
    %c0_i32 = arith.constant 0 : i32
    %c0_i32_0 = arith.constant 0 : i32
    %c0_i32_1 = arith.constant 0 : i32
    return %c0_i32, %c0_i32_0 : i32, i32
  }
  func.func @transform_2(%arg0: i32) -> (i32, i32) {
    %c0_i32 = arith.constant 0 : i32
    %c0_i32_0 = arith.constant 0 : i32
    %c0_i32_1 = arith.constant 0 : i32
    return %c0_i32, %c0_i32_0 : i32, i32
  }
  func.func @transform_3(%arg0: i32) -> (i32, i32, i32) {
    %c0_i32 = arith.constant 0 : i32
    %c0_i32_0 = arith.constant 0 : i32
    %c0_i32_1 = arith.constant 0 : i32
    %c0_i32_2 = arith.constant 0 : i32
    return %c0_i32, %c0_i32_0, %c0_i32_1 : i32, i32, i32
  }
  func.func @transform_4(%arg0: i32) -> (i32, i32, i32) {
    %c0_i32 = arith.constant 0 : i32
    %c0_i32_0 = arith.constant 0 : i32
    %c0_i32_1 = arith.constant 0 : i32
    return %arg0, %c0_i32, %c0_i32_0 : i32, i32, i32
  }
  func.func @transform_5(%arg0: i32) -> (i32, i32, i32, i32) {
    %c0_i32 = arith.constant 0 : i32
    %c0_i32_0 = arith.constant 0 : i32
    %c0_i32_1 = arith.constant 0 : i32
    %c0_i32_2 = arith.constant 0 : i32
    return %arg0, %c0_i32, %c0_i32_0, %c0_i32_1 : i32, i32, i32, i32
  }
  func.func @transform_6(%arg0: i32) -> (i32, i32, i32) {
    %c0_i32 = arith.constant 0 : i32
    %c0_i32_0 = arith.constant 0 : i32
    %c0_i32_1 = arith.constant 0 : i32
    return %arg0, %c0_i32, %c0_i32_0 : i32, i32, i32
  }
}

module attributes {stable_mosaic.version = 11 : i64} {
  func.func @_conv3x3_relu_stats_kernel(%arg0: i32, %arg1: memref<1x16x16x128xbf16, #tpu.memory_space<vmem>>, %arg2: memref<1152x128xbf16, #tpu.memory_space<vmem>>, %arg3: memref<1x128xf32, #tpu.memory_space<vmem>>, %arg4: memref<1x1x128xf32, #tpu.memory_space<vmem>>, %arg5: memref<1x1x128xf32, #tpu.memory_space<vmem>>, %arg6: memref<1x16x16x128xbf16, #tpu.memory_space<vmem>>, %arg7: memref<1x2x128xf32, #tpu.memory_space<vmem>>, %arg8: memref<18x18x128xf32, #tpu.memory_space<vmem>>, %arg9: memref<16x16x1152xbf16, #tpu.memory_space<vmem>>) attributes {dimension_semantics = [#tpu.dimension_semantics<parallel>], iteration_bounds = array<i64: 2>, scalar_prefetch = 0 : i64, scratch_operands = 2 : i64, tpu.core_type = #tpu.core_type<tc>, window_params = [{transform_indices = @transform_0, window_bounds = array<i64: 1, 16, 16, 128>}, {pipeline_mode = #tpu.pipeline_mode<synchronous>, transform_indices = @transform_1, window_bounds = array<i64: 1152, 128>}, {pipeline_mode = #tpu.pipeline_mode<synchronous>, transform_indices = @transform_2, window_bounds = array<i64: 1, 128>}, {pipeline_mode = #tpu.pipeline_mode<synchronous>, transform_indices = @transform_3, window_bounds = array<i64: 1, 1, 128>}, {transform_indices = @transform_4, window_bounds = array<i64: 1, 1, 128>}, {transform_indices = @transform_5, window_bounds = array<i64: 1, 16, 16, 128>}, {transform_indices = @transform_6, window_bounds = array<i64: 1, 2, 128>}]} {
    %c0_i32 = arith.constant 0 : i32
    %0 = arith.cmpi eq, %arg0, %c0_i32 : i32
    %1 = arith.extui %0 : i1 to i32
    %c0_i32_0 = arith.constant 0 : i32
    %2 = arith.cmpi ne, %1, %c0_i32_0 : i32
    scf.if %2 {
      %cst_74 = arith.constant 0.000000e+00 : f32
      %63 = vector.broadcast %cst_74 : f32 to vector<18x18x128xf32>
      %c0_75 = arith.constant 0 : index
      %c0_76 = arith.constant 0 : index
      %c0_77 = arith.constant 0 : index
      %64 = vector.load %arg8[%c0_75, %c0_76, %c0_77] : memref<18x18x128xf32, #tpu.memory_space<vmem>>, vector<18x18x128xf32>
      tpu.vector_store %arg8[%c0_75, %c0_76, %c0_77], %63 {strides = array<i32>} : memref<18x18x128xf32, #tpu.memory_space<vmem>>, vector<18x18x128xf32>,
    } else {
    }
    %c0 = arith.constant 0 : index
    %c0_1 = arith.constant 0 : index
    %c0_2 = arith.constant 0 : index
    %c0_3 = arith.constant 0 : index
    %3 = vector.load %arg1[%c0, %c0_1, %c0_2, %c0_3] : memref<1x16x16x128xbf16, #tpu.memory_space<vmem>>, vector<1x16x16x128xbf16>
    %4 = vector.shape_cast %3 : vector<1x16x16x128xbf16> to vector<16x16x128xbf16>
    %5 = arith.extf %4 : vector<16x16x128xbf16> to vector<16x16x128xf32>
    %c0_4 = arith.constant 0 : index
    %c0_5 = arith.constant 0 : index
    %c0_6 = arith.constant 0 : index
    %6 = vector.load %arg4[%c0_4, %c0_5, %c0_6] : memref<1x1x128xf32, #tpu.memory_space<vmem>>, vector<1x1x128xf32>
    %7 = vector.broadcast %6 : vector<1x1x128xf32> to vector<16x16x128xf32>
    %8 = arith.mulf %5, %7 : vector<16x16x128xf32>
    %c0_7 = arith.constant 0 : index
    %c0_8 = arith.constant 0 : index
    %c0_9 = arith.constant 0 : index
    %9 = vector.load %arg5[%c0_7, %c0_8, %c0_9] : memref<1x1x128xf32, #tpu.memory_space<vmem>>, vector<1x1x128xf32>
    %10 = vector.broadcast %9 : vector<1x1x128xf32> to vector<16x16x128xf32>
    %11 = arith.addf %8, %10 : vector<16x16x128xf32>
    %c1 = arith.constant 1 : index
    %c1_10 = arith.constant 1 : index
    %c0_11 = arith.constant 0 : index
    %12 = vector.load %arg8[%c1, %c1_10, %c0_11] : memref<18x18x128xf32, #tpu.memory_space<vmem>>, vector<16x16x128xf32>
    tpu.vector_store %arg8[%c1, %c1_10, %c0_11], %11 {strides = array<i32>} : memref<18x18x128xf32, #tpu.memory_space<vmem>>, vector<16x16x128xf32>,
    %c0_12 = arith.constant 0 : index
    %c0_13 = arith.constant 0 : index
    %c0_14 = arith.constant 0 : index
    %13 = vector.load %arg8[%c0_12, %c0_13, %c0_14] : memref<18x18x128xf32, #tpu.memory_space<vmem>>, vector<16x16x128xf32>
    %14 = arith.truncf %13 : vector<16x16x128xf32> to vector<16x16x128xbf16>
    %c0_15 = arith.constant 0 : index
    %c0_16 = arith.constant 0 : index
    %c0_17 = arith.constant 0 : index
    %15 = vector.load %arg9[%c0_15, %c0_16, %c0_17] : memref<16x16x1152xbf16, #tpu.memory_space<vmem>>, vector<16x16x128xbf16>
    tpu.vector_store %arg9[%c0_15, %c0_16, %c0_17], %14 {strides = array<i32>} : memref<16x16x1152xbf16, #tpu.memory_space<vmem>>, vector<16x16x128xbf16>,
    %c0_18 = arith.constant 0 : index
    %c1_19 = arith.constant 1 : index
    %c0_20 = arith.constant 0 : index
    %16 = vector.load %arg8[%c0_18, %c1_19, %c0_20] : memref<18x18x128xf32, #tpu.memory_space<vmem>>, vector<16x16x128xf32>
    %17 = arith.truncf %16 : vector<16x16x128xf32> to vector<16x16x128xbf16>
    %c0_21 = arith.constant 0 : index
    %c0_22 = arith.constant 0 : index
    %c128 = arith.constant 128 : index
    %18 = vector.load %arg9[%c0_21, %c0_22, %c128] : memref<16x16x1152xbf16, #tpu.memory_space<vmem>>, vector<16x16x128xbf16>
    tpu.vector_store %arg9[%c0_21, %c0_22, %c128], %17 {strides = array<i32>} : memref<16x16x1152xbf16, #tpu.memory_space<vmem>>, vector<16x16x128xbf16>,
    %c0_23 = arith.constant 0 : index
    %c2 = arith.constant 2 : index
    %c0_24 = arith.constant 0 : index
    %19 = vector.load %arg8[%c0_23, %c2, %c0_24] : memref<18x18x128xf32, #tpu.memory_space<vmem>>, vector<16x16x128xf32>
    %20 = arith.truncf %19 : vector<16x16x128xf32> to vector<16x16x128xbf16>
    %c0_25 = arith.constant 0 : index
    %c0_26 = arith.constant 0 : index
    %c256 = arith.constant 256 : index
    %21 = vector.load %arg9[%c0_25, %c0_26, %c256] : memref<16x16x1152xbf16, #tpu.memory_space<vmem>>, vector<16x16x128xbf16>
    tpu.vector_store %arg9[%c0_25, %c0_26, %c256], %20 {strides = array<i32>} : memref<16x16x1152xbf16, #tpu.memory_space<vmem>>, vector<16x16x128xbf16>,
    %c1_27 = arith.constant 1 : index
    %c0_28 = arith.constant 0 : index
    %c0_29 = arith.constant 0 : index
    %22 = vector.load %arg8[%c1_27, %c0_28, %c0_29] : memref<18x18x128xf32, #tpu.memory_space<vmem>>, vector<16x16x128xf32>
    %23 = arith.truncf %22 : vector<16x16x128xf32> to vector<16x16x128xbf16>
    %c0_30 = arith.constant 0 : index
    %c0_31 = arith.constant 0 : index
    %c384 = arith.constant 384 : index
    %24 = vector.load %arg9[%c0_30, %c0_31, %c384] : memref<16x16x1152xbf16, #tpu.memory_space<vmem>>, vector<16x16x128xbf16>
    tpu.vector_store %arg9[%c0_30, %c0_31, %c384], %23 {strides = array<i32>} : memref<16x16x1152xbf16, #tpu.memory_space<vmem>>, vector<16x16x128xbf16>,
    %c1_32 = arith.constant 1 : index
    %c1_33 = arith.constant 1 : index
    %c0_34 = arith.constant 0 : index
    %25 = vector.load %arg8[%c1_32, %c1_33, %c0_34] : memref<18x18x128xf32, #tpu.memory_space<vmem>>, vector<16x16x128xf32>
    %26 = arith.truncf %25 : vector<16x16x128xf32> to vector<16x16x128xbf16>
    %c0_35 = arith.constant 0 : index
    %c0_36 = arith.constant 0 : index
    %c512 = arith.constant 512 : index
    %27 = vector.load %arg9[%c0_35, %c0_36, %c512] : memref<16x16x1152xbf16, #tpu.memory_space<vmem>>, vector<16x16x128xbf16>
    tpu.vector_store %arg9[%c0_35, %c0_36, %c512], %26 {strides = array<i32>} : memref<16x16x1152xbf16, #tpu.memory_space<vmem>>, vector<16x16x128xbf16>,
    %c1_37 = arith.constant 1 : index
    %c2_38 = arith.constant 2 : index
    %c0_39 = arith.constant 0 : index
    %28 = vector.load %arg8[%c1_37, %c2_38, %c0_39] : memref<18x18x128xf32, #tpu.memory_space<vmem>>, vector<16x16x128xf32>
    %29 = arith.truncf %28 : vector<16x16x128xf32> to vector<16x16x128xbf16>
    %c0_40 = arith.constant 0 : index
    %c0_41 = arith.constant 0 : index
    %c640 = arith.constant 640 : index
    %30 = vector.load %arg9[%c0_40, %c0_41, %c640] : memref<16x16x1152xbf16, #tpu.memory_space<vmem>>, vector<16x16x128xbf16>
    tpu.vector_store %arg9[%c0_40, %c0_41, %c640], %29 {strides = array<i32>} : memref<16x16x1152xbf16, #tpu.memory_space<vmem>>, vector<16x16x128xbf16>,
    %c2_42 = arith.constant 2 : index
    %c0_43 = arith.constant 0 : index
    %c0_44 = arith.constant 0 : index
    %31 = vector.load %arg8[%c2_42, %c0_43, %c0_44] : memref<18x18x128xf32, #tpu.memory_space<vmem>>, vector<16x16x128xf32>
    %32 = arith.truncf %31 : vector<16x16x128xf32> to vector<16x16x128xbf16>
    %c0_45 = arith.constant 0 : index
    %c0_46 = arith.constant 0 : index
    %c768 = arith.constant 768 : index
    %33 = vector.load %arg9[%c0_45, %c0_46, %c768] : memref<16x16x1152xbf16, #tpu.memory_space<vmem>>, vector<16x16x128xbf16>
    tpu.vector_store %arg9[%c0_45, %c0_46, %c768], %32 {strides = array<i32>} : memref<16x16x1152xbf16, #tpu.memory_space<vmem>>, vector<16x16x128xbf16>,
    %c2_47 = arith.constant 2 : index
    %c1_48 = arith.constant 1 : index
    %c0_49 = arith.constant 0 : index
    %34 = vector.load %arg8[%c2_47, %c1_48, %c0_49] : memref<18x18x128xf32, #tpu.memory_space<vmem>>, vector<16x16x128xf32>
    %35 = arith.truncf %34 : vector<16x16x128xf32> to vector<16x16x128xbf16>
    %c0_50 = arith.constant 0 : index
    %c0_51 = arith.constant 0 : index
    %c896 = arith.constant 896 : index
    %36 = vector.load %arg9[%c0_50, %c0_51, %c896] : memref<16x16x1152xbf16, #tpu.memory_space<vmem>>, vector<16x16x128xbf16>
    tpu.vector_store %arg9[%c0_50, %c0_51, %c896], %35 {strides = array<i32>} : memref<16x16x1152xbf16, #tpu.memory_space<vmem>>, vector<16x16x128xbf16>,
    %c2_52 = arith.constant 2 : index
    %c2_53 = arith.constant 2 : index
    %c0_54 = arith.constant 0 : index
    %37 = vector.load %arg8[%c2_52, %c2_53, %c0_54] : memref<18x18x128xf32, #tpu.memory_space<vmem>>, vector<16x16x128xf32>
    %38 = arith.truncf %37 : vector<16x16x128xf32> to vector<16x16x128xbf16>
    %c0_55 = arith.constant 0 : index
    %c0_56 = arith.constant 0 : index
    %c1024 = arith.constant 1024 : index
    %39 = vector.load %arg9[%c0_55, %c0_56, %c1024] : memref<16x16x1152xbf16, #tpu.memory_space<vmem>>, vector<16x16x128xbf16>
    tpu.vector_store %arg9[%c0_55, %c0_56, %c1024], %38 {strides = array<i32>} : memref<16x16x1152xbf16, #tpu.memory_space<vmem>>, vector<16x16x128xbf16>,
    %c0_57 = arith.constant 0 : index
    %c0_58 = arith.constant 0 : index
    %c0_59 = arith.constant 0 : index
    %40 = vector.load %arg9[%c0_57, %c0_58, %c0_59] : memref<16x16x1152xbf16, #tpu.memory_space<vmem>>, vector<16x16x1152xbf16>
    %41 = vector.shape_cast %40 : vector<16x16x1152xbf16> to vector<256x1152xbf16>
    %c0_60 = arith.constant 0 : index
    %c0_61 = arith.constant 0 : index
    %42 = vector.load %arg2[%c0_60, %c0_61] : memref<1152x128xbf16, #tpu.memory_space<vmem>>, vector<1152x128xbf16>
    %cst = arith.constant dense<0.000000e+00> : vector<256x128xf32>
    %43 = tpu.matmul %41, %42, %cst {dimension_numbers = #tpu.dot_dimension_numbers<[1], [0], [0], [1], [0, 0, 1, 1], [], []>} : vector<256x1152xbf16>, vector<1152x128xbf16>, vector<256x128xf32> -> vector<256x128xf32>
    %c0_62 = arith.constant 0 : index
    %c0_63 = arith.constant 0 : index
    %44 = vector.load %arg3[%c0_62, %c0_63] : memref<1x128xf32, #tpu.memory_space<vmem>>, vector<1x128xf32>
    %45 = vector.broadcast %44 : vector<1x128xf32> to vector<256x128xf32>
    %46 = arith.addf %43, %45 : vector<256x128xf32>
    %cst_64 = arith.constant 0.000000e+00 : f32
    %47 = vector.broadcast %cst_64 : f32 to vector<256x128xf32>
    %48 = arith.maximumf %46, %47 : vector<256x128xf32>
    %49 = vector.shape_cast %48 : vector<256x128xf32> to vector<16x16x128xf32>
    %50 = arith.truncf %49 : vector<16x16x128xf32> to vector<16x16x128xbf16>
    %c0_65 = arith.constant 0 : index
    %c0_66 = arith.constant 0 : index
    %c0_67 = arith.constant 0 : index
    %c0_68 = arith.constant 0 : index
    %51 = vector.load %arg6[%c0_65, %c0_66, %c0_67, %c0_68] : memref<1x16x16x128xbf16, #tpu.memory_space<vmem>>, vector<1x16x16x128xbf16>
    %52 = vector.shape_cast %51 : vector<1x16x16x128xbf16> to vector<16x16x128xbf16>
    %53 = vector.shape_cast %50 : vector<16x16x128xbf16> to vector<1x16x16x128xbf16>
    tpu.vector_store %arg6[%c0_65, %c0_66, %c0_67, %c0_68], %53 {strides = array<i32>} : memref<1x16x16x128xbf16, #tpu.memory_space<vmem>>, vector<1x16x16x128xbf16>,
    %cst_69 = arith.constant dense<0.000000e+00> : vector<128xf32>
    %54 = vector.multi_reduction <add>, %48, %cst_69 [0] : vector<256x128xf32> to vector<128xf32>
    %55 = vector.shape_cast %54 : vector<128xf32> to vector<1x128xf32>
    %56 = arith.mulf %48, %48 : vector<256x128xf32>
    %cst_70 = arith.constant dense<0.000000e+00> : vector<128xf32>
    %57 = vector.multi_reduction <add>, %56, %cst_70 [0] : vector<256x128xf32> to vector<128xf32>
    %58 = vector.shape_cast %57 : vector<128xf32> to vector<1x128xf32>
    %59 = tpu.concatenate %55, %58 in 0 : vector<1x128xf32>, vector<1x128xf32> -> vector<2x128xf32>
    %c0_71 = arith.constant 0 : index
    %c0_72 = arith.constant 0 : index
    %c0_73 = arith.constant 0 : index
    %60 = vector.load %arg7[%c0_71, %c0_72, %c0_73] : memref<1x2x128xf32, #tpu.memory_space<vmem>>, vector<1x2x128xf32>
    %61 = vector.shape_cast %60 : vector<1x2x128xf32> to vector<2x128xf32>
    %62 = vector.shape_cast %59 : vector<2x128xf32> to vector<1x2x128xf32>
    tpu.vector_store %arg7[%c0_71, %c0_72, %c0_73], %62 {strides = array<i32>} : memref<1x2x128xf32, #tpu.memory_space<vmem>>, vector<1x2x128xf32>,
    return
  }
  func.func @transform_0(%arg0: i32) -> (i32, i32, i32, i32) {
    %c0_i32 = arith.constant 0 : i32
    %c0_i32_0 = arith.constant 0 : i32
    %c0_i32_1 = arith.constant 0 : i32
    %c0_i32_2 = arith.constant 0 : i32
    return %arg0, %c0_i32, %c0_i32_0, %c0_i32_1 : i32, i32, i32, i32
  }
  func.func @transform_1(%arg0: i32) -> (i32, i32) {
    %c0_i32 = arith.constant 0 : i32
    %c0_i32_0 = arith.constant 0 : i32
    %c0_i32_1 = arith.constant 0 : i32
    return %c0_i32, %c0_i32_0 : i32, i32
  }
  func.func @transform_2(%arg0: i32) -> (i32, i32) {
    %c0_i32 = arith.constant 0 : i32
    %c0_i32_0 = arith.constant 0 : i32
    %c0_i32_1 = arith.constant 0 : i32
    return %c0_i32, %c0_i32_0 : i32, i32
  }
  func.func @transform_3(%arg0: i32) -> (i32, i32, i32) {
    %c0_i32 = arith.constant 0 : i32
    %c0_i32_0 = arith.constant 0 : i32
    %c0_i32_1 = arith.constant 0 : i32
    %c0_i32_2 = arith.constant 0 : i32
    return %c0_i32, %c0_i32_0, %c0_i32_1 : i32, i32, i32
  }
  func.func @transform_4(%arg0: i32) -> (i32, i32, i32) {
    %c0_i32 = arith.constant 0 : i32
    %c0_i32_0 = arith.constant 0 : i32
    %c0_i32_1 = arith.constant 0 : i32
    return %arg0, %c0_i32, %c0_i32_0 : i32, i32, i32
  }
  func.func @transform_5(%arg0: i32) -> (i32, i32, i32, i32) {
    %c0_i32 = arith.constant 0 : i32
    %c0_i32_0 = arith.constant 0 : i32
    %c0_i32_1 = arith.constant 0 : i32
    %c0_i32_2 = arith.constant 0 : i32
    return %arg0, %c0_i32, %c0_i32_0, %c0_i32_1 : i32, i32, i32, i32
  }
  func.func @transform_6(%arg0: i32) -> (i32, i32, i32) {
    %c0_i32 = arith.constant 0 : i32
    %c0_i32_0 = arith.constant 0 : i32
    %c0_i32_1 = arith.constant 0 : i32
    return %arg0, %c0_i32, %c0_i32_0 : i32, i32, i32
  }
}

module attributes {stable_mosaic.version = 11 : i64} {
  func.func @_conv2x2_kernel(%arg0: i32, %arg1: memref<1x9x9x512xf32, #tpu.memory_space<vmem>>, %arg2: memref<4x512x128xbf16, #tpu.memory_space<vmem>>, %arg3: memref<1x128xf32, #tpu.memory_space<vmem>>, %arg4: memref<1x8x8x128xbf16, #tpu.memory_space<vmem>>) attributes {dimension_semantics = [#tpu.dimension_semantics<parallel>], iteration_bounds = array<i64: 2>, scalar_prefetch = 0 : i64, scratch_operands = 0 : i64, tpu.core_type = #tpu.core_type<tc>, window_params = [{transform_indices = @transform_0, window_bounds = array<i64: 1, 9, 9, 512>}, {pipeline_mode = #tpu.pipeline_mode<synchronous>, transform_indices = @transform_1, window_bounds = array<i64: 4, 512, 128>}, {pipeline_mode = #tpu.pipeline_mode<synchronous>, transform_indices = @transform_2, window_bounds = array<i64: 1, 128>}, {transform_indices = @transform_3, window_bounds = array<i64: 1, 8, 8, 128>}]} {
    %c0 = arith.constant 0 : index
    %c0_0 = arith.constant 0 : index
    %c0_1 = arith.constant 0 : index
    %c0_2 = arith.constant 0 : index
    %0 = vector.load %arg1[%c0, %c0_0, %c0_1, %c0_2] : memref<1x9x9x512xf32, #tpu.memory_space<vmem>>, vector<1x8x8x512xf32>
    %1 = vector.shape_cast %0 : vector<1x8x8x512xf32> to vector<8x8x512xf32>
    %2 = vector.shape_cast %1 : vector<8x8x512xf32> to vector<64x512xf32>
    %3 = arith.truncf %2 : vector<64x512xf32> to vector<64x512xbf16>
    %c0_3 = arith.constant 0 : index
    %c0_4 = arith.constant 0 : index
    %c0_5 = arith.constant 0 : index
    %4 = vector.load %arg2[%c0_3, %c0_4, %c0_5] : memref<4x512x128xbf16, #tpu.memory_space<vmem>>, vector<1x512x128xbf16>
    %5 = vector.shape_cast %4 : vector<1x512x128xbf16> to vector<512x128xbf16>
    %cst = arith.constant dense<0.000000e+00> : vector<64x128xf32>
    %6 = tpu.matmul %3, %5, %cst {dimension_numbers = #tpu.dot_dimension_numbers<[1], [0], [0], [1], [0, 0, 1, 1], [], []>} : vector<64x512xbf16>, vector<512x128xbf16>, vector<64x128xf32> -> vector<64x128xf32>
    %c0_6 = arith.constant 0 : index
    %c0_7 = arith.constant 0 : index
    %c1 = arith.constant 1 : index
    %c0_8 = arith.constant 0 : index
    %7 = vector.load %arg1[%c0_6, %c0_7, %c1, %c0_8] : memref<1x9x9x512xf32, #tpu.memory_space<vmem>>, vector<1x8x8x512xf32>
    %8 = vector.shape_cast %7 : vector<1x8x8x512xf32> to vector<8x8x512xf32>
    %9 = vector.shape_cast %8 : vector<8x8x512xf32> to vector<64x512xf32>
    %10 = arith.truncf %9 : vector<64x512xf32> to vector<64x512xbf16>
    %c1_9 = arith.constant 1 : index
    %c0_10 = arith.constant 0 : index
    %c0_11 = arith.constant 0 : index
    %11 = vector.load %arg2[%c1_9, %c0_10, %c0_11] : memref<4x512x128xbf16, #tpu.memory_space<vmem>>, vector<1x512x128xbf16>
    %12 = vector.shape_cast %11 : vector<1x512x128xbf16> to vector<512x128xbf16>
    %cst_12 = arith.constant dense<0.000000e+00> : vector<64x128xf32>
    %13 = tpu.matmul %10, %12, %cst_12 {dimension_numbers = #tpu.dot_dimension_numbers<[1], [0], [0], [1], [0, 0, 1, 1], [], []>} : vector<64x512xbf16>, vector<512x128xbf16>, vector<64x128xf32> -> vector<64x128xf32>
    %14 = arith.addf %6, %13 : vector<64x128xf32>
    %c0_13 = arith.constant 0 : index
    %c1_14 = arith.constant 1 : index
    %c0_15 = arith.constant 0 : index
    %c0_16 = arith.constant 0 : index
    %15 = vector.load %arg1[%c0_13, %c1_14, %c0_15, %c0_16] : memref<1x9x9x512xf32, #tpu.memory_space<vmem>>, vector<1x8x8x512xf32>
    %16 = vector.shape_cast %15 : vector<1x8x8x512xf32> to vector<8x8x512xf32>
    %17 = vector.shape_cast %16 : vector<8x8x512xf32> to vector<64x512xf32>
    %18 = arith.truncf %17 : vector<64x512xf32> to vector<64x512xbf16>
    %c2 = arith.constant 2 : index
    %c0_17 = arith.constant 0 : index
    %c0_18 = arith.constant 0 : index
    %19 = vector.load %arg2[%c2, %c0_17, %c0_18] : memref<4x512x128xbf16, #tpu.memory_space<vmem>>, vector<1x512x128xbf16>
    %20 = vector.shape_cast %19 : vector<1x512x128xbf16> to vector<512x128xbf16>
    %cst_19 = arith.constant dense<0.000000e+00> : vector<64x128xf32>
    %21 = tpu.matmul %18, %20, %cst_19 {dimension_numbers = #tpu.dot_dimension_numbers<[1], [0], [0], [1], [0, 0, 1, 1], [], []>} : vector<64x512xbf16>, vector<512x128xbf16>, vector<64x128xf32> -> vector<64x128xf32>
    %22 = arith.addf %14, %21 : vector<64x128xf32>
    %c0_20 = arith.constant 0 : index
    %c1_21 = arith.constant 1 : index
    %c1_22 = arith.constant 1 : index
    %c0_23 = arith.constant 0 : index
    %23 = vector.load %arg1[%c0_20, %c1_21, %c1_22, %c0_23] : memref<1x9x9x512xf32, #tpu.memory_space<vmem>>, vector<1x8x8x512xf32>
    %24 = vector.shape_cast %23 : vector<1x8x8x512xf32> to vector<8x8x512xf32>
    %25 = vector.shape_cast %24 : vector<8x8x512xf32> to vector<64x512xf32>
    %26 = arith.truncf %25 : vector<64x512xf32> to vector<64x512xbf16>
    %c3 = arith.constant 3 : index
    %c0_24 = arith.constant 0 : index
    %c0_25 = arith.constant 0 : index
    %27 = vector.load %arg2[%c3, %c0_24, %c0_25] : memref<4x512x128xbf16, #tpu.memory_space<vmem>>, vector<1x512x128xbf16>
    %28 = vector.shape_cast %27 : vector<1x512x128xbf16> to vector<512x128xbf16>
    %cst_26 = arith.constant dense<0.000000e+00> : vector<64x128xf32>
    %29 = tpu.matmul %26, %28, %cst_26 {dimension_numbers = #tpu.dot_dimension_numbers<[1], [0], [0], [1], [0, 0, 1, 1], [], []>} : vector<64x512xbf16>, vector<512x128xbf16>, vector<64x128xf32> -> vector<64x128xf32>
    %30 = arith.addf %22, %29 : vector<64x128xf32>
    %c0_27 = arith.constant 0 : index
    %c0_28 = arith.constant 0 : index
    %31 = vector.load %arg3[%c0_27, %c0_28] : memref<1x128xf32, #tpu.memory_space<vmem>>, vector<1x128xf32>
    %32 = vector.broadcast %31 : vector<1x128xf32> to vector<64x128xf32>
    %33 = arith.addf %30, %32 : vector<64x128xf32>
    %34 = vector.shape_cast %33 : vector<64x128xf32> to vector<8x8x128xf32>
    %35 = arith.truncf %34 : vector<8x8x128xf32> to vector<8x8x128xbf16>
    %c0_29 = arith.constant 0 : index
    %c0_30 = arith.constant 0 : index
    %c0_31 = arith.constant 0 : index
    %c0_32 = arith.constant 0 : index
    %36 = vector.load %arg4[%c0_29, %c0_30, %c0_31, %c0_32] : memref<1x8x8x128xbf16, #tpu.memory_space<vmem>>, vector<1x8x8x128xbf16>
    %37 = vector.shape_cast %36 : vector<1x8x8x128xbf16> to vector<8x8x128xbf16>
    %38 = vector.shape_cast %35 : vector<8x8x128xbf16> to vector<1x8x8x128xbf16>
    tpu.vector_store %arg4[%c0_29, %c0_30, %c0_31, %c0_32], %38 {strides = array<i32>} : memref<1x8x8x128xbf16, #tpu.memory_space<vmem>>, vector<1x8x8x128xbf16>,
    return
  }
  func.func @transform_0(%arg0: i32) -> (i32, i32, i32, i32) {
    %c0_i32 = arith.constant 0 : i32
    %c0_i32_0 = arith.constant 0 : i32
    %c0_i32_1 = arith.constant 0 : i32
    %c0_i32_2 = arith.constant 0 : i32
    return %arg0, %c0_i32, %c0_i32_0, %c0_i32_1 : i32, i32, i32, i32
  }
  func.func @transform_1(%arg0: i32) -> (i32, i32, i32) {
    %c0_i32 = arith.constant 0 : i32
    %c0_i32_0 = arith.constant 0 : i32
    %c0_i32_1 = arith.constant 0 : i32
    %c0_i32_2 = arith.constant 0 : i32
    return %c0_i32, %c0_i32_0, %c0_i32_1 : i32, i32, i32
  }
  func.func @transform_2(%arg0: i32) -> (i32, i32) {
    %c0_i32 = arith.constant 0 : i32
    %c0_i32_0 = arith.constant 0 : i32
    %c0_i32_1 = arith.constant 0 : i32
    return %c0_i32, %c0_i32_0 : i32, i32
  }
  func.func @transform_3(%arg0: i32) -> (i32, i32, i32, i32) {
    %c0_i32 = arith.constant 0 : i32
    %c0_i32_0 = arith.constant 0 : i32
    %c0_i32_1 = arith.constant 0 : i32
    %c0_i32_2 = arith.constant 0 : i32
    return %arg0, %c0_i32, %c0_i32_0, %c0_i32_1 : i32, i32, i32, i32
  }
}

</mosaic_0001>

<bundles_post_ra>
// kernel: block_forward.3
= control target key start
LH: loop header
LB: loop body
LE: loop exit
PB: predicated region body
PF: predicated region fallthrough
CT: control target
= control target key end

     0   :  { %s4565_s21 = smov 0   ;;  %s5579_s0 = inlined_call_operand.vmem [shape: bf16[2,16,16,8], index: 0, kind: input, shape index: {}]   ;;  %s5580_s1 = inlined_call_operand.vmem [shape: bf16[72,128], index: 1, kind: input, shape index: {}]   ;;  %s5581_s2 = inlined_call_operand.vmem [shape: f32[1,128], index: 2, kind: input, shape index: {}]   ;;  %s5582_s3 = inlined_call_operand.vmem [shape: f32[1,1,8], index: 3, kind: input, shape index: {}]   ;;  %s5583_s4 = inlined_call_operand.vmem [shape: f32[2,1,8], index: 4, kind: input, shape index: {}]   ;;  %s5584_s5 = inlined_call_operand.vmem [shape: bf16[2,16,16,128], index: 5, kind: output, shape index: {0}]   ;;  %s5585_s6 = inlined_call_operand.vmem [shape: f32[2,2,128], index: 6, kind: output, shape index: {1}]  }
   0x1 LB: > { %s3529_s22 = sadd.s32 4294967295, %s4519_s21   ;;  %p3533_p0 = scmp.ge.s32.totalorder %s4519_s21, 1  ;;  %s4519_s21 = sphi %s4565_s21, %s17_s21  }
   0x2   : > { %p223_p1 = scmp.lt.s32.totalorder %s4519_s21, 3 }
   0x4   : > { %p224_p2 = pnand %p3533_p0, %p223_p1 }
   0x5   : > { %p260_p3 = scmp.lt.s32.totalorder (!%p224_p2), %s3529_s22, 1  ;;  %p3539_p4 = scmp.ne.s32.totalorder (!%p224_p2), %s3529_s22, 0 }
   0x6   : > { %227 = sbr.rel (%p224_p2) target bundleno = 919 (0x397), region = 40 }
   0xb   : > { %s261_s23 = scalar_select %p260_p3, %s3529_s22, 1 }
   0xc   : > { %281 = sbr.rel (%p3539_p4) target bundleno = 45 (0x2d), region = 44 }
   0xd   : > { %s3902_s24 = sshll.u32 %s261_s23, 7  ;;  %s4576_s27 = scalar_lea.vmem %s5583_s4, %s261_s23 }
   0xe   : > { %s4581_s30 = scalar_lea.vmem %s5579_s0, %s3902_s24  ;;  %s4586_s9 = scalar_lea.vmem %s5584_s5, %s3902_s24 }
   0xf   : > { %s3538_s10 = sshll.u32 %s261_s23, 1 }
  0x10   : > { %s4591_s13 = scalar_lea.vmem %s5585_s6, %s3538_s10 }
  0x11   : > { %vm282_vm0 = vcmask 64512   ;;  %vm285_vm1 = vcmask 58368   ;;  %v4521_v0 = vmov 0.0  }
  0x12   : > { %283 = vst.msk [vmem:[#allocation2] sm:$0xff] %vm282_vm0, %v4521_v0  ;;  %284 = vst.msk [vmem:[#allocation2 + $0x8] sm:$0xff] %vm282_vm0, %v4521_v0 }
  0x13   : > { %287 = vst.msk [vmem:[#allocation2 + $0x18] sm:$0xff] %vm282_vm0, %v4521_v0  ;;  %288 = vst.msk [vmem:[#allocation2 + $0x20] sm:$0xff] %vm282_vm0, %v4521_v0 }
  0x14   : > { %290 = vst.msk [vmem:[#allocation2 + $0x30] sm:$0xff] %vm282_vm0, %v4521_v0  ;;  %291 = vst.msk [vmem:[#allocation2 + $0x38] sm:$0xff] %vm282_vm0, %v4521_v0 }
  0x15   : > { %293 = vst.msk [vmem:[#allocation2 + $0x48] sm:$0xff] %vm282_vm0, %v4521_v0  ;;  %294 = vst.msk [vmem:[#allocation2 + $0x50] sm:$0xff] %vm282_vm0, %v4521_v0 }
  0x16   : > { %296 = vst.msk [vmem:[#allocation2 + $0x60] sm:$0xff] %vm282_vm0, %v4521_v0  ;;  %297 = vst.msk [vmem:[#allocation2 + $0x68] sm:$0xff] %vm282_vm0, %v4521_v0 }
  0x17   : > { %299 = vst.msk [vmem:[#allocation2 + $0x78] sm:$0xff] %vm282_vm0, %v4521_v0  ;;  %300 = vst.msk [vmem:[#allocation2 + $0x80] sm:$0xff] %vm282_vm0, %v4521_v0 }
  0x18   : > { %302 = vst.msk [vmem:[#allocation2 + $0x90] sm:$0xff] %vm282_vm0, %v4521_v0  ;;  %303 = vst.msk [vmem:[#allocation2 + $0x98] sm:$0xff] %vm282_vm0, %v4521_v0 }
  0x19   : > { %305 = vst.msk [vmem:[#allocation2 + $0xa8] sm:$0xff] %vm282_vm0, %v4521_v0  ;;  %306 = vst.msk [vmem:[#allocation2 + $0xb0] sm:$0xff] %vm282_vm0, %v4521_v0 }
  0x1a   : > { %308 = vst.msk [vmem:[#allocation2 + $0xc0] sm:$0xff] %vm282_vm0, %v4521_v0  ;;  %309 = vst.msk [vmem:[#allocation2 + $0xc8] sm:$0xff] %vm282_vm0, %v4521_v0 }
  0x1b   : > { %311 = vst.msk [vmem:[#allocation2 + $0xd8] sm:$0xff] %vm282_vm0, %v4521_v0  ;;  %312 = vst.msk [vmem:[#allocation2 + $0xe0] sm:$0xff] %vm282_vm0, %v4521_v0 }
  0x1c   : > { %314 = vst.msk [vmem:[#allocation2 + $0xf0] sm:$0xff] %vm282_vm0, %v4521_v0  ;;  %315 = vst.msk [vmem:[#allocation2 + $0xf8] sm:$0xff] %vm282_vm0, %v4521_v0 }
  0x1d   : > { %317 = vst.msk [vmem:[#allocation2 + $0x108] sm:$0xff] %vm282_vm0, %v4521_v0  ;;  %318 = vst.msk [vmem:[#allocation2 + $0x110] sm:$0xff] %vm282_vm0, %v4521_v0 }
  0x1e   : > { %320 = vst.msk [vmem:[#allocation2 + $0x120] sm:$0xff] %vm282_vm0, %v4521_v0  ;;  %321 = vst.msk [vmem:[#allocation2 + $0x128] sm:$0xff] %vm282_vm0, %v4521_v0 }
  0x1f   : > { %323 = vst.msk [vmem:[#allocation2 + $0x138] sm:$0xff] %vm282_vm0, %v4521_v0  ;;  %324 = vst.msk [vmem:[#allocation2 + $0x140] sm:$0xff] %vm282_vm0, %v4521_v0 }
  0x20   : > { %326 = vst.msk [vmem:[#allocation2 + $0x150] sm:$0xff] %vm282_vm0, %v4521_v0  ;;  %327 = vst.msk [vmem:[#allocation2 + $0x158] sm:$0xff] %vm282_vm0, %v4521_v0 }
  0x21   : > { %329 = vst.msk [vmem:[#allocation2 + $0x168] sm:$0xff] %vm282_vm0, %v4521_v0  ;;  %330 = vst.msk [vmem:[#allocation2 + $0x170] sm:$0xff] %vm282_vm0, %v4521_v0 }
  0x22   : > { %332 = vst.msk [vmem:[#allocation2 + $0x180] sm:$0xff] %vm282_vm0, %v4521_v0  ;;  %333 = vst.msk [vmem:[#allocation2 + $0x188] sm:$0xff] %vm282_vm0, %v4521_v0 }
  0x23   : > { %335 = vst.msk [vmem:[#allocation2 + $0x198] sm:$0xff] %vm282_vm0, %v4521_v0  ;;  %336 = vst.msk [vmem:[#allocation2 + $0x1a0] sm:$0xff] %vm282_vm0, %v4521_v0 }
  0x24   : > { %286 = vst.msk [vmem:[#allocation2 + $0x10] sm:$0x3] %vm285_vm1, %v4521_v0  ;;  %289 = vst.msk [vmem:[#allocation2 + $0x28] sm:$0x3] %vm285_vm1, %v4521_v0 }
  0x25   : > { %292 = vst.msk [vmem:[#allocation2 + $0x40] sm:$0x3] %vm285_vm1, %v4521_v0  ;;  %295 = vst.msk [vmem:[#allocation2 + $0x58] sm:$0x3] %vm285_vm1, %v4521_v0 }
  0x26   : > { %298 = vst.msk [vmem:[#allocation2 + $0x70] sm:$0x3] %vm285_vm1, %v4521_v0  ;;  %301 = vst.msk [vmem:[#allocation2 + $0x88] sm:$0x3] %vm285_vm1, %v4521_v0 }
  0x27   : > { %304 = vst.msk [vmem:[#allocation2 + $0xa0] sm:$0x3] %vm285_vm1, %v4521_v0  ;;  %307 = vst.msk [vmem:[#allocation2 + $0xb8] sm:$0x3] %vm285_vm1, %v4521_v0 }
  0x28   : > { %310 = vst.msk [vmem:[#allocation2 + $0xd0] sm:$0x3] %vm285_vm1, %v4521_v0  ;;  %313 = vst.msk [vmem:[#allocation2 + $0xe8] sm:$0x3] %vm285_vm1, %v4521_v0 }
  0x29   : > { %316 = vst.msk [vmem:[#allocation2 + $0x100] sm:$0x3] %vm285_vm1, %v4521_v0  ;;  %319 = vst.msk [vmem:[#allocation2 + $0x118] sm:$0x3] %vm285_vm1, %v4521_v0 }
  0x2a   : > { %322 = vst.msk [vmem:[#allocation2 + $0x130] sm:$0x3] %vm285_vm1, %v4521_v0  ;;  %325 = vst.msk [vmem:[#allocation2 + $0x148] sm:$0x3] %vm285_vm1, %v4521_v0 }
  0x2b   : > { %328 = vst.msk [vmem:[#allocation2 + $0x160] sm:$0x3] %vm285_vm1, %v4521_v0  ;;  %331 = vst.msk [vmem:[#allocation2 + $0x178] sm:$0x3] %vm285_vm1, %v4521_v0 }
  0x2c   : > { %334 = vst.msk [vmem:[#allocation2 + $0x190] sm:$0x3] %vm285_vm1, %v4521_v0  ;;  %337 = vst.msk [vmem:[#allocation2 + $0x1a8] sm:$0x3] %vm285_vm1, %v4521_v0 }
  0x2d PF: > { %v707_v1 = vld [vmem:[#allocation2 + $0x1] sm:$0xff]  ;;  %v4651_v3 = vld [vmem:[%s5582_s3] ss:$0 sm:$0xff]  ;;  %v708_v7 = vld [vmem:[#allocation2 + $0x9] sm:$0xff]  ;;  %vm481_vm2 = vcmask 64512   ;;  %s4522_s16 = smov 8  }
  0x2e   : > { %v4225_v2 = vld [vmem:[%s4581_s30] sm:$0xff]   ;;  %v3936_v4 = vpack.c.bf16 %v707_v1, %v707_v1  ;;  %v4368_v8 = vld [vmem:[%s4581_s30 + $0x8] sm:$0xff]   ;;  %v3937_v10 = vpack.c.bf16 %v708_v7, %v708_v7  ;;  %v4369_v13 = vld [vmem:[%s4581_s30 + $0x10] sm:$0xff]   ;;  %vm674_vm3 = vcmask 60416   ;;  %s4523_s17 = smov 16   ;;  %vm931_vm4 = vcmask 126016  }
  0x2f   : > { %v4226_v5 = vunpack.c.l.bf16 %v4225_v2  ;;  %v4227_v6 = vunpack.c.h.bf16 %v4225_v2  ;;  %v4655_v9 = vld [vmem:[%s4576_s27] ss:$0 sm:$0xff]  ;;  %v4230_v11 = vunpack.c.l.bf16 %v4368_v8  ;;  %v4231_v12 = vunpack.c.h.bf16 %v4368_v8  ;;  %v4370_v14 = vld [vmem:[%s4581_s30 + $0x18] sm:$0xff]   ;;  %v4372_v28 = vld [vmem:[%s4581_s30 + $0x28] sm:$0xff]   ;;  %s4524_s18 = smov 24   ;;  %s4525_s19 = smov 32  }
  0x30   : > { %835 = vrot.lane.b32.xlu0 %v3936_v4, %s4522_s16  ;;  %v4234_v17 = vunpack.c.l.bf16 %v4369_v13  ;;  %v4235_v18 = vunpack.c.h.bf16 %v4369_v13  ;;  %v4238_v21 = vunpack.c.l.bf16 %v4370_v14  ;;  %v4239_v22 = vunpack.c.h.bf16 %v4370_v14  ;;  %v4371_v23 = vld [vmem:[%s4581_s30 + $0x20] sm:$0xff]   ;;  %v4373_v33 = vld [vmem:[%s4581_s30 + $0x30] sm:$0xff]   ;;  %v4374_v38 = vld [vmem:[%s4581_s30 + $0x38] sm:$0xff]   ;;  %s4526_s20 = smov 40   ;;  %s4527_s22 = smov 48  }
  0x31   : > { %v409_v15 = vmul.f32 %v4226_v5, %v4651_v3  ;;  %v410_v16 = vmul.f32 %v4227_v6, %v4651_v3  ;;  %v411_v19 = vmul.f32 %v4230_v11, %v4651_v3  ;;  %v412_v20 = vmul.f32 %v4231_v12, %v4651_v3  ;;  %v4375_v51 = vld [vmem:[%s4581_s30 + $0x40] sm:$0xff]   ;;  %v4376_v56 = vld [vmem:[%s4581_s30 + $0x48] sm:$0xff]   ;;  %s4528_s28 = smov 56   ;;  %s4529_s11 = smov 64  }
  0x32   : > { %v413_v26 = vmul.f32 %v4234_v17, %v4651_v3  ;;  %v414_v27 = vmul.f32 %v4235_v18, %v4651_v3  ;;  %v415_v31 = vmul.f32 %v4238_v21, %v4651_v3  ;;  %v416_v32 = vmul.f32 %v4239_v22, %v4651_v3  ;;  %v4377_v17 = vld [vmem:[%s4581_s30 + $0x50] sm:$0xff]   ;;  %v4378_v18 = vld [vmem:[%s4581_s30 + $0x58] sm:$0xff]  }
  0x33   : > { %v448_v24 = vadd.f32 %v4655_v9, %v409_v15  ;;  %v449_v25 = vadd.f32 %v4655_v9, %v410_v16  ;;  %v450_v29 = vadd.f32 %v4655_v9, %v411_v19  ;;  %v451_v30 = vadd.f32 %v4655_v9, %v412_v20 }
  0x34   : > { %837 = vrot.lane.b32.xlu0 %v3937_v10, %s4522_s16  ;;  %v452_v34 = vadd.f32 %v4655_v9, %v413_v26  ;;  %v453_v35 = vadd.f32 %v4655_v9, %v414_v27  ;;  %v4242_v36 = vunpack.c.l.bf16 %v4371_v23  ;;  %v4243_v37 = vunpack.c.h.bf16 %v4371_v23  ;;  %v4379_v23 = vld [vmem:[%s4581_s30 + $0x60] sm:$0xff]   ;;  %v4380_v27 = vld [vmem:[%s4581_s30 + $0x68] sm:$0xff]  }
  0x35   : > { %482 = vst.msk [vmem:[#allocation2 + $0x19] sm:$0xff] %vm481_vm2, %v448_v24  ;;  %483 = vst.msk [vmem:[#allocation2 + $0x21] sm:$0xff] %vm481_vm2, %v449_v25  ;;  %v454_v39 = vadd.f32 %v4655_v9, %v415_v31  ;;  %v455_v40 = vadd.f32 %v4655_v9, %v416_v32  ;;  %v4246_v41 = vunpack.c.l.bf16 %v4372_v28  ;;  %v4247_v42 = vunpack.c.h.bf16 %v4372_v28 }
  0x36   : > { %484 = vst.msk [vmem:[#allocation2 + $0x31] sm:$0xff] %vm481_vm2, %v450_v29  ;;  %485 = vst.msk [vmem:[#allocation2 + $0x39] sm:$0xff] %vm481_vm2, %v451_v30  ;;  %v417_v43 = vmul.f32 %v4242_v36, %v4651_v3  ;;  %v418_v44 = vmul.f32 %v4243_v37, %v4651_v3  ;;  %v4250_v45 = vunpack.c.l.bf16 %v4373_v33  ;;  %v4251_v46 = vunpack.c.h.bf16 %v4373_v33 }
  0x37   : > { %486 = vst.msk [vmem:[#allocation2 + $0x49] sm:$0xff] %vm481_vm2, %v452_v34  ;;  %487 = vst.msk [vmem:[#allocation2 + $0x51] sm:$0xff] %vm481_vm2, %v453_v35  ;;  %v419_v47 = vmul.f32 %v4246_v41, %v4651_v3  ;;  %v420_v48 = vmul.f32 %v4247_v42, %v4651_v3  ;;  %v4254_v49 = vunpack.c.l.bf16 %v4374_v38  ;;  %v4255_v50 = vunpack.c.h.bf16 %v4374_v38 }
  0x38   : > { %488 = vst.msk [vmem:[#allocation2 + $0x61] sm:$0xff] %vm481_vm2, %v454_v39  ;;  %489 = vst.msk [vmem:[#allocation2 + $0x69] sm:$0xff] %vm481_vm2, %v455_v40  ;;  %v456_v52 = vadd.f32 %v4655_v9, %v417_v43  ;;  %v457_v53 = vadd.f32 %v4655_v9, %v418_v44  ;;  %v421_v54 = vmul.f32 %v4250_v45, %v4651_v3  ;;  %v4258_v63 = vunpack.c.l.bf16 %v4375_v51 }
  0x39   : > { %v422_v55 = vmul.f32 %v4251_v46, %v4651_v3  ;;  %v458_v57 = vadd.f32 %v4655_v9, %v419_v47  ;;  %v459_v58 = vadd.f32 %v4655_v9, %v420_v48  ;;  %v423_v59 = vmul.f32 %v4254_v49, %v4651_v3  ;;  %v4381_v47 = vld [vmem:[%s4581_s30 + $0x70] sm:$0xff]  }
  0x3a   : > { %v424_v60 = vmul.f32 %v4255_v50, %v4651_v3  ;;  %490 = vst.msk [vmem:[#allocation2 + $0x79] sm:$0xff] %vm481_vm2, %v456_v52  ;;  %491 = vst.msk [vmem:[#allocation2 + $0x81] sm:$0xff] %vm481_vm2, %v457_v53  ;;  %v460_v61 = vadd.f32 %v4655_v9, %v421_v54  ;;  %v4259_v0 = vunpack.c.h.bf16 %v4375_v51  ;;  %v4262_v6 = vunpack.c.l.bf16 %v4376_v56 }
  0x3b   : > { %v461_v62 = vadd.f32 %v4655_v9, %v422_v55  ;;  %492 = vst.msk [vmem:[#allocation2 + $0x91] sm:$0xff] %vm481_vm2, %v458_v57  ;;  %493 = vst.msk [vmem:[#allocation2 + $0x99] sm:$0xff] %vm481_vm2, %v459_v58  ;;  %v462_v4 = vadd.f32 %v4655_v9, %v423_v59  ;;  %v4263_v7 = vunpack.c.h.bf16 %v4376_v56  ;;  %v425_v11 = vmul.f32 %v4258_v63, %v4651_v3 }
  0x3c   : > { %v709_v1 = vld [vmem:[#allocation2 + $0x19] sm:$0xff]  ;;  %v710_v2 = vld [vmem:[#allocation2 + $0x21] sm:$0xff]  ;;  %v463_v5 = vadd.f32 %v4655_v9, %v424_v60  ;;  %494 = vst.msk [vmem:[#allocation2 + $0xa9] sm:$0xff] %vm481_vm2, %v460_v61  ;;  %v426_v12 = vmul.f32 %v4259_v0, %v4651_v3  ;;  %v427_v15 = vmul.f32 %v4262_v6, %v4651_v3  ;;  %v4266_v29 = vunpack.c.l.bf16 %v4377_v17 }
  0x3d   : > { %v4711_v8 = vpack.c.bf16 %v709_v1, %v709_v1  ;;  %v711_v10 = vld [vmem:[#allocation2 + $0x31] sm:$0xff]  ;;  %495 = vst.msk [vmem:[#allocation2 + $0xb1] sm:$0xff] %vm481_vm2, %v461_v62  ;;  %496 = vst.msk [vmem:[#allocation2 + $0xc1] sm:$0xff] %vm481_vm2, %v462_v4  ;;  %v428_v16 = vmul.f32 %v4263_v7, %v4651_v3  ;;  %v4727_v19 = vpack.c.bf16 %v710_v2, %v710_v2  ;;  %v712_v20 = vld [vmem:[#allocation2 + $0x39] sm:$0xff]  ;;  %v4267_v30 = vunpack.c.h.bf16 %v4377_v17 }
  0x3e   : > { %v4717_v13 = vpack.c.bf16 %v711_v10, %v711_v10  ;;  %v713_v14 = vld [vmem:[#allocation2 + $0x49] sm:$0xff]  ;;  %497 = vst.msk [vmem:[#allocation2 + $0xc9] sm:$0xff] %vm481_vm2, %v463_v5  ;;  %v464_v21 = vadd.f32 %v4655_v9, %v425_v11  ;;  %v465_v22 = vadd.f32 %v4655_v9, %v426_v12  ;;  %v466_v25 = vadd.f32 %v4655_v9, %v427_v15  ;;  %v714_v36 = vld [vmem:[#allocation2 + $0x51] sm:$0xff] }
  0x3f   : > { %839 = vrot.lane.b32.xlu1 %v4711_v8, %s4522_s16  ;;  %v3942_v24 = vpack.c.bf16 %v713_v14, %v713_v14  ;;  %v467_v26 = vadd.f32 %v4655_v9, %v428_v16  ;;  %v715_v28 = vld [vmem:[#allocation2 + $0x61] sm:$0xff]  ;;  %v4270_v31 = vunpack.c.l.bf16 %v4378_v18  ;;  %v4271_v32 = vunpack.c.h.bf16 %v4378_v18  ;;  %v716_v55 = vld [vmem:[#allocation2 + $0x69] sm:$0xff]  ;;  %v516_v15 = vld [vmem:[#allocation2 + $0x18] sm:$0xff] }
  0x40   : > { %843 = vrot.lane.b32.xlu0 %v4717_v13, %s4522_s16  ;;  %498 = vst.msk [vmem:[#allocation2 + $0xd9] sm:$0xff] %vm481_vm2, %v464_v21  ;;  %499 = vst.msk [vmem:[#allocation2 + $0xe1] sm:$0xff] %vm481_vm2, %v465_v22  ;;  %v4739_v33 = vpack.c.bf16 %v712_v20, %v712_v20  ;;  %v4274_v34 = vunpack.c.l.bf16 %v4379_v23  ;;  %v4275_v35 = vunpack.c.h.bf16 %v4379_v23  ;;  %v429_v37 = vmul.f32 %v4266_v29, %v4651_v3  ;;  %v514_v14 = vld [vmem:[#allocation2] sm:$0xff]  ;;  %v515_v17 = vld [vmem:[#allocation2 + $0x8] sm:$0xff] }
  0x41   : > { %500 = vst.msk [vmem:[#allocation2 + $0xf1] sm:$0xff] %vm481_vm2, %v466_v25  ;;  %501 = vst.msk [vmem:[#allocation2 + $0xf9] sm:$0xff] %vm481_vm2, %v467_v26  ;;  %v430_v38 = vmul.f32 %v4267_v30, %v4651_v3  ;;  %v4278_v39 = vunpack.c.l.bf16 %v4380_v27  ;;  %v4279_v40 = vunpack.c.h.bf16 %v4380_v27  ;;  %v3944_v41 = vpack.c.bf16 %v715_v28, %v715_v28  ;;  %v717_v44 = vld [vmem:[#allocation2 + $0x79] sm:$0xff]  ;;  %v718_v4 = vld [vmem:[#allocation2 + $0x81] sm:$0xff] }
  0x42   : > { %v431_v42 = vmul.f32 %v4270_v31, %v4651_v3  ;;  %v432_v43 = vmul.f32 %v4271_v32, %v4651_v3  ;;  %v468_v45 = vadd.f32 %v4655_v9, %v429_v37  ;;  %v3943_v48 = vpack.c.bf16 %v714_v36, %v714_v36  ;;  %v719_v59 = vld [vmem:[#allocation2 + $0x91] sm:$0xff]  ;;  %v517_v18 = vld [vmem:[#allocation2 + $0x20] sm:$0xff]  ;;  %v520_v27 = vld [vmem:[#allocation2 + $0x48] sm:$0xff] }
  0x43   : > { %841 = vrot.lane.b32.xlu1 %v4727_v19, %s4522_s16  ;;  %v469_v46 = vadd.f32 %v4655_v9, %v430_v38  ;;  %v433_v51 = vmul.f32 %v4274_v34, %v4651_v3  ;;  %v434_v52 = vmul.f32 %v4275_v35, %v4651_v3  ;;  %v435_v53 = vmul.f32 %v4278_v39, %v4651_v3  ;;  %v721_v6 = vld [vmem:[#allocation2 + $0xa9] sm:$0xff]  ;;  %v519_v22 = vld [vmem:[#allocation2 + $0x38] sm:$0xff]  ;;  %v522_v30 = vld [vmem:[#allocation2 + $0x60] sm:$0xff] }
  0x44   : > { %847 = vrot.lane.b32.xlu0 %v3942_v24, %s4522_s16  ;;  %v470_v49 = vadd.f32 %v4655_v9, %v431_v42  ;;  %v471_v50 = vadd.f32 %v4655_v9, %v432_v43  ;;  %502 = vst.msk [vmem:[#allocation2 + $0x109] sm:$0xff] %vm481_vm2, %v468_v45  ;;  %v436_v54 = vmul.f32 %v4279_v40, %v4651_v3  ;;  %v4282_v57 = vunpack.c.l.bf16 %v4381_v47  ;;  %v723_v16 = vld [vmem:[#allocation2 + $0xc1] sm:$0xff]  ;;  %v4784_v20 = vld [vmem:[#allocation2 + $0xb1] sm:$0xff] }
  0x45   : > { %503 = vst.msk [vmem:[#allocation2 + $0x111] sm:$0xff] %vm481_vm2, %v469_v46  ;;  %v3946_v56 = vpack.c.bf16 %v717_v44, %v717_v44  ;;  %v4283_v58 = vunpack.c.h.bf16 %v4381_v47  ;;  %v472_v60 = vadd.f32 %v4655_v9, %v433_v51  ;;  %v473_v61 = vadd.f32 %v4655_v9, %v434_v52  ;;  %v4786_v21 = vld [vmem:[#allocation2 + $0xc9] sm:$0xff]  ;;  %v524_v32 = vld [vmem:[#allocation2 + $0x78] sm:$0xff]  ;;  %v525_v36 = vld [vmem:[#allocation2 + $0x80] sm:$0xff] }
  0x46   : > { %504 = vst.msk [vmem:[#allocation2 + $0x121] sm:$0xff] %vm481_vm2, %v470_v49  ;;  %505 = vst.msk [vmem:[#allocation2 + $0x129] sm:$0xff] %vm481_vm2, %v471_v50  ;;  %v474_v62 = vadd.f32 %v4655_v9, %v435_v53  ;;  %v475_v63 = vadd.f32 %v4655_v9, %v436_v54  ;;  %v3945_v0 = vpack.c.bf16 %v716_v55, %v716_v55  ;;  %v521_v28 = vld [vmem:[#allocation2 + $0x50] sm:$0xff]  ;;  %v523_v31 = vld [vmem:[#allocation2 + $0x68] sm:$0xff]  ;;  %vm1188_vm5 = vcmask 191616  }
  0x47   : > { %845 = vrot.lane.b32.xlu1 %v4739_v33, %s4522_s16  ;;  %506 = vst.msk [vmem:[#allocation2 + $0x139] sm:$0xff] %vm481_vm2, %v472_v60  ;;  %507 = vst.msk [vmem:[#allocation2 + $0x141] sm:$0xff] %vm481_vm2, %v473_v61  ;;  %v437_v1 = vmul.f32 %v4282_v57, %v4651_v3  ;;  %v438_v2 = vmul.f32 %v4283_v58, %v4651_v3  ;;  %v3948_v5 = vpack.c.bf16 %v719_v59, %v719_v59  ;;  %v720_v3 = vld [vmem:[#allocation2 + $0x99] sm:$0xff]  ;;  %v526_v37 = vld [vmem:[#allocation2 + $0x90] sm:$0xff]  ;;  %vm2968_vm6 = vcmask 1043456  }
  0x48   : > { %851 = vrot.lane.b32.xlu0 %v3944_v41, %s4522_s16  ;;  %508 = vst.msk [vmem:[#allocation2 + $0x151] sm:$0xff] %vm481_vm2, %v474_v62  ;;  %509 = vst.msk [vmem:[#allocation2 + $0x159] sm:$0xff] %vm481_vm2, %v475_v63  ;;  %v3947_v11 = vpack.c.bf16 %v718_v4, %v718_v4  ;;  %v3950_v12 = vpack.c.bf16 %v721_v6, %v721_v6  ;;  %v3949_v23 = vpack.c.bf16 %v720_v3, %v720_v3  ;;  %v4789_v24 = vld [vmem:[#allocation2 + $0xd9] sm:$0xff]  ;;  %v528_v43 = vld [vmem:[#allocation2 + $0xa8] sm:$0xff]  ;;  %vm1445_vm7 = vcmask 257216  }
  0x49   : > { %v476_v7 = vadd.f32 %v4655_v9, %v437_v1  ;;  %v477_v10 = vadd.f32 %v4655_v9, %v438_v2  ;;  %v518_v9 = vld [vmem:[#allocation2 + $0x30] sm:$0xff]  ;;  %v3904_v25 = vpack.c.bf16 %v514_v14, %v514_v14  ;;  %v4791_v26 = vpack.c.bf16 %v516_v15, %v516_v15  ;;  %v527_v38 = vld [vmem:[#allocation2 + $0x98] sm:$0xff]  ;;  %v530_v45 = vld [vmem:[#allocation2 + $0xc0] sm:$0xff] }
  0x4a   : > { %v3952_v29 = vpack.c.bf16 %v723_v16, %v723_v16  ;;  %v3905_v34 = vpack.c.bf16 %v515_v17, %v515_v17  ;;  %v4797_v35 = vpack.c.bf16 %v517_v18, %v517_v18  ;;  %v4799_v39 = vpack.c.bf16 %v518_v9, %v518_v9  ;;  %v529_v44 = vld [vmem:[#allocation2 + $0xb0] sm:$0xff]  ;;  %v531_v49 = vld [vmem:[#allocation2 + $0xc8] sm:$0xff]  ;;  %v532_v50 = vld [vmem:[#allocation2 + $0xd8] sm:$0xff] }
  0x4b   : > { %849 = vrot.lane.b32.xlu1 %v3943_v48, %s4522_s16  ;;  %510 = vst.msk [vmem:[#allocation2 + $0x169] sm:$0xff] %vm481_vm2, %v476_v7  ;;  %511 = vst.msk [vmem:[#allocation2 + $0x171] sm:$0xff] %vm481_vm2, %v477_v10  ;;  %v4801_v40 = vpack.c.bf16 %v519_v22, %v519_v22  ;;  %v4803_v41 = vpack.c.bf16 %v520_v27, %v520_v27  ;;  %v4805_v42 = vpack.c.bf16 %v521_v28, %v521_v28  ;;  %v533_v51 = vld [vmem:[#allocation2 + $0xe0] sm:$0xff]  ;;  %v535_v57 = vld [vmem:[#allocation2 + $0xf8] sm:$0xff]  ;;  %vm1702_vm8 = vcmask 322816  }
  0x4c   : > { %855 = vrot.lane.b32.xlu0 %v3946_v56, %s4522_s16  ;;  %675 = vst.msk [vmem:[#allocation3] sm:$0xf] %vm674_vm3, %v3904_v25  ;;  %677 = vst.msk [vmem:[#allocation3 + $0x8] sm:$0xf] %vm674_vm3, %v4791_v26  ;;  %v3951_v46 = vpack.c.bf16 %v4784_v20, %v4784_v20  ;;  %v3953_v47 = vpack.c.bf16 %v4786_v21, %v4786_v21  ;;  %v4815_v48 = vpack.c.bf16 %v522_v30, %v522_v30  ;;  %v534_v56 = vld [vmem:[#allocation2 + $0xf0] sm:$0xff]  ;;  %v536_v4 = vld [vmem:[#allocation2 + $0x108] sm:$0xff] }
  0x4d   : > { %676 = vst.msk [vmem:[#allocation3 + $0x4] sm:$0xf] %vm674_vm3, %v3905_v34  ;;  %678 = vst.msk [vmem:[#allocation3 + $0xc] sm:$0xf] %vm674_vm3, %v4797_v35  ;;  %v3954_v52 = vpack.c.bf16 %v4789_v24, %v4789_v24  ;;  %v4828_v53 = vpack.c.bf16 %v523_v31, %v523_v31  ;;  %v4830_v54 = vpack.c.bf16 %v524_v32, %v524_v32  ;;  %v727_v58 = vld [vmem:[#allocation2 + $0xf1] sm:$0xff]  ;;  %v726_v3 = vld [vmem:[#allocation2 + $0xe1] sm:$0xff] }
  0x4e   : > { %679 = vst.msk [vmem:[#allocation3 + $0x10] sm:$0xf] %vm674_vm3, %v4799_v39  ;;  %680 = vst.msk [vmem:[#allocation3 + $0x14] sm:$0xf] %vm674_vm3, %v4801_v40  ;;  %v4832_v55 = vpack.c.bf16 %v525_v36, %v525_v36  ;;  %v4836_v59 = vpack.c.bf16 %v526_v37, %v526_v37  ;;  %v4838_v60 = vpack.c.bf16 %v527_v38, %v527_v38  ;;  %v729_v14 = vld [vmem:[#allocation2 + $0x109] sm:$0xff]  ;;  %v538_v15 = vld [vmem:[#allocation2 + $0x120] sm:$0xff] }
  0x4f   : > { %853 = vrot.lane.b32.xlu1 %v3945_v0, %s4522_s16  ;;  %681 = vst.msk [vmem:[#allocation3 + $0x18] sm:$0xf] %vm674_vm3, %v4803_v41  ;;  %682 = vst.msk [vmem:[#allocation3 + $0x1c] sm:$0xf] %vm674_vm3, %v4805_v42  ;;  %v4840_v61 = vpack.c.bf16 %v528_v43, %v528_v43  ;;  %v4842_v62 = vpack.c.bf16 %v529_v44, %v529_v44  ;;  %v4850_v63 = vpack.c.bf16 %v530_v45, %v530_v45  ;;  %v539_v16 = vld [vmem:[#allocation2 + $0x128] sm:$0xff]  ;;  %v728_v21 = vld [vmem:[#allocation2 + $0xf9] sm:$0xff] }
  0x50   : > { %859 = vrot.lane.b32.xlu0 %v3948_v5, %s4522_s16  ;;  %683 = vst.msk [vmem:[#allocation3 + $0x20] sm:$0xf] %vm674_vm3, %v4815_v48  ;;  %684 = vst.msk [vmem:[#allocation3 + $0x24] sm:$0xf] %vm674_vm3, %v4828_v53  ;;  %v4852_v0 = vpack.c.bf16 %v531_v49, %v531_v49  ;;  %v4854_v1 = vpack.c.bf16 %v532_v50, %v532_v50  ;;  %v4856_v2 = vpack.c.bf16 %v533_v51, %v533_v51  ;;  %v537_v5 = vld [vmem:[#allocation2 + $0x110] sm:$0xff]  ;;  %v731_v22 = vld [vmem:[#allocation2 + $0x121] sm:$0xff] }
  0x51   : > { %685 = vst.msk [vmem:[#allocation3 + $0x28] sm:$0xf] %vm674_vm3, %v4830_v54  ;;  %686 = vst.msk [vmem:[#allocation3 + $0x2c] sm:$0xf] %vm674_vm3, %v4832_v55  ;;  %v4867_v6 = vpack.c.bf16 %v534_v56, %v534_v56  ;;  %v4869_v7 = vpack.c.bf16 %v535_v57, %v535_v57  ;;  %v3926_v10 = vpack.c.bf16 %v536_v4, %v536_v4  ;;  %v541_v24 = vld [vmem:[#allocation2 + $0x140] sm:$0xff]  ;;  %v542_v32 = vld [vmem:[#allocation2 + $0x150] sm:$0xff] }
  0x52   : > { %687 = vst.msk [vmem:[#allocation3 + $0x30] sm:$0xf] %vm674_vm3, %v4836_v59  ;;  %688 = vst.msk [vmem:[#allocation3 + $0x34] sm:$0xf] %vm674_vm3, %v4838_v60  ;;  %v3955_v17 = vpack.c.bf16 %v726_v3, %v726_v3  ;;  %v3928_v18 = vpack.c.bf16 %v538_v15, %v538_v15  ;;  %v3929_v20 = vpack.c.bf16 %v539_v16, %v539_v16  ;;  %v733_v31 = vld [vmem:[#allocation2 + $0x139] sm:$0xff]  ;;  %v732_v43 = vld [vmem:[#allocation2 + $0x129] sm:$0xff] }
  0x53   : > { %857 = vrot.lane.b32.xlu1 %v3947_v11, %s4522_s16  ;;  %689 = vst.msk [vmem:[#allocation3 + $0x38] sm:$0xf] %vm674_vm3, %v4840_v61  ;;  %690 = vst.msk [vmem:[#allocation3 + $0x3c] sm:$0xf] %vm674_vm3, %v4842_v62  ;;  %v3927_v11 = vpack.c.bf16 %v537_v5, %v537_v5  ;;  %v3958_v9 = vpack.c.bf16 %v729_v14, %v729_v14  ;;  %v3957_v25 = vpack.c.bf16 %v728_v21, %v728_v21  ;;  %v543_v34 = vld [vmem:[#allocation2 + $0x158] sm:$0xff]  ;;  %v737_v57 = vld [vmem:[#allocation2 + $0x169] sm:$0xff] }
  0x54   : > { %863 = vrot.lane.b32.xlu0 %v3950_v12, %s4522_s16  ;;  %v3956_v12 = vpack.c.bf16 %v727_v58, %v727_v58  ;;  %691 = vst.msk [vmem:[#allocation3 + $0x40] sm:$0xf] %vm674_vm3, %v4850_v63  ;;  %692 = vst.msk [vmem:[#allocation3 + $0x44] sm:$0xf] %vm674_vm3, %v4852_v0  ;;  %v3931_v28 = vpack.c.bf16 %v541_v24, %v541_v24  ;;  %v3960_v30 = vpack.c.bf16 %v731_v22, %v731_v22  ;;  %v735_v45 = vld [vmem:[#allocation2 + $0x151] sm:$0xff]  ;;  %v736_v4 = vld [vmem:[#allocation2 + $0x159] sm:$0xff] }
  0x55   : > { %693 = vst.msk [vmem:[#allocation3 + $0x48] sm:$0xf] %vm674_vm3, %v4854_v1  ;;  %694 = vst.msk [vmem:[#allocation3 + $0x4c] sm:$0xf] %vm674_vm3, %v4856_v2  ;;  %v3932_v37 = vpack.c.bf16 %v542_v32, %v542_v32  ;;  %v3933_v38 = vpack.c.bf16 %v543_v34, %v543_v34  ;;  %v3962_v44 = vpack.c.bf16 %v733_v31, %v733_v31  ;;  %v738_v3 = vld [vmem:[#allocation2 + $0x171] sm:$0xff]  ;;  %v966_v14 = vld [vmem:[#allocation2 + $0x1a] sm:$0xff] }
  0x56   : > { %695 = vst.msk [vmem:[#allocation3 + $0x50] sm:$0xf] %vm674_vm3, %v4867_v6  ;;  %696 = vst.msk [vmem:[#allocation3 + $0x54] sm:$0xf] %vm674_vm3, %v4869_v7  ;;  %v3961_v49 = vpack.c.bf16 %v732_v43, %v732_v43  ;;  %v3964_v56 = vpack.c.bf16 %v735_v45, %v735_v45  ;;  %v3966_v5 = vpack.c.bf16 %v737_v57, %v737_v57  ;;  %v965_v16 = vld [vmem:[#allocation2 + $0xa] sm:$0xff]  ;;  %v967_v21 = vld [vmem:[#allocation2 + $0x22] sm:$0xff] }
  0x57   : > { %861 = vrot.lane.b32.xlu1 %v3949_v23, %s4522_s16  ;;  %697 = vst.msk [vmem:[#allocation3 + $0x58] sm:$0xf] %vm674_vm3, %v3926_v10  ;;  %698 = vst.msk [vmem:[#allocation3 + $0x5c] sm:$0xf] %vm674_vm3, %v3927_v11  ;;  %v540_v23 = vld [vmem:[#allocation2 + $0x138] sm:$0xff]  ;;  %v964_v10 = vld [vmem:[#allocation2 + $0x2] sm:$0xff]  ;;  %v3965_v11 = vpack.c.bf16 %v736_v4, %v736_v4  ;;  %v3967_v15 = vpack.c.bf16 %v738_v3, %v738_v3 }
  0x58   : > { %867 = vrot.lane.b32.xlu0 %v3952_v29, %s4522_s16  ;;  %699 = vst.msk [vmem:[#allocation3 + $0x60] sm:$0xf] %vm674_vm3, %v3928_v18  ;;  %700 = vst.msk [vmem:[#allocation3 + $0x64] sm:$0xf] %vm674_vm3, %v3929_v20  ;;  %v3930_v27 = vpack.c.bf16 %v540_v23, %v540_v23  ;;  %v730_v29 = vld [vmem:[#allocation2 + $0x111] sm:$0xff]  ;;  %v3969_v20 = vpack.c.bf16 %v965_v16, %v965_v16  ;;  %v4916_v23 = vpack.c.bf16 %v967_v21, %v967_v21  ;;  %v969_v24 = vld [vmem:[#allocation2 + $0x3a] sm:$0xff] }
  0x59   : > { %702 = vst.msk [vmem:[#allocation3 + $0x6c] sm:$0xf] %vm674_vm3, %v3931_v28  ;;  %v3959_v36 = vpack.c.bf16 %v730_v29, %v730_v29  ;;  %703 = vst.msk [vmem:[#allocation3 + $0x70] sm:$0xf] %vm674_vm3, %v3932_v37  ;;  %v968_v18 = vld [vmem:[#allocation2 + $0x32] sm:$0xff]  ;;  %v970_v22 = vld [vmem:[#allocation2 + $0x4a] sm:$0xff]  ;;  %v4924_v28 = vpack.c.bf16 %v969_v24, %v969_v24 }
  0x5a   : > { %701 = vst.msk [vmem:[#allocation3 + $0x68] sm:$0xf] %vm674_vm3, %v3930_v27  ;;  %704 = vst.msk [vmem:[#allocation3 + $0x74] sm:$0xf] %vm674_vm3, %v3933_v38  ;;  %v972_v27 = vld [vmem:[#allocation2 + $0x62] sm:$0xff]  ;;  %v971_v29 = vld [vmem:[#allocation2 + $0x52] sm:$0xff] }
  0x5b   : > { %865 = vrot.lane.b32.xlu1 %v3951_v46, %s4522_s16  ;;  %v544_v46 = vld [vmem:[#allocation2 + $0x168] sm:$0xff]  ;;  %v974_v31 = vld [vmem:[#allocation2 + $0x7a] sm:$0xff]  ;;  %v4932_v32 = vpack.c.bf16 %v971_v29, %v971_v29  ;;  %v976_v37 = vld [vmem:[#allocation2 + $0x92] sm:$0xff]  ;;  %vm1959_vm9 = vcmask 388416   ;;  %vm2217_vm10 = vcmask 454016   ;;  %vm2474_vm11 = vcmask 519616  }
  0x5c   : > { %871 = vrot.lane.b32.xlu0 %v3954_v52, %s4522_s16  ;;  %v3934_v50 = vpack.c.bf16 %v544_v46, %v544_v46  ;;  %v734_v52 = vld [vmem:[#allocation2 + $0x141] sm:$0xff]  ;;  %v973_v34 = vld [vmem:[#allocation2 + $0x6a] sm:$0xff]  ;;  %v987_v24 = vld [vmem:[#allocation2 + $0x112] sm:$0xff]  ;;  %vm2731_vm12 = vcmask 585216   ;;  %vm2919_vm13 = vcmask 588800   ;;  %vm3431_vm14 = vcmask 1040384  }
  0x5d   : > { %v3963_v58 = vpack.c.bf16 %v734_v52, %v734_v52  ;;  %v4940_v38 = vpack.c.bf16 %v973_v34, %v973_v34  ;;  %v975_v43 = vld [vmem:[#allocation2 + $0x82] sm:$0xff]  ;;  %v978_v45 = vld [vmem:[#allocation2 + $0xaa] sm:$0xff]  ;;  %v979_v52 = vld [vmem:[#allocation2 + $0xb2] sm:$0xff] }
  0x5e   : > { %705 = vst.msk [vmem:[#allocation3 + $0x78] sm:$0xf] %vm674_vm3, %v3934_v50  ;;  %v4948_v46 = vpack.c.bf16 %v975_v43, %v975_v43  ;;  %v980_v50 = vld [vmem:[#allocation2 + $0xc2] sm:$0xff]  ;;  %v982_v57 = vld [vmem:[#allocation2 + $0xda] sm:$0xff]  ;;  %v981_v4 = vld [vmem:[#allocation2 + $0xca] sm:$0xff] }
  0x5f   : > { %869 = vrot.lane.b32.xlu1 %v3953_v47, %s4522_s16  ;;  %v545_v47 = vld [vmem:[#allocation2 + $0x170] sm:$0xff]  ;;  %v983_v3 = vld [vmem:[#allocation2 + $0xe2] sm:$0xff]  ;;  %v985_v16 = vld [vmem:[#allocation2 + $0xfa] sm:$0xff] }
  0x60   : > { %875 = vrot.lane.b32.xlu0 %v3956_v12, %s4522_s16  ;;  %v3935_v51 = vpack.c.bf16 %v545_v47, %v545_v47  ;;  %v3968_v12 = vpack.c.bf16 %v964_v10, %v964_v10  ;;  %v977_v47 = vld [vmem:[#allocation2 + $0x9a] sm:$0xff]  ;;  %v984_v10 = vld [vmem:[#allocation2 + $0xf2] sm:$0xff]  ;;  %v3989_v21 = vpack.c.bf16 %v985_v16, %v985_v16 }
  0x61   : > { %v990_v29 = vld [vmem:[#allocation2 + $0x13a] sm:$0xff] }
  0x62   : > { %706 = vst.msk [vmem:[#allocation3 + $0x7c] sm:$0xf] %vm674_vm3, %v3935_v51  ;;  %v4954_v51 = vpack.c.bf16 %v977_v47, %v977_v47  ;;  %v3994_v43 = vpack.c.bf16 %v990_v29, %v990_v29 }
  0x63   : > { %873 = vrot.lane.b32.xlu1 %v3955_v17, %s4522_s16  ;;  %v4908_v17 = vpack.c.bf16 %v966_v14, %v966_v14  ;;  %v986_v14 = vld [vmem:[#allocation2 + $0x10a] sm:$0xff] }
  0x64   : > { %879 = vrot.lane.b32.xlu0 %v3958_v9, %s4522_s16  ;;  %v4913_v9 = vpack.c.bf16 %v968_v18, %v968_v18  ;;  %v3990_v18 = vpack.c.bf16 %v986_v14, %v986_v14 }
  0x67   : > { %877 = vrot.lane.b32.xlu1 %v3957_v25, %s4522_s16  ;;  %v4920_v25 = vpack.c.bf16 %v970_v22, %v970_v22 }
  0x68   : > { %883 = vrot.lane.b32.xlu0 %v3960_v30, %s4522_s16  ;;  %v4928_v30 = vpack.c.bf16 %v972_v27, %v972_v27 }
  0x6b   : > { %881 = vrot.lane.b32.xlu1 %v3959_v36, %s4522_s16  ;;  %v4936_v36 = vpack.c.bf16 %v974_v31, %v974_v31  ;;  %v3991_v31 = vpack.c.bf16 %v987_v24, %v987_v24 }
  0x6c   : > { %887 = vrot.lane.b32.xlu0 %v3962_v44, %s4522_s16  ;;  %v4944_v44 = vpack.c.bf16 %v976_v37, %v976_v37  ;;  %v989_v37 = vld [vmem:[#allocation2 + $0x12a] sm:$0xff] }
  0x6d   : > { %v3993_v47 = vpack.c.bf16 %v989_v37, %v989_v37 }
  0x6f   : > { %885 = vrot.lane.b32.xlu1 %v3961_v49, %s4522_s16  ;;  %v3982_v49 = vpack.c.bf16 %v978_v45, %v978_v45  ;;  %v992_v45 = vld [vmem:[#allocation2 + $0x152] sm:$0xff] }
  0x70   : > { %891 = vrot.lane.b32.xlu0 %v3964_v56, %s4522_s16  ;;  %v3984_v56 = vpack.c.bf16 %v980_v50, %v980_v50  ;;  %v3996_v50 = vpack.c.bf16 %v992_v45, %v992_v45 }
  0x73   : > { %889 = vrot.lane.b32.xlu1 %v3963_v58, %s4522_s16  ;;  %v3983_v58 = vpack.c.bf16 %v979_v52, %v979_v52  ;;  %v994_v52 = vld [vmem:[#allocation2 + $0x16a] sm:$0xff] }
  0x74   : > { %895 = vrot.lane.b32.xlu0 %v3966_v5, %s4522_s16  ;;  %v3986_v5 = vpack.c.bf16 %v982_v57, %v982_v57  ;;  %v993_v57 = vld [vmem:[#allocation2 + $0x15a] sm:$0xff] }
  0x77   : > { %893 = vrot.lane.b32.xlu1 %v3965_v11, %s4522_s16  ;;  %v3985_v11 = vpack.c.bf16 %v981_v4, %v981_v4 }
  0x78   : > { %1092 = vrot.lane.b32.xlu0 %v3968_v12, %s4523_s17  ;;  %v3988_v12 = vpack.c.bf16 %v984_v10, %v984_v10  ;;  %v3997_v10 = vpack.c.bf16 %v993_v57, %v993_v57  ;;  %v4490_v57 = vld [vmem:[%s5580_s1 + $0x20] ss:$0 sps:$4 sm:$0xff]  }
  0x79   : > { %4471 = vmatprep.subr.msk.bf16.mxu0 %vm2968_vm6, %v4490_v57  ;;  %4472 = vmatprep.subr.msk.bf16.mxu1 %vm2968_vm6, %v4490_v57 }
  0x7b   : > { %897 = vrot.lane.b32.xlu1 %v3967_v15, %s4522_s16  ;;  %v3987_v15 = vpack.c.bf16 %v983_v3, %v983_v3 }
  0x7c   : > { %1096 = vrot.lane.b32.xlu0 %v4908_v17, %s4523_s17 }
  0x7f   : > { %1094 = vrot.lane.b32.xlu1 %v3969_v20, %s4523_s17  ;;  %v988_v20 = vld [vmem:[#allocation2 + $0x122] sm:$0xff] }
  0x80   : > { %1100 = vrot.lane.b32.xlu0 %v4913_v9, %s4523_s17  ;;  %v3992_v27 = vpack.c.bf16 %v988_v20, %v988_v20 }
  0x83   : > { %1098 = vrot.lane.b32.xlu1 %v4916_v23, %s4523_s17 }
  0x84   : > { %1104 = vrot.lane.b32.xlu0 %v4920_v25, %s4523_s17 }
  0x87   : > { %1102 = vrot.lane.b32.xlu1 %v4924_v28, %s4523_s17 }
  0x88   : > { %1108 = vrot.lane.b32.xlu0 %v4928_v30, %s4523_s17 }
  0x8b   : > { %1106 = vrot.lane.b32.xlu1 %v4932_v32, %s4523_s17 }
  0x8c   : > { %1112 = vrot.lane.b32.xlu0 %v4936_v36, %s4523_s17 }
  0x8f   : > { %1110 = vrot.lane.b32.xlu1 %v4940_v38, %s4523_s17 }
  0x90   : > { %1116 = vrot.lane.b32.xlu0 %v4944_v44, %s4523_s17 }
  0x93   : > { %1114 = vrot.lane.b32.xlu1 %v4948_v46, %s4523_s17 }
  0x94   : > { %1120 = vrot.lane.b32.xlu0 %v3982_v49, %s4523_s17  ;;  %v991_v49 = vld [vmem:[#allocation2 + $0x142] sm:$0xff] }
  0x97   : > { %1118 = vrot.lane.b32.xlu1 %v4954_v51, %s4523_s17 }
  0x98   : > { %1124 = vrot.lane.b32.xlu0 %v3984_v56, %s4523_s17  ;;  %v3995_v56 = vpack.c.bf16 %v991_v49, %v991_v49 }
  0x9b   : > { %1122 = vrot.lane.b32.xlu1 %v3983_v58, %s4523_s17  ;;  %v3998_v58 = vpack.c.bf16 %v994_v52, %v994_v52 }
  0x9c   : > { %1128 = vrot.lane.b32.xlu0 %v3986_v5, %s4523_s17 }
  0x9f   : > { %1126 = vrot.lane.b32.xlu1 %v3985_v11, %s4523_s17  ;;  %v995_v11 = vld [vmem:[#allocation2 + $0x172] sm:$0xff] }
  0xa0   : > { %1132 = vrot.lane.b32.xlu0 %v3988_v12, %s4523_s17  ;;  %v3999_v14 = vpack.c.bf16 %v995_v11, %v995_v11 }
  0xa2   : > { %v836_v22 = vpop.permute.xlu0 %835 }
  0xa3   : > { %1130 = vrot.lane.b32.xlu1 %v3987_v15, %s4523_s17  ;;  %932 = vst.msk [vmem:[#allocation3] sm:$0xf] %vm931_vm4, %v836_v22 }
  0xa4   : > { %1136 = vrot.lane.b32.xlu0 %v3990_v18, %s4523_s17 }
  0xa6   : > { %v838_v34 = vpop.permute.xlu0 %837 }
  0xa7   : > { %1134 = vrot.lane.b32.xlu1 %v3989_v21, %s4523_s17  ;;  %933 = vst.msk [vmem:[#allocation3 + $0x4] sm:$0xf] %vm931_vm4, %v838_v34 }
  0xa8   : > { %1140 = vrot.lane.b32.xlu0 %v3992_v27, %s4523_s17 }
  0xab   : > { %1138 = vrot.lane.b32.xlu1 %v3991_v31, %s4523_s17 }
  0xac   : > { %1144 = vrot.lane.b32.xlu0 %v3994_v43, %s4523_s17 }
  0xaf   : > { %1142 = vrot.lane.b32.xlu1 %v3993_v47, %s4523_s17 }
  0xb0   : > { %1148 = vrot.lane.b32.xlu0 %v3996_v50, %s4523_s17 }
  0xb1   : > { %v840_v4 = vpop.permute.xlu1 %839 }
  0xb2   : > { %934 = vst.msk [vmem:[#allocation3 + $0x8] sm:$0xf] %vm931_vm4, %v840_v4  ;;  %v844_v5 = vpop.permute.xlu0 %843 }
  0xb3   : > { %1146 = vrot.lane.b32.xlu1 %v3995_v56, %s4523_s17  ;;  %936 = vst.msk [vmem:[#allocation3 + $0x10] sm:$0xf] %vm931_vm4, %v844_v5  ;;  %v2252_v5 = vld [vmem:[#allocation2 + $0x49] sm:$0xff] }
  0xb4   : > { %1152 = vrot.lane.b32.xlu0 %v3998_v58, %s4523_s17 }
  0xb5   : > { %v842_v3 = vpop.permute.xlu1 %841 }
  0xb6   : > { %935 = vst.msk [vmem:[#allocation3 + $0xc] sm:$0xf] %vm931_vm4, %v842_v3  ;;  %v848_v12 = vpop.permute.xlu0 %847  ;;  %v4130_v3 = vpack.c.bf16 %v2252_v5, %v2252_v5 }
  0xb7   : > { %1150 = vrot.lane.b32.xlu1 %v3997_v10, %s4523_s17  ;;  %938 = vst.msk [vmem:[#allocation3 + $0x18] sm:$0xf] %vm931_vm4, %v848_v12  ;;  %v4491_v10 = vld [vmem:[%s5580_s1 + $0x18] sm:$0xff]  }
  0xb8   : > { %1349 = vrot.lane.b32.xlu0 %v4791_v26, %s4524_s18 }
  0xb9   : > { %v846_v15 = vpop.permute.xlu1 %845 }
  0xba   : > { %937 = vst.msk [vmem:[#allocation3 + $0x14] sm:$0xf] %vm931_vm4, %v846_v15  ;;  %v852_v16 = vpop.permute.xlu0 %851 }
  0xbb   : > { %1154 = vrot.lane.b32.xlu1 %v3999_v14, %s4523_s17  ;;  %940 = vst.msk [vmem:[#allocation3 + $0x20] sm:$0xf] %vm931_vm4, %v852_v16  ;;  %v4492_v14 = vld [vmem:[%s5580_s1 + $0x10] sm:$0xff]  }
  0xbc   : > { %1353 = vrot.lane.b32.xlu0 %v4799_v39, %s4524_s18  ;;  %v2253_v16 = vld [vmem:[#allocation2 + $0x51] sm:$0xff] }
  0xbd   : > { %v850_v18 = vpop.permute.xlu1 %849 }
  0xbe   : > { %939 = vst.msk [vmem:[#allocation3 + $0x1c] sm:$0xf] %vm931_vm4, %v850_v18  ;;  %v856_v20 = vpop.permute.xlu0 %855 }
  0xbf   : > { %1351 = vrot.lane.b32.xlu1 %v4797_v35, %s4524_s18  ;;  %942 = vst.msk [vmem:[#allocation3 + $0x28] sm:$0xf] %vm931_vm4, %v856_v20  ;;  %v4493_v20 = vld [vmem:[%s5580_s1 + $0x8] sm:$0xff]  }
  0xc0   : > { %1357 = vrot.lane.b32.xlu0 %v4803_v41, %s4524_s18 }
  0xc1   : > { %v854_v26 = vpop.permute.xlu1 %853 }
  0xc2   : > { %941 = vst.msk [vmem:[#allocation3 + $0x24] sm:$0xf] %vm931_vm4, %v854_v26  ;;  %v860_v21 = vpop.permute.xlu0 %859 }
  0xc3   : > { %1355 = vrot.lane.b32.xlu1 %v4801_v40, %s4524_s18  ;;  %944 = vst.msk [vmem:[#allocation3 + $0x30] sm:$0xf] %vm931_vm4, %v860_v21 }
  0xc4   : > { %1361 = vrot.lane.b32.xlu0 %v4815_v48, %s4524_s18 }
  0xc5   : > { %v858_v22 = vpop.permute.xlu1 %857 }
  0xc6   : > { %943 = vst.msk [vmem:[#allocation3 + $0x2c] sm:$0xf] %vm931_vm4, %v858_v22  ;;  %v864_v35 = vpop.permute.xlu0 %863  ;;  %v4494_v22 = vld [vmem:[%s5580_s1] sm:$0xff]  }
  0xc7   : > { %1359 = vrot.lane.b32.xlu1 %v4805_v42, %s4524_s18  ;;  %946 = vst.msk [vmem:[#allocation3 + $0x38] sm:$0xf] %vm931_vm4, %v864_v35 }
  0xc8   : > { %1365 = vrot.lane.b32.xlu0 %v4830_v54, %s4524_s18 }
  0xc9   : > { %v862_v24 = vpop.permute.xlu1 %861 }
  0xca   : > { %945 = vst.msk [vmem:[#allocation3 + $0x34] sm:$0xf] %vm931_vm4, %v862_v24  ;;  %v868_v27 = vpop.permute.xlu0 %867  ;;  %v1484_v24 = vld [vmem:[#allocation2 + $0x61] sm:$0xff] }
  0xcb   : > { %1363 = vrot.lane.b32.xlu1 %v4828_v53, %s4524_s18  ;;  %948 = vst.msk [vmem:[#allocation3 + $0x40] sm:$0xf] %vm931_vm4, %v868_v27 }
  0xcc   : > { %1369 = vrot.lane.b32.xlu0 %v4836_v59, %s4524_s18 }
  0xcd   : > { %v866_v29 = vpop.permute.xlu1 %865 }
  0xce   : > { %947 = vst.msk [vmem:[#allocation3 + $0x3c] sm:$0xf] %vm931_vm4, %v866_v29  ;;  %v872_v31 = vpop.permute.xlu0 %871  ;;  %v4038_v29 = vpack.c.bf16 %v1484_v24, %v1484_v24 }
  0xcf   : > { %1367 = vrot.lane.b32.xlu1 %v4832_v55, %s4524_s18  ;;  %950 = vst.msk [vmem:[#allocation3 + $0x48] sm:$0xf] %vm931_vm4, %v872_v31 }
  0xd0   : > { %1373 = vrot.lane.b32.xlu0 %v4840_v61, %s4524_s18 }
  0xd1   : > { %v870_v34 = vpop.permute.xlu1 %869 }
  0xd2   : > { %949 = vst.msk [vmem:[#allocation3 + $0x44] sm:$0xf] %vm931_vm4, %v870_v34  ;;  %v876_v37 = vpop.permute.xlu0 %875 }
  0xd3   : > { %1371 = vrot.lane.b32.xlu1 %v4838_v60, %s4524_s18  ;;  %952 = vst.msk [vmem:[#allocation3 + $0x50] sm:$0xf] %vm931_vm4, %v876_v37  ;;  %v1485_v37 = vld [vmem:[#allocation2 + $0x69] sm:$0xff] }
  0xd4   : > { %1377 = vrot.lane.b32.xlu0 %v4850_v63, %s4524_s18 }
  0xd5   : > { %v874_v43 = vpop.permute.xlu1 %873 }
  0xd6   : > { %951 = vst.msk [vmem:[#allocation3 + $0x4c] sm:$0xf] %vm931_vm4, %v874_v43  ;;  %v880_v45 = vpop.permute.xlu0 %879 }
  0xd7   : > { %1375 = vrot.lane.b32.xlu1 %v4842_v62, %s4524_s18  ;;  %954 = vst.msk [vmem:[#allocation3 + $0x58] sm:$0xf] %vm931_vm4, %v880_v45  ;;  %v4039_v45 = vpack.c.bf16 %v1485_v37, %v1485_v37  ;;  %v1492_v37 = vld [vmem:[#allocation2 + $0xc1] sm:$0xff] }
  0xd8   : > { %1606 = vrot.lane.b32.xlu0 %v4711_v8, %s4525_s19 }
  0xd9   : > { %v878_v47 = vpop.permute.xlu1 %877 }
  0xda   : > { %953 = vst.msk [vmem:[#allocation3 + $0x54] sm:$0xf] %vm931_vm4, %v878_v47  ;;  %v884_v49 = vpop.permute.xlu0 %883 }
  0xdb   : > { %1379 = vrot.lane.b32.xlu1 %v4852_v0, %s4524_s18  ;;  %956 = vst.msk [vmem:[#allocation3 + $0x60] sm:$0xf] %vm931_vm4, %v884_v49 }
  0xdc   : > { %1610 = vrot.lane.b32.xlu0 %v4717_v13, %s4525_s19 }
  0xdd   : > { %v882_v50 = vpop.permute.xlu1 %881 }
  0xde   : > { %955 = vst.msk [vmem:[#allocation3 + $0x5c] sm:$0xf] %vm931_vm4, %v882_v50  ;;  %v888_v52 = vpop.permute.xlu0 %887 }
  0xdf   : > { %1608 = vrot.lane.b32.xlu1 %v4727_v19, %s4525_s19  ;;  %958 = vst.msk [vmem:[#allocation3 + $0x68] sm:$0xf] %vm931_vm4, %v888_v52 }
  0xe0   : > { %1863 = vrot.lane.b32.xlu0 %v4908_v17, %s4526_s20  ;;  %v2250_v17 = vld [vmem:[#allocation2 + $0x31] sm:$0xff] }
  0xe1   : > { %v886_v8 = vpop.permute.xlu1 %885 }
  0xe2   : > { %957 = vst.msk [vmem:[#allocation3 + $0x64] sm:$0xf] %vm931_vm4, %v886_v8  ;;  %v892_v56 = vpop.permute.xlu0 %891 }
  0xe3   : > { %1612 = vrot.lane.b32.xlu1 %v4739_v33, %s4525_s19  ;;  %960 = vst.msk [vmem:[#allocation3 + $0x70] sm:$0xf] %vm931_vm4, %v892_v56 }
  0xe4   : > { %1867 = vrot.lane.b32.xlu0 %v4913_v9, %s4526_s20 }
  0xe5   : > { %v890_v13 = vpop.permute.xlu1 %889 }
  0xe6   : > { %959 = vst.msk [vmem:[#allocation3 + $0x6c] sm:$0xf] %vm931_vm4, %v890_v13  ;;  %v896_v19 = vpop.permute.xlu0 %895  ;;  %v2256_v13 = vld [vmem:[#allocation2 + $0x79] sm:$0xff] }
  0xe7   : > { %1865 = vrot.lane.b32.xlu1 %v4916_v23, %s4526_s20  ;;  %962 = vst.msk [vmem:[#allocation3 + $0x78] sm:$0xf] %vm931_vm4, %v896_v19  ;;  %v2970_v23 = vsel %vm2968_vm6, %v4490_v57, 0 }
  0xe8   : > { %2121 = vrot.lane.b32.xlu0 %v4799_v39, %s4527_s22  ;;  %v4128_v39 = vpack.c.bf16 %v2250_v17, %v2250_v17  ;;  %4420 = vmatpush3.bf16.msra.mxu0 %v2970_v23 }
  0xe9   : > { %v894_v33 = vpop.permute.xlu1 %893  ;;  %4466 = vmatpush3.bf16.msra.mxu1 %v2970_v23  ;;  %4421 = vmatprep.subr.bf16.mxu0 %v4491_v10 }
  0xea   : > { %961 = vst.msk [vmem:[#allocation3 + $0x74] sm:$0xf] %vm931_vm4, %v894_v33  ;;  %v1093_v58 = vpop.permute.xlu0 %1092  ;;  %4462 = vmatprep.subr.bf16.mxu1 %v4491_v10 }
  0xeb   : > { %1869 = vrot.lane.b32.xlu1 %v4924_v28, %s4526_s20  ;;  %1189 = vst.msk [vmem:[#allocation3] sm:$0xf] %vm1188_vm5, %v1093_v58 }
  0xec   : > { %2125 = vrot.lane.b32.xlu0 %v4803_v41, %s4527_s22  ;;  %v2251_v41 = vld [vmem:[#allocation2 + $0x39] sm:$0xff]  ;;  %4422 = vmatpush3.bf16.msra.mxu0 %v4491_v10 }
  0xed   : > { %v898_v4 = vpop.permute.xlu1 %897  ;;  %4467 = vmatpush3.bf16.msra.mxu1 %v4491_v10  ;;  %4423 = vmatprep.subr.bf16.mxu0 %v4492_v14 }
  0xee   : > { %963 = vst.msk [vmem:[#allocation3 + $0x7c] sm:$0xf] %vm931_vm4, %v898_v4  ;;  %v1097_v11 = vpop.permute.xlu0 %1096  ;;  %4463 = vmatprep.subr.bf16.mxu1 %v4492_v14 }
  0xef   : > { %2123 = vrot.lane.b32.xlu1 %v4801_v40, %s4527_s22  ;;  %1191 = vst.msk [vmem:[#allocation3 + $0x8] sm:$0xf] %vm1188_vm5, %v1097_v11  ;;  %v4129_v40 = vpack.c.bf16 %v2251_v41, %v2251_v41  ;;  %v1489_v11 = vld [vmem:[#allocation2 + $0x99] sm:$0xff] }
  0xf0   : > { %2378 = vrot.lane.b32.xlu0 %v4128_v39, %s4528_s28  ;;  %4424 = vmatpush3.bf16.msra.mxu0 %v4492_v14  ;;  %v1488_v39 = vld [vmem:[#allocation2 + $0x91] sm:$0xff] }
  0xf1   : > { %v1095_v12 = vpop.permute.xlu1 %1094  ;;  %4468 = vmatpush3.bf16.msra.mxu1 %v4492_v14  ;;  %4425 = vmatprep.subr.bf16.mxu0 %v4493_v20 }
  0xf2   : > { %1190 = vst.msk [vmem:[#allocation3 + $0x4] sm:$0xf] %vm1188_vm5, %v1095_v12  ;;  %v1101_v15 = vpop.permute.xlu0 %1100  ;;  %4464 = vmatprep.subr.bf16.mxu1 %v4493_v20 }
  0xf3   : > { %2127 = vrot.lane.b32.xlu1 %v4805_v42, %s4527_s22  ;;  %1193 = vst.msk [vmem:[#allocation3 + $0x10] sm:$0xf] %vm1188_vm5, %v1101_v15  ;;  %v4131_v42 = vpack.c.bf16 %v2253_v16, %v2253_v16 }
  0xf4   : > { %2382 = vrot.lane.b32.xlu0 %v4130_v3, %s4528_s28  ;;  %4426 = vmatpush3.bf16.msra.mxu0 %v4493_v20 }
  0xf5   : > { %v1099_v18 = vpop.permute.xlu1 %1098  ;;  %4469 = vmatpush3.bf16.msra.mxu1 %v4493_v20  ;;  %4427 = vmatprep.subr.bf16.mxu0 %v4494_v22 }
  0xf6   : > { %1192 = vst.msk [vmem:[#allocation3 + $0xc] sm:$0xf] %vm1188_vm5, %v1099_v18  ;;  %v1105_v26 = vpop.permute.xlu0 %1104  ;;  %4465 = vmatprep.subr.bf16.mxu1 %v4494_v22  ;;  %v2260_v18 = vld [vmem:[#allocation2 + $0xa9] sm:$0xff] }
  0xf7   : > { %2380 = vrot.lane.b32.xlu1 %v4129_v40, %s4528_s28  ;;  %1195 = vst.msk [vmem:[#allocation3 + $0x18] sm:$0xf] %vm1188_vm5, %v1105_v26 }
  0xf8   : > { %2635 = vrot.lane.b32.xlu0 %v4913_v9, %s4529_s11  ;;  %4428 = vmatpush3.bf16.msra.mxu0 %v4494_v22 }
  0xf9   : > { %v1103_v21 = vpop.permute.xlu1 %1102  ;;  %4470 = vmatpush3.bf16.msra.mxu1 %v4494_v22 }
  0xfa   : > { %1194 = vst.msk [vmem:[#allocation3 + $0x14] sm:$0xf] %vm1188_vm5, %v1103_v21  ;;  %v1109_v35 = vpop.permute.xlu0 %1108  ;;  %v2517_v21 = vld [vmem:[#allocation2 + $0xaa] sm:$0xff] }
  0xfb   : > { %2384 = vrot.lane.b32.xlu1 %v4131_v42, %s4528_s28  ;;  %1197 = vst.msk [vmem:[#allocation3 + $0x20] sm:$0xf] %vm1188_vm5, %v1109_v35 }
  0xfc   : > { %2639 = vrot.lane.b32.xlu0 %v4920_v25, %s4529_s11 }
  0xfd   : > { %v1107_v9 = vpop.permute.xlu1 %1106 }
  0xfe   : > { %1196 = vst.msk [vmem:[#allocation3 + $0x1c] sm:$0xf] %vm1188_vm5, %v1107_v9  ;;  %v1113_v27 = vpop.permute.xlu0 %1112  ;;  %v2516_v9 = vld [vmem:[#allocation2 + $0x9a] sm:$0xff] }
  0xff   : > { %2637 = vrot.lane.b32.xlu1 %v4924_v28, %s4529_s11  ;;  %1199 = vst.msk [vmem:[#allocation3 + $0x28] sm:$0xf] %vm1188_vm5, %v1113_v27 }
 0x100   : > { %1614 = vrot.lane.b32.xlu0 %v4130_v3, %s4525_s19  ;;  %v4043_v3 = vpack.c.bf16 %v1489_v11, %v1489_v11 }
 0x101   : > { %v1111_v31 = vpop.permute.xlu1 %1110 }
 0x102   : > { %1198 = vst.msk [vmem:[#allocation3 + $0x24] sm:$0xf] %vm1188_vm5, %v1111_v31  ;;  %v1117_v34 = vpop.permute.xlu0 %1116  ;;  %v2518_v31 = vld [vmem:[#allocation2 + $0xb2] sm:$0xff] }
 0x103   : > { %2641 = vrot.lane.b32.xlu1 %v4932_v32, %s4529_s11  ;;  %1201 = vst.msk [vmem:[#allocation3 + $0x30] sm:$0xf] %vm1188_vm5, %v1117_v34 }
 0x104   : > { %1618 = vrot.lane.b32.xlu0 %v4038_v29, %s4525_s19 }
 0x105   : > { %v1115_v43 = vpop.permute.xlu1 %1114 }
 0x106   : > { %1200 = vst.msk [vmem:[#allocation3 + $0x2c] sm:$0xf] %vm1188_vm5, %v1115_v43  ;;  %v1121_v28 = vpop.permute.xlu0 %1120 }
 0x107   : > { %1616 = vrot.lane.b32.xlu1 %v4131_v42, %s4525_s19  ;;  %1203 = vst.msk [vmem:[#allocation3 + $0x38] sm:$0xf] %vm1188_vm5, %v1121_v28  ;;  %v4171_v28 = vpack.c.bf16 %v2518_v31, %v2518_v31 }
 0x108   : > { %1871 = vrot.lane.b32.xlu0 %v4920_v25, %s4526_s20 }
 0x109   : > { %v1119_v47 = vpop.permute.xlu1 %1118 }
 0x10a   : > { %1202 = vst.msk [vmem:[#allocation3 + $0x34] sm:$0xf] %vm1188_vm5, %v1119_v47  ;;  %v1125_v49 = vpop.permute.xlu0 %1124 }
 0x10b   : > { %1620 = vrot.lane.b32.xlu1 %v4039_v45, %s4525_s19  ;;  %1205 = vst.msk [vmem:[#allocation3 + $0x40] sm:$0xf] %vm1188_vm5, %v1125_v49 }
 0x10c   : > { %1875 = vrot.lane.b32.xlu0 %v4928_v30, %s4526_s20 }
 0x10d   : > { %v1123_v50 = vpop.permute.xlu1 %1122 }
 0x10e   : > { %1204 = vst.msk [vmem:[#allocation3 + $0x3c] sm:$0xf] %vm1188_vm5, %v1123_v50  ;;  %v1129_v52 = vpop.permute.xlu0 %1128  ;;  %v1493_v50 = vld [vmem:[#allocation2 + $0xc9] sm:$0xff] }
 0x10f   : > { %1873 = vrot.lane.b32.xlu1 %v4932_v32, %s4526_s20  ;;  %1207 = vst.msk [vmem:[#allocation3 + $0x48] sm:$0xf] %vm1188_vm5, %v1129_v52 }
 0x110   : > { %2129 = vrot.lane.b32.xlu0 %v4815_v48, %s4527_s22  ;;  %v4134_v48 = vpack.c.bf16 %v2256_v13, %v2256_v13 }
 0x111   : > { %v1127_v25 = vpop.permute.xlu1 %1126 }
 0x112   : > { %1206 = vst.msk [vmem:[#allocation3 + $0x44] sm:$0xf] %vm1188_vm5, %v1127_v25  ;;  %v1133_v8 = vpop.permute.xlu0 %1132  ;;  %v1749_v25 = vld [vmem:[#allocation2 + $0xc2] sm:$0xff] }
 0x113   : > { %1877 = vrot.lane.b32.xlu1 %v4940_v38, %s4526_s20  ;;  %1209 = vst.msk [vmem:[#allocation3 + $0x50] sm:$0xf] %vm1188_vm5, %v1133_v8  ;;  %v4078_v13 = vpack.c.bf16 %v1749_v25, %v1749_v25  ;;  %v2010_v25 = vld [vmem:[#allocation2 + $0xf8] sm:$0xff] }
 0x114   : > { %2133 = vrot.lane.b32.xlu0 %v4830_v54, %s4527_s22  ;;  %v2257_v54 = vld [vmem:[#allocation2 + $0x81] sm:$0xff] }
 0x115   : > { %v1131_v56 = vpop.permute.xlu1 %1130  ;;  %v4135_v57 = vpack.c.bf16 %v2257_v54, %v2257_v54 }
 0x116   : > { %1208 = vst.msk [vmem:[#allocation3 + $0x4c] sm:$0xf] %vm1188_vm5, %v1131_v56  ;;  %v1137_v32 = vpop.permute.xlu0 %1136  ;;  %v4047_v56 = vpack.c.bf16 %v1493_v50, %v1493_v50 }
 0x117   : > { %2131 = vrot.lane.b32.xlu1 %v4828_v53, %s4527_s22  ;;  %1211 = vst.msk [vmem:[#allocation3 + $0x58] sm:$0xf] %vm1188_vm5, %v1137_v32 }
 0x118   : > { %2386 = vrot.lane.b32.xlu0 %v4038_v29, %s4528_s28  ;;  %v4169_v29 = vpack.c.bf16 %v2516_v9, %v2516_v9 }
 0x119   : > { %v1135_v19 = vpop.permute.xlu1 %1134 }
 0x11a   : > { %1210 = vst.msk [vmem:[#allocation3 + $0x54] sm:$0xf] %vm1188_vm5, %v1135_v19  ;;  %v1141_v33 = vpop.permute.xlu0 %1140  ;;  %v1750_v19 = vld [vmem:[#allocation2 + $0xca] sm:$0xff] }
 0x11b   : > { %2135 = vrot.lane.b32.xlu1 %v4832_v55, %s4527_s22  ;;  %1213 = vst.msk [vmem:[#allocation3 + $0x60] sm:$0xf] %vm1188_vm5, %v1141_v33 }
 0x11c   : > { %2390 = vrot.lane.b32.xlu0 %v4134_v48, %s4528_s28 }
 0x11d   : > { %v1139_v17 = vpop.permute.xlu1 %1138 }
 0x11e   : > { %1212 = vst.msk [vmem:[#allocation3 + $0x5c] sm:$0xf] %vm1188_vm5, %v1139_v17  ;;  %v1145_v53 = vpop.permute.xlu0 %1144  ;;  %v4079_v17 = vpack.c.bf16 %v1750_v19, %v1750_v19 }
 0x11f   : > { %2388 = vrot.lane.b32.xlu1 %v4039_v45, %s4528_s28  ;;  %1215 = vst.msk [vmem:[#allocation3 + $0x68] sm:$0xf] %vm1188_vm5, %v1145_v53  ;;  %v4046_v45 = vpack.c.bf16 %v1492_v37, %v1492_v37  ;;  %v2009_v37 = vld [vmem:[#allocation2 + $0xf0] sm:$0xff] }
 0x120   : > { %2643 = vrot.lane.b32.xlu0 %v4928_v30, %s4529_s11  ;;  %v4042_v30 = vpack.c.bf16 %v1488_v39, %v1488_v39 }
 0x121   : > { %v1143_v58 = vpop.permute.xlu1 %1142 }
 0x122   : > { %1214 = vst.msk [vmem:[#allocation3 + $0x64] sm:$0xf] %vm1188_vm5, %v1143_v58  ;;  %v1149_v55 = vpop.permute.xlu0 %1148 }
 0x123   : > { %2392 = vrot.lane.b32.xlu1 %v4135_v57, %s4528_s28  ;;  %1217 = vst.msk [vmem:[#allocation3 + $0x70] sm:$0xf] %vm1188_vm5, %v1149_v55  ;;  %v2264_v55 = vld [vmem:[#allocation2 + $0xd9] sm:$0xff] }
 0x124   : > { %2647 = vrot.lane.b32.xlu0 %v4936_v36, %s4529_s11 }
 0x125   : > { %v1147_v23 = vpop.permute.xlu1 %1146 }
 0x126   : > { %1216 = vst.msk [vmem:[#allocation3 + $0x6c] sm:$0xf] %vm1188_vm5, %v1147_v23  ;;  %v1153_v4 = vpop.permute.xlu0 %1152 }
 0x127   : > { %2645 = vrot.lane.b32.xlu1 %v4940_v38, %s4529_s11  ;;  %1219 = vst.msk [vmem:[#allocation3 + $0x78] sm:$0xf] %vm1188_vm5, %v1153_v4 }
 0x128   : > { %1622 = vrot.lane.b32.xlu0 %v4134_v48, %s4525_s19 }
 0x129   : > { %v1151_v5 = vpop.permute.xlu1 %1150 }
 0x12a   : > { %1218 = vst.msk [vmem:[#allocation3 + $0x74] sm:$0xf] %vm1188_vm5, %v1151_v5  ;;  %v1350_v10 = vpop.permute.xlu0 %1349 }
 0x12b   : > { %2649 = vrot.lane.b32.xlu1 %v4948_v46, %s4529_s11  ;;  %1446 = vst.msk [vmem:[#allocation3] sm:$0xf] %vm1445_vm7, %v1350_v10 }
 0x12c   : > { %1626 = vrot.lane.b32.xlu0 %v4042_v30, %s4525_s19 }
 0x12d   : > { %v1155_v41 = vpop.permute.xlu1 %1154 }
 0x12e   : > { %1220 = vst.msk [vmem:[#allocation3 + $0x7c] sm:$0xf] %vm1188_vm5, %v1155_v41  ;;  %v1354_v38 = vpop.permute.xlu0 %1353 }
 0x12f   : > { %1624 = vrot.lane.b32.xlu1 %v4135_v57, %s4525_s19  ;;  %1448 = vst.msk [vmem:[#allocation3 + $0x8] sm:$0xf] %vm1445_vm7, %v1354_v38 }
 0x130   : > { %1879 = vrot.lane.b32.xlu0 %v4936_v36, %s4526_s20 }
 0x131   : > { %v1352_v12 = vpop.permute.xlu1 %1351 }
 0x132   : > { %1447 = vst.msk [vmem:[#allocation3 + $0x4] sm:$0xf] %vm1445_vm7, %v1352_v12  ;;  %v1358_v14 = vpop.permute.xlu0 %1357  ;;  %v2522_v12 = vld [vmem:[#allocation2 + $0xe2] sm:$0xff] }
 0x133   : > { %1628 = vrot.lane.b32.xlu1 %v4043_v3, %s4525_s19  ;;  %1450 = vst.msk [vmem:[#allocation3 + $0x10] sm:$0xf] %vm1445_vm7, %v1358_v14 }
 0x134   : > { %1883 = vrot.lane.b32.xlu0 %v4944_v44, %s4526_s20 }
 0x135   : > { %v1356_v15 = vpop.permute.xlu1 %1355 }
 0x136   : > { %1449 = vst.msk [vmem:[#allocation3 + $0xc] sm:$0xf] %vm1445_vm7, %v1356_v15  ;;  %v1362_v40 = vpop.permute.xlu0 %1361 }
 0x137   : > { %1881 = vrot.lane.b32.xlu1 %v4948_v46, %s4526_s20  ;;  %1452 = vst.msk [vmem:[#allocation3 + $0x18] sm:$0xf] %vm1445_vm7, %v1362_v40  ;;  %v4175_v40 = vpack.c.bf16 %v2522_v12, %v2522_v12 }
 0x138   : > { %2137 = vrot.lane.b32.xlu0 %v4836_v59, %s4527_s22  ;;  %v4138_v59 = vpack.c.bf16 %v2260_v18, %v2260_v18 }
 0x139   : > { %v1360_v36 = vpop.permute.xlu1 %1359 }
 0x13a   : > { %1451 = vst.msk [vmem:[#allocation3 + $0x14] sm:$0xf] %vm1445_vm7, %v1360_v36  ;;  %v1366_v16 = vpop.permute.xlu0 %1365 }
 0x13b   : > { %1885 = vrot.lane.b32.xlu1 %v4954_v51, %s4526_s20  ;;  %1454 = vst.msk [vmem:[#allocation3 + $0x20] sm:$0xf] %vm1445_vm7, %v1366_v16  ;;  %v2515_v51 = vld [vmem:[#allocation2 + $0x92] sm:$0xff] }
 0x13c   : > { %2141 = vrot.lane.b32.xlu0 %v4840_v61, %s4527_s22  ;;  %v2261_v61 = vld [vmem:[#allocation2 + $0xb1] sm:$0xff]  ;;  %v4168_v42 = vpack.c.bf16 %v2515_v51, %v2515_v51 }
 0x13d   : > { %v1364_v44 = vpop.permute.xlu1 %1363  ;;  %v4139_v35 = vpack.c.bf16 %v2261_v61, %v2261_v61 }
 0x13e   : > { %1453 = vst.msk [vmem:[#allocation3 + $0x1c] sm:$0xf] %vm1445_vm7, %v1364_v44  ;;  %v1370_v46 = vpop.permute.xlu0 %1369 }
 0x13f   : > { %2139 = vrot.lane.b32.xlu1 %v4838_v60, %s4527_s22  ;;  %1456 = vst.msk [vmem:[#allocation3 + $0x28] sm:$0xf] %vm1445_vm7, %v1370_v46 }
 0x140   : > { %2394 = vrot.lane.b32.xlu0 %v4042_v30, %s4528_s28  ;;  %v2265_v30 = vld [vmem:[#allocation2 + $0xe1] sm:$0xff] }
 0x141   : > { %v1368_v20 = vpop.permute.xlu1 %1367  ;;  %v4143_v11 = vpack.c.bf16 %v2265_v30, %v2265_v30 }
 0x142   : > { %1455 = vst.msk [vmem:[#allocation3 + $0x24] sm:$0xf] %vm1445_vm7, %v1368_v20  ;;  %v1374_v26 = vpop.permute.xlu0 %1373 }
 0x143   : > { %2143 = vrot.lane.b32.xlu1 %v4842_v62, %s4527_s22  ;;  %1458 = vst.msk [vmem:[#allocation3 + $0x30] sm:$0xf] %vm1445_vm7, %v1374_v26  ;;  %v4170_v62 = vpack.c.bf16 %v2517_v21, %v2517_v21  ;;  %v4382_v26 = vld [vmem:[%s4581_s30 + $0x78] sm:$0xff]  }
 0x144   : > { %2398 = vrot.lane.b32.xlu0 %v4138_v59, %s4528_s28  ;;  %v4286_v61 = vunpack.c.l.bf16 %v4382_v26  ;;  %v1753_v21 = vld [vmem:[#allocation2 + $0xf2] sm:$0xff] }
 0x145   : > { %v1372_v60 = vpop.permute.xlu1 %1371  ;;  %v4082_v31 = vpack.c.bf16 %v1753_v21, %v1753_v21 }
 0x146   : > { %1457 = vst.msk [vmem:[#allocation3 + $0x2c] sm:$0xf] %vm1445_vm7, %v1372_v60  ;;  %v1378_v22 = vpop.permute.xlu0 %1377 }
 0x147   : > { %2396 = vrot.lane.b32.xlu1 %v4043_v3, %s4528_s28  ;;  %1460 = vst.msk [vmem:[#allocation3 + $0x38] sm:$0xf] %vm1445_vm7, %v1378_v22  ;;  %v4511_v22 = vld [vmem:[%s5582_s3] ss:$0 sm:$0xff] }
 0x148   : > { %2651 = vrot.lane.b32.xlu0 %v4168_v42, %s4529_s11  ;;  %v1497_v42 = vld [vmem:[#allocation2 + $0xf9] sm:$0xff] }
 0x149   : > { %v1376_v24 = vpop.permute.xlu1 %1375 }
 0x14a   : > { %1459 = vst.msk [vmem:[#allocation3 + $0x34] sm:$0xf] %vm1445_vm7, %v1376_v24  ;;  %v1607_v27 = vpop.permute.xlu0 %1606  ;;  %v4512_v24 = vld [vmem:[%s4576_s27] ss:$0 sm:$0xff] }
 0x14b   : > { %2400 = vrot.lane.b32.xlu1 %v4139_v35, %s4528_s28  ;;  %1703 = vst.msk [vmem:[#allocation3] sm:$0xf] %vm1702_vm8, %v1607_v27 }
 0x14c   : > { %2655 = vrot.lane.b32.xlu0 %v4170_v62, %s4529_s11 }
 0x14d   : > { %v1380_v34 = vpop.permute.xlu1 %1379 }
 0x14e   : > { %1461 = vst.msk [vmem:[#allocation3 + $0x3c] sm:$0xf] %vm1445_vm7, %v1380_v34  ;;  %v1611_v43 = vpop.permute.xlu0 %1610 }
 0x14f   : > { %2653 = vrot.lane.b32.xlu1 %v4169_v29, %s4529_s11  ;;  %1705 = vst.msk [vmem:[#allocation3 + $0x8] sm:$0xf] %vm1702_vm8, %v1611_v43 }
 0x150   : > { %1630 = vrot.lane.b32.xlu0 %v4138_v59, %s4525_s19  ;;  %v1496_v59 = vld [vmem:[#allocation2 + $0xf1] sm:$0xff] }
 0x151   : > { %v1609_v47 = vpop.permute.xlu1 %1608  ;;  %v4050_v20 = vpack.c.bf16 %v1496_v59, %v1496_v59 }
 0x152   : > { %1704 = vst.msk [vmem:[#allocation3 + $0x4] sm:$0xf] %vm1702_vm8, %v1609_v47  ;;  %v1864_v49 = vpop.permute.xlu0 %1863 }
 0x153   : > { %2657 = vrot.lane.b32.xlu1 %v4171_v28, %s4529_s11  ;;  %1960 = vst.msk [vmem:[#allocation3] sm:$0xf] %vm1959_vm9, %v1864_v49  ;;  %v2011_v49 = vld [vmem:[#allocation2 + $0x108] sm:$0xff] }
 0x154   : > { %1634 = vrot.lane.b32.xlu0 %v4046_v45, %s4525_s19 }
 0x155   : > { %v1613_v52 = vpop.permute.xlu1 %1612 }
 0x156   : > { %1706 = vst.msk [vmem:[#allocation3 + $0xc] sm:$0xf] %vm1702_vm8, %v1613_v52  ;;  %v1868_v8 = vpop.permute.xlu0 %1867 }
 0x157   : > { %1632 = vrot.lane.b32.xlu1 %v4139_v35, %s4525_s19  ;;  %1962 = vst.msk [vmem:[#allocation3 + $0x8] sm:$0xf] %vm1959_vm9, %v1868_v8  ;;  %v439_v35 = vmul.f32 %v4511_v22, %v4286_v61  ;;  %v4114_v8 = vpack.c.bf16 %v2011_v49, %v2011_v49  ;;  %v1757_v61 = vld [vmem:[#allocation2 + $0x122] sm:$0xff] }
 0x158   : > { %1887 = vrot.lane.b32.xlu0 %v4170_v62, %s4526_s20 }
 0x159   : > { %v1866_v32 = vpop.permute.xlu1 %1865  ;;  %v478_v27 = vadd.f32 %v4512_v24, %v439_v35  ;;  %v1758_v35 = vld [vmem:[#allocation2 + $0x12a] sm:$0xff] }
 0x15a   : > { %1961 = vst.msk [vmem:[#allocation3 + $0x4] sm:$0xf] %vm1959_vm9, %v1866_v32  ;;  %v2122_v48 = vpop.permute.xlu0 %2121  ;;  %v4113_v32 = vpack.c.bf16 %v2010_v25, %v2010_v25  ;;  %v2273_v25 = vld [vmem:[#allocation2 + $0x141] sm:$0xff] }
 0x15b   : > { %1636 = vrot.lane.b32.xlu1 %v4047_v56, %s4525_s19  ;;  %2218 = vst.msk [vmem:[#allocation3] sm:$0xf] %vm2217_vm10, %v2122_v48  ;;  %v2012_v48 = vld [vmem:[#allocation2 + $0x110] sm:$0xff] }
 0x15c   : > { %1891 = vrot.lane.b32.xlu0 %v4078_v13, %s4526_s20  ;;  %512 = vst.msk [vmem:[#allocation2 + $0x181] sm:$0xff] %vm481_vm2, %v478_v27 }
 0x15d   : > { %v1870_v33 = vpop.permute.xlu1 %1869 }
 0x15e   : > { %1963 = vst.msk [vmem:[#allocation3 + $0xc] sm:$0xf] %vm1959_vm9, %v1870_v33  ;;  %v2126_v54 = vpop.permute.xlu0 %2125  ;;  %v2268_v33 = vld [vmem:[#allocation2 + $0x109] sm:$0xff] }
 0x15f   : > { %1889 = vrot.lane.b32.xlu1 %v4171_v28, %s4526_s20  ;;  %2220 = vst.msk [vmem:[#allocation3 + $0x8] sm:$0xf] %vm2217_vm10, %v2126_v54  ;;  %v1754_v28 = vld [vmem:[#allocation2 + $0xfa] sm:$0xff] }
 0x160   : > { %2145 = vrot.lane.b32.xlu0 %v4850_v63, %s4527_s22  ;;  %v4142_v63 = vpack.c.bf16 %v2264_v55, %v2264_v55  ;;  %v4083_v52 = vpack.c.bf16 %v1754_v28, %v1754_v28  ;;  %v2269_v55 = vld [vmem:[#allocation2 + $0x111] sm:$0xff] }
 0x161   : > { %v2124_v53 = vpop.permute.xlu1 %2123 }
 0x162   : > { %2219 = vst.msk [vmem:[#allocation3 + $0x4] sm:$0xf] %vm2217_vm10, %v2124_v53  ;;  %v2379_v57 = vpop.permute.xlu0 %2378  ;;  %v4146_v53 = vpack.c.bf16 %v2268_v33, %v2268_v33 }
 0x163   : > { %1893 = vrot.lane.b32.xlu1 %v4079_v17, %s4526_s20  ;;  %2475 = vst.msk [vmem:[#allocation3] sm:$0xf] %vm2474_vm11, %v2379_v57 }
 0x164   : > { %2149 = vrot.lane.b32.xlu0 %v4854_v1, %s4527_s22 }
 0x165   : > { %v2128_v58 = vpop.permute.xlu1 %2127 }
 0x166   : > { %2221 = vst.msk [vmem:[#allocation3 + $0xc] sm:$0xf] %vm2217_vm10, %v2128_v58  ;;  %v2383_v23 = vpop.permute.xlu0 %2382 }
 0x167   : > { %2147 = vrot.lane.b32.xlu1 %v4852_v0, %s4527_s22  ;;  %2477 = vst.msk [vmem:[#allocation3 + $0x8] sm:$0xf] %vm2474_vm11, %v2383_v23  ;;  %v2521_v0 = vld [vmem:[#allocation2 + $0xda] sm:$0xff] }
 0x168   : > { %2402 = vrot.lane.b32.xlu0 %v4046_v45, %s4528_s28  ;;  %v4174_v41 = vpack.c.bf16 %v2521_v0, %v2521_v0  ;;  %v4112_v45 = vpack.c.bf16 %v2009_v37, %v2009_v37 }
 0x169   : > { %v2381_v39 = vpop.permute.xlu1 %2380 }
 0x16a   : > { %2476 = vst.msk [vmem:[#allocation3 + $0x4] sm:$0xf] %vm2474_vm11, %v2381_v39  ;;  %v2636_v4 = vpop.permute.xlu0 %2635 }
 0x16b   : > { %2151 = vrot.lane.b32.xlu1 %v4856_v2, %s4527_s22  ;;  %2732 = vst.msk [vmem:[#allocation3] sm:$0xf] %vm2731_vm12, %v2636_v4  ;;  %v4147_v4 = vpack.c.bf16 %v2269_v55, %v2269_v55 }
 0x16c   : > { %2406 = vrot.lane.b32.xlu0 %v4142_v63, %s4528_s28 }
 0x16d   : > { %v2385_v5 = vpop.permute.xlu1 %2384 }
 0x16e   : > { %2478 = vst.msk [vmem:[#allocation3 + $0xc] sm:$0xf] %vm2474_vm11, %v2385_v5  ;;  %v2640_v10 = vpop.permute.xlu0 %2639 }
 0x16f   : > { %2404 = vrot.lane.b32.xlu1 %v4047_v56, %s4528_s28  ;;  %2734 = vst.msk [vmem:[#allocation3 + $0x8] sm:$0xf] %vm2731_vm12, %v2640_v10 }
 0x170   : > { %2659 = vrot.lane.b32.xlu0 %v4078_v13, %s4529_s11 }
 0x171   : > { %v2638_v38 = vpop.permute.xlu1 %2637 }
 0x172   : > { %2733 = vst.msk [vmem:[#allocation3 + $0x4] sm:$0xf] %vm2731_vm12, %v2638_v38  ;;  %v1615_v3 = vpop.permute.xlu0 %1614 }
 0x173   : > { %2408 = vrot.lane.b32.xlu1 %v4143_v11, %s4528_s28  ;;  %1707 = vst.msk [vmem:[#allocation3 + $0x10] sm:$0xf] %vm1702_vm8, %v1615_v3  ;;  %v1243_v3 = vld [vmem:[#allocation2 + $0x120] sm:$0xff] }
 0x174   : > { %2663 = vrot.lane.b32.xlu0 %v4174_v41, %s4529_s11 }
 0x175   : > { %v2642_v14 = vpop.permute.xlu1 %2641 }
 0x176   : > { %2735 = vst.msk [vmem:[#allocation3 + $0xc] sm:$0xf] %vm2731_vm12, %v2642_v14  ;;  %v1619_v15 = vpop.permute.xlu0 %1618 }
 0x177   : > { %2661 = vrot.lane.b32.xlu1 %v4079_v17, %s4529_s11  ;;  %1709 = vst.msk [vmem:[#allocation3 + $0x18] sm:$0xf] %vm1702_vm8, %v1619_v15  ;;  %v4115_v17 = vpack.c.bf16 %v2012_v48, %v2012_v48  ;;  %v4022_v15 = vpack.c.bf16 %v1243_v3, %v1243_v3  ;;  %v4151_v48 = vpack.c.bf16 %v2273_v25, %v2273_v25  ;;  %v1505_v3 = vld [vmem:[#allocation2 + $0x159] sm:$0xff] }
 0x178   : > { %1381 = vrot.lane.b32.xlu0 %v4854_v1, %s4524_s18 }
 0x179   : > { %v1617_v36 = vpop.permute.xlu1 %1616  ;;  %v4495_v16 = vld [vmem:[#allocation3] sm:$0xff]  }
 0x17a   : > { %1708 = vst.msk [vmem:[#allocation3 + $0x14] sm:$0xf] %vm1702_vm8, %v1617_v36  ;;  %v1872_v44 = vpop.permute.xlu0 %1871  ;;  %4429 = vmatprep.mubr.msk.bf16.mxu0 %vm2919_vm13, %v4495_v16  ;;  %v1244_v16 = vld [vmem:[#allocation2 + $0x128] sm:$0xff] }
 0x17b   : > { %2665 = vrot.lane.b32.xlu1 %v4175_v40, %s4529_s11  ;;  %1964 = vst.msk [vmem:[#allocation3 + $0x10] sm:$0xf] %vm1959_vm9, %v1872_v44  ;;  %v4023_v59 = vpack.c.bf16 %v1244_v16, %v1244_v16 }
 0x17c   : > { %1385 = vrot.lane.b32.xlu0 %v4867_v6, %s4524_s18 }
 0x17d   : > { %v1621_v18 = vpop.permute.xlu1 %1620  ;;  %v4496_v46 = vld [vmem:[#allocation3 + $0x8] sm:$0xff]  }
 0x17e   : > { %1710 = vst.msk [vmem:[#allocation3 + $0x1c] sm:$0xf] %vm1702_vm8, %v1621_v18  ;;  %v1876_v1 = vpop.permute.xlu0 %1875  ;;  %4430 = vmatmul.mubr.msk.bf16.vlgmr.msra.gmra.mxu0 %vm2919_vm13, %v4496_v46  ;;  %v1500_v18 = vld [vmem:[#allocation2 + $0x121] sm:$0xff] }
 0x17f   : > { %1383 = vrot.lane.b32.xlu1 %v4856_v2, %s4524_s18  ;;  %1966 = vst.msk [vmem:[#allocation3 + $0x18] sm:$0xf] %vm1959_vm9, %v1876_v1  ;;  %v4287_v2 = vunpack.c.h.bf16 %v4382_v26  ;;  %v4054_v1 = vpack.c.bf16 %v1500_v18, %v1500_v18  ;;  %v1762_v18 = vld [vmem:[#allocation2 + $0x15a] sm:$0xff] }
 0x180   : > { %1638 = vrot.lane.b32.xlu0 %v4142_v63, %s4525_s19  ;;  %v2525_v63 = vld [vmem:[#allocation2 + $0x10a] sm:$0xff] }
 0x181   : > { %v1874_v51 = vpop.permute.xlu1 %1873  ;;  %v440_v9 = vmul.f32 %v4511_v22, %v4287_v2  ;;  %v4178_v30 = vpack.c.bf16 %v2525_v63, %v2525_v63 }
 0x182   : > { %1965 = vst.msk [vmem:[#allocation3 + $0x14] sm:$0xf] %vm1959_vm9, %v1874_v51  ;;  %v2130_v6 = vpop.permute.xlu0 %2129 }
 0x183   : > { %1387 = vrot.lane.b32.xlu1 %v4869_v7, %s4524_s18  ;;  %2222 = vst.msk [vmem:[#allocation3 + $0x10] sm:$0xf] %vm2217_vm10, %v2130_v6  ;;  %v4051_v7 = vpack.c.bf16 %v1497_v42, %v1497_v42  ;;  %v479_v29 = vadd.f32 %v4512_v24, %v440_v9  ;;  %v1501_v6 = vld [vmem:[#allocation2 + $0x129] sm:$0xff]  ;;  %v4087_v24 = vpack.c.bf16 %v1758_v35, %v1758_v35 }
 0x184   : > { %1642 = vrot.lane.b32.xlu0 %v4050_v20, %s4525_s19  ;;  %v4055_v42 = vpack.c.bf16 %v1501_v6, %v1501_v6 }
 0x185   : > { %v1878_v60 = vpop.permute.xlu1 %1877  ;;  %513 = vst.msk [vmem:[#allocation2 + $0x189] sm:$0xff] %vm481_vm2, %v479_v29 }
 0x186   : > { %1967 = vst.msk [vmem:[#allocation3 + $0x1c] sm:$0xf] %vm1959_vm9, %v1878_v60  ;;  %v2134_v62 = vpop.permute.xlu0 %2133  ;;  %v4086_v60 = vpack.c.bf16 %v1757_v61, %v1757_v61 }
 0x187   : > { %1640 = vrot.lane.b32.xlu1 %v4143_v11, %s4525_s19  ;;  %2224 = vst.msk [vmem:[#allocation3 + $0x18] sm:$0xf] %vm2217_vm10, %v2134_v62  ;;  %v2526_v11 = vld [vmem:[#allocation2 + $0x112] sm:$0xff] }
 0x188   : > { %1895 = vrot.lane.b32.xlu0 %v4174_v41, %s4526_s20  ;;  %v4179_v14 = vpack.c.bf16 %v2526_v11, %v2526_v11  ;;  %v2015_v62 = vld [vmem:[#allocation2 + $0x138] sm:$0xff] }
 0x189   : > { %v2132_v34 = vpop.permute.xlu1 %2131  ;;  %v4118_v27 = vpack.c.bf16 %v2015_v62, %v2015_v62 }
 0x18a   : > { %2223 = vst.msk [vmem:[#allocation3 + $0x14] sm:$0xf] %vm2217_vm10, %v2132_v34  ;;  %v2387_v43 = vpop.permute.xlu0 %2386  ;;  %v2016_v34 = vld [vmem:[#allocation2 + $0x140] sm:$0xff] }
 0x18b   : > { %1644 = vrot.lane.b32.xlu1 %v4051_v7, %s4525_s19  ;;  %2479 = vst.msk [vmem:[#allocation3 + $0x10] sm:$0xf] %vm2474_vm11, %v2387_v43  ;;  %v2272_v43 = vld [vmem:[#allocation2 + $0x139] sm:$0xff] }
 0x18c   : > { %1899 = vrot.lane.b32.xlu0 %v4082_v31, %s4526_s20 }
 0x18d   : > { %v2136_v47 = vpop.permute.xlu1 %2135 }
 0x18e   : > { %2225 = vst.msk [vmem:[#allocation3 + $0x1c] sm:$0xf] %vm2217_vm10, %v2136_v47  ;;  %v2391_v50 = vpop.permute.xlu0 %2390  ;;  %v4150_v47 = vpack.c.bf16 %v2272_v43, %v2272_v43 }
 0x18f   : > { %1897 = vrot.lane.b32.xlu1 %v4175_v40, %s4526_s20  ;;  %2481 = vst.msk [vmem:[#allocation3 + $0x18] sm:$0xf] %vm2474_vm11, %v2391_v50 }
 0x190   : > { %2153 = vrot.lane.b32.xlu0 %v4112_v45, %s4527_s22  ;;  %v4119_v45 = vpack.c.bf16 %v2016_v34, %v2016_v34 }
 0x191   : > { %v2389_v56 = vpop.permute.xlu1 %2388 }
 0x192   : > { %2480 = vst.msk [vmem:[#allocation3 + $0x14] sm:$0xf] %vm2474_vm11, %v2389_v56  ;;  %v2644_v13 = vpop.permute.xlu0 %2643 }
 0x193   : > { %1901 = vrot.lane.b32.xlu1 %v4083_v52, %s4526_s20  ;;  %2736 = vst.msk [vmem:[#allocation3 + $0x10] sm:$0xf] %vm2731_vm12, %v2644_v13  ;;  %v2529_v13 = vld [vmem:[#allocation2 + $0x13a] sm:$0xff] }
 0x194   : > { %2157 = vrot.lane.b32.xlu0 %v4114_v8, %s4527_s22 }
 0x195   : > { %v2393_v19 = vpop.permute.xlu1 %2392 }
 0x196   : > { %2482 = vst.msk [vmem:[#allocation3 + $0x1c] sm:$0xf] %vm2474_vm11, %v2393_v19  ;;  %v2648_v54 = vpop.permute.xlu0 %2647  ;;  %v4182_v19 = vpack.c.bf16 %v2529_v13, %v2529_v13  ;;  %v1252_v13 = vld [vmem:[#allocation2 + $0x188] sm:$0xff] }
 0x197   : > { %2155 = vrot.lane.b32.xlu1 %v4113_v32, %s4527_s22  ;;  %2738 = vst.msk [vmem:[#allocation3 + $0x18] sm:$0xf] %vm2731_vm12, %v2648_v54 }
 0x198   : > { %2410 = vrot.lane.b32.xlu0 %v4050_v20, %s4528_s28 }
 0x199   : > { %v2646_v57 = vpop.permute.xlu1 %2645 }
 0x19a   : > { %2737 = vst.msk [vmem:[#allocation3 + $0x14] sm:$0xf] %vm2731_vm12, %v2646_v57  ;;  %v1623_v58 = vpop.permute.xlu0 %1622  ;;  %v1247_v57 = vld [vmem:[#allocation2 + $0x150] sm:$0xff] }
 0x19b   : > { %2159 = vrot.lane.b32.xlu1 %v4115_v17, %s4527_s22  ;;  %1711 = vst.msk [vmem:[#allocation3 + $0x20] sm:$0xf] %vm1702_vm8, %v1623_v58 }
 0x19c   : > { %2414 = vrot.lane.b32.xlu0 %v4146_v53, %s4528_s28 }
 0x19d   : > { %v2650_v23 = vpop.permute.xlu1 %2649 }
 0x19e   : > { %2739 = vst.msk [vmem:[#allocation3 + $0x1c] sm:$0xf] %vm2731_vm12, %v2650_v23  ;;  %v1627_v39 = vpop.permute.xlu0 %1626  ;;  %v4026_v23 = vpack.c.bf16 %v1247_v57, %v1247_v57  ;;  %v1509_v57 = vld [vmem:[#allocation2 + $0x189] sm:$0xff] }
 0x19f   : > { %2412 = vrot.lane.b32.xlu1 %v4051_v7, %s4528_s28  ;;  %1713 = vst.msk [vmem:[#allocation3 + $0x28] sm:$0xf] %vm1702_vm8, %v1627_v39 }
 0x1a0   : > { %2667 = vrot.lane.b32.xlu0 %v4082_v31, %s4529_s11 }
 0x1a1   : > { %v1625_v5 = vpop.permute.xlu1 %1624  ;;  %v4497_v0 = vld [vmem:[#allocation3 + $0x10] sm:$0xff]  }
 0x1a2   : > { %1712 = vst.msk [vmem:[#allocation3 + $0x24] sm:$0xf] %vm1702_vm8, %v1625_v5  ;;  %v1880_v10 = vpop.permute.xlu0 %1879  ;;  %4433 = vmatprep.mubr.msk.bf16.mxu0 %vm2919_vm13, %v4497_v0  ;;  %v1504_v5 = vld [vmem:[#allocation2 + $0x151] sm:$0xff] }
 0x1a3   : > { %2416 = vrot.lane.b32.xlu1 %v4147_v4, %s4528_s28  ;;  %1968 = vst.msk [vmem:[#allocation3 + $0x20] sm:$0xf] %vm1959_vm9, %v1880_v10  ;;  %v4058_v11 = vpack.c.bf16 %v1504_v5, %v1504_v5  ;;  %v1766_v5 = vld [vmem:[#allocation2 + $0x18a] sm:$0xff] }
 0x1a4   : > { %2671 = vrot.lane.b32.xlu0 %v4178_v30, %s4529_s11 }
 0x1a5   : > { %v1629_v41 = vpop.permute.xlu1 %1628  ;;  %v4498_v38 = vld [vmem:[#allocation3 + $0x18] sm:$0xff]  }
 0x1a6   : > { %1714 = vst.msk [vmem:[#allocation3 + $0x2c] sm:$0xf] %vm1702_vm8, %v1629_v41  ;;  %v1884_v12 = vpop.permute.xlu0 %1883  ;;  %4434 = vmatmul.mubr.msk.bf16.gmra.mxu0 %vm2919_vm13, %v4498_v38 }
 0x1a7   : > { %2669 = vrot.lane.b32.xlu1 %v4083_v52, %s4529_s11  ;;  %1970 = vst.msk [vmem:[#allocation3 + $0x28] sm:$0xf] %vm1959_vm9, %v1884_v12 }
 0x1a8   : > { %1389 = vrot.lane.b32.xlu0 %v4114_v8, %s4524_s18 }
 0x1a9   : > { %v1882_v40 = vpop.permute.xlu1 %1881 }
 0x1aa   : > { %1969 = vst.msk [vmem:[#allocation3 + $0x24] sm:$0xf] %vm1959_vm9, %v1882_v40  ;;  %v2138_v36 = vpop.permute.xlu0 %2137  ;;  %v4059_v40 = vpack.c.bf16 %v1505_v3, %v1505_v3 }
 0x1ab   : > { %2673 = vrot.lane.b32.xlu1 %v4179_v14, %s4529_s11  ;;  %2226 = vst.msk [vmem:[#allocation3 + $0x20] sm:$0xf] %vm2217_vm10, %v2138_v36 }
 0x1ac   : > { %1393 = vrot.lane.b32.xlu0 %v4022_v15, %s4524_s18 }
 0x1ad   : > { %v1886_v44 = vpop.permute.xlu1 %1885 }
 0x1ae   : > { %1971 = vst.msk [vmem:[#allocation3 + $0x2c] sm:$0xf] %vm1959_vm9, %v1886_v44  ;;  %v2142_v46 = vpop.permute.xlu0 %2141 }
 0x1af   : > { %1391 = vrot.lane.b32.xlu1 %v4115_v17, %s4524_s18  ;;  %2228 = vst.msk [vmem:[#allocation3 + $0x28] sm:$0xf] %vm2217_vm10, %v2142_v46  ;;  %v2530_v17 = vld [vmem:[#allocation2 + $0x142] sm:$0xff] }
 0x1b0   : > { %1646 = vrot.lane.b32.xlu0 %v4146_v53, %s4525_s19  ;;  %v4183_v55 = vpack.c.bf16 %v2530_v17, %v2530_v17 }
 0x1b1   : > { %v2140_v20 = vpop.permute.xlu1 %2139 }
 0x1b2   : > { %2227 = vst.msk [vmem:[#allocation3 + $0x24] sm:$0xf] %vm2217_vm10, %v2140_v20  ;;  %v2395_v51 = vpop.permute.xlu0 %2394  ;;  %v4091_v20 = vpack.c.bf16 %v1762_v18, %v1762_v18 }
 0x1b3   : > { %1395 = vrot.lane.b32.xlu1 %v4023_v59, %s4524_s18  ;;  %2483 = vst.msk [vmem:[#allocation3 + $0x20] sm:$0xf] %vm2474_vm11, %v2395_v51 }
 0x1b4   : > { %1650 = vrot.lane.b32.xlu0 %v4054_v1, %s4525_s19 }
 0x1b5   : > { %v2144_v26 = vpop.permute.xlu1 %2143 }
 0x1b6   : > { %2229 = vst.msk [vmem:[#allocation3 + $0x2c] sm:$0xf] %vm2217_vm10, %v2144_v26  ;;  %v2399_v2 = vpop.permute.xlu0 %2398 }
 0x1b7   : > { %1648 = vrot.lane.b32.xlu1 %v4147_v4, %s4525_s19  ;;  %2485 = vst.msk [vmem:[#allocation3 + $0x28] sm:$0xf] %vm2474_vm11, %v2399_v2  ;;  %v1248_v4 = vld [vmem:[#allocation2 + $0x158] sm:$0xff]  ;;  %v2020_v2 = vld [vmem:[#allocation2 + $0x170] sm:$0xff] }
 0x1b8   : > { %1903 = vrot.lane.b32.xlu0 %v4178_v30, %s4526_s20  ;;  %v4027_v10 = vpack.c.bf16 %v1248_v4, %v1248_v4  ;;  %v4123_v35 = vpack.c.bf16 %v2020_v2, %v2020_v2 }
 0x1b9   : > { %v2397_v21 = vpop.permute.xlu1 %2396 }
 0x1ba   : > { %2484 = vst.msk [vmem:[#allocation3 + $0x24] sm:$0xf] %vm2474_vm11, %v2397_v21  ;;  %v2652_v22 = vpop.permute.xlu0 %2651  ;;  %v2276_v21 = vld [vmem:[#allocation2 + $0x169] sm:$0xff] }
 0x1bb   : > { %1652 = vrot.lane.b32.xlu1 %v4055_v42, %s4525_s19  ;;  %2740 = vst.msk [vmem:[#allocation3 + $0x20] sm:$0xf] %vm2731_vm12, %v2652_v22 }
 0x1bc   : > { %1907 = vrot.lane.b32.xlu0 %v4086_v60, %s4526_s20 }
 0x1bd   : > { %v2401_v9 = vpop.permute.xlu1 %2400 }
 0x1be   : > { %2486 = vst.msk [vmem:[#allocation3 + $0x2c] sm:$0xf] %vm2474_vm11, %v2401_v9  ;;  %v2656_v7 = vpop.permute.xlu0 %2655  ;;  %v4154_v9 = vpack.c.bf16 %v2276_v21, %v2276_v21  ;;  %v2538_v21 = vld [vmem:[#allocation2 + $0x1a2] sm:$0xff] }
 0x1bf   : > { %1905 = vrot.lane.b32.xlu1 %v4179_v14, %s4526_s20  ;;  %2742 = vst.msk [vmem:[#allocation3 + $0x28] sm:$0xf] %vm2731_vm12, %v2656_v7  ;;  %v1761_v14 = vld [vmem:[#allocation2 + $0x152] sm:$0xff] }
 0x1c0   : > { %2161 = vrot.lane.b32.xlu0 %v4022_v15, %s4527_s22  ;;  %v4090_v36 = vpack.c.bf16 %v1761_v14, %v1761_v14 }
 0x1c1   : > { %v2654_v29 = vpop.permute.xlu1 %2653 }
 0x1c2   : > { %2741 = vst.msk [vmem:[#allocation3 + $0x24] sm:$0xf] %vm2731_vm12, %v2654_v29  ;;  %v1631_v31 = vpop.permute.xlu0 %1630  ;;  %v2533_v29 = vld [vmem:[#allocation2 + $0x16a] sm:$0xff] }
 0x1c3   : > { %1909 = vrot.lane.b32.xlu1 %v4087_v24, %s4526_s20  ;;  %1715 = vst.msk [vmem:[#allocation3 + $0x30] sm:$0xf] %vm1702_vm8, %v1631_v31 }
 0x1c4   : > { %2165 = vrot.lane.b32.xlu0 %v4118_v27, %s4527_s22 }
 0x1c5   : > { %v2658_v37 = vpop.permute.xlu1 %2657 }
 0x1c6   : > { %2743 = vst.msk [vmem:[#allocation3 + $0x2c] sm:$0xf] %vm2731_vm12, %v2658_v37  ;;  %v1635_v28 = vpop.permute.xlu0 %1634  ;;  %v4186_v37 = vpack.c.bf16 %v2533_v29, %v2533_v29 }
 0x1c7   : > { %2163 = vrot.lane.b32.xlu1 %v4023_v59, %s4527_s22  ;;  %1717 = vst.msk [vmem:[#allocation3 + $0x38] sm:$0xf] %vm1702_vm8, %v1635_v28  ;;  %v2019_v59 = vld [vmem:[#allocation2 + $0x168] sm:$0xff] }
 0x1c8   : > { %2418 = vrot.lane.b32.xlu0 %v4054_v1, %s4528_s28  ;;  %v4122_v51 = vpack.c.bf16 %v2019_v59, %v2019_v59 }
 0x1c9   : > { %v1633_v49 = vpop.permute.xlu1 %1632  ;;  %v4499_v50 = vld [vmem:[#allocation3 + $0x20] sm:$0xff]  }
 0x1ca   : > { %1716 = vst.msk [vmem:[#allocation3 + $0x34] sm:$0xf] %vm1702_vm8, %v1633_v49  ;;  %v1888_v52 = vpop.permute.xlu0 %1887  ;;  %4437 = vmatprep.mubr.msk.bf16.mxu0 %vm2919_vm13, %v4499_v50  ;;  %v1251_v49 = vld [vmem:[#allocation2 + $0x180] sm:$0xff] }
 0x1cb   : > { %2167 = vrot.lane.b32.xlu1 %v4119_v45, %s4527_s22  ;;  %1972 = vst.msk [vmem:[#allocation3 + $0x30] sm:$0xf] %vm1959_vm9, %v1888_v52  ;;  %v4030_v25 = vpack.c.bf16 %v1251_v49, %v1251_v49 }
 0x1cc   : > { %2422 = vrot.lane.b32.xlu0 %v4150_v47, %s4528_s28 }
 0x1cd   : > { %v1637_v8 = vpop.permute.xlu1 %1636  ;;  %v4500_v56 = vld [vmem:[#allocation3 + $0x28] sm:$0xff]  }
 0x1ce   : > { %1718 = vst.msk [vmem:[#allocation3 + $0x3c] sm:$0xf] %vm1702_vm8, %v1637_v8  ;;  %v1892_v32 = vpop.permute.xlu0 %1891  ;;  %4438 = vmatmul.mubr.msk.bf16.gmra.mxu0 %vm2919_vm13, %v4500_v56 }
 0x1cf   : > { %2420 = vrot.lane.b32.xlu1 %v4055_v42, %s4528_s28  ;;  %1974 = vst.msk [vmem:[#allocation3 + $0x38] sm:$0xf] %vm1959_vm9, %v1892_v32 }
 0x1d0   : > { %2675 = vrot.lane.b32.xlu0 %v4086_v60, %s4529_s11 }
 0x1d1   : > { %v1890_v33 = vpop.permute.xlu1 %1889 }
 0x1d2   : > { %1973 = vst.msk [vmem:[#allocation3 + $0x34] sm:$0xf] %vm1959_vm9, %v1890_v33  ;;  %v2146_v54 = vpop.permute.xlu0 %2145  ;;  %v4031_v33 = vpack.c.bf16 %v1252_v13, %v1252_v13 }
 0x1d3   : > { %2424 = vrot.lane.b32.xlu1 %v4151_v48, %s4528_s28  ;;  %2230 = vst.msk [vmem:[#allocation3 + $0x30] sm:$0xf] %vm2217_vm10, %v2146_v54 }
 0x1d4   : > { %2679 = vrot.lane.b32.xlu0 %v4182_v19, %s4529_s11 }
 0x1d5   : > { %v1894_v53 = vpop.permute.xlu1 %1893 }
 0x1d6   : > { %1975 = vst.msk [vmem:[#allocation3 + $0x3c] sm:$0xf] %vm1959_vm9, %v1894_v53  ;;  %v2150_v58 = vpop.permute.xlu0 %2149 }
 0x1d7   : > { %2677 = vrot.lane.b32.xlu1 %v4087_v24, %s4529_s11  ;;  %2232 = vst.msk [vmem:[#allocation3 + $0x38] sm:$0xf] %vm2217_vm10, %v2150_v58  ;;  %v2277_v24 = vld [vmem:[#allocation2 + $0x171] sm:$0xff] }
 0x1d8   : > { %1397 = vrot.lane.b32.xlu0 %v4118_v27, %s4524_s18  ;;  %v4155_v34 = vpack.c.bf16 %v2277_v24, %v2277_v24 }
 0x1d9   : > { %v2148_v63 = vpop.permute.xlu1 %2147 }
 0x1da   : > { %2231 = vst.msk [vmem:[#allocation3 + $0x34] sm:$0xf] %vm2217_vm10, %v2148_v63  ;;  %v2403_v39 = vpop.permute.xlu0 %2402  ;;  %v4063_v63 = vpack.c.bf16 %v1509_v57, %v1509_v57 }
 0x1db   : > { %2681 = vrot.lane.b32.xlu1 %v4183_v55, %s4529_s11  ;;  %2487 = vst.msk [vmem:[#allocation3 + $0x30] sm:$0xf] %vm2474_vm11, %v2403_v39 }
 0x1dc   : > { %1401 = vrot.lane.b32.xlu0 %v4026_v23, %s4524_s18 }
 0x1dd   : > { %v2152_v30 = vpop.permute.xlu1 %2151 }
 0x1de   : > { %2233 = vst.msk [vmem:[#allocation3 + $0x3c] sm:$0xf] %vm2217_vm10, %v2152_v30  ;;  %v2407_v0 = vpop.permute.xlu0 %2406 }
 0x1df   : > { %1399 = vrot.lane.b32.xlu1 %v4119_v45, %s4524_s18  ;;  %2489 = vst.msk [vmem:[#allocation3 + $0x38] sm:$0xf] %vm2474_vm11, %v2407_v0  ;;  %v2534_v45 = vld [vmem:[#allocation2 + $0x172] sm:$0xff] }
 0x1e0   : > { %1654 = vrot.lane.b32.xlu0 %v4150_v47, %s4525_s19  ;;  %v4187_v52 = vpack.c.bf16 %v2534_v45, %v2534_v45 }
 0x1e1   : > { %v2405_v41 = vpop.permute.xlu1 %2404 }
 0x1e2   : > { %2488 = vst.msk [vmem:[#allocation3 + $0x34] sm:$0xf] %vm2474_vm11, %v2405_v41  ;;  %v2660_v38 = vpop.permute.xlu0 %2659  ;;  %v4095_v41 = vpack.c.bf16 %v1766_v5, %v1766_v5 }
 0x1e3   : > { %1403 = vrot.lane.b32.xlu1 %v4027_v10, %s4524_s18  ;;  %2744 = vst.msk [vmem:[#allocation3 + $0x30] sm:$0xf] %vm2731_vm12, %v2660_v38 }
 0x1e4   : > { %1658 = vrot.lane.b32.xlu0 %v4058_v11, %s4525_s19 }
 0x1e5   : > { %v2409_v12 = vpop.permute.xlu1 %2408 }
 0x1e6   : > { %2490 = vst.msk [vmem:[#allocation3 + $0x3c] sm:$0xf] %vm2474_vm11, %v2409_v12  ;;  %v2664_v15 = vpop.permute.xlu0 %2663 }
 0x1e7   : > { %1656 = vrot.lane.b32.xlu1 %v4151_v48, %s4525_s19  ;;  %2746 = vst.msk [vmem:[#allocation3 + $0x38] sm:$0xf] %vm2731_vm12, %v2664_v15  ;;  %v1508_v48 = vld [vmem:[#allocation2 + $0x181] sm:$0xff] }
 0x1e8   : > { %1911 = vrot.lane.b32.xlu0 %v4182_v19, %s4526_s20  ;;  %v4062_v54 = vpack.c.bf16 %v1508_v48, %v1508_v48  ;;  %v2024_v15 = vld [vmem:[#allocation2 + $0x1a0] sm:$0xff] }
 0x1e9   : > { %v2662_v16 = vpop.permute.xlu1 %2661  ;;  %v4127_v18 = vpack.c.bf16 %v2024_v15, %v2024_v15 }
 0x1ea   : > { %2745 = vst.msk [vmem:[#allocation3 + $0x34] sm:$0xf] %vm2731_vm12, %v2662_v16  ;;  %v1382_v44 = vpop.permute.xlu0 %1381  ;;  %v2280_v16 = vld [vmem:[#allocation2 + $0x199] sm:$0xff] }
 0x1eb   : > { %1660 = vrot.lane.b32.xlu1 %v4059_v40, %s4525_s19  ;;  %1462 = vst.msk [vmem:[#allocation3 + $0x40] sm:$0xf] %vm1445_vm7, %v1382_v44 }
 0x1ec   : > { %1915 = vrot.lane.b32.xlu0 %v4090_v36, %s4526_s20 }
 0x1ed   : > { %v2666_v46 = vpop.permute.xlu1 %2665 }
 0x1ee   : > { %2747 = vst.msk [vmem:[#allocation3 + $0x3c] sm:$0xf] %vm2731_vm12, %v2666_v46  ;;  %v1386_v1 = vpop.permute.xlu0 %1385  ;;  %v4158_v46 = vpack.c.bf16 %v2280_v16, %v2280_v16 }
 0x1ef   : > { %1913 = vrot.lane.b32.xlu1 %v4183_v55, %s4526_s20  ;;  %1464 = vst.msk [vmem:[#allocation3 + $0x48] sm:$0xf] %vm1445_vm7, %v1386_v1  ;;  %v1765_v55 = vld [vmem:[#allocation2 + $0x182] sm:$0xff] }
 0x1f0   : > { %2169 = vrot.lane.b32.xlu0 %v4026_v23, %s4527_s22  ;;  %v4094_v39 = vpack.c.bf16 %v1765_v55, %v1765_v55 }
 0x1f1   : > { %v1384_v6 = vpop.permute.xlu1 %1383  ;;  %v4501_v26 = vld [vmem:[#allocation3 + $0x30] sm:$0xff]  }
 0x1f2   : > { %1463 = vst.msk [vmem:[#allocation3 + $0x44] sm:$0xf] %vm1445_vm7, %v1384_v6  ;;  %v1639_v61 = vpop.permute.xlu0 %1638  ;;  %4441 = vmatprep.mubr.msk.bf16.mxu0 %vm2919_vm13, %v4501_v26  ;;  %v2537_v6 = vld [vmem:[#allocation2 + $0x19a] sm:$0xff] }
 0x1f3   : > { %1917 = vrot.lane.b32.xlu1 %v4091_v20, %s4526_s20  ;;  %1719 = vst.msk [vmem:[#allocation3 + $0x40] sm:$0xf] %vm1702_vm8, %v1639_v61  ;;  %v4190_v2 = vpack.c.bf16 %v2537_v6, %v2537_v6 }
 0x1f4   : > { %2173 = vrot.lane.b32.xlu0 %v4122_v51, %s4527_s22 }
 0x1f5   : > { %v1388_v42 = vpop.permute.xlu1 %1387  ;;  %v4502_v60 = vld [vmem:[#allocation3 + $0x38] sm:$0xff]  }
 0x1f6   : > { %1465 = vst.msk [vmem:[#allocation3 + $0x4c] sm:$0xf] %vm1445_vm7, %v1388_v42  ;;  %v1643_v22 = vpop.permute.xlu0 %1642  ;;  %4442 = vmatmul.mubr.msk.bf16.gmra.mxu0 %vm2919_vm13, %v4502_v60 }
 0x1f7   : > { %2171 = vrot.lane.b32.xlu1 %v4027_v10, %s4527_s22  ;;  %1721 = vst.msk [vmem:[#allocation3 + $0x48] sm:$0xf] %vm1702_vm8, %v1643_v22  ;;  %v2023_v10 = vld [vmem:[#allocation2 + $0x198] sm:$0xff] }
 0x1f8   : > { %2426 = vrot.lane.b32.xlu0 %v4058_v11, %s4528_s28  ;;  %v4126_v38 = vpack.c.bf16 %v2023_v10, %v2023_v10 }
 0x1f9   : > { %v1641_v62 = vpop.permute.xlu1 %1640 }
 0x1fa   : > { %1720 = vst.msk [vmem:[#allocation3 + $0x44] sm:$0xf] %vm1702_vm8, %v1641_v62  ;;  %v1896_v7 = vpop.permute.xlu0 %1895 }
 0x1fb   : > { %2175 = vrot.lane.b32.xlu1 %v4123_v35, %s4527_s22  ;;  %1976 = vst.msk [vmem:[#allocation3 + $0x40] sm:$0xf] %vm1959_vm9, %v1896_v7 }
 0x1fc   : > { %2430 = vrot.lane.b32.xlu0 %v4154_v9, %s4528_s28 }
 0x1fd   : > { %v1645_v27 = vpop.permute.xlu1 %1644 }
 0x1fe   : > { %1722 = vst.msk [vmem:[#allocation3 + $0x4c] sm:$0xf] %vm1702_vm8, %v1645_v27  ;;  %v1900_v31 = vpop.permute.xlu0 %1899 }
 0x1ff   : > { %2428 = vrot.lane.b32.xlu1 %v4059_v40, %s4528_s28  ;;  %1978 = vst.msk [vmem:[#allocation3 + $0x48] sm:$0xf] %vm1959_vm9, %v1900_v31  ;;  %v5464_v31 = vld [vmem:[%s5581_s2] ss:$0 sm:$0xff] }
 0x200   : > { %2683 = vrot.lane.b32.xlu0 %v4090_v36, %s4529_s11 }
 0x201   : > { %v1898_v43 = vpop.permute.xlu1 %1897 }
 0x202   : > { %1977 = vst.msk [vmem:[#allocation3 + $0x44] sm:$0xf] %vm1959_vm9, %v1898_v43  ;;  %v2154_v28 = vpop.permute.xlu0 %2153 }
 0x203   : > { %2432 = vrot.lane.b32.xlu1 %v4155_v34, %s4528_s28  ;;  %2234 = vst.msk [vmem:[#allocation3 + $0x40] sm:$0xf] %vm2217_vm10, %v2154_v28 }
 0x204   : > { %2687 = vrot.lane.b32.xlu0 %v4186_v37, %s4529_s11 }
 0x205   : > { %v1902_v47 = vpop.permute.xlu1 %1901 }
 0x206   : > { %1979 = vst.msk [vmem:[#allocation3 + $0x4c] sm:$0xf] %vm1959_vm9, %v1902_v47  ;;  %v2158_v50 = vpop.permute.xlu0 %2157 }
 0x207   : > { %2685 = vrot.lane.b32.xlu1 %v4091_v20, %s4529_s11  ;;  %2236 = vst.msk [vmem:[#allocation3 + $0x48] sm:$0xf] %vm2217_vm10, %v2158_v50  ;;  %v2281_v20 = vld [vmem:[#allocation2 + $0x1a1] sm:$0xff] }
 0x208   : > { %1405 = vrot.lane.b32.xlu0 %v4122_v51, %s4524_s18  ;;  %v4159_v61 = vpack.c.bf16 %v2281_v20, %v2281_v20 }
 0x209   : > { %v2156_v8 = vpop.permute.xlu1 %2155 }
 0x20a   : > { %2235 = vst.msk [vmem:[#allocation3 + $0x44] sm:$0xf] %vm2217_vm10, %v2156_v8  ;;  %v2411_v56 = vpop.permute.xlu0 %2410 }
 0x20b   : > { %2689 = vrot.lane.b32.xlu1 %v4187_v52, %s4529_s11  ;;  %2491 = vst.msk [vmem:[#allocation3 + $0x40] sm:$0xf] %vm2474_vm11, %v2411_v56 }
 0x20c   : > { %1409 = vrot.lane.b32.xlu0 %v4030_v25, %s4524_s18 }
 0x20d   : > { %v2160_v32 = vpop.permute.xlu1 %2159 }
 0x20e   : > { %2237 = vst.msk [vmem:[#allocation3 + $0x4c] sm:$0xf] %vm2217_vm10, %v2160_v32  ;;  %v2415_v19 = vpop.permute.xlu0 %2414 }
 0x20f   : > { %1407 = vrot.lane.b32.xlu1 %v4123_v35, %s4524_s18  ;;  %2493 = vst.msk [vmem:[#allocation3 + $0x48] sm:$0xf] %vm2474_vm11, %v2415_v19 }
 0x210   : > { %1662 = vrot.lane.b32.xlu0 %v4154_v9, %s4525_s19  ;;  %v4191_v9 = vpack.c.bf16 %v2538_v21, %v2538_v21 }
 0x211   : > { %v2413_v17 = vpop.permute.xlu1 %2412 }
 0x212   : > { %2492 = vst.msk [vmem:[#allocation3 + $0x44] sm:$0xf] %vm2474_vm11, %v2413_v17  ;;  %v2668_v53 = vpop.permute.xlu0 %2667 }
 0x213   : > { %1411 = vrot.lane.b32.xlu1 %v4031_v33, %s4524_s18  ;;  %2748 = vst.msk [vmem:[#allocation3 + $0x40] sm:$0xf] %vm2731_vm12, %v2668_v53 }
 0x214   : > { %1666 = vrot.lane.b32.xlu0 %v4062_v54, %s4525_s19 }
 0x215   : > { %v2417_v58 = vpop.permute.xlu1 %2416 }
 0x216   : > { %2494 = vst.msk [vmem:[#allocation3 + $0x4c] sm:$0xf] %vm2474_vm11, %v2417_v58  ;;  %v2672_v23 = vpop.permute.xlu0 %2671 }
 0x217   : > { %1664 = vrot.lane.b32.xlu1 %v4155_v34, %s4525_s19  ;;  %2750 = vst.msk [vmem:[#allocation3 + $0x48] sm:$0xf] %vm2731_vm12, %v2672_v23 }
 0x218   : > { %1919 = vrot.lane.b32.xlu0 %v4186_v37, %s4526_s20 }
 0x219   : > { %v2670_v4 = vpop.permute.xlu1 %2669 }
 0x21a   : > { %2749 = vst.msk [vmem:[#allocation3 + $0x44] sm:$0xf] %vm2731_vm12, %v2670_v4  ;;  %v1390_v30 = vpop.permute.xlu0 %1389 }
 0x21b   : > { %1668 = vrot.lane.b32.xlu1 %v4063_v63, %s4525_s19  ;;  %1466 = vst.msk [vmem:[#allocation3 + $0x50] sm:$0xf] %vm1445_vm7, %v1390_v30 }
 0x21c   : > { %1923 = vrot.lane.b32.xlu0 %v4094_v39, %s4526_s20 }
 0x21d   : > { %v2674_v0 = vpop.permute.xlu1 %2673 }
 0x21e   : > { %2751 = vst.msk [vmem:[#allocation3 + $0x4c] sm:$0xf] %vm2731_vm12, %v2674_v0  ;;  %v1394_v11 = vpop.permute.xlu0 %1393 }
 0x21f   : > { %1921 = vrot.lane.b32.xlu1 %v4187_v52, %s4526_s20  ;;  %1468 = vst.msk [vmem:[#allocation3 + $0x58] sm:$0xf] %vm1445_vm7, %v1394_v11 }
 0x220   : > { %2177 = vrot.lane.b32.xlu0 %v4030_v25, %s4527_s22 }
 0x221   : > { %v1392_v3 = vpop.permute.xlu1 %1391  ;;  %v4503_v12 = vld [vmem:[#allocation3 + $0x40] sm:$0xff]  }
 0x222   : > { %1467 = vst.msk [vmem:[#allocation3 + $0x54] sm:$0xf] %vm1445_vm7, %v1392_v3  ;;  %v1647_v14 = vpop.permute.xlu0 %1646  ;;  %4445 = vmatprep.mubr.msk.bf16.mxu1 %vm2919_vm13, %v4503_v12 }
 0x223   : > { %1925 = vrot.lane.b32.xlu1 %v4095_v41, %s4526_s20  ;;  %1723 = vst.msk [vmem:[#allocation3 + $0x50] sm:$0xf] %vm1702_vm8, %v1647_v14 }
 0x224   : > { %2181 = vrot.lane.b32.xlu0 %v4126_v38, %s4527_s22 }
 0x225   : > { %v1396_v40 = vpop.permute.xlu1 %1395  ;;  %v4504_v36 = vld [vmem:[#allocation3 + $0x48] sm:$0xff]  }
 0x226   : > { %1469 = vst.msk [vmem:[#allocation3 + $0x5c] sm:$0xf] %vm1445_vm7, %v1396_v40  ;;  %v1651_v44 = vpop.permute.xlu0 %1650  ;;  %4446 = vmatmul.mubr.msk.bf16.vlgmr.msra.gmra.mxu1 %vm2919_vm13, %v4504_v36 }
 0x227   : > { %2179 = vrot.lane.b32.xlu1 %v4031_v33, %s4527_s22  ;;  %1725 = vst.msk [vmem:[#allocation3 + $0x58] sm:$0xf] %vm1702_vm8, %v1651_v44 }
 0x228   : > { %2434 = vrot.lane.b32.xlu0 %v4062_v54, %s4528_s28 }
 0x229   : > { %v1649_v59 = vpop.permute.xlu1 %1648 }
 0x22a   : > { %1724 = vst.msk [vmem:[#allocation3 + $0x54] sm:$0xf] %vm1702_vm8, %v1649_v59  ;;  %v1904_v1 = vpop.permute.xlu0 %1903 }
 0x22b   : > { %2183 = vrot.lane.b32.xlu1 %v4127_v18, %s4527_s22  ;;  %1980 = vst.msk [vmem:[#allocation3 + $0x50] sm:$0xf] %vm1959_vm9, %v1904_v1 }
 0x22c   : > { %2438 = vrot.lane.b32.xlu0 %v4158_v46, %s4528_s28 }
 0x22d   : > { %v1653_v51 = vpop.permute.xlu1 %1652 }
 0x22e   : > { %1726 = vst.msk [vmem:[#allocation3 + $0x5c] sm:$0xf] %vm1702_vm8, %v1653_v51  ;;  %v1908_v26 = vpop.permute.xlu0 %1907 }
 0x22f   : > { %2436 = vrot.lane.b32.xlu1 %v4063_v63, %s4528_s28  ;;  %1982 = vst.msk [vmem:[#allocation3 + $0x58] sm:$0xf] %vm1959_vm9, %v1908_v26 }
 0x230   : > { %2691 = vrot.lane.b32.xlu0 %v4094_v39, %s4529_s11 }
 0x231   : > { %v1906_v42 = vpop.permute.xlu1 %1905 }
 0x232   : > { %1981 = vst.msk [vmem:[#allocation3 + $0x54] sm:$0xf] %vm1959_vm9, %v1906_v42  ;;  %v2162_v60 = vpop.permute.xlu0 %2161 }
 0x233   : > { %2440 = vrot.lane.b32.xlu1 %v4159_v61, %s4528_s28  ;;  %2238 = vst.msk [vmem:[#allocation3 + $0x50] sm:$0xf] %vm2217_vm10, %v2162_v60 }
 0x234   : > { %2695 = vrot.lane.b32.xlu0 %v4190_v2, %s4529_s11 }
 0x235   : > { %v1910_v22 = vpop.permute.xlu1 %1909 }
 0x236   : > { %1983 = vst.msk [vmem:[#allocation3 + $0x5c] sm:$0xf] %vm1959_vm9, %v1910_v22  ;;  %v2166_v35 = vpop.permute.xlu0 %2165 }
 0x237   : > { %2693 = vrot.lane.b32.xlu1 %v4095_v41, %s4529_s11  ;;  %2240 = vst.msk [vmem:[#allocation3 + $0x58] sm:$0xf] %vm2217_vm10, %v2166_v35 }
 0x239   : > { %v2164_v62 = vpop.permute.xlu1 %2163 }
 0x23a   : > { %2239 = vst.msk [vmem:[#allocation3 + $0x54] sm:$0xf] %vm2217_vm10, %v2164_v62  ;;  %v2419_v7 = vpop.permute.xlu0 %2418 }
 0x23b   : > { %2697 = vrot.lane.b32.xlu1 %v4191_v9, %s4529_s11  ;;  %2495 = vst.msk [vmem:[#allocation3 + $0x50] sm:$0xf] %vm2474_vm11, %v2419_v7 }
 0x23d   : > { %v2168_v24 = vpop.permute.xlu1 %2167 }
 0x23e   : > { %2241 = vst.msk [vmem:[#allocation3 + $0x5c] sm:$0xf] %vm2217_vm10, %v2168_v24  ;;  %v2423_v27 = vpop.permute.xlu0 %2422  ;;  %v4431_v29 = vpop.f32.mrf.mxu0 }
 0x23f   : > { %2497 = vst.msk [vmem:[#allocation3 + $0x58] sm:$0xf] %vm2474_vm11, %v2423_v27  ;;  %v3015_v43 = vadd.f32 %v4431_v29, %v5464_v31 }
 0x240   : > { %v3006_v37 = vpop.f32.mrf.mxu0 }
 0x241   : > { %v2421_v34 = vpop.permute.xlu1 %2420  ;;  %v3007_v28 = vadd.f32 %v5464_v31, %v3006_v37  ;;  %v3135_v25 = vmax.f32 %v3015_v43, 0.0 }
 0x242   : > { %2496 = vst.msk [vmem:[#allocation3 + $0x54] sm:$0xf] %vm2474_vm11, %v2421_v34  ;;  %v2676_v45 = vpop.permute.xlu0 %2675  ;;  %v4432_v47 = vpop.f32.mrf.mxu0 }
 0x243   : > { %2752 = vst.msk [vmem:[#allocation3 + $0x50] sm:$0xf] %vm2731_vm12, %v2676_v45  ;;  %v3018_v49 = vadd.f32 %v4432_v47, %v5464_v31  ;;  %v3133_v8 = vmax.f32 %v3007_v28, 0.0  ;;  %v3364_v55 = vmul.f32 %v3135_v25, %v3135_v25 }
 0x244   : > { %v3009_v52 = vpop.f32.mrf.mxu0 }
 0x245   : > { %v2425_v50 = vpop.permute.xlu1 %2424  ;;  %v3136_v56 = vmax.f32 %v3018_v49, 0.0  ;;  %v3010_v13 = vadd.f32 %v5464_v31, %v3009_v52  ;;  %v3362_v54 = vmul.f32 %v3133_v8, %v3133_v8 }
 0x246   : > { %2498 = vst.msk [vmem:[#allocation3 + $0x5c] sm:$0xf] %vm2474_vm11, %v2425_v50  ;;  %v2680_v32 = vpop.permute.xlu0 %2679 }
 0x247   : > { %2754 = vst.msk [vmem:[#allocation3 + $0x58] sm:$0xf] %vm2731_vm12, %v2680_v32  ;;  %v4296_v48 = vpack.c.bf16 %v3136_v56, %v3135_v25  ;;  %v3134_v19 = vmax.f32 %v3010_v13, 0.0  ;;  %v3365_v4 = vmul.f32 %v3136_v56, %v3136_v56 }
 0x249   : > { %v2678_v33 = vpop.permute.xlu1 %2677  ;;  %4383 = vst [vmem:[%s4586_s9 + $0x8] sm:$0xff] %v4296_v48   ;;  %v4291_v17 = vpack.c.bf16 %v3134_v19, %v3133_v8  ;;  %v3325_v53 = vadd.f32 %v3134_v19, %v3133_v8  ;;  %v3363_v57 = vmul.f32 %v3134_v19, %v3134_v19 }
 0x24a   : > { %2753 = vst.msk [vmem:[#allocation3 + $0x54] sm:$0xf] %vm2731_vm12, %v2678_v33  ;;  %v1398_v58 = vpop.permute.xlu0 %1397 }
 0x24b   : > { %1470 = vst.msk [vmem:[#allocation3 + $0x60] sm:$0xf] %vm1445_vm7, %v1398_v58  ;;  %4292 = vst [vmem:[%s4586_s9] sm:$0xff] %v4291_v17   ;;  %v3326_v23 = vadd.f32 %v3325_v53, %v3135_v25  ;;  %v3394_v63 = vadd.f32 %v3363_v57, %v3362_v54 }
 0x24d   : > { %v2682_v39 = vpop.permute.xlu1 %2681  ;;  %v3395_v30 = vadd.f32 %v3394_v63, %v3364_v55  ;;  %v3327_v0 = vadd.f32 %v3326_v23, %v3136_v56 }
 0x24e   : > { %2755 = vst.msk [vmem:[#allocation3 + $0x5c] sm:$0xf] %vm2731_vm12, %v2682_v39  ;;  %v1402_v5 = vpop.permute.xlu0 %1401 }
 0x24f   : > { %1472 = vst.msk [vmem:[#allocation3 + $0x68] sm:$0xf] %vm1445_vm7, %v1402_v5  ;;  %v3396_v10 = vadd.f32 %v3395_v30, %v3365_v4 }
 0x251   : > { %v1400_v11 = vpop.permute.xlu1 %1399  ;;  %v4505_v41 = vld [vmem:[#allocation3 + $0x50] sm:$0xff]  }
 0x252   : > { %1471 = vst.msk [vmem:[#allocation3 + $0x64] sm:$0xf] %vm1445_vm7, %v1400_v11  ;;  %v1655_v38 = vpop.permute.xlu0 %1654  ;;  %4449 = vmatprep.mubr.msk.bf16.mxu1 %vm2919_vm13, %v4505_v41 }
 0x253   : > { %1727 = vst.msk [vmem:[#allocation3 + $0x60] sm:$0xf] %vm1702_vm8, %v1655_v38 }
 0x255   : > { %v1404_v3 = vpop.permute.xlu1 %1403  ;;  %v4506_v12 = vld [vmem:[#allocation3 + $0x58] sm:$0xff]  }
 0x256   : > { %1473 = vst.msk [vmem:[#allocation3 + $0x6c] sm:$0xf] %vm1445_vm7, %v1404_v3  ;;  %v1659_v14 = vpop.permute.xlu0 %1658  ;;  %4450 = vmatmul.mubr.msk.bf16.gmra.mxu1 %vm2919_vm13, %v4506_v12 }
 0x257   : > { %1729 = vst.msk [vmem:[#allocation3 + $0x68] sm:$0xf] %vm1702_vm8, %v1659_v14 }
 0x259   : > { %v1657_v15 = vpop.permute.xlu1 %1656 }
 0x25a   : > { %1728 = vst.msk [vmem:[#allocation3 + $0x64] sm:$0xf] %vm1702_vm8, %v1657_v15  ;;  %v1912_v40 = vpop.permute.xlu0 %1911 }
 0x25b   : > { %1984 = vst.msk [vmem:[#allocation3 + $0x60] sm:$0xf] %vm1959_vm9, %v1912_v40 }
 0x25d   : > { %v1661_v36 = vpop.permute.xlu1 %1660 }
 0x25e   : > { %1730 = vst.msk [vmem:[#allocation3 + $0x6c] sm:$0xf] %vm1702_vm8, %v1661_v36  ;;  %v1916_v16 = vpop.permute.xlu0 %1915 }
 0x25f   : > { %1986 = vst.msk [vmem:[#allocation3 + $0x68] sm:$0xf] %vm1959_vm9, %v1916_v16 }
 0x261   : > { %v1914_v44 = vpop.permute.xlu1 %1913 }
 0x262   : > { %1985 = vst.msk [vmem:[#allocation3 + $0x64] sm:$0xf] %vm1959_vm9, %v1914_v44  ;;  %v2170_v18 = vpop.permute.xlu0 %2169 }
 0x263   : > { %2242 = vst.msk [vmem:[#allocation3 + $0x60] sm:$0xf] %vm2217_vm10, %v2170_v18 }
 0x265   : > { %v1918_v46 = vpop.permute.xlu1 %1917 }
 0x266   : > { %1987 = vst.msk [vmem:[#allocation3 + $0x6c] sm:$0xf] %vm1959_vm9, %v1918_v46  ;;  %v2174_v59 = vpop.permute.xlu0 %2173  ;;  %v4435_v1 = vpop.f32.mrf.mxu0 }
 0x267   : > { %2244 = vst.msk [vmem:[#allocation3 + $0x68] sm:$0xf] %vm2217_vm10, %v2174_v59  ;;  %v3031_v20 = vadd.f32 %v4435_v1, %v5464_v31 }
 0x268   : > { %v3022_v6 = vpop.f32.mrf.mxu0 }
 0x269   : > { %v2172_v51 = vpop.permute.xlu1 %2171  ;;  %v3023_v26 = vadd.f32 %v5464_v31, %v3022_v6  ;;  %v3139_v21 = vmax.f32 %v3031_v20, 0.0 }
 0x26a   : > { %2243 = vst.msk [vmem:[#allocation3 + $0x64] sm:$0xf] %vm2217_vm10, %v2172_v51  ;;  %v2427_v61 = vpop.permute.xlu0 %2426  ;;  %v4436_v2 = vpop.f32.mrf.mxu0 }
 0x26b   : > { %2499 = vst.msk [vmem:[#allocation3 + $0x60] sm:$0xf] %vm2474_vm11, %v2427_v61  ;;  %v3137_v42 = vmax.f32 %v3023_v26, 0.0  ;;  %v3034_v60 = vadd.f32 %v4436_v2, %v5464_v31  ;;  %v3368_v50 = vmul.f32 %v3139_v21, %v3139_v21 }
 0x26c   : > { %v3025_v35 = vpop.f32.mrf.mxu0 }
 0x26d   : > { %v2176_v22 = vpop.permute.xlu1 %2175  ;;  %v3328_v9 = vadd.f32 %v3327_v0, %v3137_v42  ;;  %v3366_v62 = vmul.f32 %v3137_v42, %v3137_v42  ;;  %v3140_v7 = vmax.f32 %v3034_v60, 0.0  ;;  %v3026_v24 = vadd.f32 %v5464_v31, %v3025_v35 }
 0x26e   : > { %2245 = vst.msk [vmem:[#allocation3 + $0x6c] sm:$0xf] %vm2217_vm10, %v2176_v22  ;;  %v2431_v27 = vpop.permute.xlu0 %2430 }
 0x26f   : > { %2501 = vst.msk [vmem:[#allocation3 + $0x68] sm:$0xf] %vm2474_vm11, %v2431_v27  ;;  %v3397_v29 = vadd.f32 %v3396_v10, %v3366_v62  ;;  %v4306_v34 = vpack.c.bf16 %v3140_v7, %v3139_v21  ;;  %v3138_v37 = vmax.f32 %v3026_v24, 0.0  ;;  %v3369_v56 = vmul.f32 %v3140_v7, %v3140_v7 }
 0x271   : > { %v2429_v43 = vpop.permute.xlu1 %2428  ;;  %4385 = vst [vmem:[%s4586_s9 + $0x18] sm:$0xff] %v4306_v34   ;;  %v4301_v28 = vpack.c.bf16 %v3138_v37, %v3137_v42  ;;  %v3329_v45 = vadd.f32 %v3328_v9, %v3138_v37  ;;  %v3367_v47 = vmul.f32 %v3138_v37, %v3138_v37 }
 0x272   : > { %2500 = vst.msk [vmem:[#allocation3 + $0x64] sm:$0xf] %vm2474_vm11, %v2429_v43  ;;  %v2684_v49 = vpop.permute.xlu0 %2683 }
 0x273   : > { %2756 = vst.msk [vmem:[#allocation3 + $0x60] sm:$0xf] %vm2731_vm12, %v2684_v49  ;;  %4384 = vst [vmem:[%s4586_s9 + $0x10] sm:$0xff] %v4301_v28   ;;  %v3330_v52 = vadd.f32 %v3329_v45, %v3139_v21  ;;  %v3398_v25 = vadd.f32 %v3397_v29, %v3367_v47 }
 0x275   : > { %v2433_v8 = vpop.permute.xlu1 %2432  ;;  %v3399_v13 = vadd.f32 %v3398_v25, %v3368_v50  ;;  %v3331_v48 = vadd.f32 %v3330_v52, %v3140_v7 }
 0x276   : > { %2502 = vst.msk [vmem:[#allocation3 + $0x6c] sm:$0xf] %vm2474_vm11, %v2433_v8  ;;  %v2688_v32 = vpop.permute.xlu0 %2687 }
 0x277   : > { %2758 = vst.msk [vmem:[#allocation3 + $0x68] sm:$0xf] %vm2731_vm12, %v2688_v32  ;;  %v3400_v19 = vadd.f32 %v3399_v13, %v3369_v56 }
 0x279   : > { %v2686_v33 = vpop.permute.xlu1 %2685 }
 0x27a   : > { %2757 = vst.msk [vmem:[#allocation3 + $0x64] sm:$0xf] %vm2731_vm12, %v2686_v33  ;;  %v1406_v54 = vpop.permute.xlu0 %1405 }
 0x27b   : > { %1474 = vst.msk [vmem:[#allocation3 + $0x70] sm:$0xf] %vm1445_vm7, %v1406_v54 }
 0x27d   : > { %v2690_v17 = vpop.permute.xlu1 %2689 }
 0x27e   : > { %2759 = vst.msk [vmem:[#allocation3 + $0x6c] sm:$0xf] %vm2731_vm12, %v2690_v17  ;;  %v1410_v53 = vpop.permute.xlu0 %1409 }
 0x27f   : > { %1476 = vst.msk [vmem:[#allocation3 + $0x78] sm:$0xf] %vm1445_vm7, %v1410_v53 }
 0x281   : > { %v1408_v57 = vpop.permute.xlu1 %1407  ;;  %v4507_v58 = vld [vmem:[#allocation3 + $0x60] sm:$0xff]  }
 0x282   : > { %1475 = vst.msk [vmem:[#allocation3 + $0x74] sm:$0xf] %vm1445_vm7, %v1408_v57  ;;  %v1663_v55 = vpop.permute.xlu0 %1662  ;;  %4453 = vmatprep.mubr.msk.bf16.mxu1 %vm2919_vm13, %v4507_v58 }
 0x283   : > { %1731 = vst.msk [vmem:[#allocation3 + $0x70] sm:$0xf] %vm1702_vm8, %v1663_v55 }
 0x285   : > { %v1412_v23 = vpop.permute.xlu1 %1411  ;;  %v4508_v63 = vld [vmem:[#allocation3 + $0x68] sm:$0xff]  }
 0x286   : > { %1477 = vst.msk [vmem:[#allocation3 + $0x7c] sm:$0xf] %vm1445_vm7, %v1412_v23  ;;  %v1667_v39 = vpop.permute.xlu0 %1666  ;;  %4454 = vmatmul.mubr.msk.bf16.gmra.mxu1 %vm2919_vm13, %v4508_v63 }
 0x287   : > { %1733 = vst.msk [vmem:[#allocation3 + $0x78] sm:$0xf] %vm1702_vm8, %v1667_v39 }
 0x289   : > { %v1665_v4 = vpop.permute.xlu1 %1664 }
 0x28a   : > { %1732 = vst.msk [vmem:[#allocation3 + $0x74] sm:$0xf] %vm1702_vm8, %v1665_v4  ;;  %v1920_v30 = vpop.permute.xlu0 %1919 }
 0x28b   : > { %1988 = vst.msk [vmem:[#allocation3 + $0x70] sm:$0xf] %vm1959_vm9, %v1920_v30 }
 0x28d   : > { %v1669_v5 = vpop.permute.xlu1 %1668 }
 0x28e   : > { %1734 = vst.msk [vmem:[#allocation3 + $0x7c] sm:$0xf] %vm1702_vm8, %v1669_v5  ;;  %v1924_v0 = vpop.permute.xlu0 %1923  ;;  %v4439_v10 = vpop.f32.mrf.mxu0 }
 0x28f   : > { %1990 = vst.msk [vmem:[#allocation3 + $0x78] sm:$0xf] %vm1959_vm9, %v1924_v0  ;;  %v3047_v11 = vadd.f32 %v4439_v10, %v5464_v31 }
 0x290   : > { %v3038_v38 = vpop.f32.mrf.mxu0 }
 0x291   : > { %v1922_v41 = vpop.permute.xlu1 %1921  ;;  %v3039_v3 = vadd.f32 %v5464_v31, %v3038_v38  ;;  %v3143_v36 = vmax.f32 %v3047_v11, 0.0 }
 0x292   : > { %1989 = vst.msk [vmem:[#allocation3 + $0x74] sm:$0xf] %vm1959_vm9, %v1922_v41  ;;  %v2178_v12 = vpop.permute.xlu0 %2177  ;;  %v4440_v14 = vpop.f32.mrf.mxu0 }
 0x293   : > { %2246 = vst.msk [vmem:[#allocation3 + $0x70] sm:$0xf] %vm2217_vm10, %v2178_v12  ;;  %v3141_v15 = vmax.f32 %v3039_v3, 0.0  ;;  %v3050_v40 = vadd.f32 %v4440_v14, %v5464_v31  ;;  %v3372_v22 = vmul.f32 %v3143_v36, %v3143_v36 }
 0x294   : > { %v3041_v44 = vpop.f32.mrf.mxu0 }
 0x295   : > { %v1926_v16 = vpop.permute.xlu1 %1925  ;;  %v3332_v18 = vadd.f32 %v3331_v48, %v3141_v15  ;;  %v3370_v46 = vmul.f32 %v3141_v15, %v3141_v15  ;;  %v3144_v59 = vmax.f32 %v3050_v40, 0.0  ;;  %v3042_v1 = vadd.f32 %v5464_v31, %v3041_v44 }
 0x296   : > { %1991 = vst.msk [vmem:[#allocation3 + $0x7c] sm:$0xf] %vm1959_vm9, %v1926_v16  ;;  %v2182_v20 = vpop.permute.xlu0 %2181 }
 0x297   : > { %2248 = vst.msk [vmem:[#allocation3 + $0x78] sm:$0xf] %vm2217_vm10, %v2182_v20  ;;  %v3401_v51 = vadd.f32 %v3400_v19, %v3370_v46  ;;  %v4316_v6 = vpack.c.bf16 %v3144_v59, %v3143_v36  ;;  %v3142_v26 = vmax.f32 %v3042_v1, 0.0  ;;  %v3373_v7 = vmul.f32 %v3144_v59, %v3144_v59 }
 0x299   : > { %v2180_v61 = vpop.permute.xlu1 %2179  ;;  %4387 = vst [vmem:[%s4586_s9 + $0x28] sm:$0xff] %v4316_v6   ;;  %v4311_v2 = vpack.c.bf16 %v3142_v26, %v3141_v15  ;;  %v3333_v42 = vadd.f32 %v3332_v18, %v3142_v26  ;;  %v3371_v60 = vmul.f32 %v3142_v26, %v3142_v26 }
 0x29a   : > { %2247 = vst.msk [vmem:[#allocation3 + $0x74] sm:$0xf] %vm2217_vm10, %v2180_v61  ;;  %v2435_v21 = vpop.permute.xlu0 %2434 }
 0x29b   : > { %2503 = vst.msk [vmem:[#allocation3 + $0x70] sm:$0xf] %vm2474_vm11, %v2435_v21  ;;  %4386 = vst [vmem:[%s4586_s9 + $0x20] sm:$0xff] %v4311_v2   ;;  %v3334_v35 = vadd.f32 %v3333_v42, %v3143_v36  ;;  %v3402_v9 = vadd.f32 %v3401_v51, %v3371_v60 }
 0x29d   : > { %v2184_v62 = vpop.permute.xlu1 %2183  ;;  %v3403_v24 = vadd.f32 %v3402_v9, %v3372_v22  ;;  %v3335_v29 = vadd.f32 %v3334_v35, %v3144_v59 }
 0x29e   : > { %2249 = vst.msk [vmem:[#allocation3 + $0x7c] sm:$0xf] %vm2217_vm10, %v2184_v62  ;;  %v2439_v27 = vpop.permute.xlu0 %2438 }
 0x29f   : > { %2505 = vst.msk [vmem:[#allocation3 + $0x78] sm:$0xf] %vm2474_vm11, %v2439_v27  ;;  %v3404_v34 = vadd.f32 %v3403_v24, %v3373_v7 }
 0x2a1   : > { %v2437_v37 = vpop.permute.xlu1 %2436 }
 0x2a2   : > { %2504 = vst.msk [vmem:[#allocation3 + $0x74] sm:$0xf] %vm2474_vm11, %v2437_v37  ;;  %v2692_v43 = vpop.permute.xlu0 %2691 }
 0x2a3   : > { %2760 = vst.msk [vmem:[#allocation3 + $0x70] sm:$0xf] %vm2731_vm12, %v2692_v43 }
 0x2a5   : > { %v2441_v28 = vpop.permute.xlu1 %2440 }
 0x2a6   : > { %2506 = vst.msk [vmem:[#allocation3 + $0x7c] sm:$0xf] %vm2474_vm11, %v2441_v28  ;;  %v2696_v45 = vpop.permute.xlu0 %2695 }
 0x2a7   : > { %2762 = vst.msk [vmem:[#allocation3 + $0x78] sm:$0xf] %vm2731_vm12, %v2696_v45 }
 0x2a9   : > { %v2694_v47 = vpop.permute.xlu1 %2693 }
 0x2aa   : > { %2761 = vst.msk [vmem:[#allocation3 + $0x74] sm:$0xf] %vm2731_vm12, %v2694_v47 }
 0x2ad   : > { %v2698_v49 = vpop.permute.xlu1 %2697 }
 0x2ae   : > { %2763 = vst.msk [vmem:[#allocation3 + $0x7c] sm:$0xf] %vm2731_vm12, %v2698_v49 }
 0x2b1   : > { %v4509_v50 = vld [vmem:[#allocation3 + $0x70] sm:$0xff]  }
 0x2b2   : > { %4457 = vmatprep.mubr.msk.bf16.mxu1 %vm2919_vm13, %v4509_v50 }
 0x2b5   : > { %v4510_v52 = vld [vmem:[#allocation3 + $0x78] sm:$0xff]  }
 0x2b6   : > { %v4443_v25 = vpop.f32.mrf.mxu0  ;;  %4458 = vmatmul.mubr.msk.bf16.gmra.mxu1 %vm2919_vm13, %v4510_v52 }
 0x2b7   : > { %v3063_v8 = vadd.f32 %v4443_v25, %v5464_v31 }
 0x2b8   : > { %v3054_v56 = vpop.f32.mrf.mxu0 }
 0x2b9   : > { %v3055_v13 = vadd.f32 %v5464_v31, %v3054_v56  ;;  %v3147_v33 = vmax.f32 %v3063_v8, 0.0 }
 0x2ba   : > { %v4444_v32 = vpop.f32.mrf.mxu0 }
 0x2bb   : > { %v3145_v48 = vmax.f32 %v3055_v13, 0.0  ;;  %v3066_v19 = vadd.f32 %v4444_v32, %v5464_v31  ;;  %v3376_v5 = vmul.f32 %v3147_v33, %v3147_v33 }
 0x2bc   : > { %v3057_v54 = vpop.f32.mrf.mxu0 }
 0x2bd   : > { %v3336_v17 = vadd.f32 %v3335_v29, %v3145_v48  ;;  %v3374_v53 = vmul.f32 %v3145_v48, %v3145_v48  ;;  %v3148_v57 = vmax.f32 %v3066_v19, 0.0  ;;  %v3058_v58 = vadd.f32 %v5464_v31, %v3057_v54 }
 0x2bf   : > { %v3405_v55 = vadd.f32 %v3404_v34, %v3374_v53  ;;  %v4326_v23 = vpack.c.bf16 %v3148_v57, %v3147_v33  ;;  %v3146_v63 = vmax.f32 %v3058_v58, 0.0  ;;  %v3377_v11 = vmul.f32 %v3148_v57, %v3148_v57 }
 0x2c1   : > { %4389 = vst [vmem:[%s4586_s9 + $0x38] sm:$0xff] %v4326_v23   ;;  %v4321_v39 = vpack.c.bf16 %v3146_v63, %v3145_v48  ;;  %v3337_v4 = vadd.f32 %v3336_v17, %v3146_v63  ;;  %v3375_v30 = vmul.f32 %v3146_v63, %v3146_v63 }
 0x2c3   : > { %4388 = vst [vmem:[%s4586_s9 + $0x30] sm:$0xff] %v4321_v39   ;;  %v3338_v0 = vadd.f32 %v3337_v4, %v3147_v33  ;;  %v3406_v10 = vadd.f32 %v3405_v55, %v3375_v30 }
 0x2c5   : > { %v3407_v41 = vadd.f32 %v3406_v10, %v3376_v5  ;;  %v3339_v38 = vadd.f32 %v3338_v0, %v3148_v57 }
 0x2c7   : > { %v3408_v3 = vadd.f32 %v3407_v41, %v3377_v11 }
 0x2e6   : > { %v4447_v12 = vpop.f32.mrf.mxu1 }
 0x2e7   : > { %v3079_v14 = vadd.f32 %v4447_v12, %v5464_v31 }
 0x2e8   : > { %v3070_v15 = vpop.f32.mrf.mxu1 }
 0x2e9   : > { %v3071_v40 = vadd.f32 %v5464_v31, %v3070_v15  ;;  %v3151_v18 = vmax.f32 %v3079_v14, 0.0 }
 0x2ea   : > { %v4448_v36 = vpop.f32.mrf.mxu1 }
 0x2eb   : > { %v3149_v16 = vmax.f32 %v3071_v40, 0.0  ;;  %v3082_v44 = vadd.f32 %v4448_v36, %v5464_v31  ;;  %v3380_v21 = vmul.f32 %v3151_v18, %v3151_v18 }
 0x2ec   : > { %v3073_v46 = vpop.f32.mrf.mxu1 }
 0x2ed   : > { %v3340_v59 = vadd.f32 %v3339_v38, %v3149_v16  ;;  %v3378_v1 = vmul.f32 %v3149_v16, %v3149_v16  ;;  %v3152_v20 = vmax.f32 %v3082_v44, 0.0  ;;  %v3074_v51 = vadd.f32 %v5464_v31, %v3073_v46 }
 0x2ef   : > { %v3409_v6 = vadd.f32 %v3408_v3, %v3378_v1  ;;  %v4336_v26 = vpack.c.bf16 %v3152_v20, %v3151_v18  ;;  %v3150_v61 = vmax.f32 %v3074_v51, 0.0  ;;  %v3381_v9 = vmul.f32 %v3152_v20, %v3152_v20 }
 0x2f1   : > { %4391 = vst [vmem:[%s4586_s9 + $0x48] sm:$0xff] %v4336_v26   ;;  %v4331_v2 = vpack.c.bf16 %v3150_v61, %v3149_v16  ;;  %v3341_v42 = vadd.f32 %v3340_v59, %v3150_v61  ;;  %v3379_v60 = vmul.f32 %v3150_v61, %v3150_v61 }
 0x2f3   : > { %4390 = vst [vmem:[%s4586_s9 + $0x40] sm:$0xff] %v4331_v2   ;;  %v3342_v22 = vadd.f32 %v3341_v42, %v3151_v18  ;;  %v3410_v35 = vadd.f32 %v3409_v6, %v3379_v60 }
 0x2f5   : > { %v3411_v62 = vadd.f32 %v3410_v35, %v3380_v21  ;;  %v3343_v7 = vadd.f32 %v3342_v22, %v3152_v20 }
 0x2f7   : > { %v3412_v24 = vadd.f32 %v3411_v62, %v3381_v9 }
 0x316   : > { %v4451_v27 = vpop.f32.mrf.mxu1 }
 0x317   : > { %v3095_v29 = vadd.f32 %v4451_v27, %v5464_v31 }
 0x318   : > { %v3086_v34 = vpop.f32.mrf.mxu1 }
 0x319   : > { %v3087_v37 = vadd.f32 %v5464_v31, %v3086_v34  ;;  %v3155_v47 = vmax.f32 %v3095_v29, 0.0 }
 0x31a   : > { %v4452_v43 = vpop.f32.mrf.mxu1 }
 0x31b   : > { %v3153_v28 = vmax.f32 %v3087_v37, 0.0  ;;  %v3098_v45 = vadd.f32 %v4452_v43, %v5464_v31  ;;  %v3384_v54 = vmul.f32 %v3155_v47, %v3155_v47 }
 0x31c   : > { %v3089_v49 = vpop.f32.mrf.mxu1 }
 0x31d   : > { %v3344_v50 = vadd.f32 %v3343_v7, %v3153_v28  ;;  %v3382_v52 = vmul.f32 %v3153_v28, %v3153_v28  ;;  %v3156_v25 = vmax.f32 %v3098_v45, 0.0  ;;  %v3090_v8 = vadd.f32 %v5464_v31, %v3089_v49 }
 0x31f   : > { %v3413_v56 = vadd.f32 %v3412_v24, %v3382_v52  ;;  %v4346_v13 = vpack.c.bf16 %v3156_v25, %v3155_v47  ;;  %v3154_v32 = vmax.f32 %v3090_v8, 0.0  ;;  %v3385_v57 = vmul.f32 %v3156_v25, %v3156_v25 }
 0x321   : > { %4393 = vst [vmem:[%s4586_s9 + $0x58] sm:$0xff] %v4346_v13   ;;  %v4341_v48 = vpack.c.bf16 %v3154_v32, %v3153_v28  ;;  %v3345_v19 = vadd.f32 %v3344_v50, %v3154_v32  ;;  %v3383_v33 = vmul.f32 %v3154_v32, %v3154_v32 }
 0x323   : > { %4392 = vst [vmem:[%s4586_s9 + $0x50] sm:$0xff] %v4341_v48   ;;  %v3346_v17 = vadd.f32 %v3345_v19, %v3155_v47  ;;  %v3414_v53 = vadd.f32 %v3413_v56, %v3383_v33 }
 0x325   : > { %v3415_v58 = vadd.f32 %v3414_v53, %v3384_v54  ;;  %v3347_v55 = vadd.f32 %v3346_v17, %v3156_v25 }
 0x327   : > { %v3416_v23 = vadd.f32 %v3415_v58, %v3385_v57 }
 0x346   : > { %v4455_v63 = vpop.f32.mrf.mxu1 }
 0x347   : > { %v3111_v4 = vadd.f32 %v4455_v63, %v5464_v31 }
 0x348   : > { %v3102_v39 = vpop.f32.mrf.mxu1 }
 0x349   : > { %v3103_v5 = vadd.f32 %v5464_v31, %v3102_v39  ;;  %v3159_v11 = vmax.f32 %v3111_v4, 0.0 }
 0x34a   : > { %v4456_v30 = vpop.f32.mrf.mxu1 }
 0x34b   : > { %v3114_v0 = vadd.f32 %v4456_v30, %v5464_v31  ;;  %v3157_v3 = vmax.f32 %v3103_v5, 0.0  ;;  %v3388_v51 = vmul.f32 %v3159_v11, %v3159_v11 }
 0x34c   : > { %v3105_v10 = vpop.f32.mrf.mxu1 }
 0x34d   : > { %v3160_v41 = vmax.f32 %v3114_v0, 0.0  ;;  %v3106_v38 = vadd.f32 %v5464_v31, %v3105_v10  ;;  %v3386_v40 = vmul.f32 %v3157_v3, %v3157_v3  ;;  %v3348_v36 = vadd.f32 %v3347_v55, %v3157_v3 }
 0x34f   : > { %v4356_v12 = vpack.c.bf16 %v3160_v41, %v3159_v11  ;;  %v3158_v14 = vmax.f32 %v3106_v38, 0.0  ;;  %v3417_v18 = vadd.f32 %v3416_v23, %v3386_v40  ;;  %v3389_v21 = vmul.f32 %v3160_v41, %v3160_v41 }
 0x351   : > { %4395 = vst [vmem:[%s4586_s9 + $0x68] sm:$0xff] %v4356_v12   ;;  %v4351_v15 = vpack.c.bf16 %v3158_v14, %v3157_v3  ;;  %v3387_v16 = vmul.f32 %v3158_v14, %v3158_v14  ;;  %v3349_v44 = vadd.f32 %v3348_v36, %v3158_v14 }
 0x353   : > { %4394 = vst [vmem:[%s4586_s9 + $0x60] sm:$0xff] %v4351_v15   ;;  %v3418_v59 = vadd.f32 %v3417_v18, %v3387_v16  ;;  %v3350_v1 = vadd.f32 %v3349_v44, %v3159_v11 }
 0x355   : > { %v3419_v2 = vadd.f32 %v3418_v59, %v3388_v51  ;;  %v3351_v22 = vadd.f32 %v3350_v1, %v3160_v41 }
 0x357   : > { %v3420_v29 = vadd.f32 %v3419_v2, %v3389_v21 }
 0x376   : > { %v4459_v46 = vpop.f32.mrf.mxu1 }
 0x377   : > { %v3127_v6 = vadd.f32 %v4459_v46, %v5464_v31 }
 0x378   : > { %v3118_v20 = vpop.f32.mrf.mxu1 }
 0x379   : > { %v3119_v26 = vadd.f32 %v5464_v31, %v3118_v20  ;;  %v3163_v9 = vmax.f32 %v3127_v6, 0.0 }
 0x37a   : > { %v4460_v61 = vpop.f32.mrf.mxu1 }
 0x37b   : > { %v3161_v42 = vmax.f32 %v3119_v26, 0.0  ;;  %v3130_v60 = vadd.f32 %v4460_v61, %v5464_v31  ;;  %v3392_v49 = vmul.f32 %v3163_v9, %v3163_v9 }
 0x37c   : > { %v3121_v35 = vpop.f32.mrf.mxu1 }
 0x37d   : > { %v3390_v62 = vmul.f32 %v3161_v42, %v3161_v42  ;;  %v3164_v7 = vmax.f32 %v3130_v60, 0.0  ;;  %v3122_v24 = vadd.f32 %v5464_v31, %v3121_v35  ;;  %v3352_v27 = vadd.f32 %v3351_v22, %v3161_v42 }
 0x37f   : > { %v4366_v34 = vpack.c.bf16 %v3164_v7, %v3163_v9  ;;  %v3162_v37 = vmax.f32 %v3122_v24, 0.0  ;;  %v3421_v43 = vadd.f32 %v3420_v29, %v3390_v62  ;;  %v3393_v25 = vmul.f32 %v3164_v7, %v3164_v7 }
 0x381   : > { %4397 = vst [vmem:[%s4586_s9 + $0x78] sm:$0xff] %v4366_v34   ;;  %v4361_v28 = vpack.c.bf16 %v3162_v37, %v3161_v42  ;;  %v3353_v45 = vadd.f32 %v3352_v27, %v3162_v37  ;;  %v3391_v47 = vmul.f32 %v3162_v37, %v3162_v37 }
 0x383   : > { %4396 = vst [vmem:[%s4586_s9 + $0x70] sm:$0xff] %v4361_v28   ;;  %v3354_v50 = vadd.f32 %v3353_v45, %v3163_v9  ;;  %v3422_v52 = vadd.f32 %v3421_v43, %v3391_v47 }
 0x385   : > { %v3355_v8 = vadd.f32 %v3354_v50, %v3164_v7  ;;  %v3423_v56 = vadd.f32 %v3422_v52, %v3392_v49 }
 0x387   : > { %v3356_v13 = vrot.slane %v3355_v8, 4  ;;  %v3424_v32 = vadd.f32 %v3423_v56, %v3393_v25 }
 0x389   : > { %v3357_v31 = vadd.f32 %v3356_v13, %v3355_v8  ;;  %v3425_v48 = vrot.slane %v3424_v32, 4 }
 0x38b   : > { %v3358_v19 = vrot.slane %v3357_v31, 2  ;;  %v3426_v33 = vadd.f32 %v3425_v48, %v3424_v32 }
 0x38d   : > { %v3359_v54 = vadd.f32 %v3358_v19, %v3357_v31  ;;  %v3427_v17 = vrot.slane %v3426_v33, 2 }
 0x38f   : > { %v3360_v53 = vrot.slane %v3359_v54, 1  ;;  %v3428_v57 = vadd.f32 %v3427_v17, %v3426_v33 }
 0x391   : > { %v3429_v58 = vrot.slane %v3428_v57, 1  ;;  %v3361_v55 = vadd.f32 %v3360_v53, %v3359_v54 }
 0x393   : > { %v3430_v23 = vadd.f32 %v3429_v58, %v3428_v57 }
 0x395   : > { %v3432_v63 = vsel %vm3431_vm14, %v3361_v55, %v3430_v23 }
 0x396   : > { %3433 = vst [vmem:[%s4591_s13] sm:$0x3] %v3432_v63 }
 0x397 PF: > { %s17_s21 = sadd.s32 1, %s4519_s21  }
 0x398   : > { %p14_p5 = scmp.ge.s32.totalorder %s17_s21, 4  }
 0x39a   :  { %16 = sbr.rel (!%p14_p5) target bundleno = 1 (0x1), region = 91 }

// kernel: block_forward.5
= control target key start
LH: loop header
LB: loop body
LE: loop exit
PB: predicated region body
PF: predicated region fallthrough
CT: control target
= control target key end

     0   :  { %s3399_s12 = smov 0   ;;  %s4229_s0 = inlined_call_operand.vmem [shape: f32[2,9,9,512], index: 0, kind: input, shape index: {}]   ;;  %s4230_s1 = inlined_call_operand.vmem [shape: bf16[4,512,128], index: 1, kind: input, shape index: {}]   ;;  %s4231_s2 = inlined_call_operand.vmem [shape: f32[1,128], index: 2, kind: input, shape index: {}]   ;;  %s4232_s3 = inlined_call_operand.vmem [shape: bf16[2,8,8,128], index: 3, kind: output, shape index: {}]  }
   0x1 LB: > { %s2463_s13 = sadd.s32 4294967295, %s3377_s12   ;;  %p2467_p0 = scmp.ge.s32.totalorder %s3377_s12, 1  ;;  %s3377_s12 = sphi %s3399_s12, %s13_s12  }
   0x2   : > { %p137_p1 = scmp.lt.s32.totalorder %s3377_s12, 3 }
   0x4   : > { %p138_p2 = pnand %p2467_p0, %p137_p1 }
   0x5   : > { %p161_p3 = scmp.lt.s32.totalorder (!%p138_p2), %s2463_s13, 1 }
   0x6   : > { %141 = sbr.rel (%p138_p2) target bundleno = 376 (0x178), region = 32 }
   0xb   : > { %v3243_v0 = vld [vmem:[%s4230_s1 + $0x178] sm:$0xff]   ;;  %v3247_v4 = vld [vmem:[%s4230_s1 + $0x170] sm:$0xff]   ;;  %v3251_v8 = vld [vmem:[%s4230_s1 + $0x168] sm:$0xff]   ;;  %s4234_s13 = smov (!%p161_p3, %s2463_s13), 1  ;;  %vm412_vm0 = vcmask 1046528  }
   0xc   : > { %v3244_v1 = vld [vmem:[%s4230_s1 + $0x1f8] sm:$0xff]   ;;  %2914 = vmatprep.subr.bf16.mxu0 %v3243_v0  ;;  %v3248_v5 = vld [vmem:[%s4230_s1 + $0x1f0] sm:$0xff]   ;;  %v3252_v9 = vld [vmem:[%s4230_s1 + $0x1e8] sm:$0xff]   ;;  %s3234_s16 = smul.u32 576, %s4234_s13  ;;  %s2890_s6 = sshll.u32 %s4234_s13, 5 }
   0xd   : > { %v3245_v2 = vld [vmem:[%s4230_s1 + $0x138] sm:$0xff]   ;;  %2954 = vmatprep.subr.bf16.mxu1 %v3244_v1  ;;  %v3249_v6 = vld [vmem:[%s4230_s1 + $0x130] sm:$0xff]   ;;  %v3253_v10 = vld [vmem:[%s4230_s1 + $0x128] sm:$0xff]   ;;  %s4196_s9 = scalar_lea.vmem %s4232_s3, %s2890_s6 }
   0xe   : > { %v3246_v3 = vld [vmem:[%s4230_s1 + $0x1b8] sm:$0xff]   ;;  %2915 = vmatpush3.bf16.msra.mxu0 %v3245_v2  ;;  %v3250_v7 = vld [vmem:[%s4230_s1 + $0x1b0] sm:$0xff]   ;;  %v3254_v11 = vld [vmem:[%s4230_s1 + $0x1a8] sm:$0xff]   ;;  %s3507_s27 = scalar_lea.vmem %s4229_s0, %s3234_s16 }
   0xf   : > { %2955 = vmatpush3.bf16.msra.mxu1 %v3246_v3  ;;  %2916 = vmatprep.subr.bf16.mxu0 %v3247_v4  ;;  %v3255_v12 = vld [vmem:[%s4230_s1 + $0x160] sm:$0xff]   ;;  %v3259_v16 = vld [vmem:[%s4230_s1 + $0x158] sm:$0xff]   ;;  %v3263_v20 = vld [vmem:[%s4230_s1 + $0x150] sm:$0xff]  }
  0x10   : > { %2956 = vmatprep.subr.bf16.mxu1 %v3248_v5  ;;  %v3256_v13 = vld [vmem:[%s4230_s1 + $0x1e0] sm:$0xff]   ;;  %v3260_v17 = vld [vmem:[%s4230_s1 + $0x1d8] sm:$0xff]   ;;  %v3264_v21 = vld [vmem:[%s4230_s1 + $0x1d0] sm:$0xff]  }
  0x11   : > { %v3257_v14 = vld [vmem:[%s4230_s1 + $0x120] sm:$0xff]   ;;  %v3261_v18 = vld [vmem:[%s4230_s1 + $0x118] sm:$0xff]   ;;  %v3265_v22 = vld [vmem:[%s4230_s1 + $0x110] sm:$0xff]  }
  0x12   : > { %2917 = vmatpush3.bf16.msra.mxu0 %v3249_v6  ;;  %v3258_v15 = vld [vmem:[%s4230_s1 + $0x1a0] sm:$0xff]   ;;  %v3262_v19 = vld [vmem:[%s4230_s1 + $0x198] sm:$0xff]   ;;  %v3266_v23 = vld [vmem:[%s4230_s1 + $0x190] sm:$0xff]  }
  0x13   : > { %2957 = vmatpush3.bf16.msra.mxu1 %v3250_v7  ;;  %2918 = vmatprep.subr.bf16.mxu0 %v3251_v8  ;;  %v3267_v24 = vld [vmem:[%s4230_s1 + $0x148] sm:$0xff]   ;;  %v3271_v28 = vld [vmem:[%s4230_s1 + $0x140] sm:$0xff]   ;;  %v3275_v39 = vld [vmem:[%s4230_s1 + $0x78] sm:$0xff]  }
  0x14   : > { %2958 = vmatprep.subr.bf16.mxu1 %v3252_v9  ;;  %v3268_v25 = vld [vmem:[%s4230_s1 + $0x1c8] sm:$0xff]   ;;  %v3272_v29 = vld [vmem:[%s4230_s1 + $0x1c0] sm:$0xff]   ;;  %v287_v41 = vld [vmem:[%s3507_s27 + $0x18] sm:$0xfe] }
  0x15   : > { %v3269_v26 = vld [vmem:[%s4230_s1 + $0x108] sm:$0xff]   ;;  %v3273_v30 = vld [vmem:[%s4230_s1 + $0x100] sm:$0xff]   ;;  %v291_v42 = vld [vmem:[%s3507_s27 + $0x38] sm:$0x1]  ;;  %v422_v47 = vrot.slane %v287_v41, 1 }
  0x16   : > { %2919 = vmatpush3.bf16.msra.mxu0 %v3253_v10  ;;  %v3270_v27 = vld [vmem:[%s4230_s1 + $0x188] sm:$0xff]   ;;  %v3274_v31 = vld [vmem:[%s4230_s1 + $0x180] sm:$0xff]   ;;  %v3276_v43 = vld [vmem:[%s4230_s1 + $0xf8] sm:$0xff]   ;;  %v423_v48 = vrot.slane %v291_v42, 1 }
  0x17   : > { %2959 = vmatpush3.bf16.msra.mxu1 %v3254_v11  ;;  %2920 = vmatprep.subr.bf16.mxu0 %v3255_v12  ;;  %v285_v32 = vld [vmem:[%s3507_s27 + $0x8] sm:$0xfe]  ;;  %v289_v33 = vld [vmem:[%s3507_s27 + $0x28] sm:$0x1]  ;;  %v295_v45 = vld [vmem:[%s3507_s27 + $0x58] sm:$0xfe] }
  0x18   : > { %2960 = vmatprep.subr.bf16.mxu1 %v3256_v13  ;;  %v293_v34 = vld [vmem:[%s3507_s27 + $0x48] sm:$0xfe]  ;;  %v297_v35 = vld [vmem:[%s3507_s27 + $0x68] sm:$0x1]  ;;  %v416_v36 = vrot.slane %v285_v32, 1  ;;  %v417_v37 = vrot.slane %v289_v33, 1  ;;  %v424_v55 = vsel %vm412_vm0, %v422_v47, %v423_v48 }
  0x19   : > { %v428_v38 = vrot.slane %v293_v34, 1  ;;  %v429_v40 = vrot.slane %v297_v35, 1  ;;  %v299_v46 = vld [vmem:[%s3507_s27 + $0x78] sm:$0x1]  ;;  %v434_v50 = vrot.slane %v295_v45, 1  ;;  %v3283_v48 = vld [vmem:[%s4230_s1 + $0x68] sm:$0xff]  }
  0x1a   : > { %2921 = vmatpush3.bf16.msra.mxu0 %v3257_v14  ;;  %v418_v44 = vsel %vm412_vm0, %v416_v36, %v417_v37  ;;  %v435_v51 = vrot.slane %v299_v46, 1  ;;  %v284_v52 = vld [vmem:[%s3507_s27] sm:$0xfe]  ;;  %v288_v53 = vld [vmem:[%s3507_s27 + $0x20] sm:$0x1]  ;;  %v3277_v13 = vld [vmem:[%s4230_s1 + $0x38] sm:$0xff]  }
  0x1b   : > { %2961 = vmatpush3.bf16.msra.mxu1 %v3258_v15  ;;  %2922 = vmatprep.subr.bf16.mxu0 %v3259_v16  ;;  %v430_v49 = vsel %vm412_vm0, %v428_v38, %v429_v40  ;;  %v292_v56 = vld [vmem:[%s3507_s27 + $0x40] sm:$0xfe]  ;;  %v296_v57 = vld [vmem:[%s3507_s27 + $0x60] sm:$0x1]  ;;  %v413_v58 = vrot.slane %v284_v52, 1  ;;  %v414_v59 = vrot.slane %v288_v53, 1 }
  0x1c   : > { %2962 = vmatprep.subr.bf16.mxu1 %v3260_v17  ;;  %v542_v54 = vpack.c.bf16 %v430_v49, %v418_v44  ;;  %v436_v60 = vsel %vm412_vm0, %v434_v50, %v435_v51  ;;  %v425_v61 = vrot.slane %v292_v56, 1  ;;  %v426_v62 = vrot.slane %v296_v57, 1  ;;  %v286_v63 = vld [vmem:[%s3507_s27 + $0x10] sm:$0xfe]  ;;  %v290_v0 = vld [vmem:[%s3507_s27 + $0x30] sm:$0x1] }
  0x1d   : > { %v544_v1 = vpack.c.bf16 %v436_v60, %v424_v55  ;;  %v415_v2 = vsel %vm412_vm0, %v413_v58, %v414_v59  ;;  %v294_v3 = vld [vmem:[%s3507_s27 + $0x50] sm:$0xfe]  ;;  %v298_v4 = vld [vmem:[%s3507_s27 + $0x70] sm:$0x1]  ;;  %v419_v5 = vrot.slane %v286_v63, 1  ;;  %v420_v6 = vrot.slane %v290_v0, 1 }
  0x1e   : > { %2923 = vmatpush3.bf16.msra.mxu0 %v3261_v18  ;;  %846 = vmatprep.mubr.bf16.mxu0 %v542_v54  ;;  %v427_v7 = vsel %vm412_vm0, %v425_v61, %v426_v62  ;;  %v431_v8 = vrot.slane %v294_v3, 1  ;;  %v432_v9 = vrot.slane %v298_v4, 1  ;;  %v3278_v15 = vld [vmem:[%s4230_s1 + $0xb8] sm:$0xff]   ;;  %v3279_v16 = vld [vmem:[%s4230_s1 + $0x70] sm:$0xff]   ;;  %v300_v36 = vld [vmem:[%s3507_s27 + $0x80] sm:$0xfe] }
  0x1f   : > { %2963 = vmatpush3.bf16.msra.mxu1 %v3262_v19  ;;  %2924 = vmatprep.subr.bf16.mxu0 %v3263_v20  ;;  %v541_v10 = vpack.c.bf16 %v427_v7, %v415_v2  ;;  %v421_v11 = vsel %vm412_vm0, %v419_v5, %v420_v6  ;;  %v3280_v17 = vld [vmem:[%s4230_s1 + $0xf0] sm:$0xff]   ;;  %v301_v20 = vld [vmem:[%s3507_s27 + $0x88] sm:$0xfe]  ;;  %v304_v37 = vld [vmem:[%s3507_s27 + $0xa0] sm:$0x1]  ;;  %v437_v44 = vrot.slane %v300_v36, 1 }
  0x20   : > { %2964 = vmatprep.subr.bf16.mxu1 %v3264_v21  ;;  %911 = vmatprep.mubr.bf16.mxu1 %v544_v1  ;;  %v433_v12 = vsel %vm412_vm0, %v431_v8, %v432_v9  ;;  %v3281_v18 = vld [vmem:[%s4230_s1 + $0x30] sm:$0xff]   ;;  %v305_v21 = vld [vmem:[%s3507_s27 + $0xa8] sm:$0x1]  ;;  %v308_v41 = vld [vmem:[%s3507_s27 + $0xc0] sm:$0xfe]  ;;  %v438_v45 = vrot.slane %v304_v37, 1 }
  0x21   : > { %v543_v14 = vpack.c.bf16 %v433_v12, %v421_v11  ;;  %v3282_v19 = vld [vmem:[%s4230_s1 + $0xb0] sm:$0xff]   ;;  %v312_v42 = vld [vmem:[%s3507_s27 + $0xe0] sm:$0x1]  ;;  %v449_v46 = vrot.slane %v308_v41, 1  ;;  %v3284_v61 = vld [vmem:[%s4230_s1 + $0xe8] sm:$0xff]  }
  0x22   : > { %2925 = vmatpush3.bf16.msra.mxu0 %v3265_v22  ;;  %v309_v22 = vld [vmem:[%s3507_s27 + $0xc8] sm:$0xfe]  ;;  %v302_v47 = vld [vmem:[%s3507_s27 + $0x90] sm:$0xfe]  ;;  %v450_v50 = vrot.slane %v312_v42, 1  ;;  %v439_v55 = vsel %vm412_vm0, %v437_v44, %v438_v45  ;;  %v3287_v4 = vld [vmem:[%s4230_s1 + $0x60] sm:$0xff]  }
  0x23   : > { %2965 = vmatpush3.bf16.msra.mxu1 %v3266_v23  ;;  %2926 = vmatprep.subr.bf16.mxu0 %v3267_v24  ;;  %v313_v23 = vld [vmem:[%s3507_s27 + $0xe8] sm:$0x1]  ;;  %v440_v24 = vrot.slane %v301_v20, 1  ;;  %v306_v51 = vld [vmem:[%s3507_s27 + $0xb0] sm:$0x1]  ;;  %v443_v53 = vrot.slane %v302_v47, 1 }
  0x24   : > { %2966 = vmatprep.subr.bf16.mxu1 %v3268_v25  ;;  %v441_v25 = vrot.slane %v305_v21, 1  ;;  %v310_v52 = vld [vmem:[%s3507_s27 + $0xd0] sm:$0xfe]  ;;  %v314_v56 = vld [vmem:[%s3507_s27 + $0xf0] sm:$0x1]  ;;  %v444_v57 = vrot.slane %v306_v51, 1  ;;  %v451_v59 = vsel %vm412_vm0, %v449_v46, %v450_v50 }
  0x25   : > { %v455_v58 = vrot.slane %v310_v52, 1  ;;  %v456_v60 = vrot.slane %v314_v56, 1  ;;  %v545_v62 = vpack.c.bf16 %v451_v59, %v439_v55  ;;  %v3285_v1 = vld [vmem:[%s4230_s1 + $0x28] sm:$0xff]   ;;  %v3288_v5 = vld [vmem:[%s4230_s1 + $0xe0] sm:$0xff]   ;;  %v331_v20 = vld [vmem:[%s3507_s27 + $0x178] sm:$0x1] }
  0x26   : > { %2927 = vmatpush3.bf16.msra.mxu0 %v3269_v26  ;;  %v452_v26 = vrot.slane %v309_v22, 1  ;;  %v442_v32 = vsel %vm412_vm0, %v440_v24, %v441_v25  ;;  %v445_v63 = vsel %vm412_vm0, %v443_v53, %v444_v57  ;;  %v3286_v3 = vld [vmem:[%s4230_s1 + $0xa8] sm:$0xff]   ;;  %v3289_v6 = vld [vmem:[%s4230_s1 + $0x20] sm:$0xff]   ;;  %v483_v25 = vrot.slane %v331_v20, 1  ;;  %v318_v37 = vld [vmem:[%s3507_s27 + $0x110] sm:$0xfe] }
  0x27   : > { %2967 = vmatpush3.bf16.msra.mxu1 %v3270_v27  ;;  %2928 = vmatprep.subr.bf16.mxu0 %v3271_v28  ;;  %v453_v27 = vrot.slane %v313_v23, 1  ;;  %v303_v28 = vld [vmem:[%s3507_s27 + $0x98] sm:$0xfe]  ;;  %v457_v0 = vsel %vm412_vm0, %v455_v58, %v456_v60  ;;  %v3290_v7 = vld [vmem:[%s4230_s1 + $0xa0] sm:$0xff]   ;;  %v317_v8 = vld [vmem:[%s3507_s27 + $0x108] sm:$0xfe] }
  0x28   : > { %2968 = vmatprep.subr.bf16.mxu1 %v3272_v29  ;;  %v307_v29 = vld [vmem:[%s3507_s27 + $0xb8] sm:$0x1]  ;;  %v446_v34 = vrot.slane %v303_v28, 1  ;;  %v547_v2 = vpack.c.bf16 %v457_v0, %v445_v63  ;;  %v321_v9 = vld [vmem:[%s3507_s27 + $0x128] sm:$0x1]  ;;  %v464_v12 = vrot.slane %v317_v8, 1 }
  0x29   : > { %v454_v33 = vsel %vm412_vm0, %v452_v26, %v453_v27  ;;  %v447_v35 = vrot.slane %v307_v29, 1  ;;  %v329_v11 = vld [vmem:[%s3507_s27 + $0x168] sm:$0x1]  ;;  %v316_v26 = vld [vmem:[%s3507_s27 + $0x100] sm:$0xfe]  ;;  %v3291_v50 = vld [vmem:[%s4230_s1 + $0x58] sm:$0xff]  }
  0x2a   : > { %2929 = vmatpush3.bf16.msra.mxu0 %v3273_v30  ;;  %v311_v30 = vld [vmem:[%s3507_s27 + $0xd8] sm:$0xfe]  ;;  %v546_v38 = vpack.c.bf16 %v454_v33, %v442_v32  ;;  %v320_v27 = vld [vmem:[%s3507_s27 + $0x120] sm:$0x1]  ;;  %v461_v32 = vrot.slane %v316_v26, 1  ;;  %v3295_v56 = vld [vmem:[%s4230_s1 + $0x50] sm:$0xff]  }
  0x2b   : > { %2969 = vmatpush3.bf16.msra.mxu1 %v3274_v31  ;;  %2994 = vmatprep.subr.bf16.mxu0 %v3275_v39  ;;  %v315_v31 = vld [vmem:[%s3507_s27 + $0xf8] sm:$0x1]  ;;  %v458_v39 = vrot.slane %v311_v30, 1  ;;  %v324_v30 = vld [vmem:[%s3507_s27 + $0x140] sm:$0xfe]  ;;  %v462_v33 = vrot.slane %v320_v27, 1 }
  0x2c   : > { %3034 = vmatprep.subr.bf16.mxu1 %v3276_v43  ;;  %v459_v40 = vrot.slane %v315_v31, 1  ;;  %v448_v43 = vsel %vm412_vm0, %v446_v34, %v447_v35  ;;  %v328_v31 = vld [vmem:[%s3507_s27 + $0x160] sm:$0x1]  ;;  %v473_v35 = vrot.slane %v324_v30, 1  ;;  %v326_v41 = vld [vmem:[%s3507_s27 + $0x150] sm:$0xfe] }
  0x2d   : > { %847 = vmatmul.mubr.bf16.vlgmr.msra.gmra.mxu0 %v541_v10  ;;  %v325_v10 = vld [vmem:[%s3507_s27 + $0x148] sm:$0xfe]  ;;  %v474_v36 = vrot.slane %v328_v31, 1  ;;  %v330_v42 = vld [vmem:[%s3507_s27 + $0x170] sm:$0x1]  ;;  %v479_v46 = vrot.slane %v326_v41, 1 }
  0x2e   : > { %2995 = vmatpush3.bf16.msra.mxu0 %v3277_v13  ;;  %912 = vmatmul.mubr.bf16.vlgmr.msra.gmra.mxu1 %v543_v14  ;;  %v460_v49 = vsel %vm412_vm0, %v458_v39, %v459_v40  ;;  %v465_v13 = vrot.slane %v321_v9, 1  ;;  %v476_v14 = vrot.slane %v325_v10, 1  ;;  %v463_v40 = vsel %vm412_vm0, %v461_v32, %v462_v33  ;;  %v3292_v52 = vld [vmem:[%s4230_s1 + $0xd8] sm:$0xff]   ;;  %v3296_v57 = vld [vmem:[%s4230_s1 + $0xd0] sm:$0xff]   ;;  %v333_v60 = vld [vmem:[%s3507_s27 + $0x188] sm:$0xfe] }
  0x2f   : > { %3035 = vmatpush3.bf16.msra.mxu1 %v3278_v15  ;;  %2996 = vmatprep.subr.bf16.mxu0 %v3279_v16  ;;  %v548_v54 = vpack.c.bf16 %v460_v49, %v448_v43  ;;  %v477_v15 = vrot.slane %v329_v11, 1  ;;  %v319_v16 = vld [vmem:[%s3507_s27 + $0x118] sm:$0xfe]  ;;  %v467_v43 = vrot.slane %v318_v37, 1  ;;  %v475_v45 = vsel %vm412_vm0, %v473_v35, %v474_v36  ;;  %v3297_v58 = vld [vmem:[%s4230_s1 + $0x10] sm:$0xff]  }
  0x30   : > { %3036 = vmatprep.subr.bf16.mxu1 %v3280_v17  ;;  %854 = vmatprep.mubr.bf16.mxu0 %v546_v38  ;;  %v323_v17 = vld [vmem:[%s3507_s27 + $0x138] sm:$0x1]  ;;  %v470_v21 = vrot.slane %v319_v16, 1  ;;  %v322_v38 = vld [vmem:[%s3507_s27 + $0x130] sm:$0x1]  ;;  %v480_v47 = vrot.slane %v330_v42, 1 }
  0x31   : > { %919 = vmatprep.mubr.bf16.mxu1 %v548_v54  ;;  %v471_v22 = vrot.slane %v323_v17, 1  ;;  %v478_v23 = vsel %vm412_vm0, %v476_v14, %v477_v15  ;;  %v468_v44 = vrot.slane %v322_v38, 1  ;;  %v3293_v54 = vld [vmem:[%s4230_s1 + $0x18] sm:$0xff]   ;;  %v3298_v59 = vld [vmem:[%s4230_s1 + $0x90] sm:$0xff]   ;;  %v345_v63 = vld [vmem:[%s3507_s27 + $0x1e8] sm:$0x1] }
  0x32   : > { %2997 = vmatpush3.bf16.msra.mxu0 %v3281_v18  ;;  %v466_v18 = vsel %vm412_vm0, %v464_v12, %v465_v13  ;;  %v481_v51 = vsel %vm412_vm0, %v479_v46, %v480_v47  ;;  %v3294_v55 = vld [vmem:[%s4230_s1 + $0x98] sm:$0xff]   ;;  %v488_v0 = vrot.slane %v333_v60, 1  ;;  %v332_v14 = vld [vmem:[%s3507_s27 + $0x180] sm:$0xfe]  ;;  %v336_v15 = vld [vmem:[%s3507_s27 + $0x1a0] sm:$0x1] }
  0x33   : > { %3037 = vmatpush3.bf16.msra.mxu1 %v3282_v19  ;;  %2998 = vmatprep.subr.bf16.mxu0 %v3283_v48  ;;  %v327_v19 = vld [vmem:[%s3507_s27 + $0x158] sm:$0xfe]  ;;  %v550_v28 = vpack.c.bf16 %v478_v23, %v466_v18  ;;  %v472_v29 = vsel %vm412_vm0, %v470_v21, %v471_v22  ;;  %v549_v48 = vpack.c.bf16 %v475_v45, %v463_v40  ;;  %v347_v8 = vld [vmem:[%s3507_s27 + $0x1f8] sm:$0x1]  ;;  %v340_v18 = vld [vmem:[%s3507_s27 + $0x1c0] sm:$0xfe] }
  0x34   : > { %3038 = vmatprep.subr.bf16.mxu1 %v3284_v61  ;;  %v482_v24 = vrot.slane %v327_v19, 1  ;;  %v469_v49 = vsel %vm412_vm0, %v467_v43, %v468_v44  ;;  %v337_v61 = vld [vmem:[%s3507_s27 + $0x1a8] sm:$0x1]  ;;  %v507_v13 = vrot.slane %v347_v8, 1  ;;  %v344_v19 = vld [vmem:[%s3507_s27 + $0x1e0] sm:$0x1] }
  0x35   : > { %855 = vmatmul.mubr.bf16.gmra.mxu0 %v545_v62  ;;  %v551_v53 = vpack.c.bf16 %v481_v51, %v469_v49  ;;  %v341_v62 = vld [vmem:[%s3507_s27 + $0x1c8] sm:$0xfe]  ;;  %v485_v20 = vrot.slane %v332_v14, 1  ;;  %v486_v21 = vrot.slane %v336_v15, 1  ;;  %v497_v23 = vrot.slane %v340_v18, 1  ;;  %v3303_v44 = vld [vmem:[%s4230_s1 + $0x40] sm:$0xff]  }
  0x36   : > { %2999 = vmatpush3.bf16.msra.mxu0 %v3285_v1  ;;  %920 = vmatmul.mubr.bf16.gmra.mxu1 %v547_v2  ;;  %v484_v34 = vsel %vm412_vm0, %v482_v24, %v483_v25  ;;  %v489_v1 = vrot.slane %v337_v61, 1  ;;  %v500_v2 = vrot.slane %v341_v62, 1  ;;  %v498_v24 = vrot.slane %v344_v19, 1  ;;  %v334_v25 = vld [vmem:[%s3507_s27 + $0x190] sm:$0xfe]  ;;  %v3299_v38 = vld [vmem:[%s4230_s1 + $0x48] sm:$0xff]  }
  0x37   : > { %3039 = vmatpush3.bf16.msra.mxu1 %v3286_v3  ;;  %3000 = vmatprep.subr.bf16.mxu0 %v3287_v4  ;;  %v552_v39 = vpack.c.bf16 %v484_v34, %v472_v29  ;;  %v501_v3 = vrot.slane %v345_v63, 1  ;;  %v335_v4 = vld [vmem:[%s3507_s27 + $0x198] sm:$0xfe]  ;;  %v338_v26 = vld [vmem:[%s3507_s27 + $0x1b0] sm:$0x1]  ;;  %v491_v31 = vrot.slane %v334_v25, 1 }
  0x38   : > { %3040 = vmatprep.subr.bf16.mxu1 %v3288_v5  ;;  %862 = vmatprep.mubr.bf16.mxu0 %v550_v28  ;;  %v339_v5 = vld [vmem:[%s3507_s27 + $0x1b8] sm:$0x1]  ;;  %v494_v9 = vrot.slane %v335_v4, 1  ;;  %v487_v28 = vsel %vm412_vm0, %v485_v20, %v486_v21  ;;  %v342_v29 = vld [vmem:[%s3507_s27 + $0x1d0] sm:$0xfe]  ;;  %v492_v32 = vrot.slane %v338_v26, 1  ;;  %v499_v33 = vsel %vm412_vm0, %v497_v23, %v498_v24 }
  0x39   : > { %927 = vmatprep.mubr.bf16.mxu1 %v552_v39  ;;  %v495_v10 = vrot.slane %v339_v5, 1  ;;  %v502_v11 = vsel %vm412_vm0, %v500_v2, %v501_v3  ;;  %v346_v30 = vld [vmem:[%s3507_s27 + $0x1f0] sm:$0x1]  ;;  %v503_v34 = vrot.slane %v342_v29, 1  ;;  %v553_v36 = vpack.c.bf16 %v499_v33, %v487_v28  ;;  %v3300_v40 = vld [vmem:[%s4230_s1 + $0xc8] sm:$0xff]   ;;  %v3304_v45 = vld [vmem:[%s4230_s1 + $0xc0] sm:$0xff]  }
  0x3a   : > { %3001 = vmatpush3.bf16.msra.mxu0 %v3289_v6  ;;  %v490_v6 = vsel %vm412_vm0, %v488_v0, %v489_v1  ;;  %v504_v35 = vrot.slane %v346_v30, 1  ;;  %v493_v37 = vsel %vm412_vm0, %v491_v31, %v492_v32  ;;  %v3301_v42 = vld [vmem:[%s4230_s1 + $0x8] sm:$0xff]   ;;  %v3305_v46 = vld [vmem:[%s4230_s1] sm:$0xff]   ;;  %v175_v51 = vld [vmem:[%s3507_s27 + $0x18] sm:$0xff] }
  0x3b   : > { %3041 = vmatpush3.bf16.msra.mxu1 %v3290_v7  ;;  %3002 = vmatprep.subr.bf16.mxu0 %v3291_v50  ;;  %v343_v7 = vld [vmem:[%s3507_s27 + $0x1d8] sm:$0xfe]  ;;  %v554_v16 = vpack.c.bf16 %v502_v11, %v490_v6  ;;  %v496_v17 = vsel %vm412_vm0, %v494_v9, %v495_v10  ;;  %v3302_v43 = vld [vmem:[%s4230_s1 + $0x88] sm:$0xff]   ;;  %v3306_v47 = vld [vmem:[%s4230_s1 + $0x80] sm:$0xff]  }
  0x3c   : > { %3042 = vmatprep.subr.bf16.mxu1 %v3292_v52  ;;  %v506_v12 = vrot.slane %v343_v7, 1  ;;  %v505_v39 = vsel %vm412_vm0, %v503_v34, %v504_v35  ;;  %v3709_v49 = vld [vmem:[%s3507_s27 + $0x48] sm:$0xff]  ;;  %v3714_v52 = vld [vmem:[%s3507_s27 + $0x58] sm:$0xff]  ;;  %v3311_v0 = vld [vmem:[%s4230_s1 + $0x270] sm:$0xff]  }
  0x3d   : > { %863 = vmatmul.mubr.bf16.gmra.mxu0 %v549_v48  ;;  %v555_v41 = vpack.c.bf16 %v505_v39, %v493_v37  ;;  %v173_v48 = vld [vmem:[%s3507_s27 + $0x8] sm:$0xff]  ;;  %v3307_v60 = vld [vmem:[%s4230_s1 + $0x278] sm:$0xff]   ;;  %v3312_v1 = vld [vmem:[%s4230_s1 + $0x2f0] sm:$0xff]  }
  0x3e   : > { %928 = vmatmul.mubr.bf16.gmra.mxu1 %v551_v53  ;;  %3003 = vmatpush3.bf16.msra.mxu0 %v3293_v54  ;;  %v508_v22 = vsel %vm412_vm0, %v506_v12, %v507_v13  ;;  %v205_v50 = vpack.c.bf16 %v3709_v49, %v173_v48  ;;  %v172_v53 = vld [vmem:[%s3507_s27] sm:$0xff]  ;;  %v207_v54 = vpack.c.bf16 %v3714_v52, %v175_v51  ;;  %v3308_v61 = vld [vmem:[%s4230_s1 + $0x2f8] sm:$0xff]   ;;  %v3313_v2 = vld [vmem:[%s4230_s1 + $0x230] sm:$0xff]  }
  0x3f   : > { %3043 = vmatpush3.bf16.msra.mxu1 %v3294_v55  ;;  %3004 = vmatprep.subr.bf16.mxu0 %v3295_v56  ;;  %v556_v27 = vpack.c.bf16 %v508_v22, %v496_v17  ;;  %v3719_v55 = vld [vmem:[%s3507_s27 + $0x40] sm:$0xff]  ;;  %v174_v56 = vld [vmem:[%s3507_s27 + $0x10] sm:$0xff]  ;;  %v3309_v62 = vld [vmem:[%s4230_s1 + $0x238] sm:$0xff]  }
  0x40   : > { %3044 = vmatprep.subr.bf16.mxu1 %v3296_v57  ;;  %870 = vmatprep.mubr.bf16.mxu0 %v554_v16  ;;  %v3723_v57 = vld [vmem:[%s3507_s27 + $0x50] sm:$0xff]  ;;  %v3310_v63 = vld [vmem:[%s4230_s1 + $0x2b8] sm:$0xff]   ;;  %v3752_v4 = vld [vmem:[%s3507_s27 + $0x88] sm:$0xff] }
  0x41   : > { %935 = vmatprep.mubr.bf16.mxu1 %v556_v27  ;;  %v3314_v3 = vld [vmem:[%s4230_s1 + $0x2b0] sm:$0xff]   ;;  %v3755_v5 = vld [vmem:[%s3507_s27 + $0xc8] sm:$0xff]  ;;  %v3758_v6 = vld [vmem:[%s3507_s27 + $0x98] sm:$0xff] }
  0x42   : > { %3005 = vmatpush3.bf16.msra.mxu0 %v3297_v58  ;;  %v204_v58 = vpack.c.bf16 %v3719_v55, %v172_v53  ;;  %v209_v7 = vpack.c.bf16 %v3755_v5, %v3752_v4  ;;  %v3763_v8 = vld [vmem:[%s3507_s27 + $0xd8] sm:$0xff]  ;;  %v3766_v9 = vld [vmem:[%s3507_s27 + $0x80] sm:$0xff]  ;;  %v3776_v13 = vld [vmem:[%s3507_s27 + $0x90] sm:$0xff] }
  0x43   : > { %3045 = vmatpush3.bf16.msra.mxu1 %v3298_v59  ;;  %3006 = vmatprep.subr.bf16.mxu0 %v3299_v38  ;;  %v206_v59 = vpack.c.bf16 %v3723_v57, %v174_v56  ;;  %v3769_v10 = vld [vmem:[%s3507_s27 + $0xc0] sm:$0xff]  ;;  %v211_v11 = vpack.c.bf16 %v3763_v8, %v3758_v6  ;;  %v3779_v14 = vld [vmem:[%s3507_s27 + $0xd0] sm:$0xff]  ;;  %v3315_v16 = vld [vmem:[%s4230_s1 + $0x268] sm:$0xff]  }
  0x44   : > { %3046 = vmatprep.subr.bf16.mxu1 %v3300_v40  ;;  %v208_v12 = vpack.c.bf16 %v3769_v10, %v3766_v9  ;;  %v210_v15 = vpack.c.bf16 %v3779_v14, %v3776_v13  ;;  %v3316_v17 = vld [vmem:[%s4230_s1 + $0x2e8] sm:$0xff]   ;;  %v3319_v20 = vld [vmem:[%s4230_s1 + $0x260] sm:$0xff]   ;;  %v3814_v26 = vld [vmem:[%s3507_s27 + $0x118] sm:$0xff] }
  0x45   : > { %871 = vmatmul.mubr.bf16.gmra.mxu0 %v553_v36  ;;  %v3317_v18 = vld [vmem:[%s4230_s1 + $0x228] sm:$0xff]   ;;  %v3320_v21 = vld [vmem:[%s4230_s1 + $0x2e0] sm:$0xff]   ;;  %v3817_v27 = vld [vmem:[%s3507_s27 + $0x158] sm:$0xff] }
  0x46   : > { %936 = vmatmul.mubr.bf16.gmra.mxu1 %v555_v41  ;;  %3007 = vmatpush3.bf16.msra.mxu0 %v3301_v42  ;;  %v3318_v19 = vld [vmem:[%s4230_s1 + $0x2a8] sm:$0xff]   ;;  %v3321_v22 = vld [vmem:[%s4230_s1 + $0x220] sm:$0xff]   ;;  %v215_v29 = vpack.c.bf16 %v3817_v27, %v3814_v26  ;;  %v3830_v32 = vld [vmem:[%s3507_s27 + $0x110] sm:$0xff] }
  0x47   : > { %3047 = vmatpush3.bf16.msra.mxu1 %v3302_v43  ;;  %3008 = vmatprep.subr.bf16.mxu0 %v3303_v44  ;;  %v3322_v23 = vld [vmem:[%s4230_s1 + $0x2a0] sm:$0xff]   ;;  %v3808_v24 = vld [vmem:[%s3507_s27 + $0x108] sm:$0xff]  ;;  %v3835_v34 = vld [vmem:[%s3507_s27 + $0x150] sm:$0xff] }
  0x48   : > { %3048 = vmatprep.subr.bf16.mxu1 %v3304_v45  ;;  %1168 = vmatprep.mubr.bf16.mxu0 %v205_v50  ;;  %v3811_v25 = vld [vmem:[%s3507_s27 + $0x148] sm:$0xff]  ;;  %v3824_v30 = vld [vmem:[%s3507_s27 + $0x100] sm:$0xff]  ;;  %v214_v35 = vpack.c.bf16 %v3835_v34, %v3830_v32  ;;  %v3323_v36 = vld [vmem:[%s4230_s1 + $0x258] sm:$0xff]  }
  0x49   : > { %1233 = vmatprep.mubr.bf16.mxu1 %v207_v54  ;;  %v213_v28 = vpack.c.bf16 %v3811_v25, %v3808_v24  ;;  %v3827_v31 = vld [vmem:[%s3507_s27 + $0x140] sm:$0xff]  ;;  %v3324_v37 = vld [vmem:[%s4230_s1 + $0x2d8] sm:$0xff]   ;;  %v3327_v40 = vld [vmem:[%s4230_s1 + $0x250] sm:$0xff]  }
  0x4a   : > { %3009 = vmatpush3.bf16.msra.mxu0 %v3305_v46  ;;  %v212_v33 = vpack.c.bf16 %v3827_v31, %v3824_v30  ;;  %v3325_v38 = vld [vmem:[%s4230_s1 + $0x218] sm:$0xff]   ;;  %v3328_v41 = vld [vmem:[%s4230_s1 + $0x2d0] sm:$0xff]   ;;  %v3864_v44 = vld [vmem:[%s3507_s27 + $0x188] sm:$0xff] }
  0x4b   : > { %3049 = vmatpush3.bf16.msra.mxu1 %v3306_v47  ;;  %3074 = vmatprep.subr.bf16.mxu0 %v3307_v60  ;;  %v3326_v39 = vld [vmem:[%s4230_s1 + $0x298] sm:$0xff]   ;;  %v3329_v42 = vld [vmem:[%s4230_s1 + $0x210] sm:$0xff]   ;;  %v3867_v45 = vld [vmem:[%s3507_s27 + $0x1c8] sm:$0xff] }
  0x4c   : > { %3114 = vmatprep.subr.bf16.mxu1 %v3308_v61  ;;  %v3330_v43 = vld [vmem:[%s4230_s1 + $0x290] sm:$0xff]   ;;  %v217_v46 = vpack.c.bf16 %v3867_v45, %v3864_v44  ;;  %v3872_v47 = vld [vmem:[%s3507_s27 + $0x198] sm:$0xff]  ;;  %v3878_v50 = vld [vmem:[%s3507_s27 + $0x180] sm:$0xff]  ;;  %v1300_v61 = vpack.c.bf16 %v3752_v4, %v3709_v49  ;;  %v1299_v4 = vpack.c.bf16 %v3766_v9, %v3719_v55 }
  0x4d   : > { %1169 = vmatmul.mubr.bf16.vlgmr.msra.gmra.mxu0 %v204_v58  ;;  %v3875_v48 = vld [vmem:[%s3507_s27 + $0x1d8] sm:$0xff]  ;;  %v3883_v53 = vld [vmem:[%s3507_s27 + $0x1c0] sm:$0xff]  ;;  %v3886_v54 = vld [vmem:[%s3507_s27 + $0x190] sm:$0xff] }
  0x4e   : > { %1234 = vmatmul.mubr.bf16.vlgmr.msra.gmra.mxu1 %v206_v59  ;;  %3075 = vmatpush3.bf16.msra.mxu0 %v3309_v62  ;;  %v219_v51 = vpack.c.bf16 %v3875_v48, %v3872_v47  ;;  %v3889_v56 = vld [vmem:[%s3507_s27 + $0x1d0] sm:$0xff]  ;;  %v216_v58 = vpack.c.bf16 %v3883_v53, %v3878_v50  ;;  %v3331_v60 = vld [vmem:[%s4230_s1 + $0x248] sm:$0xff]   ;;  %v3341_v55 = vld [vmem:[%s4230_s1 + $0x338] sm:$0xff]  }
  0x4f   : > { %3115 = vmatpush3.bf16.msra.mxu1 %v3310_v63  ;;  %3076 = vmatprep.subr.bf16.mxu0 %v3311_v0  ;;  %v218_v59 = vpack.c.bf16 %v3889_v56, %v3886_v54  ;;  %v3332_v62 = vld [vmem:[%s4230_s1 + $0x2c8] sm:$0xff]   ;;  %v1302_v63 = vpack.c.bf16 %v3758_v6, %v3714_v52  ;;  %v3336_v52 = vld [vmem:[%s4230_s1 + $0x2c0] sm:$0xff]   ;;  %v1301_v6 = vpack.c.bf16 %v3776_v13, %v3723_v57  ;;  %v3342_v9 = vld [vmem:[%s4230_s1 + $0x3b8] sm:$0xff]  }
  0x50   : > { %3116 = vmatprep.subr.bf16.mxu1 %v3312_v1  ;;  %1176 = vmatprep.mubr.bf16.mxu0 %v209_v7  ;;  %v3333_v0 = vld [vmem:[%s4230_s1 + $0x208] sm:$0xff]   ;;  %v3335_v1 = vld [vmem:[%s4230_s1 + $0x240] sm:$0xff]   ;;  %v3339_v7 = vld [vmem:[%s4230_s1 + $0x378] sm:$0xff]   ;;  %v1306_v57 = vpack.c.bf16 %v3814_v26, %v3763_v8  ;;  %v1307_v26 = vpack.c.bf16 %v3878_v50, %v3827_v31 }
  0x51   : > { %1241 = vmatprep.mubr.bf16.mxu1 %v211_v11  ;;  %v3334_v49 = vld [vmem:[%s4230_s1 + $0x288] sm:$0xff]   ;;  %v3340_v11 = vld [vmem:[%s4230_s1 + $0x3f8] sm:$0xff]   ;;  %v3344_v13 = vld [vmem:[%s4230_s1 + $0x3f0] sm:$0xff]  }
  0x52   : > { %3077 = vmatpush3.bf16.msra.mxu0 %v3313_v2  ;;  %v3337_v2 = vld [vmem:[%s4230_s1 + $0x200] sm:$0xff]   ;;  %v3345_v8 = vld [vmem:[%s4230_s1 + $0x330] sm:$0xff]   ;;  %v3358_v31 = vld [vmem:[%s4230_s1 + $0x398] sm:$0xff]  }
  0x53   : > { %3117 = vmatpush3.bf16.msra.mxu1 %v3314_v3  ;;  %3078 = vmatprep.subr.bf16.mxu0 %v3315_v16  ;;  %v3338_v3 = vld [vmem:[%s4230_s1 + $0x280] sm:$0xff]   ;;  %v1303_v16 = vpack.c.bf16 %v3824_v30, %v3769_v10  ;;  %v3349_v10 = vld [vmem:[%s4230_s1 + $0x328] sm:$0xff]   ;;  %v3357_v30 = vld [vmem:[%s4230_s1 + $0x318] sm:$0xff]  }
  0x54   : > { %3118 = vmatprep.subr.bf16.mxu1 %v3316_v17  ;;  %v1305_v17 = vpack.c.bf16 %v3830_v32, %v3779_v14  ;;  %v1310_v14 = vpack.c.bf16 %v3872_v47, %v3817_v27  ;;  %v1309_v27 = vpack.c.bf16 %v3886_v54, %v3835_v34  ;;  %v3359_v32 = vld [vmem:[%s4230_s1 + $0x350] sm:$0xff]   ;;  %v3366_v47 = vld [vmem:[%s4230_s1 + $0x388] sm:$0xff]   ;;  %v3368_v50 = vld [vmem:[%s4230_s1 + $0x3c0] sm:$0xff]  }
  0x55   : > { %1177 = vmatmul.mubr.bf16.gmra.mxu0 %v208_v12  ;;  %v1304_v12 = vpack.c.bf16 %v3808_v24, %v3755_v5  ;;  %v3343_v5 = vld [vmem:[%s4230_s1 + $0x370] sm:$0xff]   ;;  %v3353_v24 = vld [vmem:[%s4230_s1 + $0x320] sm:$0xff]   ;;  %v2728_v54 = vld [vmem:[%s3507_s27 + $0x48] sm:$0xfe] }
  0x56   : > { %1242 = vmatmul.mubr.bf16.gmra.mxu1 %v210_v15  ;;  %3079 = vmatpush3.bf16.msra.mxu0 %v3317_v18  ;;  %v3346_v15 = vld [vmem:[%s4230_s1 + $0x3b0] sm:$0xff]   ;;  %v3347_v18 = vld [vmem:[%s4230_s1 + $0x368] sm:$0xff]  }
  0x57   : > { %3119 = vmatpush3.bf16.msra.mxu1 %v3318_v19  ;;  %3080 = vmatprep.subr.bf16.mxu0 %v3319_v20  ;;  %v3348_v19 = vld [vmem:[%s4230_s1 + $0x3e8] sm:$0xff]   ;;  %v1308_v20 = vpack.c.bf16 %v3864_v44, %v3811_v25  ;;  %v3354_v25 = vld [vmem:[%s4230_s1 + $0x3a0] sm:$0xff]   ;;  %v3361_v34 = vld [vmem:[%s4230_s1 + $0x310] sm:$0xff]  }
  0x58   : > { %3120 = vmatprep.subr.bf16.mxu1 %v3320_v21  ;;  %1184 = vmatprep.mubr.bf16.mxu0 %v213_v28  ;;  %v3350_v21 = vld [vmem:[%s4230_s1 + $0x3a8] sm:$0xff]   ;;  %v3355_v28 = vld [vmem:[%s4230_s1 + $0x358] sm:$0xff]  }
  0x59   : > { %1249 = vmatprep.mubr.bf16.mxu1 %v215_v29  ;;  %v3356_v29 = vld [vmem:[%s4230_s1 + $0x3d8] sm:$0xff]   ;;  %v3363_v44 = vld [vmem:[%s4230_s1 + $0x348] sm:$0xff]  }
  0x5a   : > { %3081 = vmatpush3.bf16.msra.mxu0 %v3321_v22  ;;  %v3351_v22 = vld [vmem:[%s4230_s1 + $0x360] sm:$0xff]  }
  0x5b   : > { %3121 = vmatpush3.bf16.msra.mxu1 %v3322_v23  ;;  %3082 = vmatprep.subr.bf16.mxu0 %v3323_v36  ;;  %v3352_v23 = vld [vmem:[%s4230_s1 + $0x3e0] sm:$0xff]   ;;  %v2628_v36 = vld [vmem:[%s3507_s27 + $0x208] sm:$0xff] }
  0x5c   : > { %3122 = vmatprep.subr.bf16.mxu1 %v3324_v37  ;;  %v2630_v37 = vld [vmem:[%s3507_s27 + $0x218] sm:$0xff] }
  0x5d   : > { %1185 = vmatmul.mubr.bf16.gmra.mxu0 %v212_v33  ;;  %v3360_v33 = vld [vmem:[%s4230_s1 + $0x3d0] sm:$0xff]  }
  0x5e   : > { %1250 = vmatmul.mubr.bf16.gmra.mxu1 %v214_v35  ;;  %3083 = vmatpush3.bf16.msra.mxu0 %v3325_v38  ;;  %v3362_v35 = vld [vmem:[%s4230_s1 + $0x390] sm:$0xff]   ;;  %v2627_v38 = vld [vmem:[%s3507_s27 + $0x200] sm:$0xff] }
  0x5f   : > { %3123 = vmatpush3.bf16.msra.mxu1 %v3326_v39  ;;  %3084 = vmatprep.subr.bf16.mxu0 %v3327_v40  ;;  %v1312_v39 = vpack.c.bf16 %v2628_v36, %v3867_v45  ;;  %v1314_v40 = vpack.c.bf16 %v2630_v37, %v3875_v48  ;;  %v3365_v45 = vld [vmem:[%s4230_s1 + $0x308] sm:$0xff]   ;;  %v3367_v48 = vld [vmem:[%s4230_s1 + $0x340] sm:$0xff]  }
  0x60   : > { %3124 = vmatprep.subr.bf16.mxu1 %v3328_v41  ;;  %1192 = vmatprep.mubr.bf16.mxu0 %v217_v46  ;;  %v1311_v41 = vpack.c.bf16 %v2627_v38, %v3883_v53  ;;  %v3364_v46 = vld [vmem:[%s4230_s1 + $0x3c8] sm:$0xff]   ;;  %v3370_v53 = vld [vmem:[%s4230_s1 + $0x380] sm:$0xff]  }
  0x61   : > { %1257 = vmatprep.mubr.bf16.mxu1 %v219_v51  ;;  %v3369_v51 = vld [vmem:[%s4230_s1 + $0x300] sm:$0xff]  }
  0x62   : > { %3085 = vmatpush3.bf16.msra.mxu0 %v3329_v42  ;;  %v2629_v42 = vld [vmem:[%s3507_s27 + $0x210] sm:$0xff] }
  0x63   : > { %3125 = vmatpush3.bf16.msra.mxu1 %v3330_v43  ;;  %3086 = vmatprep.subr.bf16.mxu0 %v3331_v60  ;;  %v1313_v43 = vpack.c.bf16 %v2629_v42, %v3889_v56  ;;  %v2732_v56 = vld [vmem:[%s3507_s27 + $0x68] sm:$0x1]  ;;  %v1841_v60 = vrot.slane %v2728_v54, 1 }
  0x64   : > { %3126 = vmatprep.subr.bf16.mxu1 %v3332_v62 }
  0x65   : > { %1193 = vmatmul.mubr.bf16.gmra.mxu0 %v216_v58  ;;  %v2736_v58 = vld [vmem:[%s3507_s27 + $0x88] sm:$0xfe] }
  0x66   : > { %1258 = vmatmul.mubr.bf16.gmra.mxu1 %v218_v59  ;;  %3087 = vmatpush3.bf16.msra.mxu0 %v3333_v0  ;;  %v2740_v59 = vld [vmem:[%s3507_s27 + $0xa8] sm:$0x1]  ;;  %v1853_v62 = vrot.slane %v2736_v58, 1  ;;  %v2730_v0 = vld [vmem:[%s3507_s27 + $0x58] sm:$0xfe] }
  0x67   : > { %1604 = vmatprep.mubr.bf16.mxu0 %v1300_v61  ;;  %3127 = vmatpush3.bf16.msra.mxu1 %v3334_v49  ;;  %v1842_v61 = vrot.slane %v2732_v56, 1  ;;  %v2734_v49 = vld [vmem:[%s3507_s27 + $0x78] sm:$0x1]  ;;  %v2751_v58 = vld [vmem:[%s3507_s27 + $0x100] sm:$0xfe] }
  0x68   : > { %1669 = vmatprep.mubr.bf16.mxu1 %v1302_v63  ;;  %3088 = vmatprep.subr.bf16.mxu0 %v3335_v1  ;;  %v1854_v63 = vrot.slane %v2740_v59, 1  ;;  %v2755_v59 = vld [vmem:[%s3507_s27 + $0x120] sm:$0x1] }
  0x69   : > { %3128 = vmatprep.subr.bf16.mxu1 %v3336_v52  ;;  %v1843_v1 = vsel %vm412_vm0, %v1841_v60, %v1842_v61  ;;  %v2738_v52 = vld [vmem:[%s3507_s27 + $0x98] sm:$0xfe] }
  0x6a   : > { %3089 = vmatpush3.bf16.msra.mxu0 %v3337_v2  ;;  %v2742_v2 = vld [vmem:[%s3507_s27 + $0xb8] sm:$0x1] }
  0x6b   : > { %3129 = vmatpush3.bf16.msra.mxu1 %v3338_v3  ;;  %3154 = vmatprep.subr.bf16.mxu0 %v3339_v7  ;;  %v1847_v3 = vrot.slane %v2730_v0, 1  ;;  %v1859_v7 = vrot.slane %v2738_v52, 1  ;;  %v1875_v0 = vrot.slane %v2755_v59, 1 }
  0x6c   : > { %3194 = vmatprep.subr.bf16.mxu1 %v3340_v11  ;;  %v1860_v11 = vrot.slane %v2742_v2, 1 }
  0x6d   : > { %1605 = vmatmul.mubr.bf16.vlgmr.msra.gmra.mxu0 %v1299_v4  ;;  %v1848_v4 = vrot.slane %v2734_v49, 1  ;;  %v2745_v49 = vld [vmem:[%s3507_s27 + $0xd0] sm:$0xfe] }
  0x6e   : > { %1670 = vmatmul.mubr.bf16.vlgmr.msra.gmra.mxu1 %v1301_v6  ;;  %3155 = vmatpush3.bf16.msra.mxu0 %v3341_v55  ;;  %v1855_v6 = vsel %vm412_vm0, %v1853_v62, %v1854_v63  ;;  %v2731_v55 = vld [vmem:[%s3507_s27 + $0x60] sm:$0x1]  ;;  %v1874_v63 = vrot.slane %v2751_v58, 1 }
  0x6f   : > { %3195 = vmatpush3.bf16.msra.mxu1 %v3342_v9  ;;  %1612 = vmatprep.mubr.bf16.mxu0 %v1304_v12  ;;  %v2727_v12 = vld [vmem:[%s3507_s27 + $0x40] sm:$0xfe]  ;;  %v1849_v9 = vsel %vm412_vm0, %v1847_v3, %v1848_v4  ;;  %v2753_v3 = vld [vmem:[%s3507_s27 + $0x110] sm:$0xfe]  ;;  %v2757_v4 = vld [vmem:[%s3507_s27 + $0x130] sm:$0x1] }
  0x70   : > { %3156 = vmatprep.subr.bf16.mxu0 %v3343_v5  ;;  %1677 = vmatprep.mubr.bf16.mxu1 %v1306_v57  ;;  %v1967_v57 = vpack.c.bf16 %v1855_v6, %v1843_v1  ;;  %v2735_v5 = vld [vmem:[%s3507_s27 + $0x80] sm:$0xfe]  ;;  %v2749_v1 = vld [vmem:[%s3507_s27 + $0xf0] sm:$0x1]  ;;  %v1868_v6 = vrot.slane %v2745_v49, 1 }
  0x71   : > { %3196 = vmatprep.subr.bf16.mxu1 %v3344_v13  ;;  %v2739_v13 = vld [vmem:[%s3507_s27 + $0xa0] sm:$0x1] }
  0x72   : > { %3157 = vmatpush3.bf16.msra.mxu0 %v3345_v8  ;;  %v1838_v8 = vrot.slane %v2727_v12, 1  ;;  %v1880_v12 = vrot.slane %v2753_v3, 1 }
  0x73   : > { %3197 = vmatpush3.bf16.msra.mxu1 %v3346_v15  ;;  %3158 = vmatprep.subr.bf16.mxu0 %v3347_v18  ;;  %v1839_v15 = vrot.slane %v2731_v55, 1  ;;  %v1851_v18 = vrot.slane %v2739_v13, 1  ;;  %v1881_v55 = vrot.slane %v2757_v4, 1 }
  0x74   : > { %3198 = vmatprep.subr.bf16.mxu1 %v3348_v19  ;;  %v2729_v19 = vld [vmem:[%s3507_s27 + $0x50] sm:$0xfe] }
  0x75   : > { %1613 = vmatmul.mubr.bf16.gmra.mxu0 %v1303_v16  ;;  %v1861_v16 = vsel %vm412_vm0, %v1859_v7, %v1860_v11  ;;  %v1869_v7 = vrot.slane %v2749_v1, 1  ;;  %v1876_v11 = vsel %vm412_vm0, %v1874_v63, %v1875_v0 }
  0x76   : > { %1678 = vmatmul.mubr.bf16.gmra.mxu1 %v1305_v17  ;;  %3159 = vmatpush3.bf16.msra.mxu0 %v3349_v10  ;;  %v1850_v17 = vrot.slane %v2735_v5, 1  ;;  %v1969_v10 = vpack.c.bf16 %v1861_v16, %v1849_v9  ;;  %v2764_v9 = vld [vmem:[%s3507_s27 + $0x168] sm:$0x1] }
  0x77   : > { %3199 = vmatpush3.bf16.msra.mxu1 %v3350_v21  ;;  %1620 = vmatprep.mubr.bf16.mxu0 %v1308_v20  ;;  %v2733_v20 = vld [vmem:[%s3507_s27 + $0x70] sm:$0x1]  ;;  %v2737_v21 = vld [vmem:[%s3507_s27 + $0x90] sm:$0xfe]  ;;  %v1870_v13 = vsel %vm412_vm0, %v1868_v6, %v1869_v7  ;;  %v2786_v6 = vld [vmem:[%s3507_s27 + $0x218] sm:$0xfe] }
  0x78   : > { %3160 = vmatprep.subr.bf16.mxu0 %v3351_v22  ;;  %1685 = vmatprep.mubr.bf16.mxu1 %v1310_v14  ;;  %v1840_v14 = vsel %vm412_vm0, %v1838_v8, %v1839_v15  ;;  %v2741_v22 = vld [vmem:[%s3507_s27 + $0xb0] sm:$0x1]  ;;  %v2768_v8 = vld [vmem:[%s3507_s27 + $0x188] sm:$0xfe]  ;;  %v2772_v15 = vld [vmem:[%s3507_s27 + $0x1a8] sm:$0x1] }
  0x79   : > { %3200 = vmatprep.subr.bf16.mxu1 %v3352_v23  ;;  %v1844_v23 = vrot.slane %v2729_v19, 1  ;;  %v1901_v19 = vrot.slane %v2768_v8, 1  ;;  %v2790_v7 = vld [vmem:[%s3507_s27 + $0x238] sm:$0x1] }
  0x7a   : > { %3161 = vmatpush3.bf16.msra.mxu0 %v3353_v24  ;;  %v1845_v24 = vrot.slane %v2733_v20, 1  ;;  %v1902_v20 = vrot.slane %v2772_v15, 1 }
  0x7b   : > { %3201 = vmatpush3.bf16.msra.mxu1 %v3354_v25  ;;  %3162 = vmatprep.subr.bf16.mxu0 %v3355_v28  ;;  %v1852_v25 = vsel %vm412_vm0, %v1850_v17, %v1851_v18  ;;  %v2744_v28 = vld [vmem:[%s3507_s27 + $0xc8] sm:$0xfe]  ;;  %v1890_v17 = vrot.slane %v2764_v9, 1  ;;  %v1882_v18 = vsel %vm412_vm0, %v1880_v12, %v1881_v55  ;;  %v1932_v9 = vrot.slane %v2790_v7, 1 }
  0x7c   : > { %3202 = vmatprep.subr.bf16.mxu1 %v3356_v29  ;;  %v2748_v29 = vld [vmem:[%s3507_s27 + $0xe8] sm:$0x1] }
  0x7d   : > { %1621 = vmatmul.mubr.bf16.gmra.mxu0 %v1307_v26  ;;  %v1856_v26 = vrot.slane %v2737_v21, 1  ;;  %v1972_v21 = vpack.c.bf16 %v1882_v18, %v1870_v13  ;;  %v2779_v13 = vld [vmem:[%s3507_s27 + $0x1e0] sm:$0x1] }
  0x7e   : > { %1686 = vmatmul.mubr.bf16.gmra.mxu1 %v1309_v27  ;;  %3163 = vmatpush3.bf16.msra.mxu0 %v3357_v30  ;;  %v1857_v27 = vrot.slane %v2741_v22, 1  ;;  %v1966_v30 = vpack.c.bf16 %v1852_v25, %v1840_v14  ;;  %v2766_v14 = vld [vmem:[%s3507_s27 + $0x178] sm:$0x1] }
  0x7f   : > { %3203 = vmatpush3.bf16.msra.mxu1 %v3358_v31  ;;  %3164 = vmatprep.subr.bf16.mxu0 %v3359_v32  ;;  %v1846_v31 = vsel %vm412_vm0, %v1844_v23, %v1845_v24  ;;  %v2752_v32 = vld [vmem:[%s3507_s27 + $0x108] sm:$0xfe]  ;;  %v2770_v23 = vld [vmem:[%s3507_s27 + $0x198] sm:$0xfe]  ;;  %v2774_v24 = vld [vmem:[%s3507_s27 + $0x1b8] sm:$0x1] }
  0x80   : > { %3204 = vmatprep.subr.bf16.mxu1 %v3360_v33  ;;  %1628 = vmatprep.mubr.bf16.mxu0 %v1312_v39  ;;  %v2756_v33 = vld [vmem:[%s3507_s27 + $0x128] sm:$0x1]  ;;  %v1858_v36 = vsel %vm412_vm0, %v1856_v26, %v1857_v27  ;;  %v1877_v37 = vrot.slane %v2752_v32, 1  ;;  %v2746_v39 = vld [vmem:[%s3507_s27 + $0xd8] sm:$0xfe]  ;;  %v1896_v26 = vrot.slane %v2766_v14, 1  ;;  %v1903_v27 = vsel %vm412_vm0, %v1901_v19, %v1902_v20 }
  0x81   : > { %1693 = vmatprep.mubr.bf16.mxu1 %v1314_v40  ;;  %v1878_v38 = vrot.slane %v2756_v33, 1  ;;  %v2750_v40 = vld [vmem:[%s3507_s27 + $0xf8] sm:$0x1]  ;;  %v1911_v19 = vrot.slane %v2779_v13, 1 }
  0x82   : > { %3165 = vmatpush3.bf16.msra.mxu0 %v3361_v34  ;;  %v1865_v34 = vrot.slane %v2744_v28, 1  ;;  %v1907_v28 = vrot.slane %v2770_v23, 1 }
  0x83   : > { %3205 = vmatpush3.bf16.msra.mxu1 %v3362_v35  ;;  %3166 = vmatprep.subr.bf16.mxu0 %v3363_v44  ;;  %v1866_v35 = vrot.slane %v2748_v29, 1  ;;  %v2758_v44 = vld [vmem:[%s3507_s27 + $0x138] sm:$0x1]  ;;  %v1908_v29 = vrot.slane %v2774_v24, 1 }
  0x84   : > { %3206 = vmatprep.subr.bf16.mxu1 %v3364_v46  ;;  %v1871_v46 = vrot.slane %v2746_v39, 1 }
  0x85   : > { %1629 = vmatmul.mubr.bf16.gmra.mxu0 %v1311_v41  ;;  %v1968_v41 = vpack.c.bf16 %v1858_v36, %v1846_v31  ;;  %v1867_v42 = vsel %vm412_vm0, %v1865_v34, %v1866_v35  ;;  %v2763_v31 = vld [vmem:[%s3507_s27 + $0x160] sm:$0x1]  ;;  %v2767_v34 = vld [vmem:[%s3507_s27 + $0x180] sm:$0xfe] }
  0x86   : > { %1694 = vmatmul.mubr.bf16.gmra.mxu1 %v1313_v43  ;;  %3167 = vmatpush3.bf16.msra.mxu0 %v3365_v45  ;;  %v2754_v43 = vld [vmem:[%s3507_s27 + $0x118] sm:$0xfe]  ;;  %v1872_v45 = vrot.slane %v2750_v40, 1  ;;  %v2771_v35 = vld [vmem:[%s3507_s27 + $0x1a0] sm:$0x1]  ;;  %v1898_v39 = vrot.slane %v2767_v34, 1 }
  0x87   : > { %3207 = vmatpush3.bf16.msra.mxu1 %v3366_v47  ;;  %3168 = vmatprep.subr.bf16.mxu0 %v3367_v48  ;;  %v1879_v47 = vsel %vm412_vm0, %v1877_v37, %v1878_v38  ;;  %v1883_v48 = vrot.slane %v2754_v43, 1  ;;  %v1887_v37 = vrot.slane %v2763_v31, 1  ;;  %v1909_v38 = vsel %vm412_vm0, %v1907_v28, %v1908_v29 }
  0x88   : > { %3208 = vmatprep.subr.bf16.mxu1 %v3368_v50  ;;  %2271 = vmatprep.mubr.bf16.mxu0 %v1967_v57  ;;  %v1884_v50 = vrot.slane %v2758_v44, 1  ;;  %v1971_v54 = vpack.c.bf16 %v1879_v47, %v1867_v42  ;;  %v1873_v56 = vsel %vm412_vm0, %v1871_v46, %v1872_v45  ;;  %v2760_v57 = vld [vmem:[%s3507_s27 + $0x148] sm:$0xfe]  ;;  %v1899_v40 = vrot.slane %v2771_v35, 1  ;;  %v2765_v42 = vld [vmem:[%s3507_s27 + $0x170] sm:$0x1] }
  0x89   : > { %2336 = vmatprep.mubr.bf16.mxu1 %v1969_v10  ;;  %v1889_v16 = vrot.slane %v2760_v57, 1  ;;  %v2762_v10 = vld [vmem:[%s3507_s27 + $0x158] sm:$0xfe]  ;;  %v2769_v46 = vld [vmem:[%s3507_s27 + $0x190] sm:$0xfe]  ;;  %v1931_v57 = vrot.slane %v2786_v6, 1 }
  0x8a   : > { %3169 = vmatpush3.bf16.msra.mxu0 %v3369_v51  ;;  %v2743_v51 = vld [vmem:[%s3507_s27 + $0xc0] sm:$0xfe]  ;;  %v1885_v62 = vsel %vm412_vm0, %v1883_v48, %v1884_v50  ;;  %v1895_v25 = vrot.slane %v2762_v10, 1  ;;  %v2773_v45 = vld [vmem:[%s3507_s27 + $0x1b0] sm:$0x1]  ;;  %v1893_v48 = vrot.slane %v2765_v42, 1  ;;  %v1900_v50 = vsel %vm412_vm0, %v1898_v39, %v1899_v40 }
  0x8b   : > { %3209 = vmatpush3.bf16.msra.mxu1 %v3370_v53  ;;  %v2747_v53 = vld [vmem:[%s3507_s27 + $0xe0] sm:$0x1]  ;;  %v1862_v60 = vrot.slane %v2743_v51, 1  ;;  %v1973_v52 = vpack.c.bf16 %v1885_v62, %v1873_v56  ;;  %v1891_v22 = vsel %vm412_vm0, %v1889_v16, %v1890_v17  ;;  %v1904_v51 = vrot.slane %v2769_v46, 1  ;;  %v2780_v56 = vld [vmem:[%s3507_s27 + $0x1e8] sm:$0x1] }
  0x8c   : > { %v1863_v61 = vrot.slane %v2747_v53, 1  ;;  %v1975_v32 = vpack.c.bf16 %v1903_v27, %v1891_v22  ;;  %v1897_v33 = vsel %vm412_vm0, %v1895_v25, %v1896_v26  ;;  %v1905_v53 = vrot.slane %v2773_v45, 1  ;;  %v2783_v16 = vld [vmem:[%s3507_s27 + $0x200] sm:$0xfe]  ;;  %v2787_v17 = vld [vmem:[%s3507_s27 + $0x220] sm:$0x1] }
  0x8d   : > { %2272 = vmatmul.mubr.bf16.vlgmr.msra.gmra.mxu0 %v1966_v30  ;;  %v2759_v30 = vld [vmem:[%s3507_s27 + $0x140] sm:$0xfe]  ;;  %v1977_v43 = vpack.c.bf16 %v1909_v38, %v1897_v33  ;;  %v1914_v63 = vrot.slane %v2780_v56, 1  ;;  %v1933_v20 = vsel %vm412_vm0, %v1931_v57, %v1932_v9  ;;  %v1922_v10 = vrot.slane %v2783_v16, 1  ;;  %v2781_v22 = vld [vmem:[%s3507_s27 + $0x1f0] sm:$0x1] }
  0x8e   : > { %2337 = vmatmul.mubr.bf16.vlgmr.msra.gmra.mxu1 %v1968_v41  ;;  %2279 = vmatprep.mubr.bf16.mxu0 %v1971_v54  ;;  %v1864_v2 = vsel %vm412_vm0, %v1862_v60, %v1863_v61  ;;  %v1886_v36 = vrot.slane %v2759_v30, 1  ;;  %v2761_v41 = vld [vmem:[%s3507_s27 + $0x150] sm:$0xfe]  ;;  %v2776_v54 = vld [vmem:[%s3507_s27 + $0x1c8] sm:$0xfe]  ;;  %v1906_v0 = vsel %vm412_vm0, %v1904_v51, %v1905_v53  ;;  %v1923_v14 = vrot.slane %v2787_v17, 1 }
  0x8f   : > { %2344 = vmatprep.mubr.bf16.mxu1 %v1973_v52  ;;  %v1970_v5 = vpack.c.bf16 %v1876_v11, %v1864_v2  ;;  %v1892_v47 = vrot.slane %v2761_v41, 1  ;;  %v2784_v60 = vld [vmem:[%s3507_s27 + $0x208] sm:$0xfe]  ;;  %v2788_v61 = vld [vmem:[%s3507_s27 + $0x228] sm:$0x1]  ;;  %v1913_v62 = vrot.slane %v2776_v54, 1 }
  0x90   : > { %v1888_v44 = vsel %vm412_vm0, %v1886_v36, %v1887_v37  ;;  %v1925_v49 = vrot.slane %v2784_v60, 1  ;;  %v1926_v1 = vrot.slane %v2788_v61, 1  ;;  %v2778_v52 = vld [vmem:[%s3507_s27 + $0x1d8] sm:$0xfe]  ;;  %v2782_v2 = vld [vmem:[%s3507_s27 + $0x1f8] sm:$0x1]  ;;  %v1924_v29 = vsel %vm412_vm0, %v1922_v10, %v1923_v14 }
  0x91   : > { %v1974_v58 = vpack.c.bf16 %v1900_v50, %v1888_v44  ;;  %v1894_v59 = vsel %vm412_vm0, %v1892_v47, %v1893_v48  ;;  %v1915_v4 = vsel %vm412_vm0, %v1913_v62, %v1914_v63  ;;  %v1919_v11 = vrot.slane %v2778_v52, 1  ;;  %v2785_v25 = vld [vmem:[%s3507_s27 + $0x210] sm:$0xfe]  ;;  %v2789_v26 = vld [vmem:[%s3507_s27 + $0x230] sm:$0x1] }
  0x92   : > { %v1976_v3 = vpack.c.bf16 %v1906_v0, %v1894_v59  ;;  %v1920_v12 = vrot.slane %v2782_v2, 1  ;;  %v1927_v55 = vsel %vm412_vm0, %v1925_v49, %v1926_v1  ;;  %v1917_v28 = vrot.slane %v2781_v22, 1 }
  0x93   : > { %v1979_v8 = vpack.c.bf16 %v1927_v55, %v1915_v4  ;;  %v1928_v30 = vrot.slane %v2785_v25, 1  ;;  %v1929_v31 = vrot.slane %v2789_v26, 1 }
  0x94   : > { %v1921_v15 = vsel %vm412_vm0, %v1919_v11, %v1920_v12 }
  0x95   : > { %2280 = vmatmul.mubr.bf16.gmra.mxu0 %v1970_v5  ;;  %v2775_v5 = vld [vmem:[%s3507_s27 + $0x1c0] sm:$0xfe]  ;;  %v1981_v23 = vpack.c.bf16 %v1933_v20, %v1921_v15  ;;  %v1930_v34 = vsel %vm412_vm0, %v1928_v30, %v1929_v31 }
  0x96   : > { %2345 = vmatmul.mubr.bf16.gmra.mxu1 %v1972_v21  ;;  %2287 = vmatprep.mubr.bf16.mxu0 %v1975_v32  ;;  %v1910_v18 = vrot.slane %v2775_v5, 1  ;;  %v2777_v21 = vld [vmem:[%s3507_s27 + $0x1d0] sm:$0xfe] }
  0x97   : > { %2352 = vmatprep.mubr.bf16.mxu1 %v1977_v43  ;;  %v1916_v27 = vrot.slane %v2777_v21, 1 }
  0x98   : > { %v1912_v24 = vsel %vm412_vm0, %v1910_v18, %v1911_v19 }
  0x99   : > { %v1978_v32 = vpack.c.bf16 %v1924_v29, %v1912_v24  ;;  %v1918_v33 = vsel %vm412_vm0, %v1916_v27, %v1917_v28 }
  0x9a   : > { %v1980_v35 = vpack.c.bf16 %v1930_v34, %v1918_v33 }
  0x9d   : > { %2288 = vmatmul.mubr.bf16.gmra.mxu0 %v1974_v58 }
  0x9e   : > { %2353 = vmatmul.mubr.bf16.gmra.mxu1 %v1976_v3  ;;  %2295 = vmatprep.mubr.bf16.mxu0 %v1979_v8 }
  0x9f   : > { %2360 = vmatprep.mubr.bf16.mxu1 %v1981_v23 }
  0xa5   : > { %2296 = vmatmul.mubr.bf16.gmra.mxu0 %v1978_v32 }
  0xa6   : > { %2361 = vmatmul.mubr.bf16.gmra.mxu1 %v1980_v35 }
  0xed   : > { %v2930_v36 = vpop.f32.mrf.mxu0 }
  0xee   : > { %v2970_v37 = vpop.f32.mrf.mxu1 }
  0xef   : > { %v2931_v38 = vpop.f32.mrf.mxu0 }
  0xf0   : > { %v2932_v39 = vadd.f32 %v2931_v38, %v2930_v36  ;;  %v2971_v40 = vpop.f32.mrf.mxu1 }
  0xf1   : > { %v2933_v41 = vpop.f32.mrf.mxu0  ;;  %v2972_v42 = vadd.f32 %v2971_v40, %v2970_v37 }
  0xf2   : > { %v2973_v43 = vpop.f32.mrf.mxu1 }
  0xf3   : > { %v2934_v44 = vpop.f32.mrf.mxu0  ;;  %v914_v46 = vadd.f32 %v2972_v42, %v2932_v39 }
  0xf4   : > { %v2935_v45 = vadd.f32 %v2934_v44, %v2933_v41  ;;  %v2974_v47 = vpop.f32.mrf.mxu1 }
  0xf5   : > { %v2975_v48 = vadd.f32 %v2974_v47, %v2973_v43  ;;  %v2936_v51 = vpop.f32.mrf.mxu0 }
  0xf6   : > { %v2976_v53 = vpop.f32.mrf.mxu1 }
  0xf7   : > { %v917_v50 = vadd.f32 %v2975_v48, %v2935_v45  ;;  %v2937_v54 = vpop.f32.mrf.mxu0 }
  0xf8   : > { %v2938_v56 = vadd.f32 %v2937_v54, %v2936_v51  ;;  %v2977_v58 = vpop.f32.mrf.mxu1 }
  0xf9   : > { %v2939_v59 = vpop.f32.mrf.mxu0  ;;  %v2978_v60 = vadd.f32 %v2977_v58, %v2976_v53 }
  0xfa   : > { %v2979_v61 = vpop.f32.mrf.mxu1 }
  0xfb   : > { %v2940_v62 = vpop.f32.mrf.mxu0  ;;  %v922_v63 = vadd.f32 %v2978_v60, %v2938_v56 }
  0xfc   : > { %v2941_v0 = vadd.f32 %v2940_v62, %v2939_v59  ;;  %v2980_v49 = vpop.f32.mrf.mxu1 }
  0xfd   : > { %v2981_v1 = vadd.f32 %v2980_v49, %v2979_v61  ;;  %v2942_v2 = vpop.f32.mrf.mxu0 }
  0xfe   : > { %v2982_v3 = vpop.f32.mrf.mxu1 }
  0xff   : > { %v925_v52 = vadd.f32 %v2981_v1, %v2941_v0  ;;  %v2943_v4 = vpop.f32.mrf.mxu0 }
 0x100   : > { %v2944_v6 = vadd.f32 %v2943_v4, %v2942_v2  ;;  %v2983_v7 = vpop.f32.mrf.mxu1 }
 0x101   : > { %v2945_v11 = vpop.f32.mrf.mxu0  ;;  %v2984_v12 = vadd.f32 %v2983_v7, %v2982_v3 }
 0x102   : > { %v2985_v55 = vpop.f32.mrf.mxu1 }
 0x103   : > { %v2946_v57 = vpop.f32.mrf.mxu0  ;;  %v930_v9 = vadd.f32 %v2984_v12, %v2944_v6 }
 0x104   : > { %v2947_v5 = vadd.f32 %v2946_v57, %v2945_v11  ;;  %v2986_v13 = vpop.f32.mrf.mxu1 }
 0x105   : > { %v2987_v8 = vadd.f32 %v2986_v13, %v2985_v55  ;;  %v2948_v16 = vpop.f32.mrf.mxu0 }
 0x106   : > { %v2988_v17 = vpop.f32.mrf.mxu1 }
 0x107   : > { %v933_v15 = vadd.f32 %v2987_v8, %v2947_v5  ;;  %v2949_v18 = vpop.f32.mrf.mxu0 }
 0x108   : > { %v2950_v19 = vadd.f32 %v2949_v18, %v2948_v16  ;;  %v2989_v20 = vpop.f32.mrf.mxu1 }
 0x109   : > { %v2951_v10 = vpop.f32.mrf.mxu0  ;;  %v2990_v14 = vadd.f32 %v2989_v20, %v2988_v17 }
 0x10a   : > { %v2991_v21 = vpop.f32.mrf.mxu1 }
 0x10b   : > { %v2952_v22 = vpop.f32.mrf.mxu0  ;;  %v938_v23 = vadd.f32 %v2990_v14, %v2950_v19 }
 0x10c   : > { %v2953_v24 = vadd.f32 %v2952_v22, %v2951_v10  ;;  %v2992_v25 = vpop.f32.mrf.mxu1 }
 0x10d   : > { %v2993_v26 = vadd.f32 %v2992_v25, %v2991_v21  ;;  %v3010_v27 = vpop.f32.mrf.mxu0 }
 0x10e   : > { %v3050_v28 = vpop.f32.mrf.mxu1 }
 0x10f   : > { %v941_v29 = vadd.f32 %v2993_v26, %v2953_v24  ;;  %v3011_v30 = vpop.f32.mrf.mxu0 }
 0x110   : > { %v3051_v31 = vpop.f32.mrf.mxu1  ;;  %v3012_v32 = vadd.f32 %v3011_v30, %v3010_v27 }
 0x111   : > { %v3052_v33 = vadd.f32 %v3051_v31, %v3050_v28  ;;  %v3013_v34 = vpop.f32.mrf.mxu0 }
 0x112   : > { %v3053_v35 = vpop.f32.mrf.mxu1  ;;  %v1171_v36 = vadd.f32 %v3012_v32, %v914_v46 }
 0x113   : > { %v3014_v37 = vpop.f32.mrf.mxu0 }
 0x114   : > { %v3054_v38 = vpop.f32.mrf.mxu1  ;;  %v4143_v39 = vadd.f32 %v3052_v33, %v1171_v36  ;;  %v3015_v40 = vadd.f32 %v3014_v37, %v3013_v34 }
 0x115   : > { %v3055_v42 = vadd.f32 %v3054_v38, %v3053_v35  ;;  %v3016_v43 = vpop.f32.mrf.mxu0 }
 0x116   : > { %v1174_v41 = vadd.f32 %v3015_v40, %v917_v50  ;;  %v3056_v45 = vpop.f32.mrf.mxu1 }
 0x117   : > { %v3017_v47 = vpop.f32.mrf.mxu0 }
 0x118   : > { %v4145_v44 = vadd.f32 %v3055_v42, %v1174_v41  ;;  %v3018_v48 = vadd.f32 %v3017_v47, %v3016_v43  ;;  %v3057_v51 = vpop.f32.mrf.mxu1 }
 0x119   : > { %v3058_v53 = vadd.f32 %v3057_v51, %v3056_v45  ;;  %v3019_v54 = vpop.f32.mrf.mxu0 }
 0x11a   : > { %v1179_v56 = vadd.f32 %v3018_v48, %v922_v63  ;;  %v3059_v58 = vpop.f32.mrf.mxu1 }
 0x11b   : > { %v3020_v59 = vpop.f32.mrf.mxu0 }
 0x11c   : > { %v4147_v46 = vadd.f32 %v3058_v53, %v1179_v56  ;;  %v3021_v60 = vadd.f32 %v3020_v59, %v3019_v54  ;;  %v3060_v61 = vpop.f32.mrf.mxu1 }
 0x11d   : > { %v3061_v0 = vadd.f32 %v3060_v61, %v3059_v58  ;;  %v3022_v49 = vpop.f32.mrf.mxu0 }
 0x11e   : > { %v1182_v62 = vadd.f32 %v3021_v60, %v925_v52  ;;  %v3062_v1 = vpop.f32.mrf.mxu1 }
 0x11f   : > { %v3023_v2 = vpop.f32.mrf.mxu0 }
 0x120   : > { %v4149_v50 = vadd.f32 %v3061_v0, %v1182_v62  ;;  %v3024_v3 = vadd.f32 %v3023_v2, %v3022_v49  ;;  %v3063_v4 = vpop.f32.mrf.mxu1 }
 0x121   : > { %v3064_v6 = vadd.f32 %v3063_v4, %v3062_v1  ;;  %v3025_v7 = vpop.f32.mrf.mxu0 }
 0x122   : > { %v1187_v11 = vadd.f32 %v3024_v3, %v930_v9  ;;  %v3065_v12 = vpop.f32.mrf.mxu1 }
 0x123   : > { %v3026_v63 = vpop.f32.mrf.mxu0 }
 0x124   : > { %v4151_v55 = vadd.f32 %v3064_v6, %v1187_v11  ;;  %v3027_v57 = vadd.f32 %v3026_v63, %v3025_v7  ;;  %v3066_v5 = vpop.f32.mrf.mxu1 }
 0x125   : > { %v3067_v8 = vadd.f32 %v3066_v5, %v3065_v12  ;;  %v3028_v16 = vpop.f32.mrf.mxu0 }
 0x126   : > { %v1190_v13 = vadd.f32 %v3027_v57, %v933_v15  ;;  %v3068_v17 = vpop.f32.mrf.mxu1 }
 0x127   : > { %v3029_v18 = vpop.f32.mrf.mxu0 }
 0x128   : > { %v4153_v52 = vadd.f32 %v3067_v8, %v1190_v13  ;;  %v3069_v19 = vpop.f32.mrf.mxu1  ;;  %v3030_v20 = vadd.f32 %v3029_v18, %v3028_v16 }
 0x129   : > { %v3070_v10 = vadd.f32 %v3069_v19, %v3068_v17  ;;  %v3031_v14 = vpop.f32.mrf.mxu0 }
 0x12a   : > { %v3071_v21 = vpop.f32.mrf.mxu1  ;;  %v1195_v22 = vadd.f32 %v3030_v20, %v938_v23 }
 0x12b   : > { %v3032_v9 = vpop.f32.mrf.mxu0 }
 0x12c   : > { %v3072_v24 = vpop.f32.mrf.mxu1  ;;  %v4155_v25 = vadd.f32 %v3070_v10, %v1195_v22  ;;  %v3033_v26 = vadd.f32 %v3032_v9, %v3031_v14 }
 0x12d   : > { %v3073_v28 = vadd.f32 %v3072_v24, %v3071_v21  ;;  %v3090_v15 = vpop.f32.mrf.mxu0 }
 0x12e   : > { %v1198_v27 = vadd.f32 %v3033_v26, %v941_v29  ;;  %v3130_v30 = vpop.f32.mrf.mxu1 }
 0x12f   : > { %v3091_v32 = vpop.f32.mrf.mxu0 }
 0x130   : > { %v4157_v31 = vadd.f32 %v3073_v28, %v1198_v27  ;;  %v3131_v33 = vpop.f32.mrf.mxu1  ;;  %v3092_v6 = vadd.f32 %v3091_v32, %v3090_v15 }
 0x131   : > { %v3093_v34 = vpop.f32.mrf.mxu0  ;;  %v3132_v7 = vadd.f32 %v3131_v33, %v3130_v30 }
 0x132   : > { %v3133_v35 = vpop.f32.mrf.mxu1 }
 0x133   : > { %v3094_v36 = vpop.f32.mrf.mxu0  ;;  %v1672_v16 = vadd.f32 %v3132_v7, %v3092_v6 }
 0x134   : > { %v3134_v37 = vpop.f32.mrf.mxu1  ;;  %v3095_v63 = vadd.f32 %v3094_v36, %v3093_v34 }
 0x135   : > { %v3096_v38 = vpop.f32.mrf.mxu0  ;;  %v3135_v57 = vadd.f32 %v3134_v37, %v3133_v35  ;;  %v1702_v9 = vadd.f32 %v1672_v16, %v4143_v39  ;;  %v4188_v37 = vld [vmem:[%s4231_s2] ss:$0 sm:$0xff] }
 0x136   : > { %v3136_v40 = vpop.f32.mrf.mxu1 }
 0x137   : > { %v3097_v23 = vpop.f32.mrf.mxu0  ;;  %v1675_v20 = vadd.f32 %v3135_v57, %v3095_v63 }
 0x138   : > { %v3137_v41 = vpop.f32.mrf.mxu1  ;;  %v3098_v24 = vadd.f32 %v3097_v23, %v3096_v38 }
 0x139   : > { %v3099_v42 = vpop.f32.mrf.mxu0  ;;  %v3138_v26 = vadd.f32 %v3137_v41, %v3136_v40  ;;  %v1703_v33 = vadd.f32 %v1675_v20, %v4145_v44 }
 0x13a   : > { %v3139_v43 = vpop.f32.mrf.mxu1 }
 0x13b   : > { %v3100_v45 = vpop.f32.mrf.mxu0  ;;  %v1680_v6 = vadd.f32 %v3138_v26, %v3098_v24 }
 0x13c   : > { %v3140_v47 = vpop.f32.mrf.mxu1  ;;  %v3101_v28 = vadd.f32 %v3100_v45, %v3099_v42 }
 0x13d   : > { %v3102_v29 = vpop.f32.mrf.mxu0  ;;  %v3141_v15 = vadd.f32 %v3140_v47, %v3139_v43  ;;  %v1704_v57 = vadd.f32 %v1680_v6, %v4147_v46 }
 0x13e   : > { %v3142_v48 = vpop.f32.mrf.mxu1 }
 0x13f   : > { %v3103_v51 = vpop.f32.mrf.mxu0  ;;  %v1683_v23 = vadd.f32 %v3141_v15, %v3101_v28 }
 0x140   : > { %v3143_v53 = vpop.f32.mrf.mxu1  ;;  %v3104_v7 = vadd.f32 %v3103_v51, %v3102_v29 }
 0x141   : > { %v4159_v54 = vpop.f32.mrf.mxu0  ;;  %v1705_v51 = vadd.f32 %v1683_v23, %v4149_v50 }
 0x142   : > { %v4161_v56 = vpop.f32.mrf.mxu1 }
 0x143   : > { %v4163_v58 = vpop.f32.mrf.mxu0 }
 0x144   : > { %v4165_v59 = vpop.f32.mrf.mxu1 }
 0x145   : > { %v4167_v60 = vpop.f32.mrf.mxu0  ;;  %v3147_v16 = vadd.f32 %v4165_v59, %v4161_v56 }
 0x146   : > { %v4169_v61 = vpop.f32.mrf.mxu1 }
 0x147   : > { %v4171_v62 = vpop.f32.mrf.mxu0 }
 0x148   : > { %v4173_v0 = vpop.f32.mrf.mxu1 }
 0x149   : > { %v4175_v49 = vpop.f32.mrf.mxu0  ;;  %v3150_v28 = vadd.f32 %v4173_v0, %v4169_v61 }
 0x14a   : > { %v4177_v1 = vpop.f32.mrf.mxu1 }
 0x14b   : > { %v4179_v2 = vpop.f32.mrf.mxu0 }
 0x14c   : > { %v4181_v3 = vpop.f32.mrf.mxu1 }
 0x14d   : > { %v3170_v4 = vpop.f32.mrf.mxu0 }
 0x14e   : > { %v3210_v11 = vpop.f32.mrf.mxu1 }
 0x14f   : > { %v3171_v12 = vpop.f32.mrf.mxu0 }
 0x150   : > { %v3172_v5 = vadd.f32 %v3171_v12, %v3170_v4  ;;  %v3211_v13 = vpop.f32.mrf.mxu1 }
 0x151   : > { %v3173_v8 = vpop.f32.mrf.mxu0  ;;  %v3212_v17 = vadd.f32 %v3211_v13, %v3210_v11  ;;  %v3144_v11 = vadd.f32 %v3143_v53, %v3142_v48 }
 0x152   : > { %v3213_v18 = vpop.f32.mrf.mxu1 }
 0x153   : > { %v3174_v19 = vpop.f32.mrf.mxu0  ;;  %v2339_v10 = vadd.f32 %v3212_v17, %v3172_v5 }
 0x154   : > { %v3175_v14 = vadd.f32 %v3174_v19, %v3173_v8  ;;  %v3214_v21 = vpop.f32.mrf.mxu1  ;;  %v3107_v8 = vadd.f32 %v4163_v58, %v4159_v54  ;;  %v1688_v19 = vadd.f32 %v3144_v11, %v3104_v7 }
 0x155   : > { %v3176_v22 = vpop.f32.mrf.mxu0  ;;  %v3215_v27 = vadd.f32 %v3214_v21, %v3213_v18  ;;  %v2369_v34 = vadd.f32 %v2339_v10, %v1702_v9 }
 0x156   : > { %v3216_v30 = vpop.f32.mrf.mxu1  ;;  %v1691_v21 = vadd.f32 %v3147_v16, %v3107_v8  ;;  %v1706_v50 = vadd.f32 %v1688_v19, %v4151_v55 }
 0x157   : > { %v3177_v32 = vpop.f32.mrf.mxu0  ;;  %v2342_v35 = vadd.f32 %v3215_v27, %v3175_v14  ;;  %v2384_v43 = vadd.f32 %v4188_v37, %v2369_v34  ;;  %v3110_v27 = vadd.f32 %v4171_v62, %v4167_v60 }
 0x158   : > { %v3178_v36 = vadd.f32 %v3177_v32, %v3176_v22  ;;  %v3217_v4 = vpop.f32.mrf.mxu1  ;;  %v3113_v32 = vadd.f32 %v4179_v2, %v4175_v49  ;;  %v1707_v55 = vadd.f32 %v1691_v21, %v4153_v52 }
 0x159   : > { %v3179_v39 = vpop.f32.mrf.mxu0  ;;  %v2370_v38 = vadd.f32 %v2342_v35, %v1703_v33  ;;  %v3218_v40 = vadd.f32 %v3217_v4, %v3216_v30  ;;  %v3153_v33 = vadd.f32 %v4181_v3, %v4177_v1  ;;  %v1696_v61 = vadd.f32 %v3150_v28, %v3110_v27 }
 0x15a   : > { %v3219_v41 = vpop.f32.mrf.mxu1 }
 0x15b   : > { %v3180_v42 = vpop.f32.mrf.mxu0  ;;  %v2385_v44 = vadd.f32 %v4188_v37, %v2370_v38  ;;  %v2347_v45 = vadd.f32 %v3218_v40, %v3178_v36  ;;  %v1699_v38 = vadd.f32 %v3153_v33, %v3113_v32 }
 0x15c   : > { %v3181_v47 = vadd.f32 %v3180_v42, %v3179_v39  ;;  %v3220_v12 = vpop.f32.mrf.mxu1 }
 0x15d   : > { %v3182_v63 = vpop.f32.mrf.mxu0  ;;  %v2894_v5 = vpack.c.bf16 %v2385_v44, %v2384_v43  ;;  %v3221_v13 = vadd.f32 %v3220_v12, %v3219_v41  ;;  %v2371_v53 = vadd.f32 %v2347_v45, %v1704_v57  ;;  %v1708_v41 = vadd.f32 %v1696_v61, %v4155_v25 }
 0x15e   : > { %v3222_v29 = vpop.f32.mrf.mxu1  ;;  %v1709_v44 = vadd.f32 %v1699_v38, %v4157_v31 }
 0x15f   : > { %v3183_v48 = vpop.f32.mrf.mxu0  ;;  %2895 = vst [vmem:[%s4196_s9] sm:$0xff] %v2894_v5   ;;  %v2350_v17 = vadd.f32 %v3221_v13, %v3181_v47  ;;  %v2386_v54 = vadd.f32 %v4188_v37, %v2371_v53 }
 0x160   : > { %v3184_v18 = vadd.f32 %v3183_v48, %v3182_v63  ;;  %v3223_v20 = vpop.f32.mrf.mxu1 }
 0x161   : > { %v3185_v10 = vpop.f32.mrf.mxu0  ;;  %v2372_v46 = vadd.f32 %v2350_v17, %v1705_v51  ;;  %v3224_v14 = vadd.f32 %v3223_v20, %v3222_v29 }
 0x162   : > { %v3225_v22 = vpop.f32.mrf.mxu1 }
 0x163   : > { %v3186_v9 = vpop.f32.mrf.mxu0  ;;  %v2387_v56 = vadd.f32 %v4188_v37, %v2372_v46  ;;  %v2355_v58 = vadd.f32 %v3224_v14, %v3184_v18 }
 0x164   : > { %v3187_v59 = vadd.f32 %v3186_v9, %v3185_v10  ;;  %v3226_v24 = vpop.f32.mrf.mxu1 }
 0x165   : > { %v3188_v26 = vpop.f32.mrf.mxu0  ;;  %v2899_v15 = vpack.c.bf16 %v2387_v56, %v2386_v54  ;;  %v3227_v30 = vadd.f32 %v3226_v24, %v3225_v22  ;;  %v2373_v36 = vadd.f32 %v2355_v58, %v1706_v50 }
 0x166   : > { %v3228_v34 = vpop.f32.mrf.mxu1 }
 0x167   : > { %v3189_v35 = vpop.f32.mrf.mxu0  ;;  %2911 = vst [vmem:[%s4196_s9 + $0x8] sm:$0xff] %v2899_v15   ;;  %v2358_v4 = vadd.f32 %v3227_v30, %v3187_v59  ;;  %v2388_v2 = vadd.f32 %v4188_v37, %v2373_v36 }
 0x168   : > { %v3190_v39 = vadd.f32 %v3189_v35, %v3188_v26  ;;  %v3229_v60 = vpop.f32.mrf.mxu1 }
 0x169   : > { %v3191_v62 = vpop.f32.mrf.mxu0  ;;  %v2374_v0 = vadd.f32 %v2358_v4, %v1707_v55  ;;  %v3230_v6 = vadd.f32 %v3229_v60, %v3228_v34 }
 0x16a   : > { %v3231_v40 = vpop.f32.mrf.mxu1 }
 0x16b   : > { %v3192_v49 = vpop.f32.mrf.mxu0  ;;  %v2389_v1 = vadd.f32 %v4188_v37, %v2374_v0  ;;  %v2363_v3 = vadd.f32 %v3230_v6, %v3190_v39 }
 0x16c   : > { %v3193_v52 = vadd.f32 %v3192_v49, %v3191_v62  ;;  %v3232_v23 = vpop.f32.mrf.mxu1 }
 0x16d   : > { %v2904_v42 = vpack.c.bf16 %v2389_v1, %v2388_v2  ;;  %v3233_v43 = vadd.f32 %v3232_v23, %v3231_v40  ;;  %v2375_v45 = vadd.f32 %v2363_v3, %v1708_v41 }
 0x16f   : > { %2912 = vst [vmem:[%s4196_s9 + $0x10] sm:$0xff] %v2904_v42   ;;  %v2366_v47 = vadd.f32 %v3233_v43, %v3193_v52  ;;  %v2390_v11 = vadd.f32 %v4188_v37, %v2375_v45 }
 0x171   : > { %v2376_v7 = vadd.f32 %v2366_v47, %v1709_v44 }
 0x173   : > { %v2391_v12 = vadd.f32 %v4188_v37, %v2376_v7 }
 0x175   : > { %v2909_v63 = vpack.c.bf16 %v2391_v12, %v2390_v11 }
 0x177   : > { %2913 = vst [vmem:[%s4196_s9 + $0x18] sm:$0xff] %v2909_v63  }
 0x178 PF: > { %s13_s12 = sadd.s32 1, %s3377_s12  }
 0x179   : > { %p10_p4 = scmp.ge.s32.totalorder %s13_s12, 4  }
 0x17b   :  { %12 = sbr.rel (!%p10_p4) target bundleno = 1 (0x1), region = 66 }

// kernel: block_forward.4
= control target key start
LH: loop header
LB: loop body
LE: loop exit
PB: predicated region body
PF: predicated region fallthrough
CT: control target
= control target key end

     0   :  { %s6839_s21 = smov 0   ;;  %s7660_s0 = inlined_call_operand.vmem [shape: bf16[2,16,16,128], index: 0, kind: input, shape index: {}]   ;;  %s7661_s1 = inlined_call_operand.vmem [shape: bf16[1152,128], index: 1, kind: input, shape index: {}]   ;;  %s7662_s2 = inlined_call_operand.vmem [shape: f32[1,128], index: 2, kind: input, shape index: {}]   ;;  %s7663_s3 = inlined_call_operand.vmem [shape: f32[1,1,128], index: 3, kind: input, shape index: {}]   ;;  %s7664_s4 = inlined_call_operand.vmem [shape: f32[2,1,128], index: 4, kind: input, shape index: {}]   ;;  %s7665_s5 = inlined_call_operand.vmem [shape: bf16[2,16,16,128], index: 5, kind: output, shape index: {0}]   ;;  %s7666_s6 = inlined_call_operand.vmem [shape: f32[2,2,128], index: 6, kind: output, shape index: {1}]  }
   0x1 LB: > { %s4920_s22 = sadd.s32 4294967295, %s6801_s21   ;;  %p4924_p0 = scmp.ge.s32.totalorder %s6801_s21, 1  ;;  %s6801_s21 = sphi %s6839_s21, %s17_s21  }
   0x2   : > { %p223_p1 = scmp.lt.s32.totalorder %s6801_s21, 3 }
   0x4   : > { %p224_p2 = pnand %p4924_p0, %p223_p1 }
   0x6   : > { %227 = sbr.rel (%p224_p2) target bundleno = 586 (0x24a), region = 40 }
   0xb   : > { %p260_p3 = scmp.lt.s32.totalorder %s4920_s22, 1  ;;  %p4930_p4 = scmp.ne.s32.totalorder %s4920_s22, 0 }
   0xd   : > { %s261_s23 = scalar_select %p260_p3, %s4920_s22, 1 }
   0xe   : > { %281 = sbr.rel (%p4930_p4) target bundleno = 47 (0x2f), region = 44 }
   0xf   : > { %s5472_s24 = sshll.u32 %s261_s23, 7  ;;  %s6850_s27 = scalar_lea.vmem %s7664_s4, %s261_s23 }
  0x10   : > { %s6855_s30 = scalar_lea.vmem %s7660_s0, %s5472_s24  ;;  %s6860_s9 = scalar_lea.vmem %s7665_s5, %s5472_s24 }
  0x11   : > { %s4929_s10 = sshll.u32 %s261_s23, 1 }
  0x12   : > { %s6865_s13 = scalar_lea.vmem %s7666_s6, %s4929_s10 }
  0x13   : > { %v6803_v0 = vmov 0.0  }
  0x14   : > { %282 = vst [vmem:[#allocation2] sm:$0xff] %v6803_v0  ;;  %283 = vst [vmem:[#allocation2 + $0x8] sm:$0xff] %v6803_v0 }
  0x15   : > { %284 = vst [vmem:[#allocation2 + $0x10] sm:$0x3] %v6803_v0  ;;  %285 = vst [vmem:[#allocation2 + $0x18] sm:$0xff] %v6803_v0 }
  0x16   : > { %286 = vst [vmem:[#allocation2 + $0x20] sm:$0xff] %v6803_v0  ;;  %287 = vst [vmem:[#allocation2 + $0x28] sm:$0x3] %v6803_v0 }
  0x17   : > { %288 = vst [vmem:[#allocation2 + $0x30] sm:$0xff] %v6803_v0  ;;  %289 = vst [vmem:[#allocation2 + $0x38] sm:$0xff] %v6803_v0 }
  0x18   : > { %290 = vst [vmem:[#allocation2 + $0x40] sm:$0x3] %v6803_v0  ;;  %291 = vst [vmem:[#allocation2 + $0x48] sm:$0xff] %v6803_v0 }
  0x19   : > { %292 = vst [vmem:[#allocation2 + $0x50] sm:$0xff] %v6803_v0  ;;  %293 = vst [vmem:[#allocation2 + $0x58] sm:$0x3] %v6803_v0 }
  0x1a   : > { %294 = vst [vmem:[#allocation2 + $0x60] sm:$0xff] %v6803_v0  ;;  %295 = vst [vmem:[#allocation2 + $0x68] sm:$0xff] %v6803_v0 }
  0x1b   : > { %296 = vst [vmem:[#allocation2 + $0x70] sm:$0x3] %v6803_v0  ;;  %297 = vst [vmem:[#allocation2 + $0x78] sm:$0xff] %v6803_v0 }
  0x1c   : > { %298 = vst [vmem:[#allocation2 + $0x80] sm:$0xff] %v6803_v0  ;;  %299 = vst [vmem:[#allocation2 + $0x88] sm:$0x3] %v6803_v0 }
  0x1d   : > { %300 = vst [vmem:[#allocation2 + $0x90] sm:$0xff] %v6803_v0  ;;  %301 = vst [vmem:[#allocation2 + $0x98] sm:$0xff] %v6803_v0 }
  0x1e   : > { %302 = vst [vmem:[#allocation2 + $0xa0] sm:$0x3] %v6803_v0  ;;  %303 = vst [vmem:[#allocation2 + $0xa8] sm:$0xff] %v6803_v0 }
  0x1f   : > { %304 = vst [vmem:[#allocation2 + $0xb0] sm:$0xff] %v6803_v0  ;;  %305 = vst [vmem:[#allocation2 + $0xb8] sm:$0x3] %v6803_v0 }
  0x20   : > { %306 = vst [vmem:[#allocation2 + $0xc0] sm:$0xff] %v6803_v0  ;;  %307 = vst [vmem:[#allocation2 + $0xc8] sm:$0xff] %v6803_v0 }
  0x21   : > { %308 = vst [vmem:[#allocation2 + $0xd0] sm:$0x3] %v6803_v0  ;;  %309 = vst [vmem:[#allocation2 + $0xd8] sm:$0xff] %v6803_v0 }
  0x22   : > { %310 = vst [vmem:[#allocation2 + $0xe0] sm:$0xff] %v6803_v0  ;;  %311 = vst [vmem:[#allocation2 + $0xe8] sm:$0x3] %v6803_v0 }
  0x23   : > { %312 = vst [vmem:[#allocation2 + $0xf0] sm:$0xff] %v6803_v0  ;;  %313 = vst [vmem:[#allocation2 + $0xf8] sm:$0xff] %v6803_v0 }
  0x24   : > { %314 = vst [vmem:[#allocation2 + $0x100] sm:$0x3] %v6803_v0  ;;  %315 = vst [vmem:[#allocation2 + $0x108] sm:$0xff] %v6803_v0 }
  0x25   : > { %316 = vst [vmem:[#allocation2 + $0x110] sm:$0xff] %v6803_v0  ;;  %317 = vst [vmem:[#allocation2 + $0x118] sm:$0x3] %v6803_v0 }
  0x26   : > { %318 = vst [vmem:[#allocation2 + $0x120] sm:$0xff] %v6803_v0  ;;  %319 = vst [vmem:[#allocation2 + $0x128] sm:$0xff] %v6803_v0 }
  0x27   : > { %320 = vst [vmem:[#allocation2 + $0x130] sm:$0x3] %v6803_v0  ;;  %321 = vst [vmem:[#allocation2 + $0x138] sm:$0xff] %v6803_v0 }
  0x28   : > { %322 = vst [vmem:[#allocation2 + $0x140] sm:$0xff] %v6803_v0  ;;  %323 = vst [vmem:[#allocation2 + $0x148] sm:$0x3] %v6803_v0 }
  0x29   : > { %324 = vst [vmem:[#allocation2 + $0x150] sm:$0xff] %v6803_v0  ;;  %325 = vst [vmem:[#allocation2 + $0x158] sm:$0xff] %v6803_v0 }
  0x2a   : > { %326 = vst [vmem:[#allocation2 + $0x160] sm:$0x3] %v6803_v0  ;;  %327 = vst [vmem:[#allocation2 + $0x168] sm:$0xff] %v6803_v0 }
  0x2b   : > { %328 = vst [vmem:[#allocation2 + $0x170] sm:$0xff] %v6803_v0  ;;  %329 = vst [vmem:[#allocation2 + $0x178] sm:$0x3] %v6803_v0 }
  0x2c   : > { %330 = vst [vmem:[#allocation2 + $0x180] sm:$0xff] %v6803_v0  ;;  %331 = vst [vmem:[#allocation2 + $0x188] sm:$0xff] %v6803_v0 }
  0x2d   : > { %332 = vst [vmem:[#allocation2 + $0x190] sm:$0x3] %v6803_v0  ;;  %333 = vst [vmem:[#allocation2 + $0x198] sm:$0xff] %v6803_v0 }
  0x2e   : > { %334 = vst [vmem:[#allocation2 + $0x1a0] sm:$0xff] %v6803_v0  ;;  %335 = vst [vmem:[#allocation2 + $0x1a8] sm:$0x3] %v6803_v0 }
  0x2f PF: > { %v6513_v1 = vld [vmem:[%s7661_s1 + $0x78] sm:$0xff]   ;;  %v6515_v3 = vld [vmem:[%s7661_s1 + $0x70] sm:$0xff]   ;;  %v6517_v5 = vld [vmem:[%s7661_s1 + $0x68] sm:$0xff]   ;;  %vm4822_vm0 = vcmask 1040384  }
  0x30   : > { %v6514_v2 = vld [vmem:[%s7661_s1 + $0x38] sm:$0xff]   ;;  %5968 = vmatprep.subr.bf16.mxu0 %v6513_v1  ;;  %6488 = vmatprep.subr.bf16.mxu1 %v6513_v1  ;;  %v6516_v4 = vld [vmem:[%s7661_s1 + $0x30] sm:$0xff]   ;;  %v6518_v6 = vld [vmem:[%s7661_s1 + $0x28] sm:$0xff]  }
  0x31   : > { %5969 = vmatpush3.bf16.msra.mxu0 %v6514_v2  ;;  %6496 = vmatpush3.bf16.msra.mxu1 %v6514_v2  ;;  %v6519_v7 = vld [vmem:[%s7661_s1 + $0x60] sm:$0xff]   ;;  %v6521_v9 = vld [vmem:[%s7661_s1 + $0x58] sm:$0xff]   ;;  %v6523_v11 = vld [vmem:[%s7661_s1 + $0x50] sm:$0xff]  }
  0x32   : > { %5970 = vmatprep.subr.bf16.mxu0 %v6515_v3  ;;  %6489 = vmatprep.subr.bf16.mxu1 %v6515_v3  ;;  %v6520_v8 = vld [vmem:[%s7661_s1 + $0x20] sm:$0xff]   ;;  %v6522_v10 = vld [vmem:[%s7661_s1 + $0x18] sm:$0xff]   ;;  %v512_v13 = vld [vmem:[#allocation2 + $0x8] sm:$0xff] }
  0x33   : > { %v511_v12 = vld [vmem:[#allocation2] sm:$0xff]  ;;  %v5475_v16 = vpack.c.bf16 %v512_v13, %v512_v13  ;;  %v704_v17 = vld [vmem:[#allocation2 + $0x9] sm:$0xff]  ;;  %v5948_v19 = vld [vmem:[%s6855_s30 + $0x58] sm:$0xff]  }
  0x34   : > { %v703_v14 = vld [vmem:[#allocation2 + $0x1] sm:$0xff]  ;;  %v5474_v15 = vpack.c.bf16 %v511_v12, %v511_v12  ;;  %v6904_v20 = vld [vmem:[%s7663_s3] ss:$0 sm:$0xff]  ;;  %v6524_v21 = vld [vmem:[%s7661_s1 + $0x10] sm:$0xff]   ;;  %v5507_v22 = vpack.c.bf16 %v704_v17, %v704_v17  ;;  %v5840_v23 = vunpack.c.l.bf16 %v5948_v19  ;;  %v5841_v24 = vunpack.c.h.bf16 %v5948_v19 }
  0x35   : > { %5971 = vmatpush3.bf16.msra.mxu0 %v6516_v4  ;;  %6497 = vmatpush3.bf16.msra.mxu1 %v6516_v4  ;;  %v5506_v18 = vpack.c.bf16 %v703_v14, %v703_v14  ;;  %672 = vst [vmem:[#allocation3 + $0x24] sm:$0xf] %v5475_v16  ;;  %v6910_v25 = vld [vmem:[%s6850_s27] ss:$0 sm:$0xff]  ;;  %v6525_v26 = vld [vmem:[%s7661_s1 + $0x48] sm:$0xff]   ;;  %v6535_v43 = vld [vmem:[%s7661_s1 + $0xf8] sm:$0xff]  }
  0x36   : > { %5972 = vmatprep.subr.bf16.mxu0 %v6517_v5  ;;  %6490 = vmatprep.subr.bf16.mxu1 %v6517_v5  ;;  %671 = vst [vmem:[#allocation3] sm:$0xf] %v5474_v15  ;;  %864 = vst [vmem:[#allocation3 + $0x28] sm:$0xf] %v5507_v22  ;;  %v429_v27 = vmul.f32 %v5840_v23, %v6904_v20  ;;  %v430_v28 = vmul.f32 %v5841_v24, %v6904_v20  ;;  %v6526_v31 = vld [vmem:[%s7661_s1 + $0x8] sm:$0xff]   ;;  %v6527_v32 = vld [vmem:[%s7661_s1 + $0x40] sm:$0xff]  }
  0x37   : > { %863 = vst [vmem:[#allocation3 + $0x4] sm:$0xf] %v5506_v18  ;;  %v5795_v35 = vld [vmem:[%s6855_s30] sm:$0xff]   ;;  %v6536_v47 = vld [vmem:[%s7661_s1 + $0x178] sm:$0xff]   ;;  %v6550_v63 = vld [vmem:[%s7661_s1 + $0x170] sm:$0xff]  }
  0x38   : > { %v468_v29 = vadd.f32 %v6910_v25, %v429_v27  ;;  %v469_v30 = vadd.f32 %v6910_v25, %v430_v28  ;;  %v5949_v36 = vld [vmem:[%s6855_s30 + $0x60] sm:$0xff]   ;;  %v5796_v38 = vunpack.c.l.bf16 %v5795_v35  ;;  %v5797_v39 = vunpack.c.h.bf16 %v5795_v35  ;;  %v6538_v56 = vld [vmem:[%s7661_s1 + $0x138] sm:$0xff]   ;;  %v5938_v0 = vld [vmem:[%s6855_s30 + $0x8] sm:$0xff]  }
  0x39   : > { %5973 = vmatpush3.bf16.msra.mxu0 %v6518_v6  ;;  %6498 = vmatpush3.bf16.msra.mxu1 %v6518_v6  ;;  %v6528_v37 = vld [vmem:[%s7661_s1] sm:$0xff]   ;;  %v5844_v40 = vunpack.c.l.bf16 %v5949_v36  ;;  %v5845_v41 = vunpack.c.h.bf16 %v5949_v36  ;;  %v5950_v1 = vld [vmem:[%s6855_s30 + $0x68] sm:$0xff]   ;;  %v5800_v2 = vunpack.c.l.bf16 %v5938_v0  ;;  %v5801_v3 = vunpack.c.h.bf16 %v5938_v0  ;;  %v6552_v6 = vld [vmem:[%s7661_s1 + $0x130] sm:$0xff]  }
  0x3a   : > { %5974 = vmatprep.subr.bf16.mxu0 %v6519_v7  ;;  %6491 = vmatprep.subr.bf16.mxu1 %v6519_v7  ;;  %501 = vst [vmem:[#allocation2 + $0x121] sm:$0xff] %v468_v29  ;;  %502 = vst [vmem:[#allocation2 + $0x129] sm:$0xff] %v469_v30  ;;  %v5530_v33 = vpack.c.bf16 %v468_v29, %v468_v29  ;;  %v5531_v34 = vpack.c.bf16 %v469_v30, %v469_v30  ;;  %v5848_v4 = vunpack.c.l.bf16 %v5950_v1  ;;  %v6537_v27 = vld [vmem:[%s7661_s1 + $0xb8] sm:$0xff]   ;;  %v6549_v0 = vld [vmem:[%s7661_s1 + $0xe0] sm:$0xff]  }
  0x3b   : > { %v407_v44 = vmul.f32 %v5796_v38, %v6904_v20  ;;  %v408_v45 = vmul.f32 %v5797_v39, %v6904_v20  ;;  %v431_v46 = vmul.f32 %v5844_v40, %v6904_v20  ;;  %v432_v48 = vmul.f32 %v5845_v41, %v6904_v20  ;;  %v6570_v39 = vld [vmem:[%s7661_s1 + $0x168] sm:$0xff]   ;;  %v6539_v40 = vld [vmem:[%s7661_s1 + $0xf0] sm:$0xff]  }
  0x3c   : > { %887 = vst [vmem:[#allocation3 + $0x364] sm:$0xf] %v5530_v33  ;;  %888 = vst [vmem:[#allocation3 + $0x388] sm:$0xf] %v5531_v34  ;;  %v5849_v5 = vunpack.c.h.bf16 %v5950_v1  ;;  %v409_v7 = vmul.f32 %v5800_v2, %v6904_v20 }
  0x3d   : > { %5975 = vmatpush3.bf16.msra.mxu0 %v6520_v8  ;;  %6499 = vmatpush3.bf16.msra.mxu1 %v6520_v8  ;;  %v446_v49 = vadd.f32 %v6910_v25, %v407_v44  ;;  %v447_v50 = vadd.f32 %v6910_v25, %v408_v45  ;;  %v470_v51 = vadd.f32 %v6910_v25, %v431_v46  ;;  %v6529_v52 = vld [vmem:[#allocation3] ss:$36 sps:$4 sm:$0xff]   ;;  %v6572_v45 = vld [vmem:[%s7661_s1 + $0x128] sm:$0xff]  }
  0x3e   : > { %5976 = vmatprep.subr.bf16.mxu0 %v6521_v9  ;;  %6492 = vmatprep.subr.bf16.mxu1 %v6521_v9  ;;  %v6531_v42 = vld [vmem:[#allocation3 + $0x4] ss:$36 sps:$4 sm:$0xff]   ;;  %v471_v53 = vadd.f32 %v6910_v25, %v432_v48  ;;  %v410_v8 = vmul.f32 %v5801_v3, %v6904_v20  ;;  %v433_v9 = vmul.f32 %v5848_v4, %v6904_v20 }
  0x3f   : > { %3751 = vmatprep.mubr.bf16.mxu0 %v6531_v42  ;;  %479 = vst [vmem:[#allocation2 + $0x19] sm:$0xff] %v446_v49  ;;  %480 = vst [vmem:[#allocation2 + $0x21] sm:$0xff] %v447_v50  ;;  %v5508_v57 = vpack.c.bf16 %v446_v49, %v446_v49  ;;  %v5509_v58 = vpack.c.bf16 %v447_v50, %v447_v50  ;;  %v5532_v59 = vpack.c.bf16 %v470_v51, %v470_v51  ;;  %v6540_v46 = vld [vmem:[%s7661_s1 + $0xb0] sm:$0xff]   ;;  %v6547_v50 = vld [vmem:[%s7661_s1 + $0xe8] sm:$0xff]  }
  0x40   : > { %503 = vst [vmem:[#allocation2 + $0x139] sm:$0xff] %v470_v51  ;;  %504 = vst [vmem:[#allocation2 + $0x141] sm:$0xff] %v471_v53  ;;  %v5533_v62 = vpack.c.bf16 %v471_v53, %v471_v53  ;;  %v448_v15 = vadd.f32 %v6910_v25, %v409_v7  ;;  %v449_v16 = vadd.f32 %v6910_v25, %v410_v8  ;;  %v896_v7 = vld [vmem:[#allocation2 + $0xa] sm:$0xff] }
  0x41   : > { %5977 = vmatpush3.bf16.msra.mxu0 %v6522_v10  ;;  %6500 = vmatpush3.bf16.msra.mxu1 %v6522_v10  ;;  %v535_v54 = vld [vmem:[#allocation2 + $0x120] sm:$0xff]  ;;  %v536_v55 = vld [vmem:[#allocation2 + $0x128] sm:$0xff]  ;;  %865 = vst [vmem:[#allocation3 + $0x4c] sm:$0xf] %v5508_v57  ;;  %866 = vst [vmem:[#allocation3 + $0x70] sm:$0xf] %v5509_v58  ;;  %v434_v10 = vmul.f32 %v5849_v5, %v6904_v20  ;;  %v472_v17 = vadd.f32 %v6910_v25, %v433_v9 }
  0x42   : > { %5978 = vmatprep.subr.bf16.mxu0 %v6523_v11  ;;  %6493 = vmatprep.subr.bf16.mxu1 %v6523_v11  ;;  %v5498_v60 = vpack.c.bf16 %v535_v54, %v535_v54  ;;  %v5499_v61 = vpack.c.bf16 %v536_v55, %v536_v55  ;;  %889 = vst [vmem:[#allocation3 + $0x3ac] sm:$0xf] %v5532_v59  ;;  %890 = vst [vmem:[#allocation3 + $0x3d0] sm:$0xf] %v5533_v62  ;;  %v5939_v11 = vld [vmem:[%s6855_s30 + $0x10] sm:$0xff]   ;;  %v6548_v58 = vld [vmem:[%s7661_s1 + $0xa8] sm:$0xff]  }
  0x43   : > { %v473_v18 = vadd.f32 %v6910_v25, %v434_v10  ;;  %v5804_v24 = vunpack.c.l.bf16 %v5939_v11  ;;  %481 = vst [vmem:[#allocation2 + $0x31] sm:$0xff] %v448_v15  ;;  %482 = vst [vmem:[#allocation2 + $0x39] sm:$0xff] %v449_v16  ;;  %v5510_v29 = vpack.c.bf16 %v448_v15, %v448_v15  ;;  %v5511_v30 = vpack.c.bf16 %v449_v16, %v449_v16  ;;  %v5940_v5 = vld [vmem:[%s6855_s30 + $0x18] sm:$0xff]  }
  0x44   : > { %695 = vst [vmem:[#allocation3 + $0x360] sm:$0xf] %v5498_v60  ;;  %696 = vst [vmem:[#allocation3 + $0x384] sm:$0xf] %v5499_v61  ;;  %v5805_v34 = vunpack.c.h.bf16 %v5939_v11  ;;  %v5808_v9 = vunpack.c.l.bf16 %v5940_v5  ;;  %v5809_v10 = vunpack.c.h.bf16 %v5940_v5  ;;  %v6559_v15 = vld [vmem:[%s7661_s1 + $0xd8] sm:$0xff]  }
  0x45   : > { %5979 = vmatpush3.bf16.msra.mxu0 %v6524_v21  ;;  %6501 = vmatpush3.bf16.msra.mxu1 %v6524_v21  ;;  %505 = vst [vmem:[#allocation2 + $0x151] sm:$0xff] %v472_v17  ;;  %506 = vst [vmem:[#allocation2 + $0x159] sm:$0xff] %v473_v18  ;;  %v5535_v33 = vpack.c.bf16 %v473_v18, %v473_v18  ;;  %v411_v35 = vmul.f32 %v5804_v24, %v6904_v20  ;;  %v6560_v24 = vld [vmem:[%s7661_s1 + $0x98] sm:$0xff]  }
  0x46   : > { %5980 = vmatprep.subr.bf16.mxu0 %v6525_v26  ;;  %6494 = vmatprep.subr.bf16.mxu1 %v6525_v26  ;;  %v513_v12 = vld [vmem:[#allocation2 + $0x18] sm:$0xff]  ;;  %v514_v13 = vld [vmem:[#allocation2 + $0x20] sm:$0xff]  ;;  %v5951_v26 = vld [vmem:[%s6855_s30 + $0x70] sm:$0xff]   ;;  %867 = vst [vmem:[#allocation3 + $0x94] sm:$0xf] %v5510_v29  ;;  %v412_v41 = vmul.f32 %v5805_v34, %v6904_v20  ;;  %v413_v18 = vmul.f32 %v5808_v9, %v6904_v20 }
  0x47   : > { %v537_v14 = vld [vmem:[#allocation2 + $0x138] sm:$0xff]  ;;  %v5476_v19 = vpack.c.bf16 %v513_v12, %v513_v12  ;;  %v5477_v21 = vpack.c.bf16 %v514_v13, %v514_v13  ;;  %v538_v22 = vld [vmem:[#allocation2 + $0x140] sm:$0xff]  ;;  %v5852_v36 = vunpack.c.l.bf16 %v5951_v26  ;;  %868 = vst [vmem:[#allocation3 + $0xb8] sm:$0xf] %v5511_v30  ;;  %v5853_v38 = vunpack.c.h.bf16 %v5951_v26  ;;  %892 = vst [vmem:[#allocation3 + $0x418] sm:$0xf] %v5535_v33 }
  0x48   : > { %v5500_v23 = vpack.c.bf16 %v537_v14, %v537_v14  ;;  %v5501_v28 = vpack.c.bf16 %v538_v22, %v538_v22  ;;  %v450_v42 = vadd.f32 %v6910_v25, %v411_v35  ;;  %v6541_v57 = vld [vmem:[#allocation3 + $0x4c] ss:$36 sps:$4 sm:$0xff]   ;;  %v5539_v12 = vpack.c.bf16 %v896_v7, %v896_v7 }
  0x49   : > { %5981 = vmatpush3.bf16.msra.mxu0 %v6526_v31  ;;  %6502 = vmatpush3.bf16.msra.mxu1 %v6526_v31  ;;  %v5534_v31 = vpack.c.bf16 %v472_v17, %v472_v17  ;;  %673 = vst [vmem:[#allocation3 + $0x48] sm:$0xf] %v5476_v19  ;;  %674 = vst [vmem:[#allocation3 + $0x6c] sm:$0xf] %v5477_v21  ;;  %v436_v44 = vmul.f32 %v5853_v38, %v6904_v20  ;;  %v6551_v13 = vld [vmem:[%s7661_s1 + $0xa0] sm:$0xff]   ;;  %v6597_v9 = vld [vmem:[%s7661_s1 + $0x158] sm:$0xff]  }
  0x4a   : > { %5982 = vmatprep.subr.bf16.mxu0 %v6527_v32  ;;  %6495 = vmatprep.subr.bf16.mxu1 %v6527_v32  ;;  %697 = vst [vmem:[#allocation3 + $0x3a8] sm:$0xf] %v5500_v23  ;;  %1247 = vst [vmem:[#allocation3 + $0xc] sm:$0xf] %v5476_v19  ;;  %v5512_v48 = vpack.c.bf16 %v450_v42, %v450_v42  ;;  %v516_v53 = vld [vmem:[#allocation2 + $0x38] sm:$0xff]  ;;  %v414_v19 = vmul.f32 %v5809_v10, %v6904_v20  ;;  %v6583_v29 = vld [vmem:[%s7661_s1 + $0x160] sm:$0xff]  }
  0x4b   : > { %v6532_v32 = vld [vmem:[#allocation3 + $0x360] ss:$36 sps:$4 sm:$0xff]   ;;  %1248 = vst [vmem:[#allocation3 + $0x30] sm:$0xf] %v5477_v21  ;;  %698 = vst [vmem:[#allocation3 + $0x3cc] sm:$0xf] %v5501_v28  ;;  %v475_v51 = vadd.f32 %v6910_v25, %v436_v44  ;;  %v5479_v60 = vpack.c.bf16 %v516_v53, %v516_v53 }
  0x4c   : > { %891 = vst [vmem:[#allocation3 + $0x3f4] sm:$0xf] %v5534_v31  ;;  %483 = vst [vmem:[#allocation2 + $0x49] sm:$0xff] %v450_v42  ;;  %v539_v54 = vld [vmem:[#allocation2 + $0x150] sm:$0xff]  ;;  %v540_v3 = vld [vmem:[#allocation2 + $0x158] sm:$0xff]  ;;  %v453_v28 = vadd.f32 %v6910_v25, %v414_v19 }
  0x4d   : > { %5983 = vmatpush3.bf16.msra.mxu0 %v6528_v37  ;;  %6503 = vmatpush3.bf16.msra.mxu1 %v6528_v37  ;;  %v6534_v37 = vld [vmem:[#allocation3 + $0x364] ss:$36 sps:$4 sm:$0xff]   ;;  %869 = vst [vmem:[#allocation3 + $0xdc] sm:$0xf] %v5512_v48  ;;  %v5502_v61 = vpack.c.bf16 %v539_v54, %v539_v54  ;;  %508 = vst [vmem:[#allocation2 + $0x171] sm:$0xff] %v475_v51  ;;  %v5537_v62 = vpack.c.bf16 %v475_v51, %v475_v51  ;;  %v6584_v35 = vld [vmem:[%s7661_s1 + $0x120] sm:$0xff]  }
  0x4e   : > { %6080 = vmatprep.subr.bf16.mxu1 %v6535_v43  ;;  %6192 = vmatprep.subr.bf16.mxu0 %v6536_v47  ;;  %v435_v43 = vmul.f32 %v5852_v36, %v6904_v20  ;;  %v451_v47 = vadd.f32 %v6910_v25, %v412_v41  ;;  %676 = vst [vmem:[#allocation3 + $0xb4] sm:$0xf] %v5479_v60  ;;  %1250 = vst [vmem:[#allocation3 + $0x78] sm:$0xf] %v5479_v60  ;;  %v6553_v30 = vld [vmem:[#allocation3 + $0x94] ss:$36 sps:$4 sm:$0xff]  }
  0x4f   : > { %3847 = vmatprep.mubr.bf16.mxu1 %v6534_v37  ;;  %699 = vst [vmem:[#allocation3 + $0x3f0] sm:$0xf] %v5502_v61  ;;  %894 = vst [vmem:[#allocation3 + $0x460] sm:$0xf] %v5537_v62  ;;  %v5503_v4 = vpack.c.bf16 %v540_v3, %v540_v3  ;;  %v6561_v31 = vld [vmem:[%s7661_s1 + $0xd0] sm:$0xff]   ;;  %v5515_v34 = vpack.c.bf16 %v453_v28, %v453_v28  ;;  %v5941_v36 = vld [vmem:[%s6855_s30 + $0x20] sm:$0xff]  }
  0x50   : > { %3752 = vmatmul.mubr.bf16.vlgmr.msra.gmra.mxu0 %v6529_v52  ;;  %3848 = vmatmul.mubr.bf16.vlgmr.msra.gmra.mxu1 %v6532_v32  ;;  %v474_v49 = vadd.f32 %v6910_v25, %v435_v43  ;;  %v515_v52 = vld [vmem:[#allocation2 + $0x30] sm:$0xff]  ;;  %484 = vst [vmem:[#allocation2 + $0x51] sm:$0xff] %v451_v47  ;;  %v5513_v55 = vpack.c.bf16 %v451_v47, %v451_v47  ;;  %v6545_v1 = vld [vmem:[#allocation3 + $0x48] ss:$36 sps:$4 sm:$0xff]   ;;  %1056 = vst [vmem:[#allocation3 + $0x2c] sm:$0xf] %v5539_v12  ;;  %v5812_v41 = vunpack.c.l.bf16 %v5941_v36 }
  0x51   : > { %6193 = vmatpush3.bf16.msra.mxu0 %v6538_v56  ;;  %6081 = vmatpush3.bf16.msra.mxu1 %v6537_v27  ;;  %v5478_v59 = vpack.c.bf16 %v515_v52, %v515_v52  ;;  %700 = vst [vmem:[#allocation3 + $0x414] sm:$0xf] %v5503_v4  ;;  %v452_v27 = vadd.f32 %v6910_v25, %v413_v18  ;;  %486 = vst [vmem:[#allocation2 + $0x69] sm:$0xff] %v453_v28  ;;  %v897_v37 = vld [vmem:[#allocation2 + $0x1a] sm:$0xff]  ;;  %v898_v38 = vld [vmem:[#allocation2 + $0x22] sm:$0xff]  ;;  %v5813_v42 = vunpack.c.h.bf16 %v5941_v36 }
  0x52   : > { %6194 = vmatprep.subr.bf16.mxu0 %v6550_v63  ;;  %6082 = vmatprep.subr.bf16.mxu1 %v6539_v40  ;;  %507 = vst [vmem:[#allocation2 + $0x169] sm:$0xff] %v474_v49  ;;  %v5536_v56 = vpack.c.bf16 %v474_v49, %v474_v49  ;;  %v6543_v63 = vld [vmem:[#allocation3 + $0x3ac] ss:$36 sps:$4 sm:$0xff]   ;;  %870 = vst [vmem:[#allocation3 + $0x100] sm:$0xf] %v5513_v55  ;;  %v5540_v43 = vpack.c.bf16 %v897_v37, %v897_v37  ;;  %v5942_v49 = vld [vmem:[%s6855_s30 + $0x28] sm:$0xff]  }
  0x53   : > { %3759 = vmatprep.mubr.bf16.mxu0 %v6541_v57  ;;  %v6546_v2 = vld [vmem:[#allocation3 + $0x3a8] ss:$36 sps:$4 sm:$0xff]   ;;  %675 = vst [vmem:[#allocation3 + $0x90] sm:$0xf] %v5478_v59  ;;  %1249 = vst [vmem:[#allocation3 + $0x54] sm:$0xf] %v5478_v59  ;;  %3855 = vmatprep.mubr.bf16.mxu1 %v6543_v63  ;;  %v5514_v33 = vpack.c.bf16 %v452_v27, %v452_v27  ;;  %v5541_v44 = vpack.c.bf16 %v898_v38, %v898_v38  ;;  %v5817_v51 = vunpack.c.h.bf16 %v5942_v49 }
  0x54   : > { %893 = vst [vmem:[#allocation3 + $0x43c] sm:$0xf] %v5536_v56  ;;  %v517_v8 = vld [vmem:[#allocation2 + $0x48] sm:$0xff]  ;;  %485 = vst [vmem:[#allocation2 + $0x61] sm:$0xff] %v452_v27  ;;  %v415_v47 = vmul.f32 %v5812_v41, %v6904_v20  ;;  %v416_v48 = vmul.f32 %v5813_v42, %v6904_v20  ;;  %v899_v52 = vld [vmem:[#allocation2 + $0x32] sm:$0xff] }
  0x55   : > { %6195 = vmatpush3.bf16.msra.mxu0 %v6552_v6  ;;  %6083 = vmatpush3.bf16.msra.mxu1 %v6540_v46  ;;  %v895_v6 = vld [vmem:[#allocation2 + $0x2] sm:$0xff]  ;;  %v5480_v14 = vpack.c.bf16 %v517_v8, %v517_v8  ;;  %871 = vst [vmem:[#allocation3 + $0x124] sm:$0xf] %v5514_v33  ;;  %872 = vst [vmem:[#allocation3 + $0x148] sm:$0xf] %v5515_v34  ;;  %v900_v53 = vld [vmem:[#allocation2 + $0x3a] sm:$0xff] }
  0x56   : > { %6196 = vmatprep.subr.bf16.mxu0 %v6570_v39  ;;  %6084 = vmatprep.subr.bf16.mxu1 %v6547_v50  ;;  %v5538_v11 = vpack.c.bf16 %v895_v6, %v895_v6  ;;  %v6555_v39 = vld [vmem:[#allocation3 + $0x3f4] ss:$36 sps:$4 sm:$0xff]   ;;  %1057 = vst [vmem:[#allocation3 + $0x50] sm:$0xf] %v5540_v43  ;;  %1058 = vst [vmem:[#allocation3 + $0x74] sm:$0xf] %v5541_v44  ;;  %v5816_v50 = vunpack.c.l.bf16 %v5942_v49  ;;  %v454_v56 = vadd.f32 %v6910_v25, %v415_v47 }
  0x57   : > { %v518_v16 = vld [vmem:[#allocation2 + $0x50] sm:$0xff]  ;;  %677 = vst [vmem:[#allocation3 + $0xd8] sm:$0xf] %v5480_v14  ;;  %1251 = vst [vmem:[#allocation3 + $0x9c] sm:$0xf] %v5480_v14  ;;  %v6569_v46 = vld [vmem:[%s7661_s1 + $0xc8] sm:$0xff]   ;;  %v455_v57 = vadd.f32 %v6910_v25, %v416_v48  ;;  %v5543_v59 = vpack.c.bf16 %v900_v53, %v900_v53 }
  0x58   : > { %3760 = vmatmul.mubr.bf16.gmra.mxu0 %v6545_v1  ;;  %3856 = vmatmul.mubr.bf16.gmra.mxu1 %v6546_v2  ;;  %1055 = vst [vmem:[#allocation3 + $0x8] sm:$0xf] %v5538_v11  ;;  %v5481_v21 = vpack.c.bf16 %v518_v16, %v518_v16  ;;  %v6558_v40 = vld [vmem:[#allocation3 + $0x3f0] ss:$36 sps:$4 sm:$0xff]   ;;  %1631 = vst [vmem:[#allocation3 + $0x14] sm:$0xf] %v5540_v43  ;;  %v417_v63 = vmul.f32 %v5816_v50, %v6904_v20 }
  0x59   : > { %6197 = vmatpush3.bf16.msra.mxu0 %v6572_v45  ;;  %6085 = vmatpush3.bf16.msra.mxu1 %v6548_v58  ;;  %v541_v17 = vld [vmem:[#allocation2 + $0x168] sm:$0xff]  ;;  %v542_v22 = vld [vmem:[#allocation2 + $0x170] sm:$0xff]  ;;  %1632 = vst [vmem:[#allocation3 + $0x38] sm:$0xf] %v5541_v44  ;;  %v5542_v58 = vpack.c.bf16 %v899_v52, %v899_v52  ;;  %v6573_v62 = vld [vmem:[%s7661_s1 + $0xc0] sm:$0xff]   ;;  %v5516_v4 = vpack.c.bf16 %v454_v56, %v454_v56 }
  0x5a   : > { %6086 = vmatprep.subr.bf16.mxu1 %v6549_v0  ;;  %v5504_v23 = vpack.c.bf16 %v541_v17, %v541_v17  ;;  %v5505_v26 = vpack.c.bf16 %v542_v22, %v542_v22  ;;  %678 = vst [vmem:[#allocation3 + $0xfc] sm:$0xf] %v5481_v21  ;;  %1252 = vst [vmem:[#allocation3 + $0xc0] sm:$0xf] %v5481_v21  ;;  %v6557_v32 = vld [vmem:[#allocation3 + $0x90] ss:$36 sps:$4 sm:$0xff]   ;;  %6198 = vmatprep.subr.bf16.mxu0 %v6583_v29 }
  0x5b   : > { %3767 = vmatprep.mubr.bf16.mxu0 %v6553_v30  ;;  %v6562_v45 = vld [vmem:[%s7661_s1 + $0x90] sm:$0xff]   ;;  %3863 = vmatprep.mubr.bf16.mxu1 %v6555_v39  ;;  %v6571_v55 = vld [vmem:[%s7661_s1 + $0x88] sm:$0xff]   ;;  %v418_v0 = vmul.f32 %v5817_v51, %v6904_v20  ;;  %v519_v2 = vld [vmem:[#allocation2 + $0x60] sm:$0xff]  ;;  %487 = vst [vmem:[#allocation2 + $0x79] sm:$0xff] %v454_v56  ;;  %v5517_v5 = vpack.c.bf16 %v455_v57, %v455_v57 }
  0x5c   : > { %701 = vst [vmem:[#allocation3 + $0x438] sm:$0xf] %v5504_v23  ;;  %702 = vst [vmem:[#allocation3 + $0x45c] sm:$0xf] %v5505_v26  ;;  %v6563_v54 = vld [vmem:[#allocation3 + $0xdc] ss:$36 sps:$4 sm:$0xff]   ;;  %v5482_v6 = vpack.c.bf16 %v519_v2, %v519_v2  ;;  %v456_v8 = vadd.f32 %v6910_v25, %v417_v63 }
  0x5d   : > { %6087 = vmatpush3.bf16.msra.mxu1 %v6551_v13  ;;  %6199 = vmatpush3.bf16.msra.mxu0 %v6584_v35  ;;  %v6565_v60 = vld [vmem:[#allocation3 + $0x43c] ss:$36 sps:$4 sm:$0xff]   ;;  %488 = vst [vmem:[#allocation2 + $0x81] sm:$0xff] %v455_v57  ;;  %1059 = vst [vmem:[#allocation3 + $0x98] sm:$0xf] %v5542_v58  ;;  %v457_v11 = vadd.f32 %v6910_v25, %v418_v0  ;;  %v6574_v13 = vld [vmem:[%s7661_s1 + $0x80] sm:$0xff]  }
  0x5e   : > { %6088 = vmatprep.subr.bf16.mxu1 %v6559_v15  ;;  %v520_v3 = vld [vmem:[#allocation2 + $0x68] sm:$0xff]  ;;  %1060 = vst [vmem:[#allocation3 + $0xbc] sm:$0xf] %v5543_v59  ;;  %1633 = vst [vmem:[#allocation3 + $0x5c] sm:$0xf] %v5542_v58  ;;  %v5518_v12 = vpack.c.bf16 %v456_v8, %v456_v8  ;;  %6200 = vmatprep.subr.bf16.mxu0 %v6597_v9  ;;  %v6599_v15 = vld [vmem:[%s7661_s1 + $0x118] sm:$0xff]  }
  0x5f   : > { %1634 = vst [vmem:[#allocation3 + $0x80] sm:$0xf] %v5543_v59  ;;  %v5483_v7 = vpack.c.bf16 %v520_v3, %v520_v3  ;;  %v6579_v10 = vld [vmem:[#allocation3 + $0xc] ss:$36 sps:$4 sm:$0xff]   ;;  %873 = vst [vmem:[#allocation3 + $0x16c] sm:$0xf] %v5516_v4  ;;  %v5519_v14 = vpack.c.bf16 %v457_v11, %v457_v11 }
  0x60   : > { %3768 = vmatmul.mubr.bf16.gmra.mxu0 %v6557_v32  ;;  %3864 = vmatmul.mubr.bf16.gmra.mxu1 %v6558_v40  ;;  %874 = vst [vmem:[#allocation3 + $0x190] sm:$0xf] %v5517_v5  ;;  %679 = vst [vmem:[#allocation3 + $0x120] sm:$0xf] %v5482_v6  ;;  %v6581_v16 = vld [vmem:[%s7661_s1 + $0x1f8] sm:$0xff]   ;;  %v5943_v17 = vld [vmem:[%s6855_s30 + $0x30] sm:$0xff]  }
  0x61   : > { %6089 = vmatpush3.bf16.msra.mxu1 %v6560_v24  ;;  %v6567_v61 = vld [vmem:[#allocation3 + $0xd8] ss:$36 sps:$4 sm:$0xff]   ;;  %3775 = vmatprep.mubr.bf16.mxu0 %v6563_v54  ;;  %680 = vst [vmem:[#allocation3 + $0x144] sm:$0xf] %v5483_v7  ;;  %489 = vst [vmem:[#allocation2 + $0x91] sm:$0xff] %v456_v8  ;;  %v902_v19 = vld [vmem:[#allocation2 + $0x52] sm:$0xff]  ;;  %v5820_v23 = vunpack.c.l.bf16 %v5943_v17  ;;  %v5821_v24 = vunpack.c.h.bf16 %v5943_v17 }
  0x62   : > { %6090 = vmatprep.subr.bf16.mxu1 %v6561_v31  ;;  %3871 = vmatprep.mubr.bf16.mxu1 %v6565_v60  ;;  %1253 = vst [vmem:[#allocation3 + $0xe4] sm:$0xf] %v5482_v6  ;;  %1254 = vst [vmem:[#allocation3 + $0x108] sm:$0xf] %v5483_v7  ;;  %v901_v18 = vld [vmem:[#allocation2 + $0x4a] sm:$0xff]  ;;  %v521_v21 = vld [vmem:[#allocation2 + $0x78] sm:$0xff]  ;;  %v5545_v27 = vpack.c.bf16 %v902_v19, %v902_v19 }
  0x63   : > { %v6568_v1 = vld [vmem:[#allocation3 + $0x438] ss:$36 sps:$4 sm:$0xff]   ;;  %490 = vst [vmem:[#allocation2 + $0x99] sm:$0xff] %v457_v11  ;;  %875 = vst [vmem:[#allocation3 + $0x1b4] sm:$0xf] %v5518_v12  ;;  %6201 = vmatpush3.bf16.msra.mxu0 %v6599_v15  ;;  %v5544_v26 = vpack.c.bf16 %v901_v18, %v901_v18  ;;  %v6582_v29 = vld [vmem:[%s7661_s1 + $0x1b8] sm:$0xff]   ;;  %v5484_v30 = vpack.c.bf16 %v521_v21, %v521_v21  ;;  %v419_v34 = vmul.f32 %v5820_v23, %v6904_v20 }
  0x64   : > { %876 = vst [vmem:[#allocation3 + $0x1d8] sm:$0xf] %v5519_v14  ;;  %v522_v22 = vld [vmem:[#allocation2 + $0x80] sm:$0xff]  ;;  %v6577_v28 = vld [vmem:[#allocation3 + $0x8] ss:$36 sps:$4 sm:$0xff]   ;;  %v6598_v33 = vld [vmem:[%s7661_s1 + $0x1f0] sm:$0xff]   ;;  %v420_v35 = vmul.f32 %v5821_v24, %v6904_v20 }
  0x65   : > { %6091 = vmatpush3.bf16.msra.mxu1 %v6562_v45  ;;  %v5485_v31 = vpack.c.bf16 %v522_v22, %v522_v22  ;;  %v6587_v32 = vld [vmem:[#allocation3 + $0x54] ss:$36 sps:$4 sm:$0xff]   ;;  %1061 = vst [vmem:[#allocation3 + $0xe0] sm:$0xf] %v5544_v26  ;;  %1062 = vst [vmem:[#allocation3 + $0x104] sm:$0xf] %v5545_v27  ;;  %v458_v41 = vadd.f32 %v6910_v25, %v419_v34 }
  0x66   : > { %6092 = vmatprep.subr.bf16.mxu1 %v6569_v46  ;;  %v6607_v36 = vld [vmem:[%s7661_s1 + $0x150] sm:$0xff]   ;;  %1635 = vst [vmem:[#allocation3 + $0xa4] sm:$0xf] %v5544_v26  ;;  %1636 = vst [vmem:[#allocation3 + $0xc8] sm:$0xf] %v5545_v27  ;;  %v459_v42 = vadd.f32 %v6910_v25, %v420_v35  ;;  %v5944_v48 = vld [vmem:[%s6855_s30 + $0x38] sm:$0xff]  }
  0x67   : > { %v6575_v37 = vld [vmem:[#allocation3 + $0x124] ss:$36 sps:$4 sm:$0xff]   ;;  %681 = vst [vmem:[#allocation3 + $0x168] sm:$0xf] %v5484_v30  ;;  %682 = vst [vmem:[#allocation3 + $0x18c] sm:$0xf] %v5485_v31  ;;  %6202 = vmatprep.subr.bf16.mxu0 %v6607_v36  ;;  %v5520_v46 = vpack.c.bf16 %v458_v41, %v458_v41  ;;  %v5824_v52 = vunpack.c.l.bf16 %v5944_v48  ;;  %v5825_v53 = vunpack.c.h.bf16 %v5944_v48 }
  0x68   : > { %3776 = vmatmul.mubr.bf16.gmra.mxu0 %v6567_v61  ;;  %3872 = vmatmul.mubr.bf16.gmra.mxu1 %v6568_v1  ;;  %1255 = vst [vmem:[#allocation3 + $0x12c] sm:$0xf] %v5484_v30  ;;  %1256 = vst [vmem:[#allocation3 + $0x150] sm:$0xf] %v5485_v31  ;;  %v6580_v38 = vld [vmem:[#allocation3 + $0x120] ss:$36 sps:$4 sm:$0xff]   ;;  %v5521_v47 = vpack.c.bf16 %v459_v42, %v459_v42 }
  0x69   : > { %6093 = vmatpush3.bf16.msra.mxu1 %v6571_v55  ;;  %3912 = vmatprep.mubr.bf16.mxu1 %v6579_v10  ;;  %v523_v39 = vld [vmem:[#allocation2 + $0x90] sm:$0xff]  ;;  %491 = vst [vmem:[#allocation2 + $0xa9] sm:$0xff] %v458_v41  ;;  %492 = vst [vmem:[#allocation2 + $0xb1] sm:$0xff] %v459_v42  ;;  %v903_v49 = vld [vmem:[#allocation2 + $0x62] sm:$0xff]  ;;  %v421_v59 = vmul.f32 %v5824_v52, %v6904_v20  ;;  %v422_v60 = vmul.f32 %v5825_v53, %v6904_v20 }
  0x6a   : > { %6094 = vmatprep.subr.bf16.mxu1 %v6573_v62  ;;  %v524_v40 = vld [vmem:[#allocation2 + $0x98] sm:$0xff]  ;;  %3783 = vmatprep.mubr.bf16.mxu0 %v6575_v37  ;;  %v5486_v43 = vpack.c.bf16 %v523_v39, %v523_v39  ;;  %v6608_v45 = vld [vmem:[%s7661_s1 + $0x110] sm:$0xff]   ;;  %v5546_v54 = vpack.c.bf16 %v903_v49, %v903_v49  ;;  %v6590_v56 = vld [vmem:[#allocation3 + $0x50] ss:$36 sps:$4 sm:$0xff]   ;;  %877 = vst [vmem:[#allocation3 + $0x1fc] sm:$0xf] %v5520_v46 }
  0x6b   : > { %v5487_v44 = vpack.c.bf16 %v524_v40, %v524_v40  ;;  %v904_v50 = vld [vmem:[#allocation2 + $0x6a] sm:$0xff]  ;;  %878 = vst [vmem:[#allocation3 + $0x220] sm:$0xf] %v5521_v47  ;;  %6203 = vmatpush3.bf16.msra.mxu0 %v6608_v45  ;;  %v6585_v61 = vld [vmem:[#allocation3 + $0x16c] ss:$36 sps:$4 sm:$0xff]   ;;  %v460_v63 = vadd.f32 %v6910_v25, %v421_v59  ;;  %v461_v0 = vadd.f32 %v6910_v25, %v422_v60 }
  0x6c   : > { %683 = vst [vmem:[#allocation3 + $0x1b0] sm:$0xf] %v5486_v43  ;;  %v6600_v51 = vld [vmem:[%s7661_s1 + $0x1b0] sm:$0xff]   ;;  %v5547_v55 = vpack.c.bf16 %v904_v50, %v904_v50  ;;  %1257 = vst [vmem:[#allocation3 + $0x174] sm:$0xf] %v5486_v43  ;;  %v6615_v57 = vld [vmem:[%s7661_s1 + $0x1e8] sm:$0xff]  }
  0x6d   : > { %6095 = vmatpush3.bf16.msra.mxu1 %v6574_v13  ;;  %684 = vst [vmem:[#allocation3 + $0x1d4] sm:$0xf] %v5487_v44  ;;  %1258 = vst [vmem:[#allocation3 + $0x198] sm:$0xf] %v5487_v44  ;;  %v6593_v58 = vld [vmem:[#allocation3 + $0x9c] ss:$36 sps:$4 sm:$0xff]   ;;  %v5522_v8 = vpack.c.bf16 %v460_v63, %v460_v63  ;;  %v5523_v9 = vpack.c.bf16 %v461_v0, %v461_v0 }
  0x6e   : > { %6304 = vmatprep.subr.bf16.mxu1 %v6581_v16  ;;  %1063 = vst [vmem:[#allocation3 + $0x128] sm:$0xf] %v5546_v54  ;;  %1064 = vst [vmem:[#allocation3 + $0x14c] sm:$0xf] %v5547_v55  ;;  %v6589_v62 = vld [vmem:[#allocation3 + $0x168] ss:$36 sps:$4 sm:$0xff]  }
  0x6f   : > { %1637 = vst [vmem:[#allocation3 + $0xec] sm:$0xf] %v5546_v54  ;;  %1638 = vst [vmem:[#allocation3 + $0x110] sm:$0xf] %v5547_v55  ;;  %v6616_v1 = vld [vmem:[%s7661_s1 + $0x1a8] sm:$0xff]   ;;  %v5945_v2 = vld [vmem:[%s6855_s30 + $0x40] sm:$0xff]  }
  0x70   : > { %3784 = vmatmul.mubr.bf16.gmra.mxu0 %v6580_v38  ;;  %3913 = vmatmul.mubr.bf16.vlgmr.msra.gmra.mxu1 %v6577_v28  ;;  %v5828_v3 = vunpack.c.l.bf16 %v5945_v2  ;;  %v5829_v20 = vunpack.c.h.bf16 %v5945_v2  ;;  %v905_v4 = vld [vmem:[#allocation2 + $0x7a] sm:$0xff]  ;;  %v906_v5 = vld [vmem:[#allocation2 + $0x82] sm:$0xff]  ;;  %v526_v7 = vld [vmem:[#allocation2 + $0xb0] sm:$0xff]  ;;  %493 = vst [vmem:[#allocation2 + $0xc1] sm:$0xff] %v460_v63 }
  0x71   : > { %6305 = vmatpush3.bf16.msra.mxu1 %v6582_v29  ;;  %3920 = vmatprep.mubr.bf16.mxu1 %v6587_v32  ;;  %v525_v6 = vld [vmem:[#allocation2 + $0xa8] sm:$0xff]  ;;  %494 = vst [vmem:[#allocation2 + $0xc9] sm:$0xff] %v461_v0  ;;  %v5548_v10 = vpack.c.bf16 %v905_v4, %v905_v4  ;;  %v5549_v11 = vpack.c.bf16 %v906_v5, %v906_v5  ;;  %v7089_v14 = vld [vmem:[%s7663_s3] ss:$0 sm:$0xff]  ;;  %879 = vst [vmem:[#allocation3 + $0x244] sm:$0xf] %v5522_v8 }
  0x72   : > { %6306 = vmatprep.subr.bf16.mxu1 %v6598_v33  ;;  %3791 = vmatprep.mubr.bf16.mxu0 %v6585_v61  ;;  %v6591_v25 = vld [vmem:[#allocation3 + $0x1b4] ss:$36 sps:$4 sm:$0xff]   ;;  %v5488_v12 = vpack.c.bf16 %v525_v6, %v525_v6  ;;  %v5489_v13 = vpack.c.bf16 %v526_v7, %v526_v7  ;;  %v423_v15 = vmul.f32 %v7089_v14, %v5828_v3  ;;  %v7097_v19 = vld [vmem:[%s6850_s27] ss:$0 sm:$0xff]  ;;  %v6603_v23 = vld [vmem:[#allocation3 + $0xe4] ss:$36 sps:$4 sm:$0xff]  }
  0x73   : > { %880 = vst [vmem:[#allocation3 + $0x268] sm:$0xf] %v5523_v9  ;;  %v424_v16 = vmul.f32 %v7089_v14, %v5829_v20  ;;  %1065 = vst [vmem:[#allocation3 + $0x170] sm:$0xf] %v5548_v10  ;;  %v6623_v17 = vld [vmem:[%s7661_s1 + $0x148] sm:$0xff]   ;;  %v907_v29 = vld [vmem:[#allocation2 + $0x92] sm:$0xff] }
  0x74   : > { %1066 = vst [vmem:[#allocation3 + $0x194] sm:$0xf] %v5549_v11  ;;  %1639 = vst [vmem:[#allocation3 + $0x134] sm:$0xf] %v5548_v10  ;;  %v6596_v18 = vld [vmem:[#allocation3 + $0x98] ss:$36 sps:$4 sm:$0xff]   ;;  %v462_v21 = vadd.f32 %v7097_v19, %v423_v15  ;;  %6204 = vmatprep.subr.bf16.mxu0 %v6623_v17  ;;  %v5550_v34 = vpack.c.bf16 %v907_v29, %v907_v29 }
  0x75   : > { %6307 = vmatpush3.bf16.msra.mxu1 %v6600_v51  ;;  %1640 = vst [vmem:[#allocation3 + $0x158] sm:$0xf] %v5549_v11  ;;  %685 = vst [vmem:[#allocation3 + $0x1f8] sm:$0xf] %v5488_v12  ;;  %v6595_v22 = vld [vmem:[#allocation3 + $0x1b0] ss:$36 sps:$4 sm:$0xff]   ;;  %v463_v24 = vadd.f32 %v7097_v19, %v424_v16 }
  0x76   : > { %6308 = vmatprep.subr.bf16.mxu1 %v6615_v57  ;;  %686 = vst [vmem:[#allocation3 + $0x21c] sm:$0xf] %v5489_v13  ;;  %1259 = vst [vmem:[#allocation3 + $0x1bc] sm:$0xf] %v5488_v12  ;;  %v6624_v26 = vld [vmem:[%s7661_s1 + $0x108] sm:$0xff]   ;;  %v5524_v27 = vpack.c.bf16 %v462_v21, %v462_v21  ;;  %v908_v30 = vld [vmem:[#allocation2 + $0x9a] sm:$0xff] }
  0x77   : > { %1260 = vst [vmem:[#allocation3 + $0x1e0] sm:$0xf] %v5489_v13  ;;  %495 = vst [vmem:[#allocation2 + $0xd9] sm:$0xff] %v462_v21  ;;  %v5946_v28 = vld [vmem:[%s6855_s30 + $0x48] sm:$0xff]   ;;  %v5525_v31 = vpack.c.bf16 %v463_v24, %v463_v24  ;;  %6205 = vmatpush3.bf16.msra.mxu0 %v6624_v26  ;;  %v6631_v35 = vld [vmem:[%s7661_s1 + $0x1e0] sm:$0xff]   ;;  %v5551_v38 = vpack.c.bf16 %v908_v30, %v908_v30 }
  0x78   : > { %3792 = vmatmul.mubr.bf16.gmra.mxu0 %v6589_v62  ;;  %3921 = vmatmul.mubr.bf16.gmra.mxu1 %v6590_v56  ;;  %496 = vst [vmem:[#allocation2 + $0xe1] sm:$0xff] %v463_v24  ;;  %v5832_v32 = vunpack.c.l.bf16 %v5946_v28  ;;  %v5833_v33 = vunpack.c.h.bf16 %v5946_v28  ;;  %v527_v36 = vld [vmem:[#allocation2 + $0xc0] sm:$0xff]  ;;  %v528_v37 = vld [vmem:[#allocation2 + $0xc8] sm:$0xff]  ;;  %881 = vst [vmem:[#allocation3 + $0x28c] sm:$0xf] %v5524_v27 }
  0x79   : > { %3928 = vmatprep.mubr.bf16.mxu1 %v6593_v58  ;;  %6309 = vmatpush3.bf16.msra.mxu1 %v6616_v1  ;;  %1455 = vst [vmem:[#allocation3 + $0x250] sm:$0xf] %v5524_v27  ;;  %v5490_v39 = vpack.c.bf16 %v527_v36, %v527_v36  ;;  %v5491_v40 = vpack.c.bf16 %v528_v37, %v528_v37  ;;  %882 = vst [vmem:[#allocation3 + $0x2b0] sm:$0xf] %v5525_v31  ;;  %v6632_v43 = vld [vmem:[%s7661_s1 + $0x1a0] sm:$0xff]   ;;  %v5947_v58 = vld [vmem:[%s6855_s30 + $0x50] sm:$0xff]  }
  0x7a   : > { %3799 = vmatprep.mubr.bf16.mxu0 %v6591_v25  ;;  %v425_v41 = vmul.f32 %v7089_v14, %v5832_v32  ;;  %v426_v42 = vmul.f32 %v7089_v14, %v5833_v33  ;;  %1067 = vst [vmem:[#allocation3 + $0x1b8] sm:$0xf] %v5550_v34  ;;  %6310 = vmatprep.subr.bf16.mxu1 %v6631_v35  ;;  %1641 = vst [vmem:[#allocation3 + $0x17c] sm:$0xf] %v5550_v34  ;;  %v6601_v44 = vld [vmem:[#allocation3 + $0x1fc] ss:$36 sps:$4 sm:$0xff]   ;;  %v5836_v61 = vunpack.c.l.bf16 %v5947_v58 }
  0x7b   : > { %1456 = vst [vmem:[#allocation3 + $0x274] sm:$0xf] %v5525_v31  ;;  %1068 = vst [vmem:[#allocation3 + $0x1dc] sm:$0xf] %v5551_v38  ;;  %v6606_v48 = vld [vmem:[#allocation3 + $0xe0] ss:$36 sps:$4 sm:$0xff]   ;;  %v5837_v62 = vunpack.c.h.bf16 %v5947_v58 }
  0x7c   : > { %1642 = vst [vmem:[#allocation3 + $0x1a0] sm:$0xf] %v5551_v38  ;;  %687 = vst [vmem:[#allocation3 + $0x240] sm:$0xf] %v5490_v39  ;;  %v464_v45 = vadd.f32 %v7097_v19, %v425_v41  ;;  %v465_v46 = vadd.f32 %v7097_v19, %v426_v42  ;;  %v6611_v49 = vld [vmem:[#allocation3 + $0x12c] ss:$36 sps:$4 sm:$0xff]   ;;  %v427_v5 = vmul.f32 %v7089_v14, %v5836_v61 }
  0x7d   : > { %688 = vst [vmem:[#allocation3 + $0x264] sm:$0xf] %v5491_v40  ;;  %6311 = vmatpush3.bf16.msra.mxu1 %v6632_v43  ;;  %1261 = vst [vmem:[#allocation3 + $0x204] sm:$0xf] %v5490_v39  ;;  %v6605_v47 = vld [vmem:[#allocation3 + $0x1f8] ss:$36 sps:$4 sm:$0xff]   ;;  %v428_v6 = vmul.f32 %v7089_v14, %v5837_v62 }
  0x7e   : > { %1262 = vst [vmem:[#allocation3 + $0x228] sm:$0xf] %v5491_v40  ;;  %v529_v50 = vld [vmem:[#allocation2 + $0xd8] sm:$0xff]  ;;  %497 = vst [vmem:[#allocation2 + $0xf1] sm:$0xff] %v464_v45  ;;  %v5526_v51 = vpack.c.bf16 %v464_v45, %v464_v45  ;;  %v5527_v52 = vpack.c.bf16 %v465_v46, %v465_v46  ;;  %v6633_v53 = vld [vmem:[%s7661_s1 + $0x140] sm:$0xff]   ;;  %v466_v12 = vadd.f32 %v7097_v19, %v427_v5 }
  0x7f   : > { %498 = vst [vmem:[#allocation2 + $0xf9] sm:$0xff] %v465_v46  ;;  %v530_v54 = vld [vmem:[#allocation2 + $0xe0] sm:$0xff]  ;;  %v5492_v55 = vpack.c.bf16 %v529_v50, %v529_v50  ;;  %6206 = vmatprep.subr.bf16.mxu0 %v6633_v53  ;;  %v909_v59 = vld [vmem:[#allocation2 + $0xaa] sm:$0xff]  ;;  %v910_v60 = vld [vmem:[#allocation2 + $0xb2] sm:$0xff]  ;;  %v467_v13 = vadd.f32 %v7097_v19, %v428_v6 }
  0x80   : > { %3800 = vmatmul.mubr.bf16.gmra.mxu0 %v6595_v22  ;;  %3929 = vmatmul.mubr.bf16.gmra.mxu1 %v6596_v18  ;;  %v6634_v56 = vld [vmem:[%s7661_s1 + $0x100] sm:$0xff]   ;;  %v5493_v57 = vpack.c.bf16 %v530_v54, %v530_v54  ;;  %883 = vst [vmem:[#allocation3 + $0x2d4] sm:$0xf] %v5526_v51  ;;  %884 = vst [vmem:[#allocation3 + $0x2f8] sm:$0xf] %v5527_v52  ;;  %v5552_v63 = vpack.c.bf16 %v909_v59, %v909_v59  ;;  %v912_v2 = vld [vmem:[#allocation2 + $0xca] sm:$0xff] }
  0x81   : > { %3936 = vmatprep.mubr.bf16.mxu1 %v6603_v23  ;;  %3807 = vmatprep.mubr.bf16.mxu0 %v6601_v44  ;;  %1457 = vst [vmem:[#allocation3 + $0x298] sm:$0xf] %v5526_v51  ;;  %1458 = vst [vmem:[#allocation3 + $0x2bc] sm:$0xf] %v5527_v52  ;;  %v5553_v0 = vpack.c.bf16 %v910_v60, %v910_v60  ;;  %v911_v1 = vld [vmem:[#allocation2 + $0xc2] sm:$0xff]  ;;  %v5555_v20 = vpack.c.bf16 %v912_v2, %v912_v2  ;;  %v1279_v7 = vld [vmem:[#allocation2 + $0x19] sm:$0xff] }
  0x82   : > { %689 = vst [vmem:[#allocation3 + $0x288] sm:$0xf] %v5492_v55  ;;  %6207 = vmatpush3.bf16.msra.mxu0 %v6634_v56  ;;  %1263 = vst [vmem:[#allocation3 + $0x24c] sm:$0xf] %v5492_v55  ;;  %v5554_v3 = vpack.c.bf16 %v911_v1, %v911_v1  ;;  %v6609_v4 = vld [vmem:[#allocation3 + $0x244] ss:$36 sps:$4 sm:$0xff]   ;;  %v5602_v15 = vpack.c.bf16 %v1279_v7, %v1279_v7  ;;  %v5528_v23 = vpack.c.bf16 %v466_v12, %v466_v12 }
  0x83   : > { %690 = vst [vmem:[#allocation3 + $0x2ac] sm:$0xf] %v5493_v57  ;;  %1264 = vst [vmem:[#allocation3 + $0x270] sm:$0xf] %v5493_v57  ;;  %v1280_v8 = vld [vmem:[#allocation2 + $0x21] sm:$0xff]  ;;  %v6647_v22 = vld [vmem:[%s7661_s1 + $0x1d8] sm:$0xff]   ;;  %v5529_v24 = vpack.c.bf16 %v467_v13, %v467_v13 }
  0x84   : > { %1069 = vst [vmem:[#allocation3 + $0x200] sm:$0xf] %v5552_v63  ;;  %1070 = vst [vmem:[#allocation3 + $0x224] sm:$0xf] %v5553_v0  ;;  %v6613_v9 = vld [vmem:[#allocation3 + $0x240] ss:$36 sps:$4 sm:$0xff]   ;;  %v5603_v16 = vpack.c.bf16 %v1280_v8, %v1280_v8  ;;  %6312 = vmatprep.subr.bf16.mxu1 %v6647_v22 }
  0x85   : > { %1643 = vst [vmem:[#allocation3 + $0x1c4] sm:$0xf] %v5552_v63  ;;  %1644 = vst [vmem:[#allocation3 + $0x1e8] sm:$0xf] %v5553_v0  ;;  %v6614_v10 = vld [vmem:[#allocation3 + $0x128] ss:$36 sps:$4 sm:$0xff]  }
  0x86   : > { %1071 = vst [vmem:[#allocation3 + $0x248] sm:$0xf] %v5554_v3  ;;  %1072 = vst [vmem:[#allocation3 + $0x26c] sm:$0xf] %v5555_v20  ;;  %v531_v11 = vld [vmem:[#allocation2 + $0xf0] sm:$0xff]  ;;  %v532_v25 = vld [vmem:[#allocation2 + $0xf8] sm:$0xff] }
  0x87   : > { %1645 = vst [vmem:[#allocation3 + $0x20c] sm:$0xf] %v5554_v3  ;;  %1646 = vst [vmem:[#allocation3 + $0x230] sm:$0xf] %v5555_v20  ;;  %v6619_v17 = vld [vmem:[#allocation3 + $0x174] ss:$36 sps:$4 sm:$0xff]   ;;  %v5494_v18 = vpack.c.bf16 %v531_v11, %v531_v11  ;;  %v5495_v21 = vpack.c.bf16 %v532_v25, %v532_v25 }
  0x88   : > { %3808 = vmatmul.mubr.bf16.gmra.mxu0 %v6605_v47  ;;  %3937 = vmatmul.mubr.bf16.gmra.mxu1 %v6606_v48  ;;  %499 = vst [vmem:[#allocation2 + $0x109] sm:$0xff] %v466_v12  ;;  %500 = vst [vmem:[#allocation2 + $0x111] sm:$0xff] %v467_v13  ;;  %v7132_v26 = vld [vmem:[%s7661_s1 + $0x238] sm:$0xff]   ;;  %v6622_v30 = vld [vmem:[#allocation3 + $0x170] ss:$36 sps:$4 sm:$0xff]  }
  0x89   : > { %3944 = vmatprep.mubr.bf16.mxu1 %v6611_v49  ;;  %3815 = vmatprep.mubr.bf16.mxu0 %v6609_v4  ;;  %1439 = vst [vmem:[#allocation3 + $0x10] sm:$0xf] %v5602_v15  ;;  %1440 = vst [vmem:[#allocation3 + $0x34] sm:$0xf] %v5603_v16  ;;  %v6649_v27 = vld [vmem:[%s7661_s1 + $0x198] sm:$0xff]   ;;  %v914_v31 = vld [vmem:[#allocation2 + $0xe2] sm:$0xff] }
  0x8a   : > { %691 = vst [vmem:[#allocation3 + $0x2d0] sm:$0xf] %v5494_v18  ;;  %692 = vst [vmem:[#allocation3 + $0x2f4] sm:$0xf] %v5495_v21  ;;  %v6617_v28 = vld [vmem:[#allocation3 + $0x28c] ss:$36 sps:$4 sm:$0xff]   ;;  %6440 = vmatprep.subr.bf16.mxu0 %v7132_v26  ;;  %6313 = vmatpush3.bf16.msra.mxu1 %v6649_v27  ;;  %v5557_v37 = vpack.c.bf16 %v914_v31, %v914_v31 }
  0x8b   : > { %1265 = vst [vmem:[#allocation3 + $0x294] sm:$0xf] %v5494_v18  ;;  %1266 = vst [vmem:[#allocation3 + $0x2b8] sm:$0xf] %v5495_v21  ;;  %v913_v29 = vld [vmem:[#allocation2 + $0xda] sm:$0xff]  ;;  %v1281_v33 = vld [vmem:[#allocation2 + $0x31] sm:$0xff] }
  0x8c   : > { %885 = vst [vmem:[#allocation3 + $0x31c] sm:$0xf] %v5528_v23  ;;  %886 = vst [vmem:[#allocation3 + $0x340] sm:$0xf] %v5529_v24  ;;  %v5556_v32 = vpack.c.bf16 %v913_v29, %v913_v29  ;;  %v1282_v34 = vld [vmem:[#allocation2 + $0x39] sm:$0xff]  ;;  %v5604_v38 = vpack.c.bf16 %v1281_v33, %v1281_v33  ;;  %v1283_v49 = vld [vmem:[#allocation2 + $0x49] sm:$0xff] }
  0x8d   : > { %1459 = vst [vmem:[#allocation3 + $0x2e0] sm:$0xf] %v5528_v23  ;;  %1460 = vst [vmem:[#allocation3 + $0x304] sm:$0xf] %v5529_v24  ;;  %v5605_v39 = vpack.c.bf16 %v1282_v34, %v1282_v34  ;;  %v6621_v40 = vld [vmem:[#allocation3 + $0x288] ss:$36 sps:$4 sm:$0xff]   ;;  %v5606_v51 = vpack.c.bf16 %v1283_v49, %v1283_v49 }
  0x8e   : > { %1073 = vst [vmem:[#allocation3 + $0x290] sm:$0xf] %v5556_v32  ;;  %1647 = vst [vmem:[#allocation3 + $0x254] sm:$0xf] %v5556_v32  ;;  %v6625_v43 = vld [vmem:[#allocation3 + $0x2d4] ss:$36 sps:$4 sm:$0xff]  }
  0x8f   : > { %v533_v35 = vld [vmem:[#allocation2 + $0x108] sm:$0xff]  ;;  %v534_v36 = vld [vmem:[#allocation2 + $0x110] sm:$0xff]  ;;  %1074 = vst [vmem:[#allocation3 + $0x2b4] sm:$0xf] %v5557_v37  ;;  %1441 = vst [vmem:[#allocation3 + $0x58] sm:$0xf] %v5604_v38 }
  0x90   : > { %3816 = vmatmul.mubr.bf16.gmra.mxu0 %v6613_v9  ;;  %3945 = vmatmul.mubr.bf16.gmra.mxu1 %v6614_v10  ;;  %v5496_v41 = vpack.c.bf16 %v533_v35, %v533_v35  ;;  %v5497_v42 = vpack.c.bf16 %v534_v36, %v534_v36  ;;  %v6627_v44 = vld [vmem:[#allocation3 + $0x1bc] ss:$36 sps:$4 sm:$0xff]   ;;  %1442 = vst [vmem:[#allocation3 + $0x7c] sm:$0xf] %v5605_v39  ;;  %1648 = vst [vmem:[#allocation3 + $0x278] sm:$0xf] %v5557_v37 }
  0x91   : > { %3823 = vmatprep.mubr.bf16.mxu0 %v6617_v28  ;;  %3952 = vmatprep.mubr.bf16.mxu1 %v6619_v17  ;;  %2016 = vst [vmem:[#allocation3 + $0x1c] sm:$0xf] %v5604_v38  ;;  %2017 = vst [vmem:[#allocation3 + $0x40] sm:$0xf] %v5605_v39  ;;  %v915_v45 = vld [vmem:[#allocation2 + $0xf2] sm:$0xff]  ;;  %v916_v46 = vld [vmem:[#allocation2 + $0xfa] sm:$0xff] }
  0x92   : > { %693 = vst [vmem:[#allocation3 + $0x318] sm:$0xf] %v5496_v41  ;;  %694 = vst [vmem:[#allocation3 + $0x33c] sm:$0xf] %v5497_v42  ;;  %v5558_v47 = vpack.c.bf16 %v915_v45, %v915_v45  ;;  %v5559_v48 = vpack.c.bf16 %v916_v46, %v916_v46  ;;  %v1284_v50 = vld [vmem:[#allocation2 + $0x51] sm:$0xff]  ;;  %v1109_v60 = vld [vmem:[#allocation2 + $0x120] sm:$0xff] }
  0x93   : > { %1267 = vst [vmem:[#allocation3 + $0x2dc] sm:$0xf] %v5496_v41  ;;  %1268 = vst [vmem:[#allocation3 + $0x300] sm:$0xf] %v5497_v42  ;;  %v5607_v52 = vpack.c.bf16 %v1284_v50, %v1284_v50  ;;  %v6662_v53 = vld [vmem:[%s7661_s1 + $0x1d0] sm:$0xff]   ;;  %v5592_v63 = vpack.c.bf16 %v1109_v60, %v1109_v60  ;;  %v1110_v1 = vld [vmem:[#allocation2 + $0x128] sm:$0xff] }
  0x94   : > { %1075 = vst [vmem:[#allocation3 + $0x2d8] sm:$0xf] %v5558_v47  ;;  %1076 = vst [vmem:[#allocation3 + $0x2fc] sm:$0xf] %v5559_v48  ;;  %v6630_v54 = vld [vmem:[#allocation3 + $0x1b8] ss:$36 sps:$4 sm:$0xff]   ;;  %6314 = vmatprep.subr.bf16.mxu1 %v6662_v53  ;;  %v5593_v2 = vpack.c.bf16 %v1110_v1, %v1110_v1 }
  0x95   : > { %1649 = vst [vmem:[#allocation3 + $0x29c] sm:$0xf] %v5558_v47  ;;  %1650 = vst [vmem:[#allocation3 + $0x2c0] sm:$0xf] %v5559_v48  ;;  %v6664_v55 = vld [vmem:[%s7661_s1 + $0x190] sm:$0xff]   ;;  %v1285_v4 = vld [vmem:[#allocation2 + $0x61] sm:$0xff] }
  0x96   : > { %1443 = vst [vmem:[#allocation3 + $0xa0] sm:$0xf] %v5606_v51  ;;  %1444 = vst [vmem:[#allocation3 + $0xc4] sm:$0xf] %v5607_v52  ;;  %v917_v56 = vld [vmem:[#allocation2 + $0x10a] sm:$0xff]  ;;  %v918_v58 = vld [vmem:[#allocation2 + $0x112] sm:$0xff]  ;;  %6315 = vmatpush3.bf16.msra.mxu1 %v6664_v55  ;;  %v5608_v8 = vpack.c.bf16 %v1285_v4, %v1285_v4 }
  0x97   : > { %2018 = vst [vmem:[#allocation3 + $0x64] sm:$0xf] %v5606_v51  ;;  %2019 = vst [vmem:[#allocation3 + $0x88] sm:$0xf] %v5607_v52  ;;  %v6637_v57 = vld [vmem:[#allocation3 + $0x204] ss:$36 sps:$4 sm:$0xff]   ;;  %v5560_v59 = vpack.c.bf16 %v917_v56, %v917_v56  ;;  %v5561_v62 = vpack.c.bf16 %v918_v58, %v918_v58 }
  0x98   : > { %3824 = vmatmul.mubr.bf16.gmra.mxu0 %v6621_v40  ;;  %3953 = vmatmul.mubr.bf16.gmra.mxu1 %v6622_v30  ;;  %v6629_v61 = vld [vmem:[#allocation3 + $0x2d0] ss:$36 sps:$4 sm:$0xff]   ;;  %v6635_v0 = vld [vmem:[#allocation3 + $0x31c] ss:$36 sps:$4 sm:$0xff]   ;;  %1269 = vst [vmem:[#allocation3 + $0x324] sm:$0xf] %v5592_v63 }
  0x99   : > { %3831 = vmatprep.mubr.bf16.mxu0 %v6625_v43  ;;  %3960 = vmatprep.mubr.bf16.mxu1 %v6627_v44  ;;  %1077 = vst [vmem:[#allocation3 + $0x320] sm:$0xf] %v5560_v59  ;;  %1651 = vst [vmem:[#allocation3 + $0x2e4] sm:$0xf] %v5560_v59  ;;  %v6639_v3 = vld [vmem:[#allocation3 + $0x318] ss:$36 sps:$4 sm:$0xff]  }
  0x9a   : > { %1078 = vst [vmem:[#allocation3 + $0x344] sm:$0xf] %v5561_v62  ;;  %1652 = vst [vmem:[#allocation3 + $0x308] sm:$0xf] %v5561_v62  ;;  %v6640_v20 = vld [vmem:[#allocation3 + $0x200] ss:$36 sps:$4 sm:$0xff]  }
  0x9b   : > { %1270 = vst [vmem:[#allocation3 + $0x348] sm:$0xf] %v5593_v2  ;;  %v6641_v5 = vld [vmem:[#allocation3 + $0x24c] ss:$36 sps:$4 sm:$0xff]   ;;  %v6645_v6 = vld [vmem:[#allocation3 + $0x14] ss:$36 sps:$4 sm:$0xff]  }
  0x9c   : > { %v1286_v7 = vld [vmem:[#allocation2 + $0x69] sm:$0xff]  ;;  %v1111_v13 = vld [vmem:[#allocation2 + $0x138] sm:$0xff]  ;;  %v1112_v15 = vld [vmem:[#allocation2 + $0x140] sm:$0xff]  ;;  %1445 = vst [vmem:[#allocation3 + $0xe8] sm:$0xf] %v5608_v8 }
  0x9d   : > { %v919_v9 = vld [vmem:[#allocation2 + $0x122] sm:$0xff]  ;;  %v920_v10 = vld [vmem:[#allocation2 + $0x12a] sm:$0xff]  ;;  %v5609_v11 = vpack.c.bf16 %v1286_v7, %v1286_v7  ;;  %v1287_v16 = vld [vmem:[#allocation2 + $0x79] sm:$0xff]  ;;  %v5594_v17 = vpack.c.bf16 %v1111_v13, %v1111_v13  ;;  %v5595_v18 = vpack.c.bf16 %v1112_v15, %v1112_v15  ;;  %2020 = vst [vmem:[#allocation3 + $0xac] sm:$0xf] %v5608_v8 }
  0x9e   : > { %v5562_v25 = vpack.c.bf16 %v919_v9, %v919_v9  ;;  %v5563_v12 = vpack.c.bf16 %v920_v10, %v920_v10  ;;  %v1288_v21 = vld [vmem:[#allocation2 + $0x81] sm:$0xff]  ;;  %v5610_v22 = vpack.c.bf16 %v1287_v16, %v1287_v16  ;;  %v6646_v31 = vld [vmem:[#allocation3 + $0x248] ss:$36 sps:$4 sm:$0xff]   ;;  %v1113_v33 = vld [vmem:[#allocation2 + $0x150] sm:$0xff] }
  0x9f   : > { %1446 = vst [vmem:[#allocation3 + $0x10c] sm:$0xf] %v5609_v11  ;;  %v5611_v23 = vpack.c.bf16 %v1288_v21, %v1288_v21  ;;  %v6677_v24 = vld [vmem:[%s7661_s1 + $0x1c8] sm:$0xff]   ;;  %2021 = vst [vmem:[#allocation3 + $0xd0] sm:$0xf] %v5609_v11  ;;  %v921_v28 = vld [vmem:[#allocation2 + $0x13a] sm:$0xff]  ;;  %v5596_v36 = vpack.c.bf16 %v1113_v33, %v1113_v33 }
  0xa0   : > { %3832 = vmatmul.mubr.bf16.gmra.mxu0 %v6629_v61  ;;  %3961 = vmatmul.mubr.bf16.gmra.mxu1 %v6630_v54  ;;  %1079 = vst [vmem:[#allocation3 + $0x368] sm:$0xf] %v5562_v25  ;;  %1080 = vst [vmem:[#allocation3 + $0x38c] sm:$0xf] %v5563_v12  ;;  %v6679_v27 = vld [vmem:[%s7661_s1 + $0x188] sm:$0xff]   ;;  %v5564_v29 = vpack.c.bf16 %v921_v28, %v921_v28  ;;  %v1114_v34 = vld [vmem:[#allocation2 + $0x158] sm:$0xff] }
  0xa1   : > { %3839 = vmatprep.mubr.bf16.mxu0 %v6635_v0  ;;  %3968 = vmatprep.mubr.bf16.mxu1 %v6637_v57  ;;  %1653 = vst [vmem:[#allocation3 + $0x32c] sm:$0xf] %v5562_v25  ;;  %1654 = vst [vmem:[#allocation3 + $0x350] sm:$0xf] %v5563_v12  ;;  %v6643_v30 = vld [vmem:[#allocation3 + $0x10] ss:$36 sps:$4 sm:$0xff]   ;;  %v5597_v37 = vpack.c.bf16 %v1114_v34, %v1114_v34 }
  0xa2   : > { %1271 = vst [vmem:[#allocation3 + $0x36c] sm:$0xf] %v5594_v17  ;;  %1272 = vst [vmem:[#allocation3 + $0x390] sm:$0xf] %v5595_v18  ;;  %6316 = vmatprep.subr.bf16.mxu1 %v6677_v24  ;;  %v922_v32 = vld [vmem:[#allocation2 + $0x142] sm:$0xff]  ;;  %v1289_v38 = vld [vmem:[#allocation2 + $0x91] sm:$0xff] }
  0xa3   : > { %1447 = vst [vmem:[#allocation3 + $0x130] sm:$0xf] %v5610_v22  ;;  %2022 = vst [vmem:[#allocation3 + $0xf4] sm:$0xf] %v5610_v22  ;;  %6317 = vmatpush3.bf16.msra.mxu1 %v6679_v27  ;;  %v5565_v35 = vpack.c.bf16 %v922_v32, %v922_v32  ;;  %v1290_v39 = vld [vmem:[#allocation2 + $0x99] sm:$0xff]  ;;  %v5612_v41 = vpack.c.bf16 %v1289_v38, %v1289_v38  ;;  %v1115_v45 = vld [vmem:[#allocation2 + $0x168] sm:$0xff] }
  0xa4   : > { %1448 = vst [vmem:[#allocation3 + $0x154] sm:$0xf] %v5611_v23  ;;  %2023 = vst [vmem:[#allocation3 + $0x118] sm:$0xf] %v5611_v23  ;;  %v923_v40 = vld [vmem:[#allocation2 + $0x152] sm:$0xff]  ;;  %v5613_v42 = vpack.c.bf16 %v1290_v39, %v1290_v39  ;;  %v924_v43 = vld [vmem:[#allocation2 + $0x15a] sm:$0xff]  ;;  %v5598_v49 = vpack.c.bf16 %v1115_v45, %v1115_v45 }
  0xa5   : > { %1081 = vst [vmem:[#allocation3 + $0x3b0] sm:$0xf] %v5564_v29  ;;  %1655 = vst [vmem:[#allocation3 + $0x374] sm:$0xf] %v5564_v29  ;;  %v5566_v44 = vpack.c.bf16 %v923_v40, %v923_v40  ;;  %v6650_v46 = vld [vmem:[#allocation3 + $0x294] ss:$36 sps:$4 sm:$0xff]   ;;  %v5567_v48 = vpack.c.bf16 %v924_v43, %v924_v43 }
  0xa6   : > { %v6663_v47 = vld [vmem:[%s7661_s1 + $0x230] sm:$0xff]   ;;  %1082 = vst [vmem:[#allocation3 + $0x3d4] sm:$0xf] %v5565_v35  ;;  %1273 = vst [vmem:[#allocation3 + $0x3b4] sm:$0xf] %v5596_v36  ;;  %v6678_v51 = vld [vmem:[%s7661_s1 + $0x228] sm:$0xff]  }
  0xa7   : > { %1274 = vst [vmem:[#allocation3 + $0x3d8] sm:$0xf] %v5597_v37  ;;  %1656 = vst [vmem:[#allocation3 + $0x398] sm:$0xf] %v5565_v35  ;;  %v6652_v50 = vld [vmem:[#allocation3 + $0x5c] ss:$36 sps:$4 sm:$0xff]  }
  0xa8   : > { %3840 = vmatmul.mubr.bf16.gmra.mxu0 %v6639_v3  ;;  %3969 = vmatmul.mubr.bf16.gmra.mxu1 %v6640_v20  ;;  %1449 = vst [vmem:[#allocation3 + $0x178] sm:$0xf] %v5612_v41  ;;  %1450 = vst [vmem:[#allocation3 + $0x19c] sm:$0xf] %v5613_v42  ;;  %v1116_v52 = vld [vmem:[#allocation2 + $0x170] sm:$0xff]  ;;  %v6692_v59 = vld [vmem:[%s7661_s1 + $0x1c0] sm:$0xff]  }
  0xa9   : > { %3976 = vmatprep.mubr.bf16.mxu1 %v6641_v5  ;;  %4073 = vmatprep.mubr.bf16.mxu0 %v6645_v6  ;;  %1083 = vst [vmem:[#allocation3 + $0x3f8] sm:$0xf] %v5566_v44  ;;  %2024 = vst [vmem:[#allocation3 + $0x13c] sm:$0xf] %v5612_v41  ;;  %v5599_v53 = vpack.c.bf16 %v1116_v52, %v1116_v52  ;;  %v1291_v54 = vld [vmem:[#allocation2 + $0xa9] sm:$0xff]  ;;  %v1292_v55 = vld [vmem:[#allocation2 + $0xb1] sm:$0xff] }
  0xaa   : > { %2025 = vst [vmem:[#allocation3 + $0x160] sm:$0xf] %v5613_v42  ;;  %1657 = vst [vmem:[#allocation3 + $0x3bc] sm:$0xf] %v5566_v44  ;;  %v6654_v56 = vld [vmem:[#allocation3 + $0x290] ss:$36 sps:$4 sm:$0xff]   ;;  %v5614_v57 = vpack.c.bf16 %v1291_v54, %v1291_v54  ;;  %v5615_v58 = vpack.c.bf16 %v1292_v55, %v1292_v55  ;;  %6318 = vmatprep.subr.bf16.mxu1 %v6692_v59 }
  0xab   : > { %1084 = vst [vmem:[#allocation3 + $0x41c] sm:$0xf] %v5567_v48  ;;  %1275 = vst [vmem:[#allocation3 + $0x3fc] sm:$0xf] %v5598_v49  ;;  %v6655_v60 = vld [vmem:[#allocation3 + $0x58] ss:$36 sps:$4 sm:$0xff]  }
  0xac   : > { %1658 = vst [vmem:[#allocation3 + $0x3e0] sm:$0xf] %v5567_v48  ;;  %1276 = vst [vmem:[#allocation3 + $0x420] sm:$0xf] %v5599_v53  ;;  %v6656_v61 = vld [vmem:[#allocation3 + $0x2dc] ss:$36 sps:$4 sm:$0xff]  }
  0xad   : > { %1451 = vst [vmem:[#allocation3 + $0x1c0] sm:$0xf] %v5614_v57  ;;  %1452 = vst [vmem:[#allocation3 + $0x1e4] sm:$0xf] %v5615_v58  ;;  %v6693_v62 = vld [vmem:[%s7661_s1 + $0x220] sm:$0xff]   ;;  %v5952_v0 = vld [vmem:[%s6855_s30 + $0x78] sm:$0xff]  }
  0xae   : > { %2026 = vst [vmem:[#allocation3 + $0x184] sm:$0xf] %v5614_v57  ;;  %2027 = vst [vmem:[#allocation3 + $0x1a8] sm:$0xf] %v5615_v58  ;;  %v6694_v63 = vld [vmem:[%s7661_s1 + $0x180] sm:$0xff]   ;;  %v5856_v1 = vunpack.c.l.bf16 %v5952_v0  ;;  %v5857_v2 = vunpack.c.h.bf16 %v5952_v0  ;;  %v925_v3 = vld [vmem:[#allocation2 + $0x16a] sm:$0xff] }
  0xaf   : > { %v926_v20 = vld [vmem:[#allocation2 + $0x172] sm:$0xff]  ;;  %v1293_v4 = vld [vmem:[#allocation2 + $0xc1] sm:$0xff]  ;;  %v5568_v5 = vpack.c.bf16 %v925_v3, %v925_v3  ;;  %v1294_v7 = vld [vmem:[#allocation2 + $0xc9] sm:$0xff]  ;;  %6319 = vmatpush3.bf16.msra.mxu1 %v6694_v63 }
  0xb0   : > { %3977 = vmatmul.mubr.bf16.gmra.mxu1 %v6646_v31  ;;  %4074 = vmatmul.mubr.bf16.vlgmr.msra.gmra.mxu0 %v6643_v30  ;;  %v5569_v6 = vpack.c.bf16 %v926_v20, %v926_v20  ;;  %v5616_v8 = vpack.c.bf16 %v1293_v4, %v1293_v4  ;;  %v437_v9 = vmul.f32 %v7089_v14, %v5856_v1  ;;  %v6660_v25 = vld [vmem:[#allocation3 + $0x2d8] ss:$36 sps:$4 sm:$0xff]   ;;  %v6661_v12 = vld [vmem:[#allocation3 + $0xa0] ss:$36 sps:$4 sm:$0xff]   ;;  %v6667_v18 = vld [vmem:[#allocation3 + $0xec] ss:$36 sps:$4 sm:$0xff]  }
  0xb1   : > { %6441 = vmatpush3.bf16.msra.mxu0 %v7132_v26  ;;  %3984 = vmatprep.mubr.bf16.mxu1 %v6650_v46  ;;  %v6658_v26 = vld [vmem:[#allocation3 + $0xa4] ss:$36 sps:$4 sm:$0xff]   ;;  %v438_v10 = vmul.f32 %v7089_v14, %v5857_v2  ;;  %v5617_v11 = vpack.c.bf16 %v1294_v7, %v1294_v7  ;;  %1085 = vst [vmem:[#allocation3 + $0x440] sm:$0xf] %v5568_v5  ;;  %1659 = vst [vmem:[#allocation3 + $0x404] sm:$0xf] %v5568_v5 }
  0xb2   : > { %4081 = vmatprep.mubr.bf16.mxu0 %v6652_v50  ;;  %6442 = vmatprep.subr.bf16.mxu0 %v6663_v47  ;;  %1086 = vst [vmem:[#allocation3 + $0x464] sm:$0xf] %v5569_v6  ;;  %1453 = vst [vmem:[#allocation3 + $0x208] sm:$0xf] %v5616_v8  ;;  %v6665_v13 = vld [vmem:[#allocation3 + $0x324] ss:$36 sps:$4 sm:$0xff]   ;;  %v476_v15 = vadd.f32 %v7097_v19, %v437_v9 }
  0xb3   : > { %1660 = vst [vmem:[#allocation3 + $0x428] sm:$0xf] %v5569_v6  ;;  %2028 = vst [vmem:[#allocation3 + $0x1cc] sm:$0xf] %v5616_v8  ;;  %v477_v16 = vadd.f32 %v7097_v19, %v438_v10  ;;  %v1664_v17 = vld [vmem:[#allocation2 + $0x30] sm:$0xff]  ;;  %v1665_v14 = vld [vmem:[#allocation2 + $0x38] sm:$0xff] }
  0xb4   : > { %1454 = vst [vmem:[#allocation3 + $0x22c] sm:$0xf] %v5617_v11  ;;  %2029 = vst [vmem:[#allocation3 + $0x1f0] sm:$0xf] %v5617_v11  ;;  %v5666_v21 = vpack.c.bf16 %v1664_v17, %v1664_v17  ;;  %v5667_v22 = vpack.c.bf16 %v1665_v14, %v1665_v14  ;;  %v6707_v23 = vld [vmem:[%s7661_s1 + $0x218] sm:$0xff]   ;;  %v5632_v24 = vpack.c.bf16 %v476_v15, %v476_v15  ;;  %v1666_v28 = vld [vmem:[#allocation2 + $0x48] sm:$0xff] }
  0xb5   : > { %6443 = vmatpush3.bf16.msra.mxu0 %v6663_v47  ;;  %509 = vst [vmem:[#allocation2 + $0x181] sm:$0xff] %v476_v15  ;;  %510 = vst [vmem:[#allocation2 + $0x189] sm:$0xff] %v477_v16  ;;  %v5633_v27 = vpack.c.bf16 %v477_v16, %v477_v16  ;;  %v1667_v19 = vld [vmem:[#allocation2 + $0x50] sm:$0xff]  ;;  %v5668_v29 = vpack.c.bf16 %v1666_v28, %v1666_v28  ;;  %v1668_v31 = vld [vmem:[#allocation2 + $0x60] sm:$0xff] }
  0xb6   : > { %6444 = vmatprep.subr.bf16.mxu0 %v6678_v51  ;;  %1824 = vst [vmem:[#allocation3 + $0x18] sm:$0xf] %v5666_v21  ;;  %1825 = vst [vmem:[#allocation3 + $0x3c] sm:$0xf] %v5667_v22  ;;  %v5669_v30 = vpack.c.bf16 %v1667_v19, %v1667_v19  ;;  %v6669_v32 = vld [vmem:[#allocation3 + $0x320] ss:$36 sps:$4 sm:$0xff]   ;;  %v5670_v35 = vpack.c.bf16 %v1668_v31, %v1668_v31 }
  0xb7   : > { %1469 = vst [vmem:[#allocation3 + $0x448] sm:$0xf] %v5632_v24  ;;  %1470 = vst [vmem:[#allocation3 + $0x46c] sm:$0xf] %v5633_v27  ;;  %v6670_v33 = vld [vmem:[#allocation3 + $0xe8] ss:$36 sps:$4 sm:$0xff]  }
  0xb8   : > { %3985 = vmatmul.mubr.bf16.gmra.mxu1 %v6654_v56  ;;  %4082 = vmatmul.mubr.bf16.gmra.mxu0 %v6655_v60  ;;  %1826 = vst [vmem:[#allocation3 + $0x60] sm:$0xf] %v5668_v29  ;;  %v1669_v34 = vld [vmem:[#allocation2 + $0x68] sm:$0xff]  ;;  %v6671_v36 = vld [vmem:[#allocation3 + $0x36c] ss:$36 sps:$4 sm:$0xff]   ;;  %v6720_v39 = vld [vmem:[%s7661_s1 + $0x210] sm:$0xff]  }
  0xb9   : > { %3992 = vmatprep.mubr.bf16.mxu1 %v6656_v61  ;;  %4089 = vmatprep.mubr.bf16.mxu0 %v6658_v26  ;;  %v6673_v37 = vld [vmem:[#allocation3 + $0x134] ss:$36 sps:$4 sm:$0xff]   ;;  %1827 = vst [vmem:[#allocation3 + $0x84] sm:$0xf] %v5669_v30  ;;  %v5671_v38 = vpack.c.bf16 %v1669_v34, %v1669_v34  ;;  %1828 = vst [vmem:[#allocation3 + $0xa8] sm:$0xf] %v5670_v35 }
  0xba   : > { %6445 = vmatpush3.bf16.msra.mxu0 %v6678_v51  ;;  %v1301_v42 = vld [vmem:[#allocation2 + $0x121] sm:$0xff]  ;;  %v1302_v45 = vld [vmem:[#allocation2 + $0x129] sm:$0xff]  ;;  %v1670_v47 = vld [vmem:[#allocation2 + $0x78] sm:$0xff] }
  0xbb   : > { %6446 = vmatprep.subr.bf16.mxu0 %v6693_v62  ;;  %1829 = vst [vmem:[#allocation3 + $0xcc] sm:$0xf] %v5671_v38  ;;  %v5624_v46 = vpack.c.bf16 %v1301_v42, %v1301_v42  ;;  %v5625_v48 = vpack.c.bf16 %v1302_v45, %v1302_v45  ;;  %v5672_v49 = vpack.c.bf16 %v1670_v47, %v1670_v47  ;;  %v1671_v50 = vld [vmem:[#allocation2 + $0x80] sm:$0xff]  ;;  %v1672_v56 = vld [vmem:[#allocation2 + $0x90] sm:$0xff]  ;;  %v1673_v57 = vld [vmem:[#allocation2 + $0x98] sm:$0xff] }
  0xbc   : > { %v1117_v40 = vld [vmem:[#allocation2 + $0x180] sm:$0xff]  ;;  %v1118_v41 = vld [vmem:[#allocation2 + $0x188] sm:$0xff]  ;;  %v5673_v53 = vpack.c.bf16 %v1671_v50, %v1671_v50  ;;  %v6675_v58 = vld [vmem:[#allocation3 + $0x368] ss:$36 sps:$4 sm:$0xff]   ;;  %v5674_v59 = vpack.c.bf16 %v1672_v56, %v1672_v56  ;;  %v5675_v60 = vpack.c.bf16 %v1673_v57, %v1673_v57 }
  0xbd   : > { %v5600_v43 = vpack.c.bf16 %v1117_v40, %v1117_v40  ;;  %v5601_v44 = vpack.c.bf16 %v1118_v41, %v1118_v41  ;;  %1461 = vst [vmem:[#allocation3 + $0x328] sm:$0xf] %v5624_v46  ;;  %v1303_v51 = vld [vmem:[#allocation2 + $0x139] sm:$0xff]  ;;  %v1304_v52 = vld [vmem:[#allocation2 + $0x141] sm:$0xff]  ;;  %2036 = vst [vmem:[#allocation3 + $0x2ec] sm:$0xf] %v5624_v46 }
  0xbe   : > { %6447 = vmatpush3.bf16.msra.mxu0 %v6693_v62  ;;  %1462 = vst [vmem:[#allocation3 + $0x34c] sm:$0xf] %v5625_v48  ;;  %1830 = vst [vmem:[#allocation3 + $0xf0] sm:$0xf] %v5672_v49  ;;  %v5626_v54 = vpack.c.bf16 %v1303_v51, %v1303_v51  ;;  %v5627_v55 = vpack.c.bf16 %v1304_v52, %v1304_v52  ;;  %v6676_v61 = vld [vmem:[#allocation3 + $0x130] ss:$36 sps:$4 sm:$0xff]  }
  0xbf   : > { %6448 = vmatprep.subr.bf16.mxu0 %v6707_v23  ;;  %1277 = vst [vmem:[#allocation3 + $0x444] sm:$0xf] %v5600_v43  ;;  %1278 = vst [vmem:[#allocation3 + $0x468] sm:$0xf] %v5601_v44  ;;  %v6680_v26 = vld [vmem:[#allocation3 + $0x3b4] ss:$36 sps:$4 sm:$0xff]  }
  0xc0   : > { %3993 = vmatmul.mubr.bf16.gmra.mxu1 %v6660_v25  ;;  %4090 = vmatmul.mubr.bf16.gmra.mxu0 %v6661_v12  ;;  %2037 = vst [vmem:[#allocation3 + $0x310] sm:$0xf] %v5625_v48  ;;  %1831 = vst [vmem:[#allocation3 + $0x114] sm:$0xf] %v5673_v53  ;;  %v6682_v62 = vld [vmem:[#allocation3 + $0x17c] ss:$36 sps:$4 sm:$0xff]  }
  0xc1   : > { %4000 = vmatprep.mubr.bf16.mxu1 %v6665_v13  ;;  %4097 = vmatprep.mubr.bf16.mxu0 %v6667_v18  ;;  %1463 = vst [vmem:[#allocation3 + $0x370] sm:$0xf] %v5626_v54  ;;  %1464 = vst [vmem:[#allocation3 + $0x394] sm:$0xf] %v5627_v55  ;;  %v6733_v63 = vld [vmem:[%s7661_s1 + $0x208] sm:$0xff]   ;;  %v1305_v0 = vld [vmem:[#allocation2 + $0x151] sm:$0xff] }
  0xc2   : > { %6449 = vmatpush3.bf16.msra.mxu0 %v6707_v23  ;;  %2038 = vst [vmem:[#allocation3 + $0x334] sm:$0xf] %v5626_v54  ;;  %2039 = vst [vmem:[#allocation3 + $0x358] sm:$0xf] %v5627_v55  ;;  %v1306_v1 = vld [vmem:[#allocation2 + $0x159] sm:$0xff]  ;;  %v5628_v2 = vpack.c.bf16 %v1305_v0, %v1305_v0  ;;  %v1674_v3 = vld [vmem:[#allocation2 + $0xa8] sm:$0xff] }
  0xc3   : > { %6450 = vmatprep.subr.bf16.mxu0 %v6720_v39  ;;  %1832 = vst [vmem:[#allocation3 + $0x138] sm:$0xf] %v5674_v59  ;;  %1833 = vst [vmem:[#allocation3 + $0x15c] sm:$0xf] %v5675_v60  ;;  %v1675_v20 = vld [vmem:[#allocation2 + $0xb0] sm:$0xff]  ;;  %v5629_v4 = vpack.c.bf16 %v1306_v1, %v1306_v1  ;;  %v5676_v5 = vpack.c.bf16 %v1674_v3, %v1674_v3  ;;  %v1676_v13 = vld [vmem:[#allocation2 + $0xc0] sm:$0xff] }
  0xc4   : > { %v5677_v6 = vpack.c.bf16 %v1675_v20, %v1675_v20  ;;  %1465 = vst [vmem:[#allocation3 + $0x3b8] sm:$0xf] %v5628_v2  ;;  %2040 = vst [vmem:[#allocation3 + $0x37c] sm:$0xf] %v5628_v2  ;;  %v6684_v7 = vld [vmem:[#allocation3 + $0x3b0] ss:$36 sps:$4 sm:$0xff]   ;;  %v5678_v17 = vpack.c.bf16 %v1676_v13, %v1676_v13 }
  0xc5   : > { %1466 = vst [vmem:[#allocation3 + $0x3dc] sm:$0xf] %v5629_v4  ;;  %1834 = vst [vmem:[#allocation3 + $0x180] sm:$0xf] %v5676_v5  ;;  %v6685_v8 = vld [vmem:[#allocation3 + $0x178] ss:$36 sps:$4 sm:$0xff]  }
  0xc6   : > { %6451 = vmatpush3.bf16.msra.mxu0 %v6720_v39  ;;  %1835 = vst [vmem:[#allocation3 + $0x1a4] sm:$0xf] %v5677_v6  ;;  %2041 = vst [vmem:[#allocation3 + $0x3a0] sm:$0xf] %v5629_v4  ;;  %v6686_v9 = vld [vmem:[#allocation3 + $0x3fc] ss:$36 sps:$4 sm:$0xff]  }
  0xc7   : > { %6452 = vmatprep.subr.bf16.mxu0 %v6733_v63  ;;  %v6688_v10 = vld [vmem:[#allocation3 + $0x1c4] ss:$36 sps:$4 sm:$0xff]   ;;  %v1307_v11 = vld [vmem:[#allocation2 + $0x169] sm:$0xff]  ;;  %1836 = vst [vmem:[#allocation3 + $0x1c8] sm:$0xf] %v5678_v17  ;;  %v6746_v22 = vld [vmem:[%s7661_s1 + $0x200] sm:$0xff]  }
  0xc8   : > { %4001 = vmatmul.mubr.bf16.gmra.mxu1 %v6669_v32  ;;  %4098 = vmatmul.mubr.bf16.gmra.mxu0 %v6670_v33  ;;  %v1308_v25 = vld [vmem:[#allocation2 + $0x171] sm:$0xff]  ;;  %v5630_v12 = vpack.c.bf16 %v1307_v11, %v1307_v11  ;;  %v1677_v15 = vld [vmem:[#allocation2 + $0xc8] sm:$0xff]  ;;  %v6697_v27 = vld [vmem:[#allocation3 + $0x20c] ss:$36 sps:$4 sm:$0xff]  }
  0xc9   : > { %4008 = vmatprep.mubr.bf16.mxu1 %v6671_v36  ;;  %4105 = vmatprep.mubr.bf16.mxu0 %v6673_v37  ;;  %v5631_v16 = vpack.c.bf16 %v1308_v25, %v1308_v25  ;;  %v5679_v18 = vpack.c.bf16 %v1677_v15, %v1677_v15  ;;  %v6690_v14 = vld [vmem:[#allocation3 + $0x3f8] ss:$36 sps:$4 sm:$0xff]   ;;  %v6691_v21 = vld [vmem:[#allocation3 + $0x1c0] ss:$36 sps:$4 sm:$0xff]   ;;  %v1678_v29 = vld [vmem:[#allocation2 + $0xd8] sm:$0xff] }
  0xca   : > { %6453 = vmatpush3.bf16.msra.mxu0 %v6733_v63  ;;  %1467 = vst [vmem:[#allocation3 + $0x400] sm:$0xf] %v5630_v12  ;;  %2042 = vst [vmem:[#allocation3 + $0x3c4] sm:$0xf] %v5630_v12  ;;  %v1501_v23 = vld [vmem:[#allocation2 + $0x182] sm:$0xff]  ;;  %v1502_v28 = vld [vmem:[#allocation2 + $0x18a] sm:$0xff]  ;;  %v5680_v32 = vpack.c.bf16 %v1678_v29, %v1678_v29 }
  0xcb   : > { %1468 = vst [vmem:[#allocation3 + $0x424] sm:$0xf] %v5631_v16  ;;  %1837 = vst [vmem:[#allocation3 + $0x1ec] sm:$0xf] %v5679_v18  ;;  %v6695_v24 = vld [vmem:[#allocation3 + $0x444] ss:$36 sps:$4 sm:$0xff]   ;;  %v5664_v19 = vpack.c.bf16 %v1501_v23, %v1501_v23  ;;  %6454 = vmatprep.subr.bf16.mxu0 %v6746_v22  ;;  %v5665_v31 = vpack.c.bf16 %v1502_v28, %v1502_v28 }
  0xcc   : > { %2043 = vst [vmem:[#allocation3 + $0x3e8] sm:$0xf] %v5631_v16  ;;  %v1679_v30 = vld [vmem:[#allocation2 + $0xe0] sm:$0xff]  ;;  %v1680_v36 = vld [vmem:[#allocation2 + $0xf0] sm:$0xff]  ;;  %v1681_v39 = vld [vmem:[#allocation2 + $0xf8] sm:$0xff] }
  0xcd   : > { %v5681_v33 = vpack.c.bf16 %v1679_v30, %v1679_v30  ;;  %v1870_v34 = vld [vmem:[#allocation2 + $0xd9] sm:$0xff]  ;;  %v1871_v35 = vld [vmem:[#allocation2 + $0xe1] sm:$0xff]  ;;  %1661 = vst [vmem:[#allocation3 + $0x44c] sm:$0xf] %v5664_v19  ;;  %v5682_v40 = vpack.c.bf16 %v1680_v36, %v1680_v36  ;;  %v1872_v41 = vld [vmem:[#allocation2 + $0xf1] sm:$0xff]  ;;  %v5683_v43 = vpack.c.bf16 %v1681_v39, %v1681_v39 }
  0xce   : > { %6455 = vmatpush3.bf16.msra.mxu0 %v6746_v22  ;;  %v5712_v37 = vpack.c.bf16 %v1870_v34, %v1870_v34  ;;  %v5713_v38 = vpack.c.bf16 %v1871_v35, %v1871_v35  ;;  %v1873_v42 = vld [vmem:[#allocation2 + $0xf9] sm:$0xff]  ;;  %2236 = vst [vmem:[#allocation3 + $0x410] sm:$0xf] %v5664_v19  ;;  %1662 = vst [vmem:[#allocation3 + $0x470] sm:$0xf] %v5665_v31  ;;  %v5714_v44 = vpack.c.bf16 %v1872_v41, %v1872_v41  ;;  %v2050_v48 = vld [vmem:[#allocation2 + $0x4a] sm:$0xff] }
  0xcf   : > { %1838 = vst [vmem:[#allocation3 + $0x210] sm:$0xf] %v5680_v32  ;;  %1839 = vst [vmem:[#allocation3 + $0x234] sm:$0xf] %v5681_v33  ;;  %v5715_v45 = vpack.c.bf16 %v1873_v42, %v1873_v42  ;;  %v2048_v46 = vld [vmem:[#allocation2 + $0x32] sm:$0xff]  ;;  %v2049_v47 = vld [vmem:[#allocation2 + $0x3a] sm:$0xff]  ;;  %v5732_v52 = vpack.c.bf16 %v2050_v48, %v2050_v48 }
  0xd0   : > { %4009 = vmatmul.mubr.bf16.gmra.mxu1 %v6675_v58  ;;  %4106 = vmatmul.mubr.bf16.gmra.mxu0 %v6676_v61  ;;  %2237 = vst [vmem:[#allocation3 + $0x434] sm:$0xf] %v5665_v31  ;;  %2030 = vst [vmem:[#allocation3 + $0x214] sm:$0xf] %v5712_v37  ;;  %v5730_v49 = vpack.c.bf16 %v2048_v46, %v2048_v46  ;;  %v5731_v50 = vpack.c.bf16 %v2049_v47, %v2049_v47  ;;  %v2051_v51 = vld [vmem:[#allocation2 + $0x52] sm:$0xff]  ;;  %v1682_v53 = vld [vmem:[#allocation2 + $0x108] sm:$0xff] }
  0xd1   : > { %4016 = vmatprep.mubr.bf16.mxu1 %v6680_v26  ;;  %4113 = vmatprep.mubr.bf16.mxu0 %v6682_v62  ;;  %2031 = vst [vmem:[#allocation3 + $0x238] sm:$0xf] %v5713_v38  ;;  %1840 = vst [vmem:[#allocation3 + $0x258] sm:$0xf] %v5682_v40  ;;  %v5733_v54 = vpack.c.bf16 %v2051_v51, %v2051_v51  ;;  %v5684_v55 = vpack.c.bf16 %v1682_v53, %v1682_v53  ;;  %v6699_v56 = vld [vmem:[#allocation3 + $0x440] ss:$36 sps:$4 sm:$0xff]  }
  0xd2   : > { %1841 = vst [vmem:[#allocation3 + $0x27c] sm:$0xf] %v5683_v43  ;;  %2032 = vst [vmem:[#allocation3 + $0x25c] sm:$0xf] %v5714_v44  ;;  %v6700_v57 = vld [vmem:[#allocation3 + $0x208] ss:$36 sps:$4 sm:$0xff]  }
  0xd3   : > { %2033 = vst [vmem:[#allocation3 + $0x280] sm:$0xf] %v5715_v45  ;;  %2208 = vst [vmem:[#allocation3 + $0x20] sm:$0xf] %v5730_v49  ;;  %v1683_v58 = vld [vmem:[#allocation2 + $0x110] sm:$0xff]  ;;  %v2052_v62 = vld [vmem:[#allocation2 + $0x62] sm:$0xff] }
  0xd4   : > { %2209 = vst [vmem:[#allocation3 + $0x44] sm:$0xf] %v5731_v50  ;;  %2210 = vst [vmem:[#allocation3 + $0x68] sm:$0xf] %v5732_v52  ;;  %v1874_v59 = vld [vmem:[#allocation2 + $0x109] sm:$0xff]  ;;  %v5685_v60 = vpack.c.bf16 %v1683_v58, %v1683_v58  ;;  %v1875_v61 = vld [vmem:[#allocation2 + $0x111] sm:$0xff]  ;;  %v5734_v1 = vpack.c.bf16 %v2052_v62, %v2052_v62 }
  0xd5   : > { %2211 = vst [vmem:[#allocation3 + $0x8c] sm:$0xf] %v5733_v54  ;;  %1842 = vst [vmem:[#allocation3 + $0x2a0] sm:$0xf] %v5684_v55  ;;  %v5716_v26 = vpack.c.bf16 %v1874_v59, %v1874_v59  ;;  %v2053_v63 = vld [vmem:[#allocation2 + $0x6a] sm:$0xff]  ;;  %v5717_v0 = vpack.c.bf16 %v1875_v61, %v1875_v61  ;;  %v2054_v3 = vld [vmem:[#allocation2 + $0x7a] sm:$0xff] }
  0xd6   : > { %v5735_v2 = vpack.c.bf16 %v2053_v63, %v2053_v63  ;;  %v2055_v20 = vld [vmem:[#allocation2 + $0x82] sm:$0xff]  ;;  %v6705_v5 = vld [vmem:[#allocation3 + $0x1c] ss:$36 sps:$4 sm:$0xff]   ;;  %1843 = vst [vmem:[#allocation3 + $0x2c4] sm:$0xf] %v5685_v60  ;;  %v5736_v6 = vpack.c.bf16 %v2054_v3, %v2054_v3  ;;  %v2057_v13 = vld [vmem:[#allocation2 + $0x9a] sm:$0xff] }
  0xd7   : > { %v6701_v4 = vld [vmem:[#allocation3 + $0x254] ss:$36 sps:$4 sm:$0xff]   ;;  %2034 = vst [vmem:[#allocation3 + $0x2a4] sm:$0xf] %v5716_v26  ;;  %2035 = vst [vmem:[#allocation3 + $0x2c8] sm:$0xf] %v5717_v0  ;;  %v5739_v17 = vpack.c.bf16 %v2057_v13, %v2057_v13 }
  0xd8   : > { %4017 = vmatmul.mubr.bf16.gmra.mxu1 %v6684_v7  ;;  %4114 = vmatmul.mubr.bf16.gmra.mxu0 %v6685_v8  ;;  %v5737_v7 = vpack.c.bf16 %v2055_v20, %v2055_v20  ;;  %2212 = vst [vmem:[#allocation3 + $0xb0] sm:$0xf] %v5734_v1  ;;  %2213 = vst [vmem:[#allocation3 + $0xd4] sm:$0xf] %v5735_v2  ;;  %v6703_v8 = vld [vmem:[#allocation3 + $0x18] ss:$36 sps:$4 sm:$0xff]  }
  0xd9   : > { %4024 = vmatprep.mubr.bf16.mxu1 %v6686_v9  ;;  %4121 = vmatprep.mubr.bf16.mxu0 %v6688_v10  ;;  %2214 = vst [vmem:[#allocation3 + $0xf8] sm:$0xf] %v5736_v6  ;;  %v6706_v9 = vld [vmem:[#allocation3 + $0x250] ss:$36 sps:$4 sm:$0xff]   ;;  %v1685_v11 = vld [vmem:[#allocation2 + $0x128] sm:$0xff]  ;;  %v2056_v12 = vld [vmem:[#allocation2 + $0x92] sm:$0xff] }
  0xda   : > { %2215 = vst [vmem:[#allocation3 + $0x11c] sm:$0xf] %v5737_v7  ;;  %v1684_v10 = vld [vmem:[#allocation2 + $0x120] sm:$0xff]  ;;  %v5687_v15 = vpack.c.bf16 %v1685_v11, %v1685_v11  ;;  %v5738_v16 = vpack.c.bf16 %v2056_v12, %v2056_v12  ;;  %v2058_v18 = vld [vmem:[#allocation2 + $0xaa] sm:$0xff]  ;;  %v6710_v22 = vld [vmem:[#allocation3 + $0x64] ss:$36 sps:$4 sm:$0xff]  }
  0xdb   : > { %v5686_v25 = vpack.c.bf16 %v1684_v10, %v1684_v10  ;;  %v5740_v23 = vpack.c.bf16 %v2058_v18, %v2058_v18  ;;  %2217 = vst [vmem:[#allocation3 + $0x164] sm:$0xf] %v5739_v17  ;;  %v1687_v28 = vld [vmem:[#allocation2 + $0x140] sm:$0xff]  ;;  %v2061_v31 = vld [vmem:[#allocation2 + $0xca] sm:$0xff]  ;;  %v1689_v41 = vld [vmem:[#allocation2 + $0x158] sm:$0xff] }
  0xdc   : > { %1845 = vst [vmem:[#allocation3 + $0x30c] sm:$0xf] %v5687_v15  ;;  %2216 = vst [vmem:[#allocation3 + $0x140] sm:$0xf] %v5738_v16  ;;  %v2060_v19 = vld [vmem:[#allocation2 + $0xc2] sm:$0xff]  ;;  %v5689_v30 = vpack.c.bf16 %v1687_v28, %v1687_v28  ;;  %v2062_v33 = vld [vmem:[#allocation2 + $0xda] sm:$0xff]  ;;  %v5743_v37 = vpack.c.bf16 %v2061_v31, %v2061_v31  ;;  %v5691_v44 = vpack.c.bf16 %v1689_v41, %v1689_v41 }
  0xdd   : > { %1844 = vst [vmem:[#allocation3 + $0x2e8] sm:$0xf] %v5686_v25  ;;  %2218 = vst [vmem:[#allocation3 + $0x188] sm:$0xf] %v5740_v23  ;;  %v5742_v32 = vpack.c.bf16 %v2060_v19, %v2060_v19  ;;  %v2063_v34 = vld [vmem:[#allocation2 + $0xe2] sm:$0xff]  ;;  %v5744_v38 = vpack.c.bf16 %v2062_v33, %v2062_v33  ;;  %v1688_v40 = vld [vmem:[#allocation2 + $0x150] sm:$0xff] }
  0xde   : > { %v6712_v35 = vld [vmem:[#allocation3 + $0x298] ss:$36 sps:$4 sm:$0xff]   ;;  %v6713_v36 = vld [vmem:[#allocation3 + $0x60] ss:$36 sps:$4 sm:$0xff]   ;;  %v5745_v39 = vpack.c.bf16 %v2063_v34, %v2063_v34  ;;  %1847 = vst [vmem:[#allocation3 + $0x354] sm:$0xf] %v5689_v30  ;;  %v5690_v43 = vpack.c.bf16 %v1688_v40, %v1688_v40 }
  0xdf   : > { %v2064_v42 = vld [vmem:[#allocation2 + $0xf2] sm:$0xff]  ;;  %2220 = vst [vmem:[#allocation3 + $0x1d0] sm:$0xf] %v5742_v32  ;;  %v2065_v45 = vld [vmem:[#allocation2 + $0xfa] sm:$0xff]  ;;  %v2066_v47 = vld [vmem:[#allocation2 + $0x10a] sm:$0xff] }
  0xe0   : > { %4025 = vmatmul.mubr.bf16.gmra.mxu1 %v6690_v14  ;;  %4122 = vmatmul.mubr.bf16.gmra.mxu0 %v6691_v21  ;;  %v2059_v14 = vld [vmem:[#allocation2 + $0xb2] sm:$0xff]  ;;  %v5746_v46 = vpack.c.bf16 %v2064_v42, %v2064_v42  ;;  %2221 = vst [vmem:[#allocation3 + $0x1f4] sm:$0xf] %v5743_v37  ;;  %2222 = vst [vmem:[#allocation3 + $0x218] sm:$0xf] %v5744_v38  ;;  %v5747_v49 = vpack.c.bf16 %v2065_v45, %v2065_v45  ;;  %v1690_v52 = vld [vmem:[#allocation2 + $0x168] sm:$0xff] }
  0xe1   : > { %4032 = vmatprep.mubr.bf16.mxu1 %v6695_v24  ;;  %4129 = vmatprep.mubr.bf16.mxu0 %v6697_v27  ;;  %v6708_v21 = vld [vmem:[#allocation3 + $0x29c] ss:$36 sps:$4 sm:$0xff]   ;;  %v5741_v24 = vpack.c.bf16 %v2059_v14, %v2059_v14  ;;  %v1686_v27 = vld [vmem:[#allocation2 + $0x138] sm:$0xff]  ;;  %2223 = vst [vmem:[#allocation3 + $0x23c] sm:$0xf] %v5745_v39  ;;  %v5748_v50 = vpack.c.bf16 %v2066_v47, %v2066_v47  ;;  %v2068_v58 = vld [vmem:[#allocation2 + $0x122] sm:$0xff] }
  0xe2   : > { %v5688_v29 = vpack.c.bf16 %v1686_v27, %v1686_v27  ;;  %v2067_v48 = vld [vmem:[#allocation2 + $0x112] sm:$0xff]  ;;  %v6716_v55 = vld [vmem:[#allocation3 + $0xac] ss:$36 sps:$4 sm:$0xff]   ;;  %1848 = vst [vmem:[#allocation3 + $0x378] sm:$0xf] %v5690_v43  ;;  %v2069_v59 = vld [vmem:[#allocation2 + $0x12a] sm:$0xff]  ;;  %v5750_v61 = vpack.c.bf16 %v2068_v58, %v2068_v58 }
  0xe3   : > { %2219 = vst [vmem:[#allocation3 + $0x1ac] sm:$0xf] %v5741_v24  ;;  %v5749_v51 = vpack.c.bf16 %v2067_v48, %v2067_v48  ;;  %v1691_v53 = vld [vmem:[#allocation2 + $0x170] sm:$0xff]  ;;  %1849 = vst [vmem:[#allocation3 + $0x39c] sm:$0xf] %v5691_v44  ;;  %v2070_v60 = vld [vmem:[#allocation2 + $0x13a] sm:$0xff]  ;;  %v5751_v26 = vpack.c.bf16 %v2069_v59, %v2069_v59 }
  0xe4   : > { %1846 = vst [vmem:[#allocation3 + $0x330] sm:$0xf] %v5688_v29  ;;  %v6714_v54 = vld [vmem:[#allocation3 + $0x2e4] ss:$36 sps:$4 sm:$0xff]   ;;  %2224 = vst [vmem:[#allocation3 + $0x260] sm:$0xf] %v5746_v46  ;;  %v5752_v63 = vpack.c.bf16 %v2070_v60, %v2070_v60 }
  0xe5   : > { %2225 = vst [vmem:[#allocation3 + $0x284] sm:$0xf] %v5747_v49  ;;  %2226 = vst [vmem:[#allocation3 + $0x2a8] sm:$0xf] %v5748_v50  ;;  %v2071_v62 = vld [vmem:[#allocation2 + $0x142] sm:$0xff]  ;;  %v2072_v15 = vld [vmem:[#allocation2 + $0x152] sm:$0xff] }
  0xe6   : > { %2227 = vst [vmem:[#allocation3 + $0x2cc] sm:$0xf] %v5749_v51  ;;  %v1692_v0 = vld [vmem:[#allocation2 + $0x180] sm:$0xff]  ;;  %v1693_v1 = vld [vmem:[#allocation2 + $0x188] sm:$0xff]  ;;  %v6718_v2 = vld [vmem:[#allocation3 + $0x2e0] ss:$36 sps:$4 sm:$0xff]   ;;  %v5753_v3 = vpack.c.bf16 %v2071_v62, %v2071_v62 }
  0xe7   : > { %v5694_v20 = vpack.c.bf16 %v1692_v0, %v1692_v0  ;;  %2228 = vst [vmem:[#allocation3 + $0x2f0] sm:$0xf] %v5750_v61  ;;  %2229 = vst [vmem:[#allocation3 + $0x314] sm:$0xf] %v5751_v26  ;;  %v6721_v6 = vld [vmem:[#allocation3 + $0x32c] ss:$36 sps:$4 sm:$0xff]  }
  0xe8   : > { %4033 = vmatmul.mubr.bf16.gmra.mxu1 %v6699_v56  ;;  %4130 = vmatmul.mubr.bf16.gmra.mxu0 %v6700_v57  ;;  %v5692_v56 = vpack.c.bf16 %v1690_v52, %v1690_v52  ;;  %v5693_v57 = vpack.c.bf16 %v1691_v53, %v1691_v53  ;;  %2230 = vst [vmem:[#allocation3 + $0x338] sm:$0xf] %v5752_v63  ;;  %2231 = vst [vmem:[#allocation3 + $0x35c] sm:$0xf] %v5753_v3  ;;  %v6723_v7 = vld [vmem:[#allocation3 + $0xf4] ss:$36 sps:$4 sm:$0xff]  }
  0xe9   : > { %4137 = vmatprep.mubr.bf16.mxu0 %v6701_v4  ;;  %4234 = vmatprep.mubr.bf16.mxu1 %v6705_v5  ;;  %v5695_v4 = vpack.c.bf16 %v1693_v1, %v1693_v1  ;;  %v6719_v5 = vld [vmem:[#allocation3 + $0xa8] ss:$36 sps:$4 sm:$0xff]   ;;  %1852 = vst [vmem:[#allocation3 + $0x408] sm:$0xf] %v5694_v20  ;;  %v6727_v10 = vld [vmem:[#allocation3 + $0x374] ss:$36 sps:$4 sm:$0xff]  }
  0xea   : > { %1850 = vst [vmem:[#allocation3 + $0x3c0] sm:$0xf] %v5692_v56  ;;  %1851 = vst [vmem:[#allocation3 + $0x3e4] sm:$0xf] %v5693_v57  ;;  %v6729_v11 = vld [vmem:[#allocation3 + $0x13c] ss:$36 sps:$4 sm:$0xff]  }
  0xeb   : > { %1853 = vst [vmem:[#allocation3 + $0x42c] sm:$0xf] %v5695_v4  ;;  %v1884_v12 = vld [vmem:[#allocation2 + $0x181] sm:$0xff]  ;;  %v1885_v13 = vld [vmem:[#allocation2 + $0x189] sm:$0xff]  ;;  %v2075_v23 = vld [vmem:[#allocation2 + $0x172] sm:$0xff] }
  0xec   : > { %v5726_v17 = vpack.c.bf16 %v1884_v12, %v1884_v12  ;;  %v5727_v18 = vpack.c.bf16 %v1885_v13, %v1885_v13  ;;  %v2073_v14 = vld [vmem:[#allocation2 + $0x15a] sm:$0xff]  ;;  %v5757_v19 = vpack.c.bf16 %v2075_v23, %v2075_v23  ;;  %v2079_v39 = vld [vmem:[#allocation2 + $0x1a2] sm:$0xff]  ;;  %v6734_v46 = vld [vmem:[#allocation3 + $0x3bc] ss:$36 sps:$4 sm:$0xff]  }
  0xed   : > { %v5755_v27 = vpack.c.bf16 %v2073_v14, %v2073_v14  ;;  %v1694_v29 = vld [vmem:[#allocation2 + $0x198] sm:$0xff]  ;;  %v1695_v30 = vld [vmem:[#allocation2 + $0x1a0] sm:$0xff]  ;;  %v5761_v42 = vpack.c.bf16 %v2079_v39, %v2079_v39  ;;  %v6732_v45 = vld [vmem:[#allocation3 + $0x138] ss:$36 sps:$4 sm:$0xff]  }
  0xee   : > { %v1886_v31 = vld [vmem:[#allocation2 + $0x199] sm:$0xff]  ;;  %2044 = vst [vmem:[#allocation3 + $0x40c] sm:$0xf] %v5726_v17  ;;  %2045 = vst [vmem:[#allocation3 + $0x430] sm:$0xf] %v5727_v18  ;;  %v5696_v33 = vpack.c.bf16 %v1694_v29, %v1694_v29  ;;  %v5697_v34 = vpack.c.bf16 %v1695_v30, %v1695_v30 }
  0xef   : > { %2233 = vst [vmem:[#allocation3 + $0x3a4] sm:$0xf] %v5755_v27  ;;  %2235 = vst [vmem:[#allocation3 + $0x3ec] sm:$0xf] %v5757_v19  ;;  %v2078_v38 = vld [vmem:[#allocation2 + $0x19a] sm:$0xff] }
  0xf0   : > { %4138 = vmatmul.mubr.bf16.gmra.mxu0 %v6706_v9  ;;  %4235 = vmatmul.mubr.bf16.vlgmr.msra.gmra.mxu1 %v6703_v8  ;;  %v6725_v8 = vld [vmem:[#allocation3 + $0x328] ss:$36 sps:$4 sm:$0xff]   ;;  %v6726_v9 = vld [vmem:[#allocation3 + $0xf0] ss:$36 sps:$4 sm:$0xff]   ;;  %1854 = vst [vmem:[#allocation3 + $0x450] sm:$0xf] %v5696_v33  ;;  %v5760_v41 = vpack.c.bf16 %v2078_v38, %v2078_v38 }
  0xf1   : > { %4145 = vmatprep.mubr.bf16.mxu0 %v6708_v21  ;;  %4242 = vmatprep.mubr.bf16.mxu1 %v6710_v22  ;;  %v5754_v21 = vpack.c.bf16 %v2072_v15, %v2072_v15  ;;  %v2074_v22 = vld [vmem:[#allocation2 + $0x16a] sm:$0xff]  ;;  %1855 = vst [vmem:[#allocation3 + $0x474] sm:$0xf] %v5697_v34  ;;  %2239 = vst [vmem:[#allocation3 + $0x47c] sm:$0xf] %v5761_v42 }
  0xf2   : > { %v5756_v28 = vpack.c.bf16 %v2074_v22, %v2074_v22  ;;  %2238 = vst [vmem:[#allocation3 + $0x458] sm:$0xf] %v5760_v41  ;;  %v6731_v44 = vld [vmem:[#allocation3 + $0x370] ss:$36 sps:$4 sm:$0xff]   ;;  %v6736_v47 = vld [vmem:[#allocation3 + $0x184] ss:$36 sps:$4 sm:$0xff]  }
  0xf3   : > { %2232 = vst [vmem:[#allocation3 + $0x380] sm:$0xf] %v5754_v21  ;;  %v6738_v53 = vld [vmem:[#allocation3 + $0x3b8] ss:$36 sps:$4 sm:$0xff]   ;;  %v6740_v57 = vld [vmem:[#allocation3 + $0x404] ss:$36 sps:$4 sm:$0xff]  }
  0xf4   : > { %2234 = vst [vmem:[#allocation3 + $0x3c8] sm:$0xf] %v5756_v28  ;;  %v6742_v58 = vld [vmem:[#allocation3 + $0x1cc] ss:$36 sps:$4 sm:$0xff]   ;;  %v6744_v20 = vld [vmem:[#allocation3 + $0x400] ss:$36 sps:$4 sm:$0xff]  }
  0xf5   : > { %v6745_v4 = vld [vmem:[#allocation3 + $0x1c8] ss:$36 sps:$4 sm:$0xff]   ;;  %v6752_v14 = vld [vmem:[#allocation3 + $0x210] ss:$36 sps:$4 sm:$0xff]   ;;  %v6755_v22 = vld [vmem:[#allocation3 + $0x25c] ss:$36 sps:$4 sm:$0xff]  }
  0xf6   : > { %v6751_v18 = vld [vmem:[#allocation3 + $0x448] ss:$36 sps:$4 sm:$0xff]   ;;  %v6756_v23 = vld [vmem:[#allocation3 + $0x20] ss:$36 sps:$4 sm:$0xff]  }
  0xf7   : > { %v6757_v38 = vld [vmem:[#allocation3 + $0x68] ss:$36 sps:$4 sm:$0xff]  }
  0xf8   : > { %4146 = vmatmul.mubr.bf16.gmra.mxu0 %v6712_v35  ;;  %4243 = vmatmul.mubr.bf16.gmra.mxu1 %v6713_v36  ;;  %v1887_v35 = vld [vmem:[#allocation2 + $0x1a1] sm:$0xff]  ;;  %v5728_v36 = vpack.c.bf16 %v1886_v31, %v1886_v31  ;;  %v6760_v39 = vld [vmem:[#allocation3 + $0x2a4] ss:$36 sps:$4 sm:$0xff]  }
  0xf9   : > { %4153 = vmatprep.mubr.bf16.mxu0 %v6714_v54  ;;  %4250 = vmatprep.mubr.bf16.mxu1 %v6716_v55  ;;  %v5729_v37 = vpack.c.bf16 %v1887_v35, %v1887_v35  ;;  %v6739_v54 = vld [vmem:[#allocation3 + $0x180] ss:$36 sps:$4 sm:$0xff]  }
  0xfa   : > { %2046 = vst [vmem:[#allocation3 + $0x454] sm:$0xf] %v5728_v36 }
  0xfb   : > { %2047 = vst [vmem:[#allocation3 + $0x478] sm:$0xf] %v5729_v37  ;;  %v6753_v37 = vld [vmem:[#allocation3 + $0x258] ss:$36 sps:$4 sm:$0xff]  }
 0x100   : > { %4154 = vmatmul.mubr.bf16.gmra.mxu0 %v6718_v2  ;;  %4251 = vmatmul.mubr.bf16.gmra.mxu1 %v6719_v5 }
 0x101   : > { %4161 = vmatprep.mubr.bf16.mxu0 %v6721_v6  ;;  %4258 = vmatprep.mubr.bf16.mxu1 %v6723_v7  ;;  %v6747_v7 = vld [vmem:[#allocation3 + $0x44c] ss:$36 sps:$4 sm:$0xff]  }
 0x108   : > { %4162 = vmatmul.mubr.bf16.gmra.mxu0 %v6725_v8  ;;  %4259 = vmatmul.mubr.bf16.gmra.mxu1 %v6726_v9  ;;  %v6749_v8 = vld [vmem:[#allocation3 + $0x214] ss:$36 sps:$4 sm:$0xff]  }
 0x109   : > { %4169 = vmatprep.mubr.bf16.mxu0 %v6727_v10  ;;  %4266 = vmatprep.mubr.bf16.mxu1 %v6729_v11 }
 0x110   : > { %v5984_v25 = vpop.f32.mrf.mxu0  ;;  %v6056_v48 = vpop.f32.mrf.mxu1  ;;  %4170 = vmatmul.mubr.bf16.gmra.mxu0 %v6731_v44  ;;  %4267 = vmatmul.mubr.bf16.gmra.mxu1 %v6732_v45  ;;  %v7218_v44 = vld [vmem:[%s7662_s2] ss:$0 sm:$0xff] }
 0x111   : > { %4177 = vmatprep.mubr.bf16.mxu0 %v6734_v46  ;;  %4274 = vmatprep.mubr.bf16.mxu1 %v6736_v47 }
 0x112   : > { %v5985_v16 = vpop.f32.mrf.mxu0  ;;  %v6057_v49 = vpop.f32.mrf.mxu1 }
 0x113   : > { %v7183_v24 = vadd.f32 %v5985_v16, %v5984_v25  ;;  %v7187_v50 = vadd.f32 %v6057_v49, %v6056_v48 }
 0x114   : > { %v5987_v32 = vpop.f32.mrf.mxu0  ;;  %v6059_v51 = vpop.f32.mrf.mxu1 }
 0x115   : > { %v3754_v49 = vadd.f32 %v7183_v24, %v7218_v44 }
 0x116   : > { %v5988_v40 = vpop.f32.mrf.mxu0  ;;  %v6060_v52 = vpop.f32.mrf.mxu1 }
 0x117   : > { %v7185_v43 = vadd.f32 %v5988_v40, %v5987_v32  ;;  %v7189_v55 = vadd.f32 %v6060_v52, %v6059_v51  ;;  %v6761_v40 = vld [vmem:[#allocation3 + $0xb0] ss:$36 sps:$4 sm:$0xff]  }
 0x118   : > { %v5990_v56 = vpop.f32.mrf.mxu0  ;;  %v6062_v59 = vpop.f32.mrf.mxu1  ;;  %4178 = vmatmul.mubr.bf16.gmra.mxu0 %v6738_v53  ;;  %4275 = vmatmul.mubr.bf16.gmra.mxu1 %v6739_v54 }
 0x119   : > { %4185 = vmatprep.mubr.bf16.mxu0 %v6740_v57  ;;  %4282 = vmatprep.mubr.bf16.mxu1 %v6742_v58  ;;  %v6762_v57 = vld [vmem:[#allocation3 + $0xf8] ss:$36 sps:$4 sm:$0xff]  }
 0x11a   : > { %v5991_v60 = vpop.f32.mrf.mxu0  ;;  %v6063_v26 = vpop.f32.mrf.mxu1 }
 0x11b   : > { %v7191_v61 = vadd.f32 %v5991_v60, %v5990_v56  ;;  %v7193_v62 = vadd.f32 %v6063_v26, %v6062_v59  ;;  %v6758_v56 = vld [vmem:[#allocation3 + $0x2a0] ss:$36 sps:$4 sm:$0xff]   ;;  %v6765_v59 = vld [vmem:[#allocation3 + $0x2ec] ss:$36 sps:$4 sm:$0xff]  }
 0x11c   : > { %v5993_v63 = vpop.f32.mrf.mxu0  ;;  %v6065_v0 = vpop.f32.mrf.mxu1  ;;  %v6766_v60 = vld [vmem:[#allocation3 + $0x140] ss:$36 sps:$4 sm:$0xff]  }
 0x11e   : > { %v5994_v1 = vpop.f32.mrf.mxu0  ;;  %v6066_v3 = vpop.f32.mrf.mxu1 }
 0x11f   : > { %v7195_v2 = vadd.f32 %v5994_v1, %v5993_v63  ;;  %v7197_v5 = vadd.f32 %v6066_v3, %v6065_v0  ;;  %v3757_v0 = vadd.f32 %v7185_v43, %v7218_v44 }
 0x120   : > { %v5996_v6 = vpop.f32.mrf.mxu0  ;;  %v6068_v10 = vpop.f32.mrf.mxu1  ;;  %4186 = vmatmul.mubr.bf16.gmra.mxu0 %v6744_v20  ;;  %4283 = vmatmul.mubr.bf16.gmra.mxu1 %v6745_v4 }
 0x121   : > { %4193 = vmatprep.mubr.bf16.mxu0 %v6747_v7  ;;  %4290 = vmatprep.mubr.bf16.mxu1 %v6749_v8  ;;  %v3762_v8 = vadd.f32 %v7191_v61, %v7218_v44 }
 0x122   : > { %v5997_v9 = vpop.f32.mrf.mxu0  ;;  %v6069_v12 = vpop.f32.mrf.mxu1 }
 0x123   : > { %v7199_v11 = vadd.f32 %v5997_v9, %v5996_v6  ;;  %v7201_v13 = vadd.f32 %v6069_v12, %v6068_v10  ;;  %v6763_v12 = vld [vmem:[#allocation3 + $0x2e8] ss:$36 sps:$4 sm:$0xff]  }
 0x124   : > { %v5999_v25 = vpop.f32.mrf.mxu0  ;;  %v6071_v16 = vpop.f32.mrf.mxu1 }
 0x126   : > { %v6000_v15 = vpop.f32.mrf.mxu0  ;;  %v6072_v27 = vpop.f32.mrf.mxu1 }
 0x127   : > { %v7203_v17 = vadd.f32 %v6000_v15, %v5999_v25  ;;  %v7205_v28 = vadd.f32 %v6072_v27, %v6071_v16  ;;  %v6767_v15 = vld [vmem:[#allocation3 + $0x188] ss:$36 sps:$4 sm:$0xff]  }
 0x128   : > { %v6002_v21 = vpop.f32.mrf.mxu0  ;;  %v6074_v29 = vpop.f32.mrf.mxu1  ;;  %4194 = vmatmul.mubr.bf16.gmra.mxu0 %v6751_v18  ;;  %4291 = vmatmul.mubr.bf16.gmra.mxu1 %v6752_v14  ;;  %v6770_v18 = vld [vmem:[#allocation3 + $0x334] ss:$36 sps:$4 sm:$0xff]  }
 0x129   : > { %4298 = vmatprep.mubr.bf16.mxu1 %v6755_v22  ;;  %6456 = vmatprep.mubr.bf16.mxu0 %v6756_v23  ;;  %v6771_v14 = vld [vmem:[#allocation3 + $0x1d0] ss:$36 sps:$4 sm:$0xff]   ;;  %v3765_v23 = vadd.f32 %v7195_v2, %v7218_v44 }
 0x12a   : > { %v6003_v19 = vpop.f32.mrf.mxu0  ;;  %v6075_v32 = vpop.f32.mrf.mxu1 }
 0x12b   : > { %v7207_v30 = vadd.f32 %v6003_v19, %v6002_v21  ;;  %v7209_v33 = vadd.f32 %v6075_v32, %v6074_v29 }
 0x12c   : > { %v6005_v31 = vpop.f32.mrf.mxu0  ;;  %v6077_v35 = vpop.f32.mrf.mxu1 }
 0x12e   : > { %v6006_v34 = vpop.f32.mrf.mxu0  ;;  %v6078_v41 = vpop.f32.mrf.mxu1 }
 0x12f   : > { %v7211_v36 = vadd.f32 %v6006_v34, %v6005_v31  ;;  %v7213_v42 = vadd.f32 %v6078_v41, %v6077_v35  ;;  %v3770_v35 = vadd.f32 %v7199_v11, %v7218_v44  ;;  %v6772_v41 = vld [vmem:[#allocation3 + $0x218] ss:$36 sps:$4 sm:$0xff]  }
 0x130   : > { %v6008_v45 = vpop.f32.mrf.mxu0  ;;  %v6096_v46 = vpop.f32.mrf.mxu1  ;;  %4299 = vmatmul.mubr.bf16.gmra.mxu1 %v6753_v37  ;;  %6457 = vmatmul.mubr.bf16.vlgmr.msra.gmra.mxu0 %v6757_v38 }
 0x131   : > { %4306 = vmatprep.mubr.bf16.mxu1 %v6760_v39  ;;  %6460 = vmatprep.mubr.bf16.mxu0 %v6761_v40  ;;  %v6768_v40 = vld [vmem:[#allocation3 + $0x330] ss:$36 sps:$4 sm:$0xff]  }
 0x132   : > { %v6009_v47 = vpop.f32.mrf.mxu0  ;;  %v6097_v48 = vpop.f32.mrf.mxu1 }
 0x133   : > { %v7222_v51 = vadd.f32 %v6009_v47, %v6008_v45  ;;  %v6098_v52 = vadd.f32 %v6097_v48, %v6096_v46  ;;  %v6775_v46 = vld [vmem:[#allocation3 + $0x37c] ss:$36 sps:$4 sm:$0xff]  }
 0x134   : > { %v6011_v53 = vpop.f32.mrf.mxu0  ;;  %v6099_v54 = vpop.f32.mrf.mxu1  ;;  %v6776_v47 = vld [vmem:[#allocation3 + $0x260] ss:$36 sps:$4 sm:$0xff]  }
 0x135   : > { %v7224_v58 = vadd.f32 %v6098_v52, %v3754_v49  ;;  %v3773_v52 = vadd.f32 %v7203_v17, %v7218_v44 }
 0x136   : > { %v6012_v26 = vpop.f32.mrf.mxu0  ;;  %v6100_v63 = vpop.f32.mrf.mxu1 }
 0x137   : > { %v7228_v1 = vadd.f32 %v6012_v26, %v6011_v53  ;;  %v6101_v3 = vadd.f32 %v6100_v63, %v6099_v54  ;;  %v3778_v26 = vadd.f32 %v7207_v30, %v7218_v44 }
 0x138   : > { %v6014_v24 = vpop.f32.mrf.mxu0  ;;  %v6102_v20 = vpop.f32.mrf.mxu1  ;;  %4307 = vmatmul.mubr.bf16.gmra.mxu1 %v6758_v56  ;;  %6461 = vmatmul.mubr.bf16.gmra.mxu0 %v6762_v57 }
 0x139   : > { %v7230_v4 = vadd.f32 %v6101_v3, %v3757_v0  ;;  %4314 = vmatprep.mubr.bf16.mxu1 %v6765_v59  ;;  %6464 = vmatprep.mubr.bf16.mxu0 %v6766_v60 }
 0x13a   : > { %v6015_v6 = vpop.f32.mrf.mxu0  ;;  %v6103_v7 = vpop.f32.mrf.mxu1 }
 0x13b   : > { %v7234_v9 = vadd.f32 %v6015_v6, %v6014_v24  ;;  %v6104_v10 = vadd.f32 %v6103_v7, %v6102_v20  ;;  %v6773_v24 = vld [vmem:[#allocation3 + $0x378] ss:$36 sps:$4 sm:$0xff]   ;;  %v6777_v20 = vld [vmem:[#allocation3 + $0x2a8] ss:$36 sps:$4 sm:$0xff]  }
 0x13c   : > { %v6017_v43 = vpop.f32.mrf.mxu0  ;;  %v6105_v25 = vpop.f32.mrf.mxu1  ;;  %v6780_v7 = vld [vmem:[#allocation3 + $0x3c4] ss:$36 sps:$4 sm:$0xff]  }
 0x13d   : > { %v7236_v16 = vadd.f32 %v6104_v10, %v3762_v8  ;;  %v6781_v8 = vld [vmem:[#allocation3 + $0x2f0] ss:$36 sps:$4 sm:$0xff]  }
 0x13e   : > { %v6018_v21 = vpop.f32.mrf.mxu0  ;;  %v6106_v22 = vpop.f32.mrf.mxu1 }
 0x13f   : > { %v7240_v27 = vadd.f32 %v6018_v21, %v6017_v43  ;;  %v6107_v19 = vadd.f32 %v6106_v22, %v6105_v25  ;;  %v3781_v25 = vadd.f32 %v7211_v36, %v7218_v44 }
 0x140   : > { %v6020_v61 = vpop.f32.mrf.mxu0  ;;  %v6108_v29 = vpop.f32.mrf.mxu1  ;;  %4315 = vmatmul.mubr.bf16.gmra.mxu1 %v6763_v12  ;;  %6465 = vmatmul.mubr.bf16.gmra.mxu0 %v6767_v15 }
 0x141   : > { %v7242_v31 = vadd.f32 %v6107_v19, %v3765_v23  ;;  %4322 = vmatprep.mubr.bf16.mxu1 %v6770_v18  ;;  %6468 = vmatprep.mubr.bf16.mxu0 %v6771_v14  ;;  %v3786_v23 = vadd.f32 %v7222_v51, %v7218_v44 }
 0x142   : > { %v6021_v32 = vpop.f32.mrf.mxu0  ;;  %v6109_v34 = vpop.f32.mrf.mxu1 }
 0x143   : > { %v7246_v37 = vadd.f32 %v6021_v32, %v6020_v61  ;;  %v6110_v38 = vadd.f32 %v6109_v34, %v6108_v29  ;;  %v6778_v32 = vld [vmem:[#allocation3 + $0x3c0] ss:$36 sps:$4 sm:$0xff]   ;;  %v6782_v34 = vld [vmem:[#allocation3 + $0x338] ss:$36 sps:$4 sm:$0xff]  }
 0x144   : > { %v6023_v2 = vpop.f32.mrf.mxu0  ;;  %v6111_v39 = vpop.f32.mrf.mxu1 }
 0x145   : > { %v7248_v45 = vadd.f32 %v6110_v38, %v3770_v35  ;;  %v6785_v38 = vld [vmem:[#allocation3 + $0x40c] ss:$36 sps:$4 sm:$0xff]  }
 0x146   : > { %v6024_v48 = vpop.f32.mrf.mxu0  ;;  %v6112_v49 = vpop.f32.mrf.mxu1 }
 0x147   : > { %v7252_v53 = vadd.f32 %v6024_v48, %v6023_v2  ;;  %v6113_v54 = vadd.f32 %v6112_v49, %v6111_v39  ;;  %v6786_v2 = vld [vmem:[#allocation3 + $0x380] ss:$36 sps:$4 sm:$0xff]  }
 0x148   : > { %v6026_v11 = vpop.f32.mrf.mxu0  ;;  %v6114_v56 = vpop.f32.mrf.mxu1  ;;  %4323 = vmatmul.mubr.bf16.gmra.mxu1 %v6768_v40  ;;  %6469 = vmatmul.mubr.bf16.gmra.mxu0 %v6772_v41  ;;  %v3789_v41 = vadd.f32 %v7228_v1, %v7218_v44 }
 0x149   : > { %v7254_v57 = vadd.f32 %v6113_v54, %v3773_v52  ;;  %4330 = vmatprep.mubr.bf16.mxu1 %v6775_v46  ;;  %6472 = vmatprep.mubr.bf16.mxu0 %v6776_v47 }
 0x14a   : > { %v6027_v59 = vpop.f32.mrf.mxu0  ;;  %v6115_v60 = vpop.f32.mrf.mxu1 }
 0x14b   : > { %v7258_v63 = vadd.f32 %v6027_v59, %v6026_v11  ;;  %v6116_v0 = vadd.f32 %v6115_v60, %v6114_v56  ;;  %v3794_v11 = vadd.f32 %v7234_v9, %v7218_v44 }
 0x14c   : > { %v6029_v17 = vpop.f32.mrf.mxu0  ;;  %v6117_v3 = vpop.f32.mrf.mxu1 }
 0x14d   : > { %v7260_v6 = vadd.f32 %v6116_v0, %v3778_v26  ;;  %v6783_v26 = vld [vmem:[#allocation3 + $0x408] ss:$36 sps:$4 sm:$0xff]  }
 0x14e   : > { %v6030_v10 = vpop.f32.mrf.mxu0  ;;  %v6118_v43 = vpop.f32.mrf.mxu1  ;;  %v6787_v0 = vld [vmem:[#allocation3 + $0x3c8] ss:$36 sps:$4 sm:$0xff]  }
 0x14f   : > { %v7264_v12 = vadd.f32 %v6030_v10, %v6029_v17  ;;  %v6119_v15 = vadd.f32 %v6118_v43, %v6117_v3  ;;  %v6790_v3 = vld [vmem:[#allocation3 + $0x454] ss:$36 sps:$4 sm:$0xff]  }
 0x150   : > { %v6032_v30 = vpop.f32.mrf.mxu0  ;;  %v6120_v18 = vpop.f32.mrf.mxu1  ;;  %4331 = vmatmul.mubr.bf16.gmra.mxu1 %v6773_v24  ;;  %6473 = vmatmul.mubr.bf16.gmra.mxu0 %v6777_v20  ;;  %v6791_v24 = vld [vmem:[#allocation3 + $0x410] ss:$36 sps:$4 sm:$0xff]  }
 0x151   : > { %v7266_v14 = vadd.f32 %v6119_v15, %v3781_v25  ;;  %4338 = vmatprep.mubr.bf16.mxu1 %v6780_v7  ;;  %6476 = vmatprep.mubr.bf16.mxu0 %v6781_v8  ;;  %v3797_v8 = vadd.f32 %v7240_v27, %v7218_v44 }
 0x152   : > { %v6033_v21 = vpop.f32.mrf.mxu0  ;;  %v6121_v22 = vpop.f32.mrf.mxu1 }
 0x153   : > { %v7270_v19 = vadd.f32 %v6033_v21, %v6032_v30  ;;  %v6122_v61 = vadd.f32 %v6121_v22, %v6120_v18  ;;  %v3802_v21 = vadd.f32 %v7246_v37, %v7218_v44 }
 0x154   : > { %v6035_v36 = vpop.f32.mrf.mxu0  ;;  %v6123_v29 = vpop.f32.mrf.mxu1 }
 0x155   : > { %v7272_v35 = vadd.f32 %v6122_v61, %v3786_v23 }
 0x156   : > { %v6036_v39 = vpop.f32.mrf.mxu0  ;;  %v6124_v40 = vpop.f32.mrf.mxu1 }
 0x157   : > { %v7276_v46 = vadd.f32 %v6036_v39, %v6035_v36  ;;  %v6125_v47 = vadd.f32 %v6124_v40, %v6123_v29  ;;  %v6788_v36 = vld [vmem:[#allocation3 + $0x450] ss:$36 sps:$4 sm:$0xff]   ;;  %v6792_v29 = vld [vmem:[#allocation3 + $0x458] ss:$36 sps:$4 sm:$0xff]  }
 0x158   : > { %v6038_v51 = vpop.f32.mrf.mxu0  ;;  %v6126_v48 = vpop.f32.mrf.mxu1  ;;  %4339 = vmatmul.mubr.bf16.gmra.mxu1 %v6778_v32  ;;  %6477 = vmatmul.mubr.bf16.gmra.mxu0 %v6782_v34 }
 0x159   : > { %v7278_v49 = vadd.f32 %v6125_v47, %v3789_v41  ;;  %4346 = vmatprep.mubr.bf16.mxu1 %v6785_v38  ;;  %6480 = vmatprep.mubr.bf16.mxu0 %v6786_v2  ;;  %v3805_v2 = vadd.f32 %v7252_v53, %v7218_v44 }
 0x15a   : > { %v6039_v52 = vpop.f32.mrf.mxu0  ;;  %v6127_v54 = vpop.f32.mrf.mxu1 }
 0x15b   : > { %v7282_v56 = vadd.f32 %v6039_v52, %v6038_v51  ;;  %v6128_v59 = vadd.f32 %v6127_v54, %v6126_v48  ;;  %v3810_v52 = vadd.f32 %v7258_v63, %v7218_v44 }
 0x15c   : > { %v6041_v1 = vpop.f32.mrf.mxu0  ;;  %v6129_v60 = vpop.f32.mrf.mxu1 }
 0x15d   : > { %v7284_v17 = vadd.f32 %v6128_v59, %v3794_v11 }
 0x15e   : > { %v6042_v20 = vpop.f32.mrf.mxu0  ;;  %v6130_v7 = vpop.f32.mrf.mxu1 }
 0x15f   : > { %v7288_v10 = vadd.f32 %v6042_v20, %v6041_v1  ;;  %v6131_v43 = vadd.f32 %v6130_v7, %v6129_v60 }
 0x160   : > { %v6044_v9 = vpop.f32.mrf.mxu0  ;;  %v6132_v25 = vpop.f32.mrf.mxu1  ;;  %4347 = vmatmul.mubr.bf16.gmra.mxu1 %v6783_v26  ;;  %6481 = vmatmul.mubr.bf16.gmra.mxu0 %v6787_v0  ;;  %v3813_v0 = vadd.f32 %v7264_v12, %v7218_v44 }
 0x161   : > { %v7290_v15 = vadd.f32 %v6131_v43, %v3797_v8  ;;  %4354 = vmatprep.mubr.bf16.mxu1 %v6790_v3  ;;  %6484 = vmatprep.mubr.bf16.mxu0 %v6791_v24 }
 0x162   : > { %v6045_v30 = vpop.f32.mrf.mxu0  ;;  %v6133_v18 = vpop.f32.mrf.mxu1 }
 0x163   : > { %v7294_v22 = vadd.f32 %v6045_v30, %v6044_v9  ;;  %v6134_v23 = vadd.f32 %v6133_v18, %v6132_v25  ;;  %v3818_v9 = vadd.f32 %v7270_v19, %v7218_v44 }
 0x164   : > { %v6047_v27 = vpop.f32.mrf.mxu0  ;;  %v6135_v61 = vpop.f32.mrf.mxu1 }
 0x165   : > { %v7296_v32 = vadd.f32 %v6134_v23, %v3802_v21 }
 0x166   : > { %v6048_v34 = vpop.f32.mrf.mxu0  ;;  %v6136_v38 = vpop.f32.mrf.mxu1 }
 0x167   : > { %v7300_v39 = vadd.f32 %v6048_v34, %v6047_v27  ;;  %v6137_v40 = vadd.f32 %v6136_v38, %v6135_v61 }
 0x168   : > { %v6050_v41 = vpop.f32.mrf.mxu0  ;;  %v6138_v47 = vpop.f32.mrf.mxu1  ;;  %4355 = vmatmul.mubr.bf16.gmra.mxu1 %v6788_v36  ;;  %6485 = vmatmul.mubr.bf16.gmra.mxu0 %v6792_v29  ;;  %v3821_v36 = vadd.f32 %v7276_v46, %v7218_v44 }
 0x169   : > { %v7302_v37 = vadd.f32 %v6137_v40, %v3805_v2 }
 0x16a   : > { %v6051_v51 = vpop.f32.mrf.mxu0  ;;  %v6139_v48 = vpop.f32.mrf.mxu1 }
 0x16b   : > { %v7306_v54 = vadd.f32 %v6051_v51, %v6050_v41  ;;  %v6140_v11 = vadd.f32 %v6139_v48, %v6138_v47 }
 0x16c   : > { %v6053_v59 = vpop.f32.mrf.mxu0  ;;  %v6141_v1 = vpop.f32.mrf.mxu1 }
 0x16d   : > { %v7308_v53 = vadd.f32 %v6140_v11, %v3810_v52 }
 0x16e   : > { %v6054_v60 = vpop.f32.mrf.mxu0  ;;  %v6142_v26 = vpop.f32.mrf.mxu1 }
 0x16f   : > { %v7312_v3 = vadd.f32 %v6054_v60, %v6053_v59  ;;  %v6143_v24 = vadd.f32 %v6142_v26, %v6141_v1 }
 0x170   : > { %v6144_v20 = vpop.f32.mrf.mxu1  ;;  %v6208_v7 = vpop.f32.mrf.mxu0 }
 0x171   : > { %v7314_v8 = vadd.f32 %v6143_v24, %v3813_v0 }
 0x172   : > { %v6145_v63 = vpop.f32.mrf.mxu1  ;;  %v6209_v43 = vpop.f32.mrf.mxu0 }
 0x173   : > { %v6146_v25 = vadd.f32 %v6145_v63, %v6144_v20  ;;  %v6210_v30 = vadd.f32 %v6209_v43, %v6208_v7 }
 0x174   : > { %v6147_v18 = vpop.f32.mrf.mxu1  ;;  %v6211_v21 = vpop.f32.mrf.mxu0 }
 0x175   : > { %v7318_v23 = vadd.f32 %v6146_v25, %v3818_v9  ;;  %v7321_v12 = vadd.f32 %v6210_v30, %v7224_v58  ;;  %v3826_v58 = vadd.f32 %v7282_v56, %v7218_v44 }
 0x176   : > { %v6148_v27 = vpop.f32.mrf.mxu1  ;;  %v6212_v61 = vpop.f32.mrf.mxu0 }
 0x177   : > { %v6149_v29 = vadd.f32 %v6148_v27, %v6147_v18  ;;  %v6213_v34 = vadd.f32 %v6212_v61, %v6211_v21 }
 0x178   : > { %v6150_v38 = vpop.f32.mrf.mxu1  ;;  %v6214_v2 = vpop.f32.mrf.mxu0 }
 0x179   : > { %v7325_v40 = vadd.f32 %v6149_v29, %v3821_v36  ;;  %v7328_v19 = vadd.f32 %v6213_v34, %v7230_v4  ;;  %v3829_v4 = vadd.f32 %v7288_v10, %v7218_v44 }
 0x17a   : > { %v6151_v41 = vpop.f32.mrf.mxu1  ;;  %v6215_v47 = vpop.f32.mrf.mxu0 }
 0x17b   : > { %v6152_v51 = vadd.f32 %v6151_v41, %v6150_v38  ;;  %v6216_v48 = vadd.f32 %v6215_v47, %v6214_v2 }
 0x17c   : > { %v6153_v52 = vpop.f32.mrf.mxu1  ;;  %v6217_v11 = vpop.f32.mrf.mxu0 }
 0x17d   : > { %v7332_v59 = vadd.f32 %v6152_v51, %v3826_v58  ;;  %v7335_v46 = vadd.f32 %v6216_v48, %v7236_v16  ;;  %v3834_v16 = vadd.f32 %v7294_v22, %v7218_v44 }
 0x17e   : > { %v6154_v1 = vpop.f32.mrf.mxu1  ;;  %v6218_v60 = vpop.f32.mrf.mxu0 }
 0x17f   : > { %v6155_v26 = vadd.f32 %v6154_v1, %v6153_v52  ;;  %v6219_v0 = vadd.f32 %v6218_v60, %v6217_v11 }
 0x180   : > { %v6156_v24 = vpop.f32.mrf.mxu1  ;;  %v6220_v20 = vpop.f32.mrf.mxu0 }
 0x181   : > { %v7339_v7 = vadd.f32 %v6155_v26, %v3829_v4  ;;  %v7342_v56 = vadd.f32 %v6219_v0, %v7242_v31  ;;  %v3837_v31 = vadd.f32 %v7300_v39, %v7218_v44 }
 0x182   : > { %v6157_v63 = vpop.f32.mrf.mxu1  ;;  %v6221_v43 = vpop.f32.mrf.mxu0 }
 0x183   : > { %v6158_v9 = vadd.f32 %v6157_v63, %v6156_v24  ;;  %v6222_v25 = vadd.f32 %v6221_v43, %v6220_v20 }
 0x184   : > { %v6159_v30 = vpop.f32.mrf.mxu1  ;;  %v6223_v18 = vpop.f32.mrf.mxu0 }
 0x185   : > { %v7346_v21 = vadd.f32 %v6158_v9, %v3834_v16  ;;  %v7349_v10 = vadd.f32 %v6222_v25, %v7248_v45  ;;  %v3842_v45 = vadd.f32 %v7306_v54, %v7218_v44 }
 0x186   : > { %v6160_v27 = vpop.f32.mrf.mxu1  ;;  %v6224_v61 = vpop.f32.mrf.mxu0 }
 0x187   : > { %v6161_v36 = vadd.f32 %v6160_v27, %v6159_v30  ;;  %v6225_v29 = vadd.f32 %v6224_v61, %v6223_v18 }
 0x188   : > { %v6162_v34 = vpop.f32.mrf.mxu1  ;;  %v6226_v38 = vpop.f32.mrf.mxu0 }
 0x189   : > { %v7353_v2 = vadd.f32 %v6161_v36, %v3837_v31  ;;  %v7356_v22 = vadd.f32 %v6225_v29, %v7254_v57  ;;  %v3845_v57 = vadd.f32 %v7312_v3, %v7218_v44 }
 0x18a   : > { %v6163_v41 = vpop.f32.mrf.mxu1  ;;  %v6227_v47 = vpop.f32.mrf.mxu0 }
 0x18b   : > { %v6164_v58 = vadd.f32 %v6163_v41, %v6162_v34  ;;  %v6228_v51 = vadd.f32 %v6227_v47, %v6226_v38 }
 0x18c   : > { %v6165_v48 = vpop.f32.mrf.mxu1  ;;  %v6229_v52 = vpop.f32.mrf.mxu0 }
 0x18d   : > { %v7360_v11 = vadd.f32 %v6164_v58, %v3842_v45  ;;  %v7363_v39 = vadd.f32 %v6228_v51, %v7260_v6  ;;  %v3850_v6 = vadd.f32 %v7187_v50, %v7218_v44 }
 0x18e   : > { %v6166_v1 = vpop.f32.mrf.mxu1  ;;  %v6230_v60 = vpop.f32.mrf.mxu0 }
 0x18f   : > { %v6167_v4 = vadd.f32 %v6166_v1, %v6165_v48  ;;  %v6231_v26 = vadd.f32 %v6230_v60, %v6229_v52 }
 0x190   : > { %v6168_v0 = vpop.f32.mrf.mxu1  ;;  %v6232_v24 = vpop.f32.mrf.mxu0 }
 0x191   : > { %v7367_v20 = vadd.f32 %v6167_v4, %v3845_v57  ;;  %v7370_v54 = vadd.f32 %v6231_v26, %v7266_v14  ;;  %v3853_v14 = vadd.f32 %v7189_v55, %v7218_v44 }
 0x192   : > { %v6169_v63 = vpop.f32.mrf.mxu1  ;;  %v6233_v43 = vpop.f32.mrf.mxu0 }
 0x193   : > { %v6170_v16 = vadd.f32 %v6169_v63, %v6168_v0  ;;  %v6234_v9 = vadd.f32 %v6233_v43, %v6232_v24 }
 0x194   : > { %v6171_v25 = vpop.f32.mrf.mxu1  ;;  %v6235_v30 = vpop.f32.mrf.mxu0 }
 0x195   : > { %v7374_v18 = vadd.f32 %v6170_v16, %v3850_v6  ;;  %v7377_v3 = vadd.f32 %v6234_v9, %v7272_v35  ;;  %v3858_v35 = vadd.f32 %v7193_v62, %v7218_v44 }
 0x196   : > { %v6172_v27 = vpop.f32.mrf.mxu1  ;;  %v6236_v61 = vpop.f32.mrf.mxu0 }
 0x197   : > { %v6173_v31 = vadd.f32 %v6172_v27, %v6171_v25  ;;  %v6237_v36 = vadd.f32 %v6236_v61, %v6235_v30 }
 0x198   : > { %v6174_v29 = vpop.f32.mrf.mxu1  ;;  %v6238_v34 = vpop.f32.mrf.mxu0 }
 0x199   : > { %v7381_v38 = vadd.f32 %v6173_v31, %v3853_v14  ;;  %v7384_v50 = vadd.f32 %v6237_v36, %v7278_v49  ;;  %v3861_v49 = vadd.f32 %v7197_v5, %v7218_v44 }
 0x19a   : > { %v6175_v41 = vpop.f32.mrf.mxu1  ;;  %v6239_v47 = vpop.f32.mrf.mxu0 }
 0x19b   : > { %v6176_v45 = vadd.f32 %v6175_v41, %v6174_v29  ;;  %v6240_v58 = vadd.f32 %v6239_v47, %v6238_v34 }
 0x19c   : > { %v6177_v51 = vpop.f32.mrf.mxu1  ;;  %v6241_v48 = vpop.f32.mrf.mxu0 }
 0x19d   : > { %v7388_v52 = vadd.f32 %v6176_v45, %v3858_v35  ;;  %v7391_v55 = vadd.f32 %v6240_v58, %v7284_v17  ;;  %v3866_v17 = vadd.f32 %v7201_v13, %v7218_v44 }
 0x19e   : > { %v6178_v1 = vpop.f32.mrf.mxu1  ;;  %v6242_v60 = vpop.f32.mrf.mxu0 }
 0x19f   : > { %v6179_v57 = vadd.f32 %v6178_v1, %v6177_v51  ;;  %v6243_v4 = vadd.f32 %v6242_v60, %v6241_v48 }
 0x1a0   : > { %v6180_v26 = vpop.f32.mrf.mxu1  ;;  %v6244_v0 = vpop.f32.mrf.mxu0 }
 0x1a1   : > { %v7395_v24 = vadd.f32 %v6179_v57, %v3861_v49  ;;  %v7398_v62 = vadd.f32 %v6243_v4, %v7290_v15  ;;  %v3869_v15 = vadd.f32 %v7205_v28, %v7218_v44 }
 0x1a2   : > { %v6181_v63 = vpop.f32.mrf.mxu1  ;;  %v6245_v43 = vpop.f32.mrf.mxu0 }
 0x1a3   : > { %v6182_v6 = vadd.f32 %v6181_v63, %v6180_v26  ;;  %v6246_v16 = vadd.f32 %v6245_v43, %v6244_v0 }
 0x1a4   : > { %v6183_v9 = vpop.f32.mrf.mxu1  ;;  %v6247_v25 = vpop.f32.mrf.mxu0 }
 0x1a5   : > { %v7402_v30 = vadd.f32 %v6182_v6, %v3866_v17  ;;  %v7405_v5 = vadd.f32 %v6246_v16, %v7296_v32  ;;  %v3874_v32 = vadd.f32 %v7209_v33, %v7218_v44 }
 0x1a6   : > { %v6184_v27 = vpop.f32.mrf.mxu1  ;;  %v6248_v61 = vpop.f32.mrf.mxu0 }
 0x1a7   : > { %v6185_v14 = vadd.f32 %v6184_v27, %v6183_v9  ;;  %v6249_v31 = vadd.f32 %v6248_v61, %v6247_v25 }
 0x1a8   : > { %v6186_v36 = vpop.f32.mrf.mxu1  ;;  %v6250_v29 = vpop.f32.mrf.mxu0 }
 0x1a9   : > { %v7409_v34 = vadd.f32 %v6185_v14, %v3869_v15  ;;  %v7412_v13 = vadd.f32 %v6249_v31, %v7302_v37  ;;  %v3877_v37 = vadd.f32 %v7213_v42, %v7218_v44 }
 0x1aa   : > { %v6187_v41 = vpop.f32.mrf.mxu1  ;;  %v6251_v47 = vpop.f32.mrf.mxu0 }
 0x1ab   : > { %v6188_v35 = vadd.f32 %v6187_v41, %v6186_v36  ;;  %v6252_v45 = vadd.f32 %v6251_v47, %v6250_v29 }
 0x1ac   : > { %v6189_v58 = vpop.f32.mrf.mxu1  ;;  %v6253_v51 = vpop.f32.mrf.mxu0 }
 0x1ad   : > { %v7416_v48 = vadd.f32 %v6188_v35, %v3874_v32  ;;  %v7419_v28 = vadd.f32 %v6252_v45, %v7308_v53 }
 0x1ae   : > { %v6190_v1 = vpop.f32.mrf.mxu1  ;;  %v6254_v60 = vpop.f32.mrf.mxu0 }
 0x1af   : > { %v6191_v49 = vadd.f32 %v6190_v1, %v6189_v58  ;;  %v6255_v57 = vadd.f32 %v6254_v60, %v6253_v51 }
 0x1b0   : > { %v6256_v4 = vpop.f32.mrf.mxu0  ;;  %v6320_v26 = vpop.f32.mrf.mxu1 }
 0x1b1   : > { %v7423_v0 = vadd.f32 %v6191_v49, %v3877_v37  ;;  %v7426_v33 = vadd.f32 %v6255_v57, %v7314_v8 }
 0x1b2   : > { %v6257_v63 = vpop.f32.mrf.mxu0  ;;  %v6321_v43 = vpop.f32.mrf.mxu1 }
 0x1b3   : > { %v6258_v17 = vadd.f32 %v6257_v63, %v6256_v4  ;;  %v6322_v6 = vadd.f32 %v6321_v43, %v6320_v26 }
 0x1b4   : > { %v6259_v53 = vpop.f32.mrf.mxu0  ;;  %v7428_v16 = vpop.f32.mrf.mxu1 }
 0x1b5   : > { %v7431_v9 = vadd.f32 %v6258_v17, %v7318_v23  ;;  %v7434_v42 = vadd.f32 %v6322_v6, %v7321_v12 }
 0x1b6   : > { %v6260_v44 = vpop.f32.mrf.mxu0  ;;  %v7436_v25 = vpop.f32.mrf.mxu1 }
 0x1b7   : > { %v6261_v27 = vadd.f32 %v6260_v44, %v6259_v53 }
 0x1b8   : > { %v6262_v61 = vpop.f32.mrf.mxu0  ;;  %v7438_v8 = vpop.f32.mrf.mxu1 }
 0x1b9   : > { %v7441_v15 = vadd.f32 %v6261_v27, %v7325_v40 }
 0x1ba   : > { %v6263_v14 = vpop.f32.mrf.mxu0  ;;  %v7443_v31 = vpop.f32.mrf.mxu1 }
 0x1bb   : > { %v6264_v36 = vadd.f32 %v6263_v14, %v6262_v61 }
 0x1bc   : > { %v6265_v29 = vpop.f32.mrf.mxu0  ;;  %v7445_v23 = vpop.f32.mrf.mxu1 }
 0x1bd   : > { %v7448_v12 = vadd.f32 %v6264_v36, %v7332_v59 }
 0x1be   : > { %v6266_v41 = vpop.f32.mrf.mxu0  ;;  %v7450_v47 = vpop.f32.mrf.mxu1 }
 0x1bf   : > { %v6267_v32 = vadd.f32 %v6266_v41, %v6265_v29 }
 0x1c0   : > { %v6268_v35 = vpop.f32.mrf.mxu0  ;;  %v7452_v45 = vpop.f32.mrf.mxu1 }
 0x1c1   : > { %v7455_v40 = vadd.f32 %v6267_v32, %v7339_v7 }
 0x1c2   : > { %v6269_v58 = vpop.f32.mrf.mxu0  ;;  %v7457_v51 = vpop.f32.mrf.mxu1 }
 0x1c3   : > { %v6270_v1 = vadd.f32 %v6269_v58, %v6268_v35 }
 0x1c4   : > { %v6271_v60 = vpop.f32.mrf.mxu0  ;;  %v7459_v37 = vpop.f32.mrf.mxu1 }
 0x1c5   : > { %v7462_v59 = vadd.f32 %v6270_v1, %v7346_v21 }
 0x1c6   : > { %v6272_v49 = vpop.f32.mrf.mxu0  ;;  %v7464_v57 = vpop.f32.mrf.mxu1 }
 0x1c7   : > { %7667 = vst [vmem:[#allocation4_spill] sm:$0xff] %v7462_v59  ;;  %v6273_v4 = vadd.f32 %v6272_v49, %v6271_v60 }
 0x1c8   : > { %v6274_v26 = vpop.f32.mrf.mxu0  ;;  %v7466_v63 = vpop.f32.mrf.mxu1 }
 0x1c9   : > { %v7469_v7 = vadd.f32 %v6273_v4, %v7353_v2 }
 0x1ca   : > { %v6275_v43 = vpop.f32.mrf.mxu0  ;;  %v7471_v17 = vpop.f32.mrf.mxu1 }
 0x1cb   : > { %7668 = vst [vmem:[#allocation5_spill] sm:$0xff] %v7469_v7  ;;  %v6276_v6 = vadd.f32 %v6275_v43, %v6274_v26 }
 0x1cc   : > { %v6277_v53 = vpop.f32.mrf.mxu0  ;;  %v7473_v44 = vpop.f32.mrf.mxu1 }
 0x1cd   : > { %v7476_v21 = vadd.f32 %v6276_v6, %v7360_v11 }
 0x1ce   : > { %v6278_v27 = vpop.f32.mrf.mxu0  ;;  %v7478_v61 = vpop.f32.mrf.mxu1 }
 0x1cf   : > { %v6279_v14 = vadd.f32 %v6278_v27, %v6277_v53 }
 0x1d0   : > { %v6280_v36 = vpop.f32.mrf.mxu0  ;;  %v7480_v29 = vpop.f32.mrf.mxu1 }
 0x1d1   : > { %v7483_v2 = vadd.f32 %v6279_v14, %v7367_v20 }
 0x1d2   : > { %v6281_v41 = vpop.f32.mrf.mxu0  ;;  %v7485_v32 = vpop.f32.mrf.mxu1 }
 0x1d3   : > { %7669 = vst [vmem:[#allocation6_spill] sm:$0xff] %v7483_v2  ;;  %v6282_v35 = vadd.f32 %v6281_v41, %v6280_v36 }
 0x1d4   : > { %v6283_v58 = vpop.f32.mrf.mxu0  ;;  %v7487_v1 = vpop.f32.mrf.mxu1 }
 0x1d5   : > { %v7490_v11 = vadd.f32 %v6282_v35, %v7374_v18 }
 0x1d6   : > { %v6284_v60 = vpop.f32.mrf.mxu0  ;;  %v7492_v49 = vpop.f32.mrf.mxu1 }
 0x1d7   : > { %7670 = vst [vmem:[#allocation7_spill] sm:$0xff] %v7490_v11  ;;  %v6285_v4 = vadd.f32 %v6284_v60, %v6283_v58 }
 0x1d8   : > { %v6286_v26 = vpop.f32.mrf.mxu0  ;;  %v7494_v43 = vpop.f32.mrf.mxu1 }
 0x1d9   : > { %v7497_v20 = vadd.f32 %v6285_v4, %v7381_v38 }
 0x1da   : > { %v6287_v6 = vpop.f32.mrf.mxu0  ;;  %v7499_v53 = vpop.f32.mrf.mxu1 }
 0x1db   : > { %7671 = vst [vmem:[#allocation8_spill] sm:$0xff] %v7497_v20  ;;  %v6288_v27 = vadd.f32 %v6287_v6, %v6286_v26 }
 0x1dc   : > { %v6289_v14 = vpop.f32.mrf.mxu0  ;;  %v7501_v36 = vpop.f32.mrf.mxu1 }
 0x1dd   : > { %v7504_v18 = vadd.f32 %v6288_v27, %v7388_v52 }
 0x1de   : > { %v6290_v41 = vpop.f32.mrf.mxu0  ;;  %v7506_v35 = vpop.f32.mrf.mxu1 }
 0x1df   : > { %7672 = vst [vmem:[#allocation9_spill] sm:$0xff] %v7504_v18  ;;  %v6291_v58 = vadd.f32 %v6290_v41, %v6289_v14 }
 0x1e0   : > { %v6292_v60 = vpop.f32.mrf.mxu0  ;;  %v7508_v11 = vpop.f32.mrf.mxu1 }
 0x1e1   : > { %v7511_v38 = vadd.f32 %v6291_v58, %v7395_v24 }
 0x1e2   : > { %v6293_v4 = vpop.f32.mrf.mxu0  ;;  %v7513_v20 = vpop.f32.mrf.mxu1 }
 0x1e3   : > { %7673 = vst [vmem:[#allocation10_spill] sm:$0xff] %v7511_v38  ;;  %v6294_v26 = vadd.f32 %v6293_v4, %v6292_v60 }
 0x1e4   : > { %v6295_v6 = vpop.f32.mrf.mxu0  ;;  %v7515_v7 = vpop.f32.mrf.mxu1 }
 0x1e5   : > { %v7518_v52 = vadd.f32 %v6294_v26, %v7402_v30  ;;  %v6328_v30 = vadd.f32 %v7443_v31, %v7438_v8 }
 0x1e6   : > { %v6296_v27 = vpop.f32.mrf.mxu0  ;;  %v7520_v18 = vpop.f32.mrf.mxu1 }
 0x1e7   : > { %7674 = vst [vmem:[#allocation11_spill] sm:$0xff] %v7518_v52  ;;  %v6297_v14 = vadd.f32 %v6296_v27, %v6295_v6  ;;  %v4245_v8 = vadd.f32 %v6328_v30, %v7335_v46  ;;  %v6334_v46 = vadd.f32 %v7457_v51, %v7452_v45  ;;  %v6337_v45 = vadd.f32 %v7464_v57, %v7459_v37 }
 0x1e8   : > { %v6298_v41 = vpop.f32.mrf.mxu0  ;;  %v7522_v2 = vpop.f32.mrf.mxu1  ;;  %v6352_v37 = vadd.f32 %v7499_v53, %v7494_v43 }
 0x1e9   : > { %v7525_v24 = vadd.f32 %v6297_v14, %v7409_v34  ;;  %v6331_v34 = vadd.f32 %v7450_v47, %v7445_v23 }
 0x1ea   : > { %v6299_v58 = vpop.f32.mrf.mxu0  ;;  %v7527_v38 = vpop.f32.mrf.mxu1 }
 0x1eb   : > { %7675 = vst [vmem:[#allocation12_spill] sm:$0xff] %v7525_v24  ;;  %v6300_v60 = vadd.f32 %v6299_v58, %v6298_v41  ;;  %v6325_v41 = vadd.f32 %v7436_v25, %v7428_v16  ;;  %v4248_v23 = vadd.f32 %v6331_v34, %v7342_v56  ;;  %v6343_v25 = vadd.f32 %v7478_v61, %v7473_v44 }
 0x1ec   : > { %v6301_v4 = vpop.f32.mrf.mxu0  ;;  %v7529_v59 = vpop.f32.mrf.mxu1  ;;  %v4253_v61 = vadd.f32 %v6334_v46, %v7349_v10 }
 0x1ed   : > { %v7534_v26 = vadd.f32 %v6300_v60, %v7416_v48 }
 0x1ee   : > { %v6302_v6 = vpop.f32.mrf.mxu0  ;;  %v7536_v27 = vpop.f32.mrf.mxu1 }
 0x1ef   : > { %7676 = vst [vmem:[#allocation13_spill] sm:$0xff] %v7534_v26  ;;  %v6303_v14 = vadd.f32 %v6302_v6, %v6301_v4  ;;  %v6340_v6 = vadd.f32 %v7471_v17, %v7466_v63 }
 0x1f0   : > { %v7540_v24 = vpop.f32.mrf.mxu1  ;;  %v6458_v52 = vpop.f32.mrf.mxu0 }
 0x1f1   : > { %v7545_v58 = vadd.f32 %v6303_v14, %v7423_v0  ;;  %v4406_v60 = vadd.f32 %v6458_v52, %v4245_v8  ;;  %v4240_v0 = vadd.f32 %v6325_v41, %v7328_v19  ;;  %v4261_v19 = vadd.f32 %v6340_v6, %v7363_v39 }
 0x1f2   : > { %v7548_v48 = vpop.f32.mrf.mxu1  ;;  %v4397_v31 = vpop.f32.mrf.mxu0  ;;  %v4264_v41 = vadd.f32 %v6343_v25, %v7370_v54  ;;  %v6346_v39 = vadd.f32 %v7485_v32, %v7480_v29  ;;  %v6355_v25 = vadd.f32 %v7506_v35, %v7501_v36  ;;  %v4256_v29 = vadd.f32 %v6337_v45, %v7356_v22 }
 0x1f3   : > { %v4398_v26 = vadd.f32 %v4397_v31, %v7434_v42  ;;  %v4526_v42 = vmax.f32 %v4406_v60, 0.0  ;;  %v4277_v36 = vadd.f32 %v6352_v37, %v7391_v55 }
 0x1f4   : > { %v7552_v47 = vpop.f32.mrf.mxu1  ;;  %v6459_v4 = vpop.f32.mrf.mxu0 }
 0x1f5   : > { %v4409_v16 = vadd.f32 %v6459_v4, %v4248_v23  ;;  %v4524_v52 = vmax.f32 %v4398_v26, 0.0 }
 0x1f6   : > { %v7561_v30 = vpop.f32.mrf.mxu1  ;;  %v4400_v56 = vpop.f32.mrf.mxu0 }
 0x1f7   : > { %v4527_v34 = vmax.f32 %v4409_v16, 0.0  ;;  %v4401_v14 = vadd.f32 %v4400_v56, %v4240_v0  ;;  %v4753_v51 = vmul.f32 %v4524_v52, %v4524_v52  ;;  %v4755_v56 = vmul.f32 %v4526_v42, %v4526_v42 }
 0x1f8   : > { %v7563_v8 = vpop.f32.mrf.mxu1  ;;  %v6462_v63 = vpop.f32.mrf.mxu0 }
 0x1f9   : > { %v5866_v17 = vpack.c.bf16 %v4527_v34, %v4526_v42  ;;  %v4525_v31 = vmax.f32 %v4401_v14, 0.0  ;;  %v4422_v16 = vadd.f32 %v6462_v63, %v4261_v19 }
 0x1fa   : > { %v7568_v44 = vpop.f32.mrf.mxu1  ;;  %v4413_v26 = vpop.f32.mrf.mxu0 }
 0x1fb   : > { %5953 = vst [vmem:[%s6860_s9 + $0x8] sm:$0xff] %v5866_v17   ;;  %v5861_v60 = vpack.c.bf16 %v4525_v31, %v4524_v52  ;;  %v4716_v23 = vadd.f32 %v4525_v31, %v4524_v52  ;;  %v4754_v4 = vmul.f32 %v4525_v31, %v4525_v31  ;;  %v4414_v57 = vadd.f32 %v4413_v26, %v4253_v61 }
 0x1fc   : > { %v7577_v6 = vpop.f32.mrf.mxu1  ;;  %v6463_v0 = vpop.f32.mrf.mxu0  ;;  %v4756_v52 = vmul.f32 %v4527_v34, %v4527_v34  ;;  %v4530_v53 = vmax.f32 %v4422_v16, 0.0  ;;  %v4269_v61 = vadd.f32 %v6346_v39, %v7377_v3  ;;  %v4280_v16 = vadd.f32 %v6355_v25, %v7398_v62 }
 0x1fd   : > { %5862 = vst [vmem:[%s6860_s9] sm:$0xff] %v5861_v60   ;;  %v4717_v10 = vadd.f32 %v4716_v23, %v4526_v42  ;;  %v4785_v46 = vadd.f32 %v4754_v4, %v4753_v51  ;;  %v4425_v54 = vadd.f32 %v6463_v0, %v4264_v41  ;;  %v4528_v14 = vmax.f32 %v4414_v57, 0.0 }
 0x1fe   : > { %v7582_v63 = vpop.f32.mrf.mxu1  ;;  %v4416_v32 = vpop.f32.mrf.mxu0  ;;  %v6349_v42 = vadd.f32 %v7492_v49, %v7487_v1  ;;  %v6358_v39 = vadd.f32 %v7513_v20, %v7508_v11 }
 0x1ff   : > { %v4786_v43 = vadd.f32 %v4785_v46, %v4755_v56  ;;  %v4718_v17 = vadd.f32 %v4717_v10, %v4527_v34  ;;  %v4531_v31 = vmax.f32 %v4425_v54, 0.0  ;;  %v4417_v19 = vadd.f32 %v4416_v32, %v4256_v29 }
 0x200   : > { %v7587_v51 = vpop.f32.mrf.mxu1  ;;  %v6466_v35 = vpop.f32.mrf.mxu0  ;;  %v4757_v41 = vmul.f32 %v4528_v14, %v4528_v14  ;;  %v6364_v56 = vadd.f32 %v7527_v38, %v7522_v2  ;;  %v4272_v46 = vadd.f32 %v6349_v42, %v7384_v50  ;;  %v4759_v54 = vmul.f32 %v4530_v53, %v4530_v53 }
 0x201   : > { %v4719_v26 = vadd.f32 %v4718_v17, %v4528_v14  ;;  %v4787_v22 = vadd.f32 %v4786_v43, %v4756_v52  ;;  %v5876_v45 = vpack.c.bf16 %v4531_v31, %v4530_v53  ;;  %v4529_v60 = vmax.f32 %v4417_v19, 0.0 }
 0x202   : > { %v7591_v23 = vpop.f32.mrf.mxu1  ;;  %v4429_v34 = vpop.f32.mrf.mxu0  ;;  %v4438_v1 = vadd.f32 %v6466_v35, %v4277_v36  ;;  %v6367_v32 = vadd.f32 %v7536_v27, %v7529_v59  ;;  %v4760_v20 = vmul.f32 %v4531_v31, %v4531_v31  ;;  %v4293_v35 = vadd.f32 %v6364_v56, %v7419_v28 }
 0x203   : > { %v4788_v4 = vadd.f32 %v4787_v22, %v4757_v41  ;;  %5955 = vst [vmem:[%s6860_s9 + $0x18] sm:$0xff] %v5876_v45   ;;  %v4430_v49 = vadd.f32 %v4429_v34, %v4269_v61  ;;  %v5871_v57 = vpack.c.bf16 %v4529_v60, %v4528_v14  ;;  %v4720_v55 = vadd.f32 %v4719_v26, %v4529_v60 }
 0x204   : > { %v4758_v37 = vmul.f32 %v4529_v60, %v4529_v60  ;;  %v7595_v0 = vpop.f32.mrf.mxu1  ;;  %v6467_v3 = vpop.f32.mrf.mxu0  ;;  %v4534_v43 = vmax.f32 %v4438_v1, 0.0  ;;  %v4285_v41 = vadd.f32 %v6358_v39, %v7405_v5  ;;  %v4296_v34 = vadd.f32 %v6367_v32, %v7426_v33 }
 0x205   : > { %v4441_v10 = vadd.f32 %v6467_v3, %v4280_v16  ;;  %5954 = vst [vmem:[%s6860_s9 + $0x10] sm:$0xff] %v5871_v57   ;;  %v4721_v52 = vadd.f32 %v4720_v55, %v4530_v53  ;;  %v4532_v62 = vmax.f32 %v4430_v49, 0.0  ;;  %v6361_v53 = vadd.f32 %v7520_v18, %v7515_v7 }
 0x206   : > { %v4789_v29 = vadd.f32 %v4788_v4, %v4758_v37  ;;  %v7603_v25 = vpop.f32.mrf.mxu1  ;;  %v4432_v14 = vpop.f32.mrf.mxu0  ;;  %v6370_v28 = vadd.f32 %v7548_v48, %v7540_v24  ;;  %v6376_v16 = vadd.f32 %v7568_v44, %v7563_v8  ;;  %v4763_v55 = vmul.f32 %v4534_v43, %v4534_v43 }
 0x207   : > { %v4535_v17 = vmax.f32 %v4441_v10, 0.0  ;;  %v4433_v11 = vadd.f32 %v4432_v14, %v4272_v46  ;;  %v4722_v38 = vadd.f32 %v4721_v52, %v4531_v31  ;;  %v4761_v26 = vmul.f32 %v4532_v62, %v4532_v62 }
 0x208   : > { %v4790_v2 = vadd.f32 %v4789_v29, %v4759_v54  ;;  %v7607_v19 = vpop.f32.mrf.mxu1  ;;  %v6470_v50 = vpop.f32.mrf.mxu0  ;;  %v4288_v57 = vadd.f32 %v6361_v53, %v7412_v13  ;;  %v6379_v10 = vadd.f32 %v7582_v63, %v7577_v6  ;;  %v6373_v13 = vadd.f32 %v7561_v30, %v7552_v47 }
 0x209   : > { %v5886_v42 = vpack.c.bf16 %v4535_v17, %v4534_v43  ;;  %v4533_v36 = vmax.f32 %v4433_v11, 0.0  ;;  %v4723_v61 = vadd.f32 %v4722_v38, %v4532_v62  ;;  %v4454_v60 = vadd.f32 %v6470_v50, %v4293_v35 }
 0x20a   : > { %v4791_v59 = vadd.f32 %v4790_v2, %v4760_v20  ;;  %v6387_v27 = vpop.f32.mrf.mxu1  ;;  %v4445_v22 = vpop.f32.mrf.mxu0  ;;  %v4764_v24 = vmul.f32 %v4535_v17, %v4535_v17  ;;  %v4309_v32 = vadd.f32 %v6376_v16, %v7448_v12  ;;  %v4301_v63 = vadd.f32 %v6370_v28, %v7431_v9 }
 0x20b   : > { %5957 = vst [vmem:[%s6860_s9 + $0x28] sm:$0xff] %v5886_v42   ;;  %v5881_v31 = vpack.c.bf16 %v4533_v36, %v4532_v62  ;;  %v4762_v45 = vmul.f32 %v4533_v36, %v4533_v36  ;;  %v4724_v7 = vadd.f32 %v4723_v61, %v4533_v36  ;;  %v4446_v18 = vadd.f32 %v4445_v22, %v4285_v41 }
 0x20c   : > { %v4792_v4 = vadd.f32 %v4791_v59, %v4761_v26  ;;  %v6389_v1 = vpop.f32.mrf.mxu1  ;;  %v6471_v49 = vpop.f32.mrf.mxu0  ;;  %v4538_v46 = vmax.f32 %v4454_v60, 0.0  ;;  %v4312_v53 = vadd.f32 %v6379_v10, %v7455_v40  ;;  %v6382_v12 = vadd.f32 %v7591_v23, %v7587_v51 }
 0x20d   : > { %5956 = vst [vmem:[%s6860_s9 + $0x20] sm:$0xff] %v5881_v31   ;;  %v4457_v5 = vadd.f32 %v6471_v49, %v4296_v34  ;;  %v4725_v37 = vadd.f32 %v4724_v7, %v4534_v43  ;;  %v4536_v39 = vmax.f32 %v4446_v18, 0.0  ;;  %v6388_v61 = vadd.f32 %v6387_v27, %v7607_v19 }
 0x20e   : > { %v4793_v3 = vadd.f32 %v4792_v4, %v4762_v45  ;;  %v6390_v33 = vpop.f32.mrf.mxu1  ;;  %v4448_v56 = vpop.f32.mrf.mxu0  ;;  %v4304_v9 = vadd.f32 %v6373_v13, %v7441_v15  ;;  %v4767_v59 = vmul.f32 %v4538_v46, %v4538_v46  ;;  %v6385_v27 = vadd.f32 %v7603_v25, %v7595_v0  ;;  %v7679_v13 = vld [vmem:[#allocation5_spill] sm:$0xff] }
 0x20f   : > { %v4539_v54 = vmax.f32 %v4457_v5, 0.0  ;;  %v4449_v52 = vadd.f32 %v4448_v56, %v4288_v57  ;;  %v4726_v8 = vadd.f32 %v4725_v37, %v4535_v17  ;;  %v4765_v11 = vmul.f32 %v4536_v39, %v4536_v39  ;;  %v7677_v37 = vld [vmem:[#allocation4_spill] sm:$0xff] }
 0x210   : > { %v4794_v48 = vadd.f32 %v4793_v3, %v4763_v55  ;;  %v6392_v44 = vpop.f32.mrf.mxu1  ;;  %v6474_v29 = vpop.f32.mrf.mxu0  ;;  %v6391_v60 = vadd.f32 %v6390_v33, %v6389_v1  ;;  %v4325_v16 = vadd.f32 %v6388_v61, %v7476_v21  ;;  %v4317_v3 = vadd.f32 %v6382_v12, %v7677_v37  ;;  %v7680_v61 = vld [vmem:[#allocation9_spill] sm:$0xff] }
 0x211   : > { %v5896_v62 = vpack.c.bf16 %v4539_v54, %v4538_v46  ;;  %v4537_v14 = vmax.f32 %v4449_v52, 0.0  ;;  %v4727_v43 = vadd.f32 %v4726_v8, %v4536_v39  ;;  %v4470_v50 = vadd.f32 %v6474_v29, %v4309_v32 }
 0x212   : > { %v4795_v20 = vadd.f32 %v4794_v48, %v4764_v24  ;;  %v6393_v6 = vpop.f32.mrf.mxu1  ;;  %v4461_v2 = vpop.f32.mrf.mxu0  ;;  %v4768_v18 = vmul.f32 %v4539_v54, %v4539_v54 }
 0x213   : > { %5959 = vst [vmem:[%s6860_s9 + $0x38] sm:$0xff] %v5896_v62   ;;  %v5891_v38 = vpack.c.bf16 %v4537_v14, %v4536_v39  ;;  %v4766_v17 = vmul.f32 %v4537_v14, %v4537_v14  ;;  %v4728_v47 = vadd.f32 %v4727_v43, %v4537_v14  ;;  %v4462_v30 = vadd.f32 %v4461_v2, %v4301_v63 }
 0x214   : > { %v4796_v42 = vadd.f32 %v4795_v20, %v4765_v11  ;;  %v6395_v36 = vpop.f32.mrf.mxu1  ;;  %v6475_v35 = vpop.f32.mrf.mxu0  ;;  %v4542_v34 = vmax.f32 %v4470_v50, 0.0  ;;  %v6394_v21 = vadd.f32 %v6393_v6, %v6392_v44  ;;  %v4320_v62 = vadd.f32 %v6385_v27, %v7679_v13 }
 0x215   : > { %5958 = vst [vmem:[%s6860_s9 + $0x30] sm:$0xff] %v5891_v38   ;;  %v4473_v26 = vadd.f32 %v6475_v35, %v4312_v53  ;;  %v4729_v41 = vadd.f32 %v4728_v47, %v4538_v46  ;;  %v4540_v31 = vmax.f32 %v4462_v30, 0.0  ;;  %v7678_v46 = vld [vmem:[#allocation6_spill] sm:$0xff] }
 0x216   : > { %v4797_v22 = vadd.f32 %v4796_v42, %v4766_v17  ;;  %v6396_v45 = vpop.f32.mrf.mxu1  ;;  %v4464_v40 = vpop.f32.mrf.mxu0  ;;  %v4771_v14 = vmul.f32 %v4542_v34, %v4542_v34 }
 0x217   : > { %v4543_v4 = vmax.f32 %v4473_v26, 0.0  ;;  %v4465_v7 = vadd.f32 %v4464_v40, %v4304_v9  ;;  %v4730_v51 = vadd.f32 %v4729_v41, %v4539_v54  ;;  %v4769_v57 = vmul.f32 %v4540_v31, %v4540_v31 }
 0x218   : > { %v4798_v49 = vadd.f32 %v4797_v22, %v4767_v59  ;;  %v6398_v23 = vpop.f32.mrf.mxu1  ;;  %v6478_v19 = vpop.f32.mrf.mxu0  ;;  %v4328_v54 = vadd.f32 %v6391_v60, %v7678_v46  ;;  %v6397_v30 = vadd.f32 %v6396_v45, %v6395_v36 }
 0x219   : > { %v5906_v15 = vpack.c.bf16 %v4543_v4, %v4542_v34  ;;  %v4541_v28 = vmax.f32 %v4465_v7, 0.0  ;;  %v4731_v5 = vadd.f32 %v4730_v51, %v4540_v31  ;;  %v4486_v10 = vadd.f32 %v6478_v19, %v4325_v16 }
 0x21a   : > { %v4799_v1 = vadd.f32 %v4798_v49, %v4768_v18  ;;  %v6399_v55 = vpop.f32.mrf.mxu1  ;;  %v4477_v39 = vpop.f32.mrf.mxu0  ;;  %v4772_v53 = vmul.f32 %v4543_v4, %v4543_v4 }
 0x21b   : > { %5961 = vst [vmem:[%s6860_s9 + $0x48] sm:$0xff] %v5906_v15   ;;  %v5901_v33 = vpack.c.bf16 %v4541_v28, %v4540_v31  ;;  %v4770_v56 = vmul.f32 %v4541_v28, %v4541_v28  ;;  %v4732_v0 = vadd.f32 %v4731_v5, %v4541_v28  ;;  %v4478_v25 = vadd.f32 %v4477_v39, %v4317_v3  ;;  %v7681_v31 = vld [vmem:[#allocation7_spill] sm:$0xff]  ;;  %v7683_v28 = vld [vmem:[#allocation8_spill] sm:$0xff] }
 0x21c   : > { %v4800_v52 = vadd.f32 %v4799_v1, %v4769_v57  ;;  %v6401_v24 = vpop.f32.mrf.mxu1  ;;  %v6479_v48 = vpop.f32.mrf.mxu0  ;;  %v6400_v8 = vadd.f32 %v6399_v55, %v6398_v23  ;;  %v4546_v2 = vmax.f32 %v4486_v10, 0.0  ;;  %v4333_v40 = vadd.f32 %v6394_v21, %v7681_v31  ;;  %v7684_v21 = vld [vmem:[#allocation11_spill] sm:$0xff] }
 0x21d   : > { %5960 = vst [vmem:[%s6860_s9 + $0x40] sm:$0xff] %v5901_v33   ;;  %v4489_v29 = vadd.f32 %v6479_v48, %v4328_v54  ;;  %v4733_v32 = vadd.f32 %v4732_v0, %v4542_v34  ;;  %v4544_v11 = vmax.f32 %v4478_v25, 0.0  ;;  %v4336_v16 = vadd.f32 %v6397_v30, %v7683_v28 }
 0x21e   : > { %v4801_v43 = vadd.f32 %v4800_v52, %v4770_v56  ;;  %v6402_v20 = vpop.f32.mrf.mxu1  ;;  %v4480_v63 = vpop.f32.mrf.mxu0  ;;  %v4341_v26 = vadd.f32 %v6400_v8, %v7680_v61  ;;  %v4775_v5 = vmul.f32 %v4546_v2, %v4546_v2 }
 0x21f   : > { %v4547_v38 = vmax.f32 %v4489_v29, 0.0  ;;  %v6403_v17 = vadd.f32 %v6402_v20, %v6401_v24  ;;  %v4481_v50 = vadd.f32 %v4480_v63, %v4320_v62  ;;  %v4734_v47 = vadd.f32 %v4733_v32, %v4543_v4  ;;  %v7682_v4 = vld [vmem:[#allocation10_spill] sm:$0xff] }
 0x220   : > { %v4802_v42 = vadd.f32 %v4801_v43, %v4771_v14  ;;  %v6404_v44 = vpop.f32.mrf.mxu1  ;;  %v6482_v6 = vpop.f32.mrf.mxu0  ;;  %v4773_v59 = vmul.f32 %v4544_v11, %v4544_v11 }
 0x221   : > { %v5916_v35 = vpack.c.bf16 %v4547_v38, %v4546_v2  ;;  %v4545_v12 = vmax.f32 %v4481_v50, 0.0  ;;  %v4735_v9 = vadd.f32 %v4734_v47, %v4544_v11  ;;  %v4502_v18 = vadd.f32 %v6482_v6, %v4341_v26  ;;  %v7686_v47 = vld [vmem:[#allocation12_spill] sm:$0xff] }
 0x222   : > { %v4803_v41 = vadd.f32 %v4802_v42, %v4772_v53  ;;  %v6405_v22 = vpop.f32.mrf.mxu1  ;;  %v4493_v60 = vpop.f32.mrf.mxu0  ;;  %v4344_v49 = vadd.f32 %v6403_v17, %v7682_v4  ;;  %v4776_v10 = vmul.f32 %v4547_v38, %v4547_v38  ;;  %v7685_v53 = vld [vmem:[#allocation13_spill] sm:$0xff] }
 0x223   : > { %5963 = vst [vmem:[%s6860_s9 + $0x58] sm:$0xff] %v5916_v35   ;;  %v5911_v34 = vpack.c.bf16 %v4545_v12, %v4544_v11  ;;  %v4774_v7 = vmul.f32 %v4545_v12, %v4545_v12  ;;  %v4736_v36 = vadd.f32 %v4735_v9, %v4545_v12  ;;  %v4494_v45 = vadd.f32 %v4493_v60, %v4333_v40 }
 0x224   : > { %v4804_v51 = vadd.f32 %v4803_v41, %v4773_v59  ;;  %v6407_v23 = vpop.f32.mrf.mxu1  ;;  %v6483_v19 = vpop.f32.mrf.mxu0  ;;  %v6406_v27 = vadd.f32 %v6405_v22, %v6404_v44  ;;  %v4550_v39 = vmax.f32 %v4502_v18, 0.0 }
 0x225   : > { %5962 = vst [vmem:[%s6860_s9 + $0x50] sm:$0xff] %v5911_v34   ;;  %v4505_v15 = vadd.f32 %v6483_v19, %v4344_v49  ;;  %v4737_v57 = vadd.f32 %v4736_v36, %v4546_v2  ;;  %v4548_v55 = vmax.f32 %v4494_v45, 0.0 }
 0x226   : > { %v4805_v1 = vadd.f32 %v4804_v51, %v4774_v7  ;;  %v6408_v37 = vpop.f32.mrf.mxu1  ;;  %v4496_v3 = vpop.f32.mrf.mxu0  ;;  %v4349_v8 = vadd.f32 %v6406_v27, %v7684_v21  ;;  %v4779_v6 = vmul.f32 %v4550_v39, %v4550_v39 }
 0x227   : > { %v4551_v33 = vmax.f32 %v4505_v15, 0.0  ;;  %v4497_v56 = vadd.f32 %v4496_v3, %v4336_v16  ;;  %v4738_v54 = vadd.f32 %v4737_v57, %v4547_v38  ;;  %v6409_v24 = vadd.f32 %v6408_v37, %v6407_v23 }
 0x228   : > { %v4806_v46 = vadd.f32 %v4805_v1, %v4775_v5  ;;  %v6410_v52 = vpop.f32.mrf.mxu1  ;;  %v6486_v0 = vpop.f32.mrf.mxu0  ;;  %v4777_v13 = vmul.f32 %v4548_v55, %v4548_v55 }
 0x229   : > { %v5926_v25 = vpack.c.bf16 %v4551_v33, %v4550_v39  ;;  %v4549_v48 = vmax.f32 %v4497_v56, 0.0  ;;  %v4739_v29 = vadd.f32 %v4738_v54, %v4548_v55  ;;  %v4352_v44 = vadd.f32 %v6409_v24, %v7686_v47 }
 0x22a   : > { %v4807_v62 = vadd.f32 %v4806_v46, %v4776_v10  ;;  %v6411_v14 = vpop.f32.mrf.mxu1  ;;  %v4509_v32 = vpop.f32.mrf.mxu0  ;;  %v4780_v22 = vmul.f32 %v4551_v33, %v4551_v33 }
 0x22b   : > { %5965 = vst [vmem:[%s6860_s9 + $0x68] sm:$0xff] %v5926_v25   ;;  %v5921_v43 = vpack.c.bf16 %v4549_v48, %v4548_v55  ;;  %v4778_v11 = vmul.f32 %v4549_v48, %v4549_v48  ;;  %v6412_v20 = vadd.f32 %v6411_v14, %v6410_v52  ;;  %v4510_v63 = vadd.f32 %v4509_v32, %v4349_v8 }
 0x22c   : > { %v4808_v2 = vadd.f32 %v4807_v62, %v4777_v13  ;;  %v4740_v38 = vadd.f32 %v4739_v29, %v4549_v48  ;;  %v6413_v17 = vpop.f32.mrf.mxu1  ;;  %v6487_v50 = vpop.f32.mrf.mxu0 }
 0x22d   : > { %5964 = vst [vmem:[%s6860_s9 + $0x60] sm:$0xff] %v5921_v43   ;;  %v4357_v42 = vadd.f32 %v6412_v20, %v7685_v53  ;;  %v4552_v12 = vmax.f32 %v4510_v63, 0.0 }
 0x22e   : > { %v4741_v30 = vadd.f32 %v4740_v38, %v4550_v39  ;;  %v4809_v35 = vadd.f32 %v4808_v2, %v4778_v11  ;;  %v6414_v61 = vpop.f32.mrf.mxu1  ;;  %v4512_v26 = vpop.f32.mrf.mxu0 }
 0x22f   : > { %v4518_v9 = vadd.f32 %v6486_v0, %v4357_v42  ;;  %v6415_v59 = vadd.f32 %v6414_v61, %v6413_v17  ;;  %v4513_v41 = vadd.f32 %v4512_v26, %v4352_v44  ;;  %v4781_v4 = vmul.f32 %v4552_v12, %v4552_v12 }
 0x230   : > { %v4810_v31 = vadd.f32 %v4809_v35, %v4779_v6  ;;  %v4742_v40 = vadd.f32 %v4741_v30, %v4551_v33 }
 0x231   : > { %v4360_v60 = vadd.f32 %v6415_v59, %v7545_v58  ;;  %v4553_v34 = vmax.f32 %v4513_v41, 0.0  ;;  %v4554_v7 = vmax.f32 %v4518_v9, 0.0 }
 0x232   : > { %v4743_v18 = vadd.f32 %v4742_v40, %v4552_v12  ;;  %v4811_v49 = vadd.f32 %v4810_v31, %v4780_v22 }
 0x233   : > { %v4521_v51 = vadd.f32 %v6487_v50, %v4360_v60  ;;  %v5931_v36 = vpack.c.bf16 %v4553_v34, %v4552_v12  ;;  %v4782_v45 = vmul.f32 %v4553_v34, %v4553_v34  ;;  %v4783_v15 = vmul.f32 %v4554_v7, %v4554_v7 }
 0x234   : > { %v4812_v23 = vadd.f32 %v4811_v49, %v4781_v4  ;;  %v4744_v19 = vadd.f32 %v4743_v18, %v4553_v34 }
 0x235   : > { %v4555_v27 = vmax.f32 %v4521_v51, 0.0  ;;  %5966 = vst [vmem:[%s6860_s9 + $0x70] sm:$0xff] %v5931_v36  }
 0x236   : > { %v4745_v28 = vadd.f32 %v4744_v19, %v4554_v7  ;;  %v4813_v16 = vadd.f32 %v4812_v23, %v4782_v45 }
 0x237   : > { %v5936_v5 = vpack.c.bf16 %v4555_v27, %v4554_v7  ;;  %v4784_v57 = vmul.f32 %v4555_v27, %v4555_v27 }
 0x238   : > { %v4746_v1 = vadd.f32 %v4745_v28, %v4555_v27  ;;  %v4814_v58 = vadd.f32 %v4813_v16, %v4783_v15 }
 0x239   : > { %5967 = vst [vmem:[%s6860_s9 + $0x78] sm:$0xff] %v5936_v5  }
 0x23a   : > { %v4747_v55 = vrot.slane %v4746_v1, 4  ;;  %v4815_v37 = vadd.f32 %v4814_v58, %v4784_v57 }
 0x23c   : > { %v4748_v3 = vadd.f32 %v4747_v55, %v4746_v1  ;;  %v4816_v39 = vrot.slane %v4815_v37, 4 }
 0x23e   : > { %v4749_v33 = vrot.slane %v4748_v3, 2  ;;  %v4817_v56 = vadd.f32 %v4816_v39, %v4815_v37 }
 0x240   : > { %v4750_v10 = vadd.f32 %v4749_v33, %v4748_v3  ;;  %v4818_v46 = vrot.slane %v4817_v56, 2 }
 0x242   : > { %v4751_v54 = vrot.slane %v4750_v10, 1  ;;  %v4819_v52 = vadd.f32 %v4818_v46, %v4817_v56 }
 0x244   : > { %v4820_v0 = vrot.slane %v4819_v52, 1  ;;  %v4752_v25 = vadd.f32 %v4751_v54, %v4750_v10 }
 0x246   : > { %v4821_v24 = vadd.f32 %v4820_v0, %v4819_v52 }
 0x248   : > { %v4823_v48 = vsel %vm4822_vm0, %v4752_v25, %v4821_v24 }
 0x249   : > { %4824 = vst [vmem:[%s6865_s13] sm:$0x3] %v4823_v48 }
 0x24a PF: > { %s17_s21 = sadd.s32 1, %s6801_s21  }
 0x24b   : > { %p14_p5 = scmp.ge.s32.totalorder %s17_s21, 4  }
 0x24d   :  { %16 = sbr.rel (!%p14_p5) target bundleno = 1 (0x1), region = 91 }

</bundles_post_ra>
